<compile_context>
chip_gen: v6e
topology: v6e:2x2x1
jax: 0.10.0
libtpu: 0.0.40
codegen_flags: <defaults>
</compile_context>

<pallas_src>
import numpy as np

import jax
import jax.numpy as jnp
from jax.experimental import pallas as pl
from jax.experimental.pallas import tpu as pltpu


LANE = 128        # output-channel / hidden lane padding
Q1P = 200         # conv1 pooled pixels 196 -> padded to a multiple of 8
K1P = 128         # conv1 im2col K (5*5*3=75) -> padded to a full lane tile
N_TAP = 25        # conv2 5x5 kernel positions
GROUP_PAD = 32    # conv2 pooled pixels per pool group, 25 -> padded to 32

_VMEM_LIMIT_BYTES = 32 * 1024 * 1024   # fits v5e/v6e (128 MiB) and v7x (64 MiB)


def _round_up(x, m):
    return (x + m - 1) // m * m


def _compiler_params():
    return pltpu.CompilerParams(
        dimension_semantics=("parallel",),
        vmem_limit_bytes=_VMEM_LIMIT_BYTES,
    )


# ----------------------------- Pallas kernels ------------------------------ #

def _fused_conv_kernel(cols_ref, w1_ref, b1_ref, gsel_ref, w2_ref, b2_ref, o_ref):
    """Fused conv1 + bias + ReLU + pool + conv2 + bias + ReLU + pool, one image.

    cols_ref: (4*Q1P, K1P) bf16  conv1 im2col rows, pool-group major (r = g*Q1P + q).
    w1_ref:   (K1P, 128)  bf16   conv1 weights (K order kh,kw,ci), channels padded.
    b1_ref:   (1, 128)    f32
    gsel_ref: (25, 128, Q1P) bf16  one-hot row selectors building conv2 patches.
    w2_ref:   (25*128, 128) bf16   conv2 weights stacked tap-major (row = p*128+ci).
    b2_ref:   (1, 128)    f32
    o_ref:    (32, 128)   bf16   pooled conv2 output (row = pooled pixel, lane = ch).
    """
    ntap, _, q1p = gsel_ref.shape

    # conv1: one MXU matmul over all 4*Q1P pool-candidate rows.
    y = jnp.dot(cols_ref[...], w1_ref[...], preferred_element_type=jnp.float32)
    # 2x2 max-pool = max over the four aligned row groups; shared bias + ReLU
    # commute with the max, so they happen once, afterwards.
    y = jnp.maximum(jnp.maximum(y[0:q1p], y[q1p:2 * q1p]),
                    jnp.maximum(y[2 * q1p:3 * q1p], y[3 * q1p:4 * q1p]))
    h1 = jnp.maximum(y + b1_ref[...], 0.0).astype(jnp.bfloat16)      # (Q1P, 128)

    # conv2: build the patch matrix in VMEM via exact one-hot selection matmuls
    # (one per 5x5 tap), lane-concatenate, then a single MXU matmul.
    parts = [
        jnp.dot(gsel_ref[p], h1,
                preferred_element_type=jnp.float32).astype(jnp.bfloat16)
        for p in range(ntap)
    ]
    cols2 = jnp.concatenate(parts, axis=-1)                          # (128, 25*128)
    z = jnp.dot(cols2, w2_ref[...], preferred_element_type=jnp.float32)  # (128, 128)
    # rows are pool-group major (g*32 + pooled_pixel): pool = max of aligned slices.
    z = jnp.maximum(jnp.maximum(z[0:32], z[32:64]),
                    jnp.maximum(z[64:96], z[96:128]))
    o_ref[...] = jnp.maximum(z + b2_ref[...], 0.0).astype(o_ref.dtype)


def _mlp2_kernel(x_ref, w1_ref, b1_ref, w2_ref, b2_ref, o_ref):
    """Fused relu(relu(x@W1+b1)@W2+b2); the (TM,128) intermediate never hits HBM."""
    h = jnp.dot(x_ref[...], w1_ref[...], preferred_element_type=jnp.float32)
    h = jnp.maximum(h + b1_ref[...], 0.0).astype(jnp.bfloat16)
    y = jnp.dot(h, w2_ref[...], preferred_element_type=jnp.float32)
    o_ref[...] = jnp.maximum(y + b2_ref[...], 0.0).astype(o_ref.dtype)


# ------------------------------ kernel wrappers ----------------------------- #

def fused_convs(cols, w1, b1, gsel, w2, b2):
    """cols: (B, 4*Q1P, K1P) bf16 -> pooled conv2 output (B, 32, 128) bf16."""
    B, R, K = cols.shape
    assert R == 4 * Q1P and K == K1P
    flops = 2 * B * (R * K * LANE + N_TAP * LANE * Q1P * LANE
                     + LANE * (N_TAP * LANE) * LANE)
    bytes_accessed = int(cols.size * 2 + w1.size * 2 + gsel.size * 2 + w2.size * 2
                         + (b1.size + b2.size) * 4 + B * GROUP_PAD * LANE * 2)
    return pl.pallas_call(
        _fused_conv_kernel,
        out_shape=jax.ShapeDtypeStruct((B, GROUP_PAD, LANE), jnp.bfloat16),
        grid=(B,),
        in_specs=[
            pl.BlockSpec((None, R, K), lambda b: (b, 0, 0)),
            pl.BlockSpec(w1.shape, lambda b: (0, 0)),
            pl.BlockSpec(b1.shape, lambda b: (0, 0)),
            pl.BlockSpec(gsel.shape, lambda b: (0, 0, 0)),
            pl.BlockSpec(w2.shape, lambda b: (0, 0)),
            pl.BlockSpec(b2.shape, lambda b: (0, 0)),
        ],
        out_specs=pl.BlockSpec((None, GROUP_PAD, LANE), lambda b: (b, 0, 0)),
        compiler_params=_compiler_params(),
        cost_estimate=pl.CostEstimate(flops=int(flops), transcendentals=0,
                                      bytes_accessed=bytes_accessed),
    )(cols, w1, b1, gsel, w2, b2)


def _pick_row_tile(n):
    # Capped at 256 (v5e VMEM headroom); multiples of 8 keep stores unmasked.
    for t in (256, 128, 64, 32, 16, 8):
        if n % t == 0:
            return t
    return n  # full dim (allowed by the block rule)


def mlp2(x, w1, b1, w2, b2):
    """relu(relu(x@w1+b1)@w2+b2) with a row-tiled, batch-parallel grid."""
    B, K1 = x.shape
    N1, N2 = w1.shape[1], w2.shape[1]
    tm = _pick_row_tile(B)
    flops = 2 * B * (K1 * N1 + N1 * N2)
    bytes_accessed = int(x.size * 2 + w1.size * 2 + w2.size * 2
                         + (b1.size + b2.size) * 4 + B * N2 * 4)
    return pl.pallas_call(
        _mlp2_kernel,
        out_shape=jax.ShapeDtypeStruct((B, N2), jnp.float32),
        grid=(B // tm,),
        in_specs=[
            pl.BlockSpec((tm, K1), lambda i: (i, 0)),
            pl.BlockSpec((K1, N1), lambda i: (0, 0)),
            pl.BlockSpec((1, N1), lambda i: (0, 0)),
            pl.BlockSpec((N1, N2), lambda i: (0, 0)),
            pl.BlockSpec((1, N2), lambda i: (0, 0)),
        ],
        out_specs=pl.BlockSpec((tm, N2), lambda i: (i, 0)),
        compiler_params=_compiler_params(),
        cost_estimate=pl.CostEstimate(flops=int(flops), transcendentals=0,
                                      bytes_accessed=bytes_accessed),
    )(x, w1, b1, w2, b2)


# ------------------------------ host-side glue ------------------------------ #

def _im2col_pool_grouped(x, k):
    """NHWC x -> (B, 4, OHp*OWp, k*k*C) im2col, rows grouped by 2x2 pool window."""
    B, H, W, C = x.shape
    OH, OW = H - k + 1, W - k + 1
    OHp, OWp = OH // 2, OW // 2
    pats = [x[:, i:i + OH, j:j + OW, :] for i in range(k) for j in range(k)]
    cols = jnp.concatenate(pats, axis=-1)                 # (B, OH, OW, k*k*C)
    cols = cols[:, :2 * OHp, :2 * OWp, :]                 # floor-pool like nn.MaxPool2d
    cols = cols.reshape(B, OHp, 2, OWp, 2, k * k * C)
    cols = cols.transpose(0, 2, 4, 1, 3, 5)               # (B, dh, dw, OHp, OWp, K)
    return cols.reshape(B, 4, OHp * OWp, k * k * C)


def _conv2_selectors():
    """One-hot selectors that build the conv2 im2col patches inside the kernel.

    gsel[p, r, col] = 1 with p = kh*5+kw (tap), r = pool_group*32 + (ohp*5+owp),
    col = (2*ohp+dh+kh)*14 + (2*owp+dw+kw)  (the conv1-pooled 14x14 pixel feeding
    that tap).  Exact 0/1 values, so bf16 selection matmuls are exact gathers.
    """
    g = np.zeros((N_TAP, LANE, Q1P), np.float32)
    for kh in range(5):
        for kw in range(5):
            p = kh * 5 + kw
            for dh in range(2):
                for dw in range(2):
                    grp = dh * 2 + dw
                    for ohp in range(5):
                        for owp in range(5):
                            r = grp * GROUP_PAD + ohp * 5 + owp
                            col = (2 * ohp + dh + kh) * 14 + (2 * owp + dw + kw)
                            g[p, r, col] = 1.0
    return jnp.asarray(g, jnp.bfloat16)


def prepare_params(params):
    """One-time repack of PyTorch-layout parameters into kernel-ready matrices."""
    f32, bf16 = jnp.float32, jnp.bfloat16

    # conv1: (6,3,5,5) -> (K1P, 128); K order (kh, kw, ci) matches the im2col.
    co1 = params["conv1_b"].shape[0]
    w1 = jnp.transpose(params["conv1_w"], (2, 3, 1, 0)).reshape(75, co1)
    w1 = jnp.pad(w1, ((0, K1P - 75), (0, LANE - co1))).astype(bf16)
    b1 = jnp.pad(params["conv1_b"], (0, LANE - co1)).reshape(1, LANE).astype(f32)

    # conv2: (16,6,5,5) -> (25*128, 128) stacked tap-major (row = (kh*5+kw)*128+ci).
    co2, ci2 = params["conv2_w"].shape[:2]
    w2 = jnp.transpose(params["conv2_w"], (2, 3, 1, 0))            # (5,5,ci,co)
    w2 = jnp.pad(w2, ((0, 0), (0, 0), (0, LANE - ci2), (0, LANE - co2)))
    w2 = w2.reshape(N_TAP * LANE, LANE).astype(bf16)
    b2 = jnp.pad(params["conv2_b"], (0, LANE - co2)).reshape(1, LANE).astype(f32)

    # fc1 consumes the fused-conv output flattened as s*128 + c (s = pooled 5x5
    # pixel, rows 25..31 padding; c = conv2 channel, lanes 16..127 padding).
    # PyTorch flattens NCHW (16,5,5) as c*25 + s; fold that permutation + all the
    # zero padding into the fc1 weight once, so padded/junk lanes contribute 0.
    h1d = params["fc1_w"].shape[1]
    h2d = params["fc2_w"].shape[1]
    n1 = _round_up(h1d, LANE)
    n2 = _round_up(h2d, LANE)
    wf1 = params["fc1_w"].reshape(co2, N_TAP, h1d)                   # [c, s, h]
    wf1 = jnp.pad(wf1, ((0, LANE - co2), (0, GROUP_PAD - N_TAP), (0, n1 - h1d)))
    wf1 = jnp.transpose(wf1, (1, 0, 2)).reshape(GROUP_PAD * LANE, n1).astype(bf16)
    bf1 = jnp.pad(params["fc1_b"], (0, n1 - h1d)).reshape(1, n1).astype(f32)
    wf2 = jnp.pad(params["fc2_w"], ((0, n1 - h1d), (0, n2 - h2d))).astype(bf16)
    bf2 = jnp.pad(params["fc2_b"], (0, n2 - h2d)).reshape(1, n2).astype(f32)

    return {"c1_w": w1, "c1_b": b1, "c2_w": w2, "c2_b": b2,
            "gsel": _conv2_selectors(),
            "fc1_w": wf1, "fc1_b": bf1, "fc2_w": wf2, "fc2_b": bf2}


# --------------------------- model: SimpleCNN_header ------------------------ #

def init_params(key, input_dim=400, hidden_dims=(120, 84)):
    ks = jax.random.split(key, 8)

    def u(k, shape, fan_in):
        bound = 1.0 / jnp.sqrt(fan_in)
        return jax.random.uniform(k, shape, jnp.float32, -bound, bound)

    return {
        "conv1_w": u(ks[0], (6, 3, 5, 5), 3 * 25),
        "conv1_b": u(ks[1], (6,), 3 * 25),
        "conv2_w": u(ks[2], (16, 6, 5, 5), 6 * 25),
        "conv2_b": u(ks[3], (16,), 6 * 25),
        "fc1_w":  u(ks[4], (input_dim, hidden_dims[0]), input_dim),
        "fc1_b":  u(ks[5], (hidden_dims[0],), input_dim),
        "fc2_w":  u(ks[6], (hidden_dims[0], hidden_dims[1]), hidden_dims[0]),
        "fc2_b":  u(ks[7], (hidden_dims[1],), hidden_dims[0]),
    }


def simple_cnn_header_forward(params, x_nchw):
    """x_nchw: (B, 3, 32, 32) float32 -> (B, hidden_dims[1])."""
    prep = prepare_params(params)
    B = x_nchw.shape[0]
    h2d = params["fc2_b"].shape[0]

    x = jnp.transpose(x_nchw, (0, 2, 3, 1))                    # NHWC once, at the input
    cols = _im2col_pool_grouped(x, 5)                          # (B, 4, 196, 75)
    # TODO(synk): conv1 im2col still runs as XLA glue; building it in-kernel from
    # the raw ~12 KB/img NHWC image needs C=3 lane relayouts that are not worth the
    # lowering risk at these shapes (bf16 + lane-padded cols is the safe fallback).
    cols = jnp.pad(cols, ((0, 0), (0, 0),
                          (0, Q1P - cols.shape[2]), (0, K1P - cols.shape[3])))
    cols = cols.reshape(B, 4 * Q1P, K1P).astype(jnp.bfloat16)  # pool-group-major rows

    pooled = fused_convs(cols, prep["c1_w"], prep["c1_b"], prep["gsel"],
                         prep["c2_w"], prep["c2_b"])           # (B, 32, 128) bf16
    xf = pooled.reshape(B, GROUP_PAD * LANE)                   # layout-only flatten
    y = mlp2(xf, prep["fc1_w"], prep["fc1_b"], prep["fc2_w"], prep["fc2_b"])
    return y[:, :h2d]


# --------------------------- pure-JAX reference ------------------------------ #

def _ref_forward(params, x):
    def conv(x, w, b):
        y = jax.lax.conv_general_dilated(
            x, w, window_strides=(1, 1), padding="VALID",
            dimension_numbers=("NCHW", "OIHW", "NCHW"))
        return jax.nn.relu(y + b[None, :, None, None])

    def pool(x):
        return jax.lax.reduce_window(
            x, -jnp.inf, jax.lax.max, (1, 1, 2, 2), (1, 1, 2, 2), "VALID")

    x = pool(conv(x, params["conv1_w"], params["conv1_b"]))
    x = pool(conv(x, params["conv2_w"], params["conv2_b"]))
    x = x.reshape(-1, 400)
    x = jax.nn.relu(x @ params["fc1_w"] + params["fc1_b"])
    x = jax.nn.relu(x @ params["fc2_w"] + params["fc2_b"])
    return x


if __name__ == "__main__":
    key = jax.random.PRNGKey(0)
    kp, kx = jax.random.split(key)

    # Spatial size must be 32 so the flatten to 16*5*5=400 matches the module.
    B = 2
    x = jax.random.normal(kx, (B, 3, 32, 32), jnp.float32)
    params = init_params(kp, input_dim=400, hidden_dims=(120, 84))

    fwd = jax.jit(simple_cnn_header_forward)
    out = jax.block_until_ready(fwd(params, x))

    ref = jax.block_until_ready(_ref_forward(params, x))
    assert out.shape == (B, 84), out.shape
    # bf16 streamed activations/weights (f32 accumulation) -> loosened tolerance.
    assert jnp.allclose(out, ref, atol=3e-2, rtol=3e-2), \
        float(jnp.max(jnp.abs(out - ref)))

    print("KERNEL_OK")
</pallas_src>

<mosaic_0001>
module attributes {stable_mosaic.version = 11 : i64} {
  func.func @_fused_conv_kernel(%arg0: i32, %arg1: memref<1x800x128xbf16, #tpu.memory_space<vmem>>, %arg2: memref<128x128xbf16, #tpu.memory_space<vmem>>, %arg3: memref<1x128xf32, #tpu.memory_space<vmem>>, %arg4: memref<25x128x200xbf16, #tpu.memory_space<vmem>>, %arg5: memref<3200x128xbf16, #tpu.memory_space<vmem>>, %arg6: memref<1x128xf32, #tpu.memory_space<vmem>>, %arg7: memref<1x32x128xbf16, #tpu.memory_space<vmem>>) attributes {dimension_semantics = [#tpu.dimension_semantics<parallel>], iteration_bounds = array<i64: 2>, scalar_prefetch = 0 : i64, scratch_operands = 0 : i64, tpu.core_type = #tpu.core_type<tc>, window_params = [{transform_indices = @transform_0, window_bounds = array<i64: 1, 800, 128>}, {pipeline_mode = #tpu.pipeline_mode<synchronous>, transform_indices = @transform_1, window_bounds = array<i64: 128, 128>}, {pipeline_mode = #tpu.pipeline_mode<synchronous>, transform_indices = @transform_2, window_bounds = array<i64: 1, 128>}, {pipeline_mode = #tpu.pipeline_mode<synchronous>, transform_indices = @transform_3, window_bounds = array<i64: 25, 128, 200>}, {pipeline_mode = #tpu.pipeline_mode<synchronous>, transform_indices = @transform_4, window_bounds = array<i64: 3200, 128>}, {pipeline_mode = #tpu.pipeline_mode<synchronous>, transform_indices = @transform_5, window_bounds = array<i64: 1, 128>}, {transform_indices = @transform_6, window_bounds = array<i64: 1, 32, 128>}]} {
    %c0 = arith.constant 0 : index
    %c0_0 = arith.constant 0 : index
    %c0_1 = arith.constant 0 : index
    %0 = vector.load %arg1[%c0, %c0_0, %c0_1] : memref<1x800x128xbf16, #tpu.memory_space<vmem>>, vector<1x800x128xbf16>
    %1 = vector.shape_cast %0 : vector<1x800x128xbf16> to vector<800x128xbf16>
    %c0_2 = arith.constant 0 : index
    %c0_3 = arith.constant 0 : index
    %2 = vector.load %arg2[%c0_2, %c0_3] : memref<128x128xbf16, #tpu.memory_space<vmem>>, vector<128x128xbf16>
    %cst = arith.constant dense<0.000000e+00> : vector<800x128xf32>
    %3 = tpu.matmul %1, %2, %cst {dimension_numbers = #tpu.dot_dimension_numbers<[1], [0], [0], [1], [0, 0, 1, 1], [], []>} : vector<800x128xbf16>, vector<128x128xbf16>, vector<800x128xf32> -> vector<800x128xf32>
    %4 = vector.extract_strided_slice %3 {offsets = [0, 0], sizes = [200, 128], strides = [1, 1]} : vector<800x128xf32> to vector<200x128xf32>
    %5 = vector.extract_strided_slice %3 {offsets = [200, 0], sizes = [200, 128], strides = [1, 1]} : vector<800x128xf32> to vector<200x128xf32>
    %6 = arith.maximumf %4, %5 : vector<200x128xf32>
    %7 = vector.extract_strided_slice %3 {offsets = [400, 0], sizes = [200, 128], strides = [1, 1]} : vector<800x128xf32> to vector<200x128xf32>
    %8 = vector.extract_strided_slice %3 {offsets = [600, 0], sizes = [200, 128], strides = [1, 1]} : vector<800x128xf32> to vector<200x128xf32>
    %9 = arith.maximumf %7, %8 : vector<200x128xf32>
    %10 = arith.maximumf %6, %9 : vector<200x128xf32>
    %c0_4 = arith.constant 0 : index
    %c0_5 = arith.constant 0 : index
    %11 = vector.load %arg3[%c0_4, %c0_5] : memref<1x128xf32, #tpu.memory_space<vmem>>, vector<1x128xf32>
    %12 = vector.broadcast %11 : vector<1x128xf32> to vector<200x128xf32>
    %13 = arith.addf %10, %12 : vector<200x128xf32>
    %cst_6 = arith.constant 0.000000e+00 : f32
    %14 = vector.broadcast %cst_6 : f32 to vector<200x128xf32>
    %15 = arith.maximumf %13, %14 : vector<200x128xf32>
    %16 = arith.truncf %15 : vector<200x128xf32> to vector<200x128xbf16>
    %c0_7 = arith.constant 0 : index
    %c0_8 = arith.constant 0 : index
    %c0_9 = arith.constant 0 : index
    %17 = vector.load %arg4[%c0_7, %c0_8, %c0_9] : memref<25x128x200xbf16, #tpu.memory_space<vmem>>, vector<1x128x200xbf16>
    %18 = vector.shape_cast %17 : vector<1x128x200xbf16> to vector<128x200xbf16>
    %cst_10 = arith.constant dense<0.000000e+00> : vector<128x128xf32>
    %19 = tpu.matmul %18, %16, %cst_10 {dimension_numbers = #tpu.dot_dimension_numbers<[1], [0], [0], [1], [0, 0, 1, 1], [], []>} : vector<128x200xbf16>, vector<200x128xbf16>, vector<128x128xf32> -> vector<128x128xf32>
    %20 = arith.truncf %19 : vector<128x128xf32> to vector<128x128xbf16>
    %c1 = arith.constant 1 : index
    %c0_11 = arith.constant 0 : index
    %c0_12 = arith.constant 0 : index
    %21 = vector.load %arg4[%c1, %c0_11, %c0_12] : memref<25x128x200xbf16, #tpu.memory_space<vmem>>, vector<1x128x200xbf16>
    %22 = vector.shape_cast %21 : vector<1x128x200xbf16> to vector<128x200xbf16>
    %cst_13 = arith.constant dense<0.000000e+00> : vector<128x128xf32>
    %23 = tpu.matmul %22, %16, %cst_13 {dimension_numbers = #tpu.dot_dimension_numbers<[1], [0], [0], [1], [0, 0, 1, 1], [], []>} : vector<128x200xbf16>, vector<200x128xbf16>, vector<128x128xf32> -> vector<128x128xf32>
    %24 = arith.truncf %23 : vector<128x128xf32> to vector<128x128xbf16>
    %c2 = arith.constant 2 : index
    %c0_14 = arith.constant 0 : index
    %c0_15 = arith.constant 0 : index
    %25 = vector.load %arg4[%c2, %c0_14, %c0_15] : memref<25x128x200xbf16, #tpu.memory_space<vmem>>, vector<1x128x200xbf16>
    %26 = vector.shape_cast %25 : vector<1x128x200xbf16> to vector<128x200xbf16>
    %cst_16 = arith.constant dense<0.000000e+00> : vector<128x128xf32>
    %27 = tpu.matmul %26, %16, %cst_16 {dimension_numbers = #tpu.dot_dimension_numbers<[1], [0], [0], [1], [0, 0, 1, 1], [], []>} : vector<128x200xbf16>, vector<200x128xbf16>, vector<128x128xf32> -> vector<128x128xf32>
    %28 = arith.truncf %27 : vector<128x128xf32> to vector<128x128xbf16>
    %c3 = arith.constant 3 : index
    %c0_17 = arith.constant 0 : index
    %c0_18 = arith.constant 0 : index
    %29 = vector.load %arg4[%c3, %c0_17, %c0_18] : memref<25x128x200xbf16, #tpu.memory_space<vmem>>, vector<1x128x200xbf16>
    %30 = vector.shape_cast %29 : vector<1x128x200xbf16> to vector<128x200xbf16>
    %cst_19 = arith.constant dense<0.000000e+00> : vector<128x128xf32>
    %31 = tpu.matmul %30, %16, %cst_19 {dimension_numbers = #tpu.dot_dimension_numbers<[1], [0], [0], [1], [0, 0, 1, 1], [], []>} : vector<128x200xbf16>, vector<200x128xbf16>, vector<128x128xf32> -> vector<128x128xf32>
    %32 = arith.truncf %31 : vector<128x128xf32> to vector<128x128xbf16>
    %c4 = arith.constant 4 : index
    %c0_20 = arith.constant 0 : index
    %c0_21 = arith.constant 0 : index
    %33 = vector.load %arg4[%c4, %c0_20, %c0_21] : memref<25x128x200xbf16, #tpu.memory_space<vmem>>, vector<1x128x200xbf16>
    %34 = vector.shape_cast %33 : vector<1x128x200xbf16> to vector<128x200xbf16>
    %cst_22 = arith.constant dense<0.000000e+00> : vector<128x128xf32>
    %35 = tpu.matmul %34, %16, %cst_22 {dimension_numbers = #tpu.dot_dimension_numbers<[1], [0], [0], [1], [0, 0, 1, 1], [], []>} : vector<128x200xbf16>, vector<200x128xbf16>, vector<128x128xf32> -> vector<128x128xf32>
    %36 = arith.truncf %35 : vector<128x128xf32> to vector<128x128xbf16>
    %c5 = arith.constant 5 : index
    %c0_23 = arith.constant 0 : index
    %c0_24 = arith.constant 0 : index
    %37 = vector.load %arg4[%c5, %c0_23, %c0_24] : memref<25x128x200xbf16, #tpu.memory_space<vmem>>, vector<1x128x200xbf16>
    %38 = vector.shape_cast %37 : vector<1x128x200xbf16> to vector<128x200xbf16>
    %cst_25 = arith.constant dense<0.000000e+00> : vector<128x128xf32>
    %39 = tpu.matmul %38, %16, %cst_25 {dimension_numbers = #tpu.dot_dimension_numbers<[1], [0], [0], [1], [0, 0, 1, 1], [], []>} : vector<128x200xbf16>, vector<200x128xbf16>, vector<128x128xf32> -> vector<128x128xf32>
    %40 = arith.truncf %39 : vector<128x128xf32> to vector<128x128xbf16>
    %c6 = arith.constant 6 : index
    %c0_26 = arith.constant 0 : index
    %c0_27 = arith.constant 0 : index
    %41 = vector.load %arg4[%c6, %c0_26, %c0_27] : memref<25x128x200xbf16, #tpu.memory_space<vmem>>, vector<1x128x200xbf16>
    %42 = vector.shape_cast %41 : vector<1x128x200xbf16> to vector<128x200xbf16>
    %cst_28 = arith.constant dense<0.000000e+00> : vector<128x128xf32>
    %43 = tpu.matmul %42, %16, %cst_28 {dimension_numbers = #tpu.dot_dimension_numbers<[1], [0], [0], [1], [0, 0, 1, 1], [], []>} : vector<128x200xbf16>, vector<200x128xbf16>, vector<128x128xf32> -> vector<128x128xf32>
    %44 = arith.truncf %43 : vector<128x128xf32> to vector<128x128xbf16>
    %c7 = arith.constant 7 : index
    %c0_29 = arith.constant 0 : index
    %c0_30 = arith.constant 0 : index
    %45 = vector.load %arg4[%c7, %c0_29, %c0_30] : memref<25x128x200xbf16, #tpu.memory_space<vmem>>, vector<1x128x200xbf16>
    %46 = vector.shape_cast %45 : vector<1x128x200xbf16> to vector<128x200xbf16>
    %cst_31 = arith.constant dense<0.000000e+00> : vector<128x128xf32>
    %47 = tpu.matmul %46, %16, %cst_31 {dimension_numbers = #tpu.dot_dimension_numbers<[1], [0], [0], [1], [0, 0, 1, 1], [], []>} : vector<128x200xbf16>, vector<200x128xbf16>, vector<128x128xf32> -> vector<128x128xf32>
    %48 = arith.truncf %47 : vector<128x128xf32> to vector<128x128xbf16>
    %c8 = arith.constant 8 : index
    %c0_32 = arith.constant 0 : index
    %c0_33 = arith.constant 0 : index
    %49 = vector.load %arg4[%c8, %c0_32, %c0_33] : memref<25x128x200xbf16, #tpu.memory_space<vmem>>, vector<1x128x200xbf16>
    %50 = vector.shape_cast %49 : vector<1x128x200xbf16> to vector<128x200xbf16>
    %cst_34 = arith.constant dense<0.000000e+00> : vector<128x128xf32>
    %51 = tpu.matmul %50, %16, %cst_34 {dimension_numbers = #tpu.dot_dimension_numbers<[1], [0], [0], [1], [0, 0, 1, 1], [], []>} : vector<128x200xbf16>, vector<200x128xbf16>, vector<128x128xf32> -> vector<128x128xf32>
    %52 = arith.truncf %51 : vector<128x128xf32> to vector<128x128xbf16>
    %c9 = arith.constant 9 : index
    %c0_35 = arith.constant 0 : index
    %c0_36 = arith.constant 0 : index
    %53 = vector.load %arg4[%c9, %c0_35, %c0_36] : memref<25x128x200xbf16, #tpu.memory_space<vmem>>, vector<1x128x200xbf16>
    %54 = vector.shape_cast %53 : vector<1x128x200xbf16> to vector<128x200xbf16>
    %cst_37 = arith.constant dense<0.000000e+00> : vector<128x128xf32>
    %55 = tpu.matmul %54, %16, %cst_37 {dimension_numbers = #tpu.dot_dimension_numbers<[1], [0], [0], [1], [0, 0, 1, 1], [], []>} : vector<128x200xbf16>, vector<200x128xbf16>, vector<128x128xf32> -> vector<128x128xf32>
    %56 = arith.truncf %55 : vector<128x128xf32> to vector<128x128xbf16>
    %c10 = arith.constant 10 : index
    %c0_38 = arith.constant 0 : index
    %c0_39 = arith.constant 0 : index
    %57 = vector.load %arg4[%c10, %c0_38, %c0_39] : memref<25x128x200xbf16, #tpu.memory_space<vmem>>, vector<1x128x200xbf16>
    %58 = vector.shape_cast %57 : vector<1x128x200xbf16> to vector<128x200xbf16>
    %cst_40 = arith.constant dense<0.000000e+00> : vector<128x128xf32>
    %59 = tpu.matmul %58, %16, %cst_40 {dimension_numbers = #tpu.dot_dimension_numbers<[1], [0], [0], [1], [0, 0, 1, 1], [], []>} : vector<128x200xbf16>, vector<200x128xbf16>, vector<128x128xf32> -> vector<128x128xf32>
    %60 = arith.truncf %59 : vector<128x128xf32> to vector<128x128xbf16>
    %c11 = arith.constant 11 : index
    %c0_41 = arith.constant 0 : index
    %c0_42 = arith.constant 0 : index
    %61 = vector.load %arg4[%c11, %c0_41, %c0_42] : memref<25x128x200xbf16, #tpu.memory_space<vmem>>, vector<1x128x200xbf16>
    %62 = vector.shape_cast %61 : vector<1x128x200xbf16> to vector<128x200xbf16>
    %cst_43 = arith.constant dense<0.000000e+00> : vector<128x128xf32>
    %63 = tpu.matmul %62, %16, %cst_43 {dimension_numbers = #tpu.dot_dimension_numbers<[1], [0], [0], [1], [0, 0, 1, 1], [], []>} : vector<128x200xbf16>, vector<200x128xbf16>, vector<128x128xf32> -> vector<128x128xf32>
    %64 = arith.truncf %63 : vector<128x128xf32> to vector<128x128xbf16>
    %c12 = arith.constant 12 : index
    %c0_44 = arith.constant 0 : index
    %c0_45 = arith.constant 0 : index
    %65 = vector.load %arg4[%c12, %c0_44, %c0_45] : memref<25x128x200xbf16, #tpu.memory_space<vmem>>, vector<1x128x200xbf16>
    %66 = vector.shape_cast %65 : vector<1x128x200xbf16> to vector<128x200xbf16>
    %cst_46 = arith.constant dense<0.000000e+00> : vector<128x128xf32>
    %67 = tpu.matmul %66, %16, %cst_46 {dimension_numbers = #tpu.dot_dimension_numbers<[1], [0], [0], [1], [0, 0, 1, 1], [], []>} : vector<128x200xbf16>, vector<200x128xbf16>, vector<128x128xf32> -> vector<128x128xf32>
    %68 = arith.truncf %67 : vector<128x128xf32> to vector<128x128xbf16>
    %c13 = arith.constant 13 : index
    %c0_47 = arith.constant 0 : index
    %c0_48 = arith.constant 0 : index
    %69 = vector.load %arg4[%c13, %c0_47, %c0_48] : memref<25x128x200xbf16, #tpu.memory_space<vmem>>, vector<1x128x200xbf16>
    %70 = vector.shape_cast %69 : vector<1x128x200xbf16> to vector<128x200xbf16>
    %cst_49 = arith.constant dense<0.000000e+00> : vector<128x128xf32>
    %71 = tpu.matmul %70, %16, %cst_49 {dimension_numbers = #tpu.dot_dimension_numbers<[1], [0], [0], [1], [0, 0, 1, 1], [], []>} : vector<128x200xbf16>, vector<200x128xbf16>, vector<128x128xf32> -> vector<128x128xf32>
    %72 = arith.truncf %71 : vector<128x128xf32> to vector<128x128xbf16>
    %c14 = arith.constant 14 : index
    %c0_50 = arith.constant 0 : index
    %c0_51 = arith.constant 0 : index
    %73 = vector.load %arg4[%c14, %c0_50, %c0_51] : memref<25x128x200xbf16, #tpu.memory_space<vmem>>, vector<1x128x200xbf16>
    %74 = vector.shape_cast %73 : vector<1x128x200xbf16> to vector<128x200xbf16>
    %cst_52 = arith.constant dense<0.000000e+00> : vector<128x128xf32>
    %75 = tpu.matmul %74, %16, %cst_52 {dimension_numbers = #tpu.dot_dimension_numbers<[1], [0], [0], [1], [0, 0, 1, 1], [], []>} : vector<128x200xbf16>, vector<200x128xbf16>, vector<128x128xf32> -> vector<128x128xf32>
    %76 = arith.truncf %75 : vector<128x128xf32> to vector<128x128xbf16>
    %c15 = arith.constant 15 : index
    %c0_53 = arith.constant 0 : index
    %c0_54 = arith.constant 0 : index
    %77 = vector.load %arg4[%c15, %c0_53, %c0_54] : memref<25x128x200xbf16, #tpu.memory_space<vmem>>, vector<1x128x200xbf16>
    %78 = vector.shape_cast %77 : vector<1x128x200xbf16> to vector<128x200xbf16>
    %cst_55 = arith.constant dense<0.000000e+00> : vector<128x128xf32>
    %79 = tpu.matmul %78, %16, %cst_55 {dimension_numbers = #tpu.dot_dimension_numbers<[1], [0], [0], [1], [0, 0, 1, 1], [], []>} : vector<128x200xbf16>, vector<200x128xbf16>, vector<128x128xf32> -> vector<128x128xf32>
    %80 = arith.truncf %79 : vector<128x128xf32> to vector<128x128xbf16>
    %c16 = arith.constant 16 : index
    %c0_56 = arith.constant 0 : index
    %c0_57 = arith.constant 0 : index
    %81 = vector.load %arg4[%c16, %c0_56, %c0_57] : memref<25x128x200xbf16, #tpu.memory_space<vmem>>, vector<1x128x200xbf16>
    %82 = vector.shape_cast %81 : vector<1x128x200xbf16> to vector<128x200xbf16>
    %cst_58 = arith.constant dense<0.000000e+00> : vector<128x128xf32>
    %83 = tpu.matmul %82, %16, %cst_58 {dimension_numbers = #tpu.dot_dimension_numbers<[1], [0], [0], [1], [0, 0, 1, 1], [], []>} : vector<128x200xbf16>, vector<200x128xbf16>, vector<128x128xf32> -> vector<128x128xf32>
    %84 = arith.truncf %83 : vector<128x128xf32> to vector<128x128xbf16>
    %c17 = arith.constant 17 : index
    %c0_59 = arith.constant 0 : index
    %c0_60 = arith.constant 0 : index
    %85 = vector.load %arg4[%c17, %c0_59, %c0_60] : memref<25x128x200xbf16, #tpu.memory_space<vmem>>, vector<1x128x200xbf16>
    %86 = vector.shape_cast %85 : vector<1x128x200xbf16> to vector<128x200xbf16>
    %cst_61 = arith.constant dense<0.000000e+00> : vector<128x128xf32>
    %87 = tpu.matmul %86, %16, %cst_61 {dimension_numbers = #tpu.dot_dimension_numbers<[1], [0], [0], [1], [0, 0, 1, 1], [], []>} : vector<128x200xbf16>, vector<200x128xbf16>, vector<128x128xf32> -> vector<128x128xf32>
    %88 = arith.truncf %87 : vector<128x128xf32> to vector<128x128xbf16>
    %c18 = arith.constant 18 : index
    %c0_62 = arith.constant 0 : index
    %c0_63 = arith.constant 0 : index
    %89 = vector.load %arg4[%c18, %c0_62, %c0_63] : memref<25x128x200xbf16, #tpu.memory_space<vmem>>, vector<1x128x200xbf16>
    %90 = vector.shape_cast %89 : vector<1x128x200xbf16> to vector<128x200xbf16>
    %cst_64 = arith.constant dense<0.000000e+00> : vector<128x128xf32>
    %91 = tpu.matmul %90, %16, %cst_64 {dimension_numbers = #tpu.dot_dimension_numbers<[1], [0], [0], [1], [0, 0, 1, 1], [], []>} : vector<128x200xbf16>, vector<200x128xbf16>, vector<128x128xf32> -> vector<128x128xf32>
    %92 = arith.truncf %91 : vector<128x128xf32> to vector<128x128xbf16>
    %c19 = arith.constant 19 : index
    %c0_65 = arith.constant 0 : index
    %c0_66 = arith.constant 0 : index
    %93 = vector.load %arg4[%c19, %c0_65, %c0_66] : memref<25x128x200xbf16, #tpu.memory_space<vmem>>, vector<1x128x200xbf16>
    %94 = vector.shape_cast %93 : vector<1x128x200xbf16> to vector<128x200xbf16>
    %cst_67 = arith.constant dense<0.000000e+00> : vector<128x128xf32>
    %95 = tpu.matmul %94, %16, %cst_67 {dimension_numbers = #tpu.dot_dimension_numbers<[1], [0], [0], [1], [0, 0, 1, 1], [], []>} : vector<128x200xbf16>, vector<200x128xbf16>, vector<128x128xf32> -> vector<128x128xf32>
    %96 = arith.truncf %95 : vector<128x128xf32> to vector<128x128xbf16>
    %c20 = arith.constant 20 : index
    %c0_68 = arith.constant 0 : index
    %c0_69 = arith.constant 0 : index
    %97 = vector.load %arg4[%c20, %c0_68, %c0_69] : memref<25x128x200xbf16, #tpu.memory_space<vmem>>, vector<1x128x200xbf16>
    %98 = vector.shape_cast %97 : vector<1x128x200xbf16> to vector<128x200xbf16>
    %cst_70 = arith.constant dense<0.000000e+00> : vector<128x128xf32>
    %99 = tpu.matmul %98, %16, %cst_70 {dimension_numbers = #tpu.dot_dimension_numbers<[1], [0], [0], [1], [0, 0, 1, 1], [], []>} : vector<128x200xbf16>, vector<200x128xbf16>, vector<128x128xf32> -> vector<128x128xf32>
    %100 = arith.truncf %99 : vector<128x128xf32> to vector<128x128xbf16>
    %c21 = arith.constant 21 : index
    %c0_71 = arith.constant 0 : index
    %c0_72 = arith.constant 0 : index
    %101 = vector.load %arg4[%c21, %c0_71, %c0_72] : memref<25x128x200xbf16, #tpu.memory_space<vmem>>, vector<1x128x200xbf16>
    %102 = vector.shape_cast %101 : vector<1x128x200xbf16> to vector<128x200xbf16>
    %cst_73 = arith.constant dense<0.000000e+00> : vector<128x128xf32>
    %103 = tpu.matmul %102, %16, %cst_73 {dimension_numbers = #tpu.dot_dimension_numbers<[1], [0], [0], [1], [0, 0, 1, 1], [], []>} : vector<128x200xbf16>, vector<200x128xbf16>, vector<128x128xf32> -> vector<128x128xf32>
    %104 = arith.truncf %103 : vector<128x128xf32> to vector<128x128xbf16>
    %c22 = arith.constant 22 : index
    %c0_74 = arith.constant 0 : index
    %c0_75 = arith.constant 0 : index
    %105 = vector.load %arg4[%c22, %c0_74, %c0_75] : memref<25x128x200xbf16, #tpu.memory_space<vmem>>, vector<1x128x200xbf16>
    %106 = vector.shape_cast %105 : vector<1x128x200xbf16> to vector<128x200xbf16>
    %cst_76 = arith.constant dense<0.000000e+00> : vector<128x128xf32>
    %107 = tpu.matmul %106, %16, %cst_76 {dimension_numbers = #tpu.dot_dimension_numbers<[1], [0], [0], [1], [0, 0, 1, 1], [], []>} : vector<128x200xbf16>, vector<200x128xbf16>, vector<128x128xf32> -> vector<128x128xf32>
    %108 = arith.truncf %107 : vector<128x128xf32> to vector<128x128xbf16>
    %c23 = arith.constant 23 : index
    %c0_77 = arith.constant 0 : index
    %c0_78 = arith.constant 0 : index
    %109 = vector.load %arg4[%c23, %c0_77, %c0_78] : memref<25x128x200xbf16, #tpu.memory_space<vmem>>, vector<1x128x200xbf16>
    %110 = vector.shape_cast %109 : vector<1x128x200xbf16> to vector<128x200xbf16>
    %cst_79 = arith.constant dense<0.000000e+00> : vector<128x128xf32>
    %111 = tpu.matmul %110, %16, %cst_79 {dimension_numbers = #tpu.dot_dimension_numbers<[1], [0], [0], [1], [0, 0, 1, 1], [], []>} : vector<128x200xbf16>, vector<200x128xbf16>, vector<128x128xf32> -> vector<128x128xf32>
    %112 = arith.truncf %111 : vector<128x128xf32> to vector<128x128xbf16>
    %c24 = arith.constant 24 : index
    %c0_80 = arith.constant 0 : index
    %c0_81 = arith.constant 0 : index
    %113 = vector.load %arg4[%c24, %c0_80, %c0_81] : memref<25x128x200xbf16, #tpu.memory_space<vmem>>, vector<1x128x200xbf16>
    %114 = vector.shape_cast %113 : vector<1x128x200xbf16> to vector<128x200xbf16>
    %cst_82 = arith.constant dense<0.000000e+00> : vector<128x128xf32>
    %115 = tpu.matmul %114, %16, %cst_82 {dimension_numbers = #tpu.dot_dimension_numbers<[1], [0], [0], [1], [0, 0, 1, 1], [], []>} : vector<128x200xbf16>, vector<200x128xbf16>, vector<128x128xf32> -> vector<128x128xf32>
    %116 = arith.truncf %115 : vector<128x128xf32> to vector<128x128xbf16>
    %117 = tpu.concatenate %20, %24, %28, %32, %36, %40, %44, %48, %52, %56, %60, %64, %68, %72, %76, %80 in 1 : vector<128x128xbf16>, vector<128x128xbf16>, vector<128x128xbf16>, vector<128x128xbf16>, vector<128x128xbf16>, vector<128x128xbf16>, vector<128x128xbf16>, vector<128x128xbf16>, vector<128x128xbf16>, vector<128x128xbf16>, vector<128x128xbf16>, vector<128x128xbf16>, vector<128x128xbf16>, vector<128x128xbf16>, vector<128x128xbf16>, vector<128x128xbf16> -> vector<128x2048xbf16>
    %118 = tpu.concatenate %84, %88, %92, %96, %100, %104, %108, %112, %116 in 1 : vector<128x128xbf16>, vector<128x128xbf16>, vector<128x128xbf16>, vector<128x128xbf16>, vector<128x128xbf16>, vector<128x128xbf16>, vector<128x128xbf16>, vector<128x128xbf16>, vector<128x128xbf16> -> vector<128x1152xbf16>
    %119 = tpu.concatenate %117, %118 in 1 : vector<128x2048xbf16>, vector<128x1152xbf16> -> vector<128x3200xbf16>
    %c0_83 = arith.constant 0 : index
    %c0_84 = arith.constant 0 : index
    %120 = vector.load %arg5[%c0_83, %c0_84] : memref<3200x128xbf16, #tpu.memory_space<vmem>>, vector<3200x128xbf16>
    %cst_85 = arith.constant dense<0.000000e+00> : vector<128x128xf32>
    %121 = tpu.matmul %119, %120, %cst_85 {dimension_numbers = #tpu.dot_dimension_numbers<[1], [0], [0], [1], [0, 0, 1, 1], [], []>} : vector<128x3200xbf16>, vector<3200x128xbf16>, vector<128x128xf32> -> vector<128x128xf32>
    %122 = vector.extract_strided_slice %121 {offsets = [0, 0], sizes = [32, 128], strides = [1, 1]} : vector<128x128xf32> to vector<32x128xf32>
    %123 = vector.extract_strided_slice %121 {offsets = [32, 0], sizes = [32, 128], strides = [1, 1]} : vector<128x128xf32> to vector<32x128xf32>
    %124 = arith.maximumf %122, %123 : vector<32x128xf32>
    %125 = vector.extract_strided_slice %121 {offsets = [64, 0], sizes = [32, 128], strides = [1, 1]} : vector<128x128xf32> to vector<32x128xf32>
    %126 = vector.extract_strided_slice %121 {offsets = [96, 0], sizes = [32, 128], strides = [1, 1]} : vector<128x128xf32> to vector<32x128xf32>
    %127 = arith.maximumf %125, %126 : vector<32x128xf32>
    %128 = arith.maximumf %124, %127 : vector<32x128xf32>
    %c0_86 = arith.constant 0 : index
    %c0_87 = arith.constant 0 : index
    %129 = vector.load %arg6[%c0_86, %c0_87] : memref<1x128xf32, #tpu.memory_space<vmem>>, vector<1x128xf32>
    %130 = vector.broadcast %129 : vector<1x128xf32> to vector<32x128xf32>
    %131 = arith.addf %128, %130 : vector<32x128xf32>
    %cst_88 = arith.constant 0.000000e+00 : f32
    %132 = vector.broadcast %cst_88 : f32 to vector<32x128xf32>
    %133 = arith.maximumf %131, %132 : vector<32x128xf32>
    %134 = arith.truncf %133 : vector<32x128xf32> to vector<32x128xbf16>
    %c0_89 = arith.constant 0 : index
    %c0_90 = arith.constant 0 : index
    %c0_91 = arith.constant 0 : index
    %135 = vector.load %arg7[%c0_89, %c0_90, %c0_91] : memref<1x32x128xbf16, #tpu.memory_space<vmem>>, vector<1x32x128xbf16>
    %136 = vector.shape_cast %135 : vector<1x32x128xbf16> to vector<32x128xbf16>
    %137 = vector.shape_cast %134 : vector<32x128xbf16> to vector<1x32x128xbf16>
    tpu.vector_store %arg7[%c0_89, %c0_90, %c0_91], %137 {strides = array<i32>} : memref<1x32x128xbf16, #tpu.memory_space<vmem>>, vector<1x32x128xbf16>,
    return
  }
  func.func @transform_0(%arg0: i32) -> (i32, i32, i32) {
    %c0_i32 = arith.constant 0 : i32
    %c0_i32_0 = arith.constant 0 : i32
    %c0_i32_1 = arith.constant 0 : i32
    return %arg0, %c0_i32, %c0_i32_0 : i32, i32, i32
  }
  func.func @transform_1(%arg0: i32) -> (i32, i32) {
    %c0_i32 = arith.constant 0 : i32
    %c0_i32_0 = arith.constant 0 : i32
    %c0_i32_1 = arith.constant 0 : i32
    return %c0_i32, %c0_i32_0 : i32, i32
  }
  func.func @transform_2(%arg0: i32) -> (i32, i32) {
    %c0_i32 = arith.constant 0 : i32
    %c0_i32_0 = arith.constant 0 : i32
    %c0_i32_1 = arith.constant 0 : i32
    return %c0_i32, %c0_i32_0 : i32, i32
  }
  func.func @transform_3(%arg0: i32) -> (i32, i32, i32) {
    %c0_i32 = arith.constant 0 : i32
    %c0_i32_0 = arith.constant 0 : i32
    %c0_i32_1 = arith.constant 0 : i32
    %c0_i32_2 = arith.constant 0 : i32
    return %c0_i32, %c0_i32_0, %c0_i32_1 : i32, i32, i32
  }
  func.func @transform_4(%arg0: i32) -> (i32, i32) {
    %c0_i32 = arith.constant 0 : i32
    %c0_i32_0 = arith.constant 0 : i32
    %c0_i32_1 = arith.constant 0 : i32
    return %c0_i32, %c0_i32_0 : i32, i32
  }
  func.func @transform_5(%arg0: i32) -> (i32, i32) {
    %c0_i32 = arith.constant 0 : i32
    %c0_i32_0 = arith.constant 0 : i32
    %c0_i32_1 = arith.constant 0 : i32
    return %c0_i32, %c0_i32_0 : i32, i32
  }
  func.func @transform_6(%arg0: i32) -> (i32, i32, i32) {
    %c0_i32 = arith.constant 0 : i32
    %c0_i32_0 = arith.constant 0 : i32
    %c0_i32_1 = arith.constant 0 : i32
    return %arg0, %c0_i32, %c0_i32_0 : i32, i32, i32
  }
}

module attributes {stable_mosaic.version = 11 : i64} {
  func.func @_mlp2_kernel(%arg0: i32, %arg1: memref<2x4096xbf16, #tpu.memory_space<vmem>>, %arg2: memref<4096x128xbf16, #tpu.memory_space<vmem>>, %arg3: memref<1x128xf32, #tpu.memory_space<vmem>>, %arg4: memref<128x128xbf16, #tpu.memory_space<vmem>>, %arg5: memref<1x128xf32, #tpu.memory_space<vmem>>, %arg6: memref<2x128xf32, #tpu.memory_space<vmem>>) attributes {dimension_semantics = [#tpu.dimension_semantics<parallel>], iteration_bounds = array<i64: 1>, scalar_prefetch = 0 : i64, scratch_operands = 0 : i64, tpu.core_type = #tpu.core_type<tc>, window_params = [{transform_indices = @transform_0, window_bounds = array<i64: 2, 4096>}, {pipeline_mode = #tpu.pipeline_mode<synchronous>, transform_indices = @transform_1, window_bounds = array<i64: 4096, 128>}, {pipeline_mode = #tpu.pipeline_mode<synchronous>, transform_indices = @transform_2, window_bounds = array<i64: 1, 128>}, {pipeline_mode = #tpu.pipeline_mode<synchronous>, transform_indices = @transform_3, window_bounds = array<i64: 128, 128>}, {pipeline_mode = #tpu.pipeline_mode<synchronous>, transform_indices = @transform_4, window_bounds = array<i64: 1, 128>}, {transform_indices = @transform_5, window_bounds = array<i64: 2, 128>}]} {
    %c0 = arith.constant 0 : index
    %c0_0 = arith.constant 0 : index
    %0 = vector.load %arg1[%c0, %c0_0] : memref<2x4096xbf16, #tpu.memory_space<vmem>>, vector<2x4096xbf16>
    %c0_1 = arith.constant 0 : index
    %c0_2 = arith.constant 0 : index
    %1 = vector.load %arg2[%c0_1, %c0_2] : memref<4096x128xbf16, #tpu.memory_space<vmem>>, vector<4096x128xbf16>
    %cst = arith.constant dense<0.000000e+00> : vector<2x128xf32>
    %2 = tpu.matmul %0, %1, %cst {dimension_numbers = #tpu.dot_dimension_numbers<[1], [0], [0], [1], [0, 0, 1, 1], [], []>} : vector<2x4096xbf16>, vector<4096x128xbf16>, vector<2x128xf32> -> vector<2x128xf32>
    %c0_3 = arith.constant 0 : index
    %c0_4 = arith.constant 0 : index
    %3 = vector.load %arg3[%c0_3, %c0_4] : memref<1x128xf32, #tpu.memory_space<vmem>>, vector<1x128xf32>
    %4 = vector.broadcast %3 : vector<1x128xf32> to vector<2x128xf32>
    %5 = arith.addf %2, %4 : vector<2x128xf32>
    %cst_5 = arith.constant 0.000000e+00 : f32
    %6 = vector.broadcast %cst_5 : f32 to vector<2x128xf32>
    %7 = arith.maximumf %5, %6 : vector<2x128xf32>
    %8 = arith.truncf %7 : vector<2x128xf32> to vector<2x128xbf16>
    %c0_6 = arith.constant 0 : index
    %c0_7 = arith.constant 0 : index
    %9 = vector.load %arg4[%c0_6, %c0_7] : memref<128x128xbf16, #tpu.memory_space<vmem>>, vector<128x128xbf16>
    %cst_8 = arith.constant dense<0.000000e+00> : vector<2x128xf32>
    %10 = tpu.matmul %8, %9, %cst_8 {dimension_numbers = #tpu.dot_dimension_numbers<[1], [0], [0], [1], [0, 0, 1, 1], [], []>} : vector<2x128xbf16>, vector<128x128xbf16>, vector<2x128xf32> -> vector<2x128xf32>
    %c0_9 = arith.constant 0 : index
    %c0_10 = arith.constant 0 : index
    %11 = vector.load %arg5[%c0_9, %c0_10] : memref<1x128xf32, #tpu.memory_space<vmem>>, vector<1x128xf32>
    %12 = vector.broadcast %11 : vector<1x128xf32> to vector<2x128xf32>
    %13 = arith.addf %10, %12 : vector<2x128xf32>
    %cst_11 = arith.constant 0.000000e+00 : f32
    %14 = vector.broadcast %cst_11 : f32 to vector<2x128xf32>
    %15 = arith.maximumf %13, %14 : vector<2x128xf32>
    %c0_12 = arith.constant 0 : index
    %c0_13 = arith.constant 0 : index
    %16 = vector.load %arg6[%c0_12, %c0_13] : memref<2x128xf32, #tpu.memory_space<vmem>>, vector<2x128xf32>
    tpu.vector_store %arg6[%c0_12, %c0_13], %15 {strides = array<i32>} : memref<2x128xf32, #tpu.memory_space<vmem>>, vector<2x128xf32>,
    return
  }
  func.func @transform_0(%arg0: i32) -> (i32, i32) {
    %c0_i32 = arith.constant 0 : i32
    %c0_i32_0 = arith.constant 0 : i32
    return %arg0, %c0_i32 : i32, i32
  }
  func.func @transform_1(%arg0: i32) -> (i32, i32) {
    %c0_i32 = arith.constant 0 : i32
    %c0_i32_0 = arith.constant 0 : i32
    %c0_i32_1 = arith.constant 0 : i32
    return %c0_i32, %c0_i32_0 : i32, i32
  }
  func.func @transform_2(%arg0: i32) -> (i32, i32) {
    %c0_i32 = arith.constant 0 : i32
    %c0_i32_0 = arith.constant 0 : i32
    %c0_i32_1 = arith.constant 0 : i32
    return %c0_i32, %c0_i32_0 : i32, i32
  }
  func.func @transform_3(%arg0: i32) -> (i32, i32) {
    %c0_i32 = arith.constant 0 : i32
    %c0_i32_0 = arith.constant 0 : i32
    %c0_i32_1 = arith.constant 0 : i32
    return %c0_i32, %c0_i32_0 : i32, i32
  }
  func.func @transform_4(%arg0: i32) -> (i32, i32) {
    %c0_i32 = arith.constant 0 : i32
    %c0_i32_0 = arith.constant 0 : i32
    %c0_i32_1 = arith.constant 0 : i32
    return %c0_i32, %c0_i32_0 : i32, i32
  }
  func.func @transform_5(%arg0: i32) -> (i32, i32) {
    %c0_i32 = arith.constant 0 : i32
    %c0_i32_0 = arith.constant 0 : i32
    return %arg0, %c0_i32 : i32, i32
  }
}

</mosaic_0001>

<bundles_post_ra>
// kernel: simple_cnn_header_forward.2
= control target key start
LH: loop header
LB: loop body
LE: loop exit
PB: predicated region body
PF: predicated region fallthrough
CT: control target
= control target key end

     0   :  { %s12911_s21 = smov 0   ;;  %s18379_s0 = inlined_call_operand.vmem [shape: bf16[2,800,128], index: 0, kind: input, shape index: {}]   ;;  %s18380_s1 = inlined_call_operand.vmem [shape: bf16[128,128], index: 1, kind: input, shape index: {}]   ;;  %s18381_s2 = inlined_call_operand.vmem [shape: f32[1,128], index: 2, kind: input, shape index: {}]   ;;  %s18382_s3 = inlined_call_operand.vmem [shape: bf16[25,128,200], index: 3, kind: input, shape index: {}]   ;;  %s18383_s4 = inlined_call_operand.vmem [shape: bf16[3200,128], index: 4, kind: input, shape index: {}]   ;;  %s18384_s5 = inlined_call_operand.vmem [shape: f32[1,128], index: 5, kind: input, shape index: {}]   ;;  %s18385_s6 = inlined_call_operand.vmem [shape: bf16[2,32,128], index: 6, kind: output, shape index: {}]  }
   0x1 LB: > { %s9712_s22 = sadd.s32 4294967295, %s12873_s21   ;;  %p9716_p0 = scmp.ge.s32.totalorder %s12873_s21, 1  ;;  %s12873_s21 = sphi %s12911_s21, %s16_s21  }
   0x2   : > { %p212_p1 = scmp.lt.s32.totalorder %s12873_s21, 3 }
   0x4   : > { %p213_p2 = pnand %p9716_p0, %p212_p1 }
   0x6   : > { %216 = sbr.rel (%p213_p2) target bundleno = 1975 (0x7b7), region = 44 }
   0xb   : > { %v12002_v0 = vld [vmem:[%s18380_s1 + $0x38] sm:$0xff]   ;;  %p242_p3 = scmp.lt.s32.totalorder %s9712_s22, 1  ;;  %v12003_v1 = vld [vmem:[%s18380_s1 + $0x30] sm:$0xff]   ;;  %v12004_v2 = vld [vmem:[%s18380_s1 + $0x28] sm:$0xff]   ;;  %vm1383_vm0 = vcmask 588800   ;;  %vm1408_vm1 = vcmask 1043456  }
   0xc   : > { %11828 = vmatprep.subr.bf16.mxu0 %v12002_v0  ;;  %v12005_v3 = vld [vmem:[%s18380_s1 + $0x20] sm:$0xff]   ;;  %v12006_v5 = vld [vmem:[%s18380_s1 + $0x18] sm:$0xff]   ;;  %v12007_v6 = vld [vmem:[%s18380_s1 + $0x10] sm:$0xff]  }
   0xd   : > { %s19604_s22 = smov (!%p242_p3, %s9712_s22), 1  ;;  %11829 = vmatpush3.bf16.msra.mxu0 %v12002_v0  ;;  %v12008_v7 = vld [vmem:[%s18380_s1 + $0x8] sm:$0xff]   ;;  %v12009_v8 = vld [vmem:[%s18380_s1] sm:$0xff]  }
   0xe   : > { %11830 = vmatprep.subr.bf16.mxu0 %v12003_v1  ;;  %s11992_s29 = smul.u32 400, %s19604_s22 }
  0x10   : > { %s12934_s8 = scalar_lea.vmem %s18379_s0, %s11992_s29  ;;  %s10970_s29 = sshll.u32 %s19604_s22, 4 }
  0x11   : > { %11831 = vmatpush3.bf16.msra.mxu0 %v12003_v1  ;;  %v12010_v4 = vld [vmem:[%s12934_s8] sm:$0xff]   ;;  %v12011_v9 = vld [vmem:[%s12934_s8 + $0x8] sm:$0xff]   ;;  %v12012_v10 = vld [vmem:[%s12934_s8 + $0x10] sm:$0xff]  }
  0x12   : > { %11832 = vmatprep.subr.bf16.mxu0 %v12004_v2  ;;  %11844 = vmatprep.mubr.bf16.mxu0 %v12010_v4  ;;  %v12013_v11 = vld [vmem:[%s12934_s8 + $0x18] sm:$0xff]   ;;  %v12014_v12 = vld [vmem:[%s12934_s8 + $0x20] sm:$0xff]   ;;  %v12015_v13 = vld [vmem:[%s12934_s8 + $0x28] sm:$0xff]  }
  0x13   : > { %v12016_v14 = vld [vmem:[%s12934_s8 + $0x30] sm:$0xff]   ;;  %v12017_v15 = vld [vmem:[%s12934_s8 + $0x38] sm:$0xff]   ;;  %v12018_v16 = vld [vmem:[%s12934_s8 + $0x40] sm:$0xff]  }
  0x14   : > { %v12019_v17 = vld [vmem:[%s12934_s8 + $0x48] sm:$0xff]   ;;  %v12020_v18 = vld [vmem:[%s12934_s8 + $0x50] sm:$0xff]   ;;  %v12021_v19 = vld [vmem:[%s12934_s8 + $0x58] sm:$0xff]  }
  0x15   : > { %11833 = vmatpush3.bf16.msra.mxu0 %v12004_v2  ;;  %v12022_v20 = vld [vmem:[%s12934_s8 + $0x60] sm:$0xff]   ;;  %v12023_v21 = vld [vmem:[%s12934_s8 + $0x68] sm:$0xff]   ;;  %v12024_v22 = vld [vmem:[%s12934_s8 + $0x70] sm:$0xff]  }
  0x16   : > { %11834 = vmatprep.subr.bf16.mxu0 %v12005_v3  ;;  %v12025_v23 = vld [vmem:[%s12934_s8 + $0x78] sm:$0xff]   ;;  %v12026_v24 = vld [vmem:[%s12934_s8 + $0x80] sm:$0xff]   ;;  %v12027_v25 = vld [vmem:[%s12934_s8 + $0x88] sm:$0xff]  }
  0x17   : > { %v12028_v26 = vld [vmem:[%s12934_s8 + $0x90] sm:$0xff]   ;;  %v12029_v27 = vld [vmem:[%s12934_s8 + $0x98] sm:$0xff]   ;;  %v12030_v28 = vld [vmem:[%s12934_s8 + $0xa0] sm:$0xff]  }
  0x18   : > { %v12031_v29 = vld [vmem:[%s12934_s8 + $0xa8] sm:$0xff]   ;;  %v12032_v30 = vld [vmem:[%s12934_s8 + $0xb0] sm:$0xff]   ;;  %v12033_v31 = vld [vmem:[%s12934_s8 + $0xb8] sm:$0xff]  }
  0x19   : > { %11835 = vmatpush3.bf16.msra.mxu0 %v12005_v3  ;;  %v12034_v32 = vld [vmem:[%s12934_s8 + $0xc0] sm:$0xff]   ;;  %v12035_v33 = vld [vmem:[%s12934_s8 + $0xc8] sm:$0xff]   ;;  %v12036_v34 = vld [vmem:[%s12934_s8 + $0xd0] sm:$0xff]  }
  0x1a   : > { %11836 = vmatprep.subr.bf16.mxu0 %v12006_v5  ;;  %v12037_v35 = vld [vmem:[%s12934_s8 + $0xd8] sm:$0xff]   ;;  %v12038_v36 = vld [vmem:[%s12934_s8 + $0xe0] sm:$0xff]   ;;  %v12039_v37 = vld [vmem:[%s12934_s8 + $0xe8] sm:$0xff]  }
  0x1b   : > { %v12040_v38 = vld [vmem:[%s12934_s8 + $0xf0] sm:$0xff]   ;;  %v12041_v39 = vld [vmem:[%s12934_s8 + $0xf8] sm:$0xff]   ;;  %v12042_v40 = vld [vmem:[%s12934_s8 + $0x100] sm:$0xff]  }
  0x1c   : > { %v12043_v41 = vld [vmem:[%s12934_s8 + $0x108] sm:$0xff]   ;;  %v12044_v42 = vld [vmem:[%s12934_s8 + $0x110] sm:$0xff]   ;;  %v12045_v43 = vld [vmem:[%s12934_s8 + $0x118] sm:$0xff]  }
  0x1d   : > { %11837 = vmatpush3.bf16.msra.mxu0 %v12006_v5  ;;  %v12046_v44 = vld [vmem:[%s12934_s8 + $0x120] sm:$0xff]   ;;  %v12047_v45 = vld [vmem:[%s12934_s8 + $0x128] sm:$0xff]   ;;  %v12048_v46 = vld [vmem:[%s12934_s8 + $0x130] sm:$0xff]  }
  0x1e   : > { %11838 = vmatprep.subr.bf16.mxu0 %v12007_v6  ;;  %v12049_v47 = vld [vmem:[%s12934_s8 + $0x138] sm:$0xff]   ;;  %v12050_v48 = vld [vmem:[%s12934_s8 + $0x140] sm:$0xff]   ;;  %v12051_v49 = vld [vmem:[%s12934_s8 + $0x148] sm:$0xff]  }
  0x1f   : > { %v12052_v50 = vld [vmem:[%s12934_s8 + $0x150] sm:$0xff]   ;;  %v12053_v51 = vld [vmem:[%s12934_s8 + $0x158] sm:$0xff]   ;;  %v12054_v52 = vld [vmem:[%s12934_s8 + $0x160] sm:$0xff]  }
  0x20   : > { %v12055_v53 = vld [vmem:[%s12934_s8 + $0x168] sm:$0xff]   ;;  %v12056_v54 = vld [vmem:[%s12934_s8 + $0x170] sm:$0xff]   ;;  %v12057_v55 = vld [vmem:[%s12934_s8 + $0x178] sm:$0xff]  }
  0x21   : > { %11839 = vmatpush3.bf16.msra.mxu0 %v12007_v6  ;;  %v12058_v56 = vld [vmem:[%s12934_s8 + $0x180] sm:$0xff]   ;;  %v12059_v57 = vld [vmem:[%s12934_s8 + $0x188] sm:$0xff]   ;;  %s251_s8 = scalar_lea.vmem %s18385_s6, %s10970_s29 }
  0x22   : > { %11840 = vmatprep.subr.bf16.mxu0 %v12008_v7 }
  0x25   : > { %11841 = vmatpush3.bf16.msra.mxu0 %v12008_v7 }
  0x26   : > { %11842 = vmatprep.subr.bf16.mxu0 %v12009_v8 }
  0x29   : > { %11843 = vmatpush3.bf16.msra.mxu0 %v12009_v8 }
  0x2c   : > { %11845 = vmatmul.mubr.bf16.vlgmr.msra.gmra.mxu0 %v12011_v9 }
  0x2d   : > { %11848 = vmatprep.mubr.bf16.mxu0 %v12012_v10 }
  0x34   : > { %11849 = vmatmul.mubr.bf16.gmra.mxu0 %v12013_v11 }
  0x35   : > { %11852 = vmatprep.mubr.bf16.mxu0 %v12014_v12 }
  0x3c   : > { %11853 = vmatmul.mubr.bf16.gmra.mxu0 %v12015_v13 }
  0x3d   : > { %11856 = vmatprep.mubr.bf16.mxu0 %v12016_v14 }
  0x44   : > { %11857 = vmatmul.mubr.bf16.gmra.mxu0 %v12017_v15 }
  0x45   : > { %11860 = vmatprep.mubr.bf16.mxu0 %v12018_v16 }
  0x4c   : > { %11861 = vmatmul.mubr.bf16.gmra.mxu0 %v12019_v17 }
  0x4d   : > { %11864 = vmatprep.mubr.bf16.mxu0 %v12020_v18 }
  0x54   : > { %11865 = vmatmul.mubr.bf16.gmra.mxu0 %v12021_v19 }
  0x55   : > { %11868 = vmatprep.mubr.bf16.mxu0 %v12022_v20 }
  0x5c   : > { %11869 = vmatmul.mubr.bf16.gmra.mxu0 %v12023_v21 }
  0x5d   : > { %11872 = vmatprep.mubr.bf16.mxu0 %v12024_v22 }
  0x64   : > { %11873 = vmatmul.mubr.bf16.gmra.mxu0 %v12025_v23 }
  0x65   : > { %11876 = vmatprep.mubr.bf16.mxu0 %v12026_v24 }
  0x6c   : > { %11877 = vmatmul.mubr.bf16.gmra.mxu0 %v12027_v25 }
  0x6d   : > { %11880 = vmatprep.mubr.bf16.mxu0 %v12028_v26 }
  0x74   : > { %11881 = vmatmul.mubr.bf16.gmra.mxu0 %v12029_v27 }
  0x75   : > { %11884 = vmatprep.mubr.bf16.mxu0 %v12030_v28 }
  0x7c   : > { %11885 = vmatmul.mubr.bf16.gmra.mxu0 %v12031_v29 }
  0x7d   : > { %11888 = vmatprep.mubr.bf16.mxu0 %v12032_v30  ;;  %v18386_v30 = vmov 0  }
  0x7e   : > { %1412 = vmatprep.subr.bf16.mxu1 %v18386_v30  ;;  %2066 = vmatprep.subr.bf16.mxu0 %v18386_v30 }
  0x84   : > { %11889 = vmatmul.mubr.bf16.gmra.mxu0 %v12033_v31 }
  0x85   : > { %11892 = vmatprep.mubr.bf16.mxu0 %v12034_v32 }
  0x8c   : > { %11893 = vmatmul.mubr.bf16.gmra.mxu0 %v12035_v33 }
  0x8d   : > { %11896 = vmatprep.mubr.bf16.mxu0 %v12036_v34 }
  0x94   : > { %11897 = vmatmul.mubr.bf16.gmra.mxu0 %v12037_v35 }
  0x95   : > { %11900 = vmatprep.mubr.bf16.mxu0 %v12038_v36 }
  0x9c   : > { %11901 = vmatmul.mubr.bf16.gmra.mxu0 %v12039_v37 }
  0x9d   : > { %11904 = vmatprep.mubr.bf16.mxu0 %v12040_v38 }
  0xa4   : > { %11905 = vmatmul.mubr.bf16.gmra.mxu0 %v12041_v39 }
  0xa5   : > { %11908 = vmatprep.mubr.bf16.mxu0 %v12042_v40 }
  0xac   : > { %11909 = vmatmul.mubr.bf16.gmra.mxu0 %v12043_v41 }
  0xad   : > { %11912 = vmatprep.mubr.bf16.mxu0 %v12044_v42 }
  0xb4   : > { %11913 = vmatmul.mubr.bf16.gmra.mxu0 %v12045_v43 }
  0xb5   : > { %11916 = vmatprep.mubr.bf16.mxu0 %v12046_v44 }
  0xbc   : > { %11917 = vmatmul.mubr.bf16.gmra.mxu0 %v12047_v45 }
  0xbd   : > { %11920 = vmatprep.mubr.bf16.mxu0 %v12048_v46 }
  0xc4   : > { %11921 = vmatmul.mubr.bf16.gmra.mxu0 %v12049_v47 }
  0xc5   : > { %11924 = vmatprep.mubr.bf16.mxu0 %v12050_v48 }
  0xcc   : > { %11925 = vmatmul.mubr.bf16.gmra.mxu0 %v12051_v49 }
  0xcd   : > { %11928 = vmatprep.mubr.bf16.mxu0 %v12052_v50 }
  0xd4   : > { %11929 = vmatmul.mubr.bf16.gmra.mxu0 %v12053_v51 }
  0xd5   : > { %11932 = vmatprep.mubr.bf16.mxu0 %v12054_v52  ;;  %v12062_v52 = vld [vmem:[%s18382_s3 + $0x4] ss:$8 sps:$4 sm:$0xff]  }
  0xd6   : > { %9795 = vmatprep.mubr.msk.bf16.mxu1 %vm1383_vm0, %v12062_v52 }
  0xdc   : > { %11933 = vmatmul.mubr.bf16.gmra.mxu0 %v12055_v53 }
  0xdd   : > { %11936 = vmatprep.mubr.bf16.mxu0 %v12056_v54 }
  0xe4   : > { %11937 = vmatmul.mubr.bf16.gmra.mxu0 %v12057_v55 }
  0xe5   : > { %11940 = vmatprep.mubr.bf16.mxu0 %v12058_v56  ;;  %v12065_v56 = vld [vmem:[%s18382_s3 + $0x184] ss:$8 sps:$4 sm:$0xff]  }
  0xec   : > { %v13001_v58 = vpop.f32.mrf.mxu0  ;;  %11941 = vmatmul.mubr.bf16.gmra.mxu0 %v12059_v57 }
  0xed   : > { %9915 = vmatprep.mubr.msk.bf16.mxu0 %vm1383_vm0, %v12065_v56 }
  0xee   : > { %v13003_v59 = vpop.f32.mrf.mxu0 }
  0xf0   : > { %v13005_v60 = vpop.f32.mrf.mxu0 }
  0xf2   : > { %v13007_v61 = vpop.f32.mrf.mxu0 }
  0xf4   : > { %v13009_v62 = vpop.f32.mrf.mxu0 }
  0xf6   : > { %v13011_v63 = vpop.f32.mrf.mxu0 }
  0xf8   : > { %v13013_v0 = vpop.f32.mrf.mxu0 }
  0xfa   : > { %v13015_v1 = vpop.f32.mrf.mxu0 }
  0xfc   : > { %v13017_v2 = vpop.f32.mrf.mxu0 }
  0xfe   : > { %v13019_v3 = vpop.f32.mrf.mxu0 }
 0x100   : > { %v13021_v4 = vpop.f32.mrf.mxu0 }
 0x102   : > { %v13023_v5 = vpop.f32.mrf.mxu0 }
 0x104   : > { %v13025_v6 = vpop.f32.mrf.mxu0 }
 0x106   : > { %v13027_v7 = vpop.f32.mrf.mxu0 }
 0x108   : > { %v13029_v8 = vpop.f32.mrf.mxu0 }
 0x10a   : > { %v13031_v9 = vpop.f32.mrf.mxu0 }
 0x10c   : > { %v13033_v10 = vpop.f32.mrf.mxu0 }
 0x10d   : > { %18696 = vst [vmem:[#allocation2_spill] sm:$0xff] %v13033_v10 }
 0x10e   : > { %v13035_v11 = vpop.f32.mrf.mxu0 }
 0x110   : > { %v13037_v12 = vpop.f32.mrf.mxu0 }
 0x111   : > { %18697 = vst [vmem:[#allocation3_spill] sm:$0xff] %v13037_v12 }
 0x112   : > { %v13039_v13 = vpop.f32.mrf.mxu0 }
 0x113   : > { %18698 = vst [vmem:[#allocation4_spill] sm:$0xff] %v13039_v13 }
 0x114   : > { %v13041_v14 = vpop.f32.mrf.mxu0 }
 0x115   : > { %18699 = vst [vmem:[#allocation5_spill] sm:$0xff] %v13041_v14 }
 0x116   : > { %v13043_v15 = vpop.f32.mrf.mxu0 }
 0x117   : > { %18700 = vst [vmem:[#allocation6_spill] sm:$0xff] %v13043_v15 }
 0x118   : > { %v13045_v16 = vpop.f32.mrf.mxu0 }
 0x119   : > { %18701 = vst [vmem:[#allocation7_spill] sm:$0xff] %v13045_v16 }
 0x11a   : > { %v13047_v17 = vpop.f32.mrf.mxu0 }
 0x11b   : > { %18702 = vst [vmem:[#allocation8_spill] sm:$0xff] %v13047_v17 }
 0x11c   : > { %v13049_v18 = vpop.f32.mrf.mxu0 }
 0x11e   : > { %v13051_v19 = vpop.f32.mrf.mxu0 }
 0x11f   : > { %18703 = vst [vmem:[#allocation9_spill] sm:$0xff] %v13051_v19 }
 0x120   : > { %v13053_v20 = vpop.f32.mrf.mxu0 }
 0x122   : > { %v13057_v22 = vpop.f32.mrf.mxu0 }
 0x124   : > { %v13059_v23 = vpop.f32.mrf.mxu0 }
 0x126   : > { %v13061_v24 = vpop.f32.mrf.mxu0 }
 0x128   : > { %v13065_v26 = vpop.f32.mrf.mxu0 }
 0x12a   : > { %v13069_v28 = vpop.f32.mrf.mxu0 }
 0x12c   : > { %v13071_v29 = vpop.f32.mrf.mxu0 }
 0x12e   : > { %v13075_v31 = vpop.f32.mrf.mxu0 }
 0x130   : > { %v13079_v33 = vpop.f32.mrf.mxu0 }
 0x132   : > { %v13083_v35 = vpop.f32.mrf.mxu0 }
 0x134   : > { %v13085_v36 = vpop.f32.mrf.mxu0 }
 0x136   : > { %v13087_v37 = vpop.f32.mrf.mxu0 }
 0x138   : > { %v13091_v39 = vpop.f32.mrf.mxu0 }
 0x139   : > { %18704 = vst [vmem:[#allocation10_spill] sm:$0xff] %v13091_v39 }
 0x13a   : > { %v13095_v41 = vpop.f32.mrf.mxu0 }
 0x13c   : > { %v13097_v42 = vpop.f32.mrf.mxu0 }
 0x13d   : > { %18705 = vst [vmem:[#allocation11_spill] sm:$0xff] %v13097_v42 }
 0x13e   : > { %v13099_v43 = vpop.f32.mrf.mxu0 }
 0x140   : > { %v13103_v45 = vpop.f32.mrf.mxu0 }
 0x141   : > { %18706 = vst [vmem:[#allocation12_spill] sm:$0xff] %v13103_v45 }
 0x142   : > { %v13107_v47 = vpop.f32.mrf.mxu0 }
 0x144   : > { %v13109_v48 = vpop.f32.mrf.mxu0 }
 0x145   : > { %18707 = vst [vmem:[#allocation13_spill] sm:$0xff] %v13109_v48 }
 0x146   : > { %v13111_v49 = vpop.f32.mrf.mxu0 }
 0x147   : > { %18708 = vst [vmem:[#allocation14_spill] sm:$0xff] %v13111_v49 }
 0x148   : > { %v13115_v51 = vpop.f32.mrf.mxu0 }
 0x149   : > { %18709 = vst [vmem:[#allocation15_spill] sm:$0xff] %v13115_v51 }
 0x14a   : > { %v13119_v53 = vpop.f32.mrf.mxu0 }
 0x14b   : > { %18710 = vst [vmem:[#allocation16_spill] sm:$0xff] %v13119_v53  ;;  %v1150_v53 = vmax.f32 %v13003_v59, %v13057_v22  ;;  %v1154_v59 = vmax.f32 %v13011_v63, %v13069_v28 }
 0x14c   : > { %v11894_v54 = vpop.f32.mrf.mxu0 }
 0x14e   : > { %v13121_v55 = vpop.f32.mrf.mxu0 }
 0x14f   : > { %18711 = vst [vmem:[#allocation17_spill] sm:$0xff] %v13121_v55 }
 0x150   : > { %v11895_v57 = vpop.f32.mrf.mxu0 }
 0x152   : > { %v13125_v30 = vpop.f32.mrf.mxu0 }
 0x153   : > { %18712 = vst [vmem:[#allocation18_spill] sm:$0xff] %v13125_v30 }
 0x154   : > { %v11898_v46 = vpop.f32.mrf.mxu0 }
 0x156   : > { %v959_v40 = vpop.f32.mrf.mxu0 }
 0x158   : > { %v13127_v44 = vpop.f32.mrf.mxu0 }
 0x15a   : > { %v962_v50 = vpop.f32.mrf.mxu0 }
 0x15c   : > { %v13129_v34 = vpop.f32.mrf.mxu0 }
 0x15e   : > { %v13134_v38 = vpop.f32.mrf.mxu0 }
 0x160   : > { %v13140_v27 = vpop.f32.mrf.mxu0 }
 0x162   : > { %v978_v32 = vpop.f32.mrf.mxu0 }
 0x164   : > { %v13143_v21 = vpop.f32.mrf.mxu0 }
 0x166   : > { %v13145_v25 = vpop.f32.mrf.mxu0 }
 0x168   : > { %v13147_v51 = vpop.f32.mrf.mxu0 }
 0x16a   : > { %v13149_v14 = vpop.f32.mrf.mxu0 }
 0x16c   : > { %v13151_v55 = vpop.f32.mrf.mxu0 }
 0x16e   : > { %v13153_v16 = vpop.f32.mrf.mxu0 }
 0x170   : > { %v13155_v19 = vpop.f32.mrf.mxu0 }
 0x171   : > { %18713 = vst [vmem:[#allocation19_spill] sm:$0xff] %v13155_v19 }
 0x172   : > { %v13157_v52 = vpop.f32.mrf.mxu0 }
 0x174   : > { %v13159_v30 = vpop.f32.mrf.mxu0 }
 0x175   : > { %18714 = vst [vmem:[#allocation20_spill] sm:$0xff] %v13159_v30 }
 0x176   : > { %v13161_v56 = vpop.f32.mrf.mxu0 }
 0x177   : > { %18715 = vst [vmem:[#allocation21_spill] sm:$0xff] %v13161_v56  ;;  %v13178_v56 = vld [vmem:[%s18381_s2] ss:$0 sm:$0xff] }
 0x178   : > { %v13163_v17 = vpop.f32.mrf.mxu0 }
 0x179   : > { %18716 = vst [vmem:[#allocation22_spill] sm:$0xff] %v13163_v17 }
 0x17a   : > { %v13165_v48 = vpop.f32.mrf.mxu0 }
 0x17b   : > { %18717 = vst [vmem:[#allocation23_spill] sm:$0xff] %v13165_v48 }
 0x17c   : > { %v13167_v45 = vpop.f32.mrf.mxu0 }
 0x17d   : > { %18718 = vst [vmem:[#allocation24_spill] sm:$0xff] %v13167_v45  ;;  %v1151_v45 = vmax.f32 %v13007_v61, %v13049_v18 }
 0x17e   : > { %v13169_v10 = vpop.f32.mrf.mxu0 }
 0x17f   : > { %18719 = vst [vmem:[#allocation25_spill] sm:$0xff] %v13169_v10 }
 0x180   : > { %v11919_v15 = vpop.f32.mrf.mxu0 }
 0x181   : > { %v1175_v49 = vmax.f32 %v11894_v54, %v11919_v15  ;;  %v18721_v15 = vmax.f32 %v13005_v60, %v13061_v24  ;;  %v18723_v24 = vmax.f32 %v13013_v0, %v13075_v31 }
 0x182   : > { %v13173_v19 = vpop.f32.mrf.mxu0 }
 0x183   : > { %18720 = vst [vmem:[#allocation26_spill] sm:$0xff] %v13173_v19  ;;  %v1200_v12 = vmax.f32 %v1150_v53, %v1175_v49 }
 0x184   : > { %v11922_v13 = vpop.f32.mrf.mxu0 }
 0x185   : > { %v1178_v17 = vmax.f32 %v962_v50, %v11922_v13  ;;  %v1232_v42 = vadd.f32 %v13178_v56, %v1200_v12 }
 0x186   : > { %v1055_v30 = vpop.f32.mrf.mxu0 }
 0x187   : > { %v1176_v10 = vmax.f32 %v11895_v57, %v1055_v30  ;;  %v1203_v22 = vmax.f32 %v18721_v15, %v1178_v17  ;;  %v1257_v39 = vmax.f32 %v1232_v42, 0.0  ;;  %v18722_v30 = vmax.f32 %v13001_v58, %v13053_v20 }
 0x188   : > { %v11923_v48 = vpop.f32.mrf.mxu0  ;;  %v1155_v17 = vmax.f32 %v13015_v1, %v13059_v23  ;;  %v1158_v58 = vmax.f32 %v13019_v3, %v13083_v35  ;;  %v18724_v3 = vmax.f32 %v13009_v62, %v13065_v26 }
 0x189   : > { %v1201_v49 = vmax.f32 %v1151_v45, %v1176_v10  ;;  %v1179_v53 = vmax.f32 %v11898_v46, %v11923_v48  ;;  %v1235_v18 = vadd.f32 %v13178_v56, %v1203_v22 }
 0x18a   : > { %v1058_v54 = vpop.f32.mrf.mxu0 }
 0x18b   : > { %v1233_v13 = vadd.f32 %v13178_v56, %v1201_v49  ;;  %v1204_v50 = vmax.f32 %v1154_v59, %v1179_v53  ;;  %v1177_v19 = vmax.f32 %v959_v40, %v1058_v54  ;;  %v1159_v53 = vmax.f32 %v13023_v5, %v13071_v29 }
 0x18c   : > { %v11926_v61 = vpop.f32.mrf.mxu0  ;;  %v18725_v5 = vmax.f32 %v13021_v4, %v13087_v37 }
 0x18d   : > { %v1258_v12 = vmax.f32 %v1233_v13, 0.0  ;;  %v1202_v63 = vmax.f32 %v18722_v30, %v1177_v19  ;;  %v1182_v28 = vmax.f32 %v978_v32, %v11926_v61  ;;  %v1260_v19 = vmax.f32 %v1235_v18, 0.0 }
 0x18e   : > { %v1071_v57 = vpop.f32.mrf.mxu0  ;;  %v1162_v13 = vmax.f32 %v13027_v7, %v13095_v41 }
 0x18f   : > { %v13193_v60 = vpack.c.bf16 %v1258_v12, %v1257_v39  ;;  %v1234_v10 = vadd.f32 %v13178_v56, %v1202_v63  ;;  %v1207_v40 = vmax.f32 %v18723_v24, %v1182_v28  ;;  %v1180_v42 = vmax.f32 %v13127_v44, %v1071_v57 }
 0x190   : > { %v11927_v45 = vpop.f32.mrf.mxu0  ;;  %v1236_v39 = vadd.f32 %v13178_v56, %v1204_v50 }
 0x191   : > { %v1259_v20 = vmax.f32 %v1234_v10, 0.0  ;;  %v1183_v32 = vmax.f32 %v13129_v34, %v11927_v45  ;;  %v1205_v46 = vmax.f32 %v1155_v17, %v1180_v42  ;;  %v1239_v23 = vadd.f32 %v13178_v56, %v1207_v40 }
 0x192   : > { %v1074_v48 = vpop.f32.mrf.mxu0  ;;  %v1261_v15 = vmax.f32 %v1236_v39, 0.0  ;;  %v1163_v40 = vmax.f32 %v13031_v9, %v13085_v36 }
 0x193   : > { %v13206_v59 = vpack.c.bf16 %v1260_v19, %v1259_v20  ;;  %v1208_v1 = vmax.f32 %v1158_v58, %v1183_v32  ;;  %v1181_v0 = vmax.f32 %v13134_v38, %v1074_v48  ;;  %v1237_v31 = vadd.f32 %v13178_v56, %v1205_v46 }
 0x194   : > { %v11930_v44 = vpop.f32.mrf.mxu0  ;;  %v1264_v50 = vmax.f32 %v1239_v23, 0.0 }
 0x195   : > { %v1206_v35 = vmax.f32 %v18724_v3, %v1181_v0  ;;  %v1262_v34 = vmax.f32 %v1237_v31, 0.0  ;;  %v1186_v22 = vmax.f32 %v13149_v14, %v11930_v44  ;;  %v1240_v26 = vadd.f32 %v13178_v56, %v1208_v1 }
 0x196   : > { %v1087_v49 = vpop.f32.mrf.mxu0 }
 0x197   : > { %v1238_v54 = vadd.f32 %v13178_v56, %v1206_v35  ;;  %v1184_v38 = vmax.f32 %v13140_v27, %v1087_v49  ;;  %v13221_v61 = vpack.c.bf16 %v1262_v34, %v1261_v15  ;;  %v1211_v29 = vmax.f32 %v18725_v5, %v1186_v22  ;;  %v18731_v34 = vld [vmem:[#allocation11_spill] sm:$0xff]  ;;  %v18739_v5 = vld [vmem:[#allocation20_spill] sm:$0xff] }
 0x198   : > { %v11931_v62 = vpop.f32.mrf.mxu0  ;;  %v1265_v57 = vmax.f32 %v1240_v26, 0.0  ;;  %v18733_v49 = vld [vmem:[#allocation3_spill] sm:$0xff]  ;;  %v18737_v26 = vld [vmem:[#allocation16_spill] sm:$0xff] }
 0x199   : > { %v1263_v18 = vmax.f32 %v1238_v54, 0.0  ;;  %v1209_v12 = vmax.f32 %v1159_v53, %v1184_v38  ;;  %v1187_v14 = vmax.f32 %v13143_v21, %v11931_v62  ;;  %v1243_v24 = vadd.f32 %v13178_v56, %v1211_v29  ;;  %v18734_v53 = vld [vmem:[#allocation14_spill] sm:$0xff] }
 0x19a   : > { %v1090_v30 = vpop.f32.mrf.mxu0  ;;  %v18726_v21 = vmax.f32 %v13017_v2, %v13079_v33  ;;  %v18727_v2 = vmax.f32 %v13029_v8, %v13099_v43  ;;  %v18728_v8 = vld [vmem:[#allocation10_spill] sm:$0xff]  ;;  %v18735_v54 = vmax.f32 %v18733_v49, %v18734_v53 }
 0x19b   : > { %v13228_v63 = vpack.c.bf16 %v1264_v50, %v1263_v18  ;;  %v1241_v27 = vadd.f32 %v13178_v56, %v1209_v12  ;;  %v1212_v7 = vmax.f32 %v1162_v13, %v1187_v14  ;;  %v1185_v41 = vmax.f32 %v13145_v25, %v1090_v30  ;;  %v18736_v13 = vld [vmem:[#allocation19_spill] sm:$0xff] }
 0x19c   : > { %v11934_v28 = vpop.f32.mrf.mxu0  ;;  %v1268_v9 = vmax.f32 %v1243_v24, 0.0  ;;  %v18729_v43 = vmax.f32 %v13025_v6, %v18728_v8  ;;  %v18738_v6 = vld [vmem:[#allocation6_spill] sm:$0xff] }
 0x19d   : > { %v1266_v10 = vmax.f32 %v1241_v27, 0.0  ;;  %v1190_v17 = vmax.f32 %v13157_v52, %v11934_v28  ;;  %v1210_v4 = vmax.f32 %v18726_v21, %v1185_v41  ;;  %v1244_v25 = vadd.f32 %v13178_v56, %v1212_v7 }
 0x19e   : > { %v1103_v37 = vpop.f32.mrf.mxu0  ;;  %v1166_v52 = vmax.f32 %v13035_v11, %v13107_v47  ;;  %v1170_v18 = vmax.f32 %v18738_v6, %v18737_v26  ;;  %v18756_v6 = vld [vmem:[#allocation5_spill] sm:$0xff] }
 0x19f   : > { %v13239_v42 = vpack.c.bf16 %v1266_v10, %v1265_v57  ;;  %v1188_v45 = vmax.f32 %v13147_v51, %v1103_v37  ;;  %v1242_v58 = vadd.f32 %v13178_v56, %v1210_v4  ;;  %v1215_v33 = vmax.f32 %v18727_v2, %v1190_v17  ;;  %v18740_v57 = vld [vmem:[#allocation21_spill] sm:$0xff]  ;;  %v18741_v4 = vld [vmem:[#allocation2_spill] sm:$0xff]  ;;  %v18742_v37 = vld [vmem:[#allocation12_spill] sm:$0xff] }
 0x1a0   : > { %v11935_v19 = vpop.f32.mrf.mxu0  ;;  %v1269_v1 = vmax.f32 %v1244_v25, 0.0 }
 0x1a1   : > { %v1213_v20 = vmax.f32 %v1163_v40, %v1188_v45  ;;  %v1191_v32 = vmax.f32 %v13151_v55, %v11935_v19  ;;  %v1267_v36 = vmax.f32 %v1242_v58, 0.0  ;;  %v1247_v11 = vadd.f32 %v13178_v56, %v1215_v33  ;;  %v18730_v55 = vld [vmem:[#allocation23_spill] sm:$0xff]  ;;  %v18744_v19 = vld [vmem:[#allocation26_spill] sm:$0xff] }
 0x1a2   : > { %v1106_v39 = vpop.f32.mrf.mxu0  ;;  %v18743_v40 = vmax.f32 %v18741_v4, %v18742_v37  ;;  %v18745_v33 = vmov 0   ;;  %v12068_v4 = vld [vmem:[%s18382_s3 + $0x194] ss:$8 sps:$4 sm:$0xff]   ;;  %v12070_v37 = vld [vmem:[%s18382_s3 + $0x10] ss:$8 sps:$4 sm:$0xff]  }
 0x1a3   : > { %v1245_v51 = vadd.f32 %v13178_v56, %v1213_v20  ;;  %v1216_v46 = vmax.f32 %v1166_v52, %v1191_v32  ;;  %v1189_v48 = vmax.f32 %v13153_v16, %v1106_v39  ;;  %v13252_v0 = vpack.c.bf16 %v1268_v9, %v1267_v36  ;;  %v18732_v16 = vld [vmem:[#allocation4_spill] sm:$0xff]  ;;  %v18746_v20 = vld [vmem:[#allocation13_spill] sm:$0xff]  ;;  %v18748_v39 = vld [vmem:[#allocation22_spill] sm:$0xff] }
 0x1a4   : > { %v11938_v23 = vpop.f32.mrf.mxu0  ;;  %v1167_v22 = vmax.f32 %v18732_v16, %v18731_v34  ;;  %v1272_v12 = vmax.f32 %v1247_v11, 0.0  ;;  %v18747_v32 = vld [vmem:[#allocation8_spill] sm:$0xff] }
 0x1a5   : > { %v1270_v47 = vmax.f32 %v1245_v51, 0.0  ;;  %v1214_v31 = vmax.f32 %v18729_v43, %v1189_v48  ;;  %v1194_v44 = vmax.f32 %v18730_v55, %v11938_v23  ;;  %v1248_v30 = vadd.f32 %v13178_v56, %v1216_v46  ;;  %v18749_v46 = vld [vmem:[#allocation18_spill] sm:$0xff]  ;;  %v18750_v48 = vld [vmem:[#allocation9_spill] sm:$0xff]  ;;  %v18751_v55 = vld [vmem:[#allocation24_spill] sm:$0xff] }
 0x1a6   : > { %v1119_v3 = vpop.f32.mrf.mxu0  ;;  %v1171_v9 = vmax.f32 %v18747_v32, %v18746_v20  ;;  %v12082_v20 = vld [vmem:[%s18382_s3 + $0x30] ss:$8 sps:$4 sm:$0xff]  }
 0x1a7   : > { %v13259_v35 = vpack.c.bf16 %v1270_v47, %v1269_v1  ;;  %v1246_v15 = vadd.f32 %v13178_v56, %v1214_v31  ;;  %v1219_v38 = vmax.f32 %v18735_v54, %v1194_v44  ;;  %v1192_v50 = vmax.f32 %v18736_v13, %v1119_v3  ;;  %v18752_v3 = vld [vmem:[#allocation7_spill] sm:$0xff]  ;;  %v12083_v32 = vld [vmem:[%s18382_s3 + $0x1b0] ss:$8 sps:$4 sm:$0xff]  }
 0x1a8   : > { %v11939_v62 = vpop.f32.mrf.mxu0  ;;  %v1273_v25 = vmax.f32 %v1248_v30, 0.0  ;;  %v1174_v1 = vmax.f32 %v18750_v48, %v18749_v46  ;;  %v12090_v46 = vld [vmem:[%s18382_s3 + $0x54] ss:$8 sps:$4 sm:$0xff]  }
 0x1a9   : > { %v1271_v14 = vmax.f32 %v1246_v15, 0.0  ;;  %v1195_v29 = vmax.f32 %v18739_v5, %v11939_v62  ;;  %v1217_v27 = vmax.f32 %v1167_v22, %v1192_v50  ;;  %v1251_v17 = vadd.f32 %v13178_v56, %v1219_v38  ;;  %v18753_v15 = vld [vmem:[#allocation17_spill] sm:$0xff] }
 0x1aa   : > { %v1122_v7 = vpop.f32.mrf.mxu0  ;;  %v18754_v34 = vmax.f32 %v18752_v3, %v18753_v15  ;;  %v18755_v38 = vld [vmem:[#allocation25_spill] sm:$0xff] }
 0x1ab   : > { %v13272_v41 = vpack.c.bf16 %v1272_v12, %v1271_v14  ;;  %v1220_v28 = vmax.f32 %v1170_v18, %v1195_v29  ;;  %v1193_v10 = vmax.f32 %v18740_v57, %v1122_v7  ;;  %v1249_v24 = vadd.f32 %v13178_v56, %v1217_v27  ;;  %v18757_v18 = vld [vmem:[#allocation15_spill] sm:$0xff]  ;;  %v12092_v48 = vld [vmem:[%s18382_s3 + $0x1d4] ss:$8 sps:$4 sm:$0xff]   ;;  %v12106_v3 = vld [vmem:[%s18382_s3 + $0x70] ss:$8 sps:$4 sm:$0xff]  }
 0x1ac   : > { %v11942_v21 = vpop.f32.mrf.mxu0  ;;  %v1276_v23 = vmax.f32 %v1251_v17, 0.0  ;;  %v18758_v12 = vmax.f32 %v18756_v6, %v18757_v18  ;;  %v12060_v17 = vld [vmem:[%s18382_s3] ss:$8 sps:$4 sm:$0xff]   ;;  %v12107_v15 = vld [vmem:[%s18382_s3 + $0x1f0] ss:$8 sps:$4 sm:$0xff]  }
 0x1ad   : > { %v1218_v45 = vmax.f32 %v18743_v40, %v1193_v10  ;;  %1413 = vmatpush1.bf16.msra.mxu1 %v13272_v41  ;;  %2067 = vmatpush1.bf16.msra.mxu0 %v13272_v41  ;;  %v1274_v58 = vmax.f32 %v1249_v24, 0.0  ;;  %v1198_v52 = vmax.f32 %v18744_v19, %v11942_v21  ;;  %v1252_v8 = vadd.f32 %v13178_v56, %v1220_v28  ;;  %v12063_v24 = vld [vmem:[%s18382_s3 + $0x180] ss:$8 sps:$4 sm:$0xff]   ;;  %v12066_v21 = vld [vmem:[%s18382_s3 + $0x14] ss:$8 sps:$4 sm:$0xff]  }
 0x1ae   : > { %v1135_v2 = vpop.f32.mrf.mxu0  ;;  %1414 = vmatprep.subr.bf16.mxu1 %v18745_v33  ;;  %2068 = vmatprep.subr.bf16.mxu0 %v18745_v33  ;;  %v12071_v40 = vld [vmem:[%s18382_s3 + $0x190] ss:$8 sps:$4 sm:$0xff]   ;;  %v12077_v19 = vld [vmem:[%s18382_s3 + $0x1a0] ss:$8 sps:$4 sm:$0xff]  }
 0x1af   : > { %v1250_v36 = vadd.f32 %v13178_v56, %v1218_v45  ;;  %v1196_v51 = vmax.f32 %v18748_v39, %v1135_v2  ;;  %v13291_v11 = vpack.c.bf16 %v1274_v58, %v1273_v25  ;;  %v1223_v16 = vmax.f32 %v18754_v34, %v1198_v52  ;;  %v12072_v45 = vld [vmem:[%s18382_s3 + $0x24] ss:$8 sps:$4 sm:$0xff]   ;;  %v12076_v58 = vld [vmem:[%s18382_s3 + $0x20] ss:$8 sps:$4 sm:$0xff]   ;;  %v12078_v52 = vld [vmem:[%s18382_s3 + $0x34] ss:$8 sps:$4 sm:$0xff]  }
 0x1b0   : > { %v11943_v47 = vpop.f32.mrf.mxu0  ;;  %v1277_v50 = vmax.f32 %v1252_v8, 0.0  ;;  %v12074_v25 = vld [vmem:[%s18382_s3 + $0x1a4] ss:$8 sps:$4 sm:$0xff]   ;;  %v12080_v2 = vld [vmem:[%s18382_s3 + $0x1b4] ss:$8 sps:$4 sm:$0xff]  }
 0x1b1   : > { %v1275_v43 = vmax.f32 %v1250_v36, 0.0  ;;  %v1221_v31 = vmax.f32 %v1171_v9, %v1196_v51  ;;  %v1199_v44 = vmax.f32 %v18751_v55, %v11943_v47  ;;  %1415 = vmatpush1.bf16.msra.mxu1 %v13259_v35  ;;  %2069 = vmatpush1.bf16.msra.mxu0 %v13259_v35  ;;  %v1255_v26 = vadd.f32 %v13178_v56, %v1223_v16  ;;  %v12084_v9 = vld [vmem:[%s18382_s3 + $0x44] ss:$8 sps:$4 sm:$0xff]   ;;  %v12088_v39 = vld [vmem:[%s18382_s3 + $0x40] ss:$8 sps:$4 sm:$0xff]  }
 0x1b2   : > { %v1138_v22 = vpop.f32.mrf.mxu0  ;;  %1416 = vmatprep.subr.bf16.mxu1 %v18745_v33  ;;  %2070 = vmatprep.subr.bf16.mxu0 %v18745_v33  ;;  %v12086_v36 = vld [vmem:[%s18382_s3 + $0x1c4] ss:$8 sps:$4 sm:$0xff]   ;;  %v12089_v51 = vld [vmem:[%s18382_s3 + $0x1c0] ss:$8 sps:$4 sm:$0xff]   ;;  %v12102_v55 = vld [vmem:[%s18382_s3 + $0x74] ss:$8 sps:$4 sm:$0xff]  }
 0x1b3   : > { %v13302_v49 = vpack.c.bf16 %v1276_v23, %v1275_v43  ;;  %v1253_v53 = vadd.f32 %v13178_v56, %v1221_v31  ;;  %v1224_v54 = vmax.f32 %v1174_v1, %v1199_v44  ;;  %v1197_v13 = vmax.f32 %v18755_v38, %v1138_v22  ;;  %v12094_v1 = vld [vmem:[%s18382_s3 + $0x50] ss:$8 sps:$4 sm:$0xff]   ;;  %v12096_v47 = vld [vmem:[%s18382_s3 + $0x64] ss:$8 sps:$4 sm:$0xff]   ;;  %v12100_v43 = vld [vmem:[%s18382_s3 + $0x60] ss:$8 sps:$4 sm:$0xff]  }
 0x1b4   : > { %v1280_v30 = vmax.f32 %v1255_v26, 0.0  ;;  %v12095_v23 = vld [vmem:[%s18382_s3 + $0x1d0] ss:$8 sps:$4 sm:$0xff]   ;;  %v12098_v8 = vld [vmem:[%s18382_s3 + $0x1e4] ss:$8 sps:$4 sm:$0xff]  }
 0x1b5   : > { %v1278_v62 = vmax.f32 %v1253_v53, 0.0  ;;  %1417 = vmatpush1.bf16.msra.mxu1 %v13252_v0  ;;  %2071 = vmatpush1.bf16.msra.mxu0 %v13252_v0  ;;  %v1222_v14 = vmax.f32 %v18758_v12, %v1197_v13  ;;  %v1256_v28 = vadd.f32 %v13178_v56, %v1224_v54  ;;  %v12101_v31 = vld [vmem:[%s18382_s3 + $0x1e0] ss:$8 sps:$4 sm:$0xff]   ;;  %v12104_v44 = vld [vmem:[%s18382_s3 + $0x1f4] ss:$8 sps:$4 sm:$0xff]  }
 0x1b6   : > { %1418 = vmatprep.subr.bf16.mxu1 %v18745_v33  ;;  %2072 = vmatprep.subr.bf16.mxu0 %v18745_v33  ;;  %v12110_v34 = vld [vmem:[%s18382_s3 + $0x84] ss:$8 sps:$4 sm:$0xff]   ;;  %v12108_v22 = vld [vmem:[%s18382_s3 + $0x80] ss:$8 sps:$4 sm:$0xff]   ;;  %v12114_v54 = vld [vmem:[%s18382_s3 + $0x94] ss:$8 sps:$4 sm:$0xff]  }
 0x1b7   : > { %v13314_v5 = vpack.c.bf16 %v1278_v62, %v1277_v50  ;;  %v1254_v29 = vadd.f32 %v13178_v56, %v1222_v14  ;;  %v1281_v57 = vmax.f32 %v1256_v28, 0.0  ;;  %v12113_v16 = vld [vmem:[%s18382_s3 + $0x284] ss:$8 sps:$4 sm:$0xff]   ;;  %v12111_v53 = vld [vmem:[%s18382_s3 + $0x280] ss:$8 sps:$4 sm:$0xff]  }
 0x1b8   : > { %v12116_v38 = vld [vmem:[%s18382_s3 + $0x294] ss:$8 sps:$4 sm:$0xff]   ;;  %v12118_v13 = vld [vmem:[%s18382_s3 + $0x90] ss:$8 sps:$4 sm:$0xff]   ;;  %v12120_v62 = vld [vmem:[%s18382_s3 + $0xa4] ss:$8 sps:$4 sm:$0xff]  }
 0x1b9   : > { %1419 = vmatpush1.bf16.msra.mxu1 %v13239_v42  ;;  %2073 = vmatpush1.bf16.msra.mxu0 %v13239_v42  ;;  %v1279_v27 = vmax.f32 %v1254_v29, 0.0  ;;  %v1294_v10 = vpack.c.bf16 %v1281_v57, %v1281_v57  ;;  %v12119_v50 = vld [vmem:[%s18382_s3 + $0x290] ss:$8 sps:$4 sm:$0xff]   ;;  %v12122_v26 = vld [vmem:[%s18382_s3 + $0x2a4] ss:$8 sps:$4 sm:$0xff]  }
 0x1ba   : > { %1420 = vmatprep.subr.bf16.mxu1 %v18745_v33  ;;  %2074 = vmatprep.subr.bf16.mxu0 %v18745_v33  ;;  %v12124_v6 = vld [vmem:[%s18382_s3 + $0xa0] ss:$8 sps:$4 sm:$0xff]   ;;  %v12126_v12 = vld [vmem:[%s18382_s3 + $0xb4] ss:$8 sps:$4 sm:$0xff]   ;;  %v12130_v29 = vld [vmem:[%s18382_s3 + $0xb0] ss:$8 sps:$4 sm:$0xff]  }
 0x1bb   : > { %v13321_v7 = vpack.c.bf16 %v1280_v30, %v1279_v27  ;;  %v13340_v56 = vsel %vm1408_vm1, %v1294_v10, 0  ;;  %v12125_v18 = vld [vmem:[%s18382_s3 + $0x2a0] ss:$8 sps:$4 sm:$0xff]   ;;  %v12128_v14 = vld [vmem:[%s18382_s3 + $0x2b4] ss:$8 sps:$4 sm:$0xff]  }
 0x1bc   : > { %v12131_v30 = vld [vmem:[%s18382_s3 + $0x2b0] ss:$8 sps:$4 sm:$0xff]   ;;  %v12132_v27 = vld [vmem:[%s18382_s3 + $0xc4] ss:$8 sps:$4 sm:$0xff]   ;;  %v12136_v57 = vld [vmem:[%s18382_s3 + $0xc0] ss:$8 sps:$4 sm:$0xff]  }
 0x1bd   : > { %1421 = vmatpush1.bf16.msra.mxu1 %v13228_v63  ;;  %2075 = vmatpush1.bf16.msra.mxu0 %v13228_v63  ;;  %v12134_v28 = vld [vmem:[%s18382_s3 + $0x2c4] ss:$8 sps:$4 sm:$0xff]   ;;  %v12137_v10 = vld [vmem:[%s18382_s3 + $0x2c0] ss:$8 sps:$4 sm:$0xff]  }
 0x1be   : > { %1422 = vmatprep.subr.bf16.mxu1 %v18745_v33  ;;  %2076 = vmatprep.subr.bf16.mxu0 %v18745_v33 }
 0x1c1   : > { %1423 = vmatpush1.bf16.msra.mxu1 %v13221_v61  ;;  %2077 = vmatpush1.bf16.msra.mxu0 %v13221_v61 }
 0x1c2   : > { %1424 = vmatprep.subr.bf16.mxu1 %v18745_v33  ;;  %2078 = vmatprep.subr.bf16.mxu0 %v18745_v33 }
 0x1c5   : > { %1425 = vmatpush1.bf16.msra.mxu1 %v13206_v59  ;;  %2079 = vmatpush1.bf16.msra.mxu0 %v13206_v59 }
 0x1c6   : > { %1426 = vmatprep.subr.bf16.mxu1 %v18745_v33  ;;  %2080 = vmatprep.subr.bf16.mxu0 %v18745_v33 }
 0x1c9   : > { %1427 = vmatpush1.bf16.msra.mxu1 %v13193_v60  ;;  %2081 = vmatpush1.bf16.msra.mxu0 %v13193_v60 }
 0x1ca   : > { %1434 = vmatprep.subr.bf16.mxu1 %v18745_v33  ;;  %2088 = vmatprep.subr.bf16.mxu0 %v18745_v33 }
 0x1cd   : > { %1435 = vmatpush2.bf16.msra.mxu1 %v13340_v56  ;;  %2089 = vmatpush2.bf16.msra.mxu0 %v13340_v56 }
 0x1ce   : > { %1436 = vmatprep.subr.bf16.mxu1 %v18745_v33  ;;  %2090 = vmatprep.subr.bf16.mxu0 %v18745_v33 }
 0x1d1   : > { %1437 = vmatpush2.bf16.msra.mxu1 %v13321_v7  ;;  %2091 = vmatpush2.bf16.msra.mxu0 %v13321_v7 }
 0x1d2   : > { %1438 = vmatprep.subr.bf16.mxu1 %v18745_v33  ;;  %2092 = vmatprep.subr.bf16.mxu0 %v18745_v33 }
 0x1d5   : > { %1439 = vmatpush2.bf16.msra.mxu1 %v13314_v5  ;;  %2093 = vmatpush2.bf16.msra.mxu0 %v13314_v5 }
 0x1d6   : > { %1440 = vmatprep.subr.bf16.mxu1 %v18745_v33  ;;  %2094 = vmatprep.subr.bf16.mxu0 %v18745_v33 }
 0x1d9   : > { %1441 = vmatpush2.bf16.msra.mxu1 %v13302_v49  ;;  %2095 = vmatpush2.bf16.msra.mxu0 %v13302_v49 }
 0x1da   : > { %1442 = vmatprep.subr.bf16.mxu1 %v18745_v33  ;;  %2096 = vmatprep.subr.bf16.mxu0 %v18745_v33 }
 0x1dd   : > { %1443 = vmatpush2.bf16.msra.mxu1 %v13291_v11  ;;  %2097 = vmatpush2.bf16.msra.mxu0 %v13291_v11 }
 0x1de   : > { %1630 = vmatprep.subr.bf16.mxu1 %v18745_v33  ;;  %2502 = vmatprep.subr.bf16.mxu0 %v18745_v33 }
 0x1e0   : > { %1445 = vmatmul.mubr.bf16.vlgmr.msra.gmra.mxu1 %v12060_v17  ;;  %2099 = vmatmul.mubr.bf16.vlgmr.msra.gmra.mxu0 %v12063_v24  ;;  %v12138_v17 = vld [vmem:[%s18382_s3 + $0xd4] ss:$8 sps:$4 sm:$0xff]  }
 0x1e1   : > { %1631 = vmatpush1.bf16.msra.mxu1 %v13272_v41  ;;  %2503 = vmatpush1.bf16.msra.mxu0 %v13272_v41  ;;  %v12140_v24 = vld [vmem:[%s18382_s3 + $0x2d4] ss:$8 sps:$4 sm:$0xff]  }
 0x1e2   : > { %1632 = vmatprep.subr.bf16.mxu1 %v18745_v33  ;;  %2504 = vmatprep.subr.bf16.mxu0 %v18745_v33 }
 0x1e3   : > { %9796 = vmatprep.mubr.msk.bf16.mxu1 %vm1383_vm0, %v12066_v21  ;;  %9916 = vmatprep.mubr.msk.bf16.mxu0 %vm1383_vm0, %v12068_v4  ;;  %v12142_v21 = vld [vmem:[%s18382_s3 + $0xd0] ss:$8 sps:$4 sm:$0xff]  }
 0x1e4   : > { %v12143_v4 = vld [vmem:[%s18382_s3 + $0x2d0] ss:$8 sps:$4 sm:$0xff]  }
 0x1e5   : > { %1633 = vmatpush1.bf16.msra.mxu1 %v13259_v35  ;;  %2505 = vmatpush1.bf16.msra.mxu0 %v13259_v35 }
 0x1e6   : > { %1634 = vmatprep.subr.bf16.mxu1 %v18745_v33  ;;  %2506 = vmatprep.subr.bf16.mxu0 %v18745_v33 }
 0x1e8   : > { %1453 = vmatmul.mubr.bf16.gmra.mxu1 %v12070_v37  ;;  %2107 = vmatmul.mubr.bf16.gmra.mxu0 %v12071_v40  ;;  %v12144_v37 = vld [vmem:[%s18382_s3 + $0xe4] ss:$8 sps:$4 sm:$0xff]  }
 0x1e9   : > { %1635 = vmatpush1.bf16.msra.mxu1 %v13252_v0  ;;  %2507 = vmatpush1.bf16.msra.mxu0 %v13252_v0  ;;  %v12146_v40 = vld [vmem:[%s18382_s3 + $0x2e4] ss:$8 sps:$4 sm:$0xff]  }
 0x1ea   : > { %1636 = vmatprep.subr.bf16.mxu1 %v18745_v33  ;;  %2508 = vmatprep.subr.bf16.mxu0 %v18745_v33 }
 0x1eb   : > { %9797 = vmatprep.mubr.msk.bf16.mxu1 %vm1383_vm0, %v12072_v45  ;;  %9917 = vmatprep.mubr.msk.bf16.mxu0 %vm1383_vm0, %v12074_v25  ;;  %v12148_v45 = vld [vmem:[%s18382_s3 + $0xe0] ss:$8 sps:$4 sm:$0xff]  }
 0x1ec   : > { %v12149_v25 = vld [vmem:[%s18382_s3 + $0x2e0] ss:$8 sps:$4 sm:$0xff]  }
 0x1ed   : > { %1637 = vmatpush1.bf16.msra.mxu1 %v13239_v42  ;;  %2509 = vmatpush1.bf16.msra.mxu0 %v13239_v42 }
 0x1ee   : > { %1638 = vmatprep.subr.bf16.mxu1 %v18745_v33  ;;  %2510 = vmatprep.subr.bf16.mxu0 %v18745_v33 }
 0x1f0   : > { %1461 = vmatmul.mubr.bf16.gmra.mxu1 %v12076_v58  ;;  %2115 = vmatmul.mubr.bf16.gmra.mxu0 %v12077_v19  ;;  %v12150_v58 = vld [vmem:[%s18382_s3 + $0xf4] ss:$8 sps:$4 sm:$0xff]  }
 0x1f1   : > { %1639 = vmatpush1.bf16.msra.mxu1 %v13228_v63  ;;  %2511 = vmatpush1.bf16.msra.mxu0 %v13228_v63  ;;  %v12152_v19 = vld [vmem:[%s18382_s3 + $0x2f4] ss:$8 sps:$4 sm:$0xff]  }
 0x1f2   : > { %1640 = vmatprep.subr.bf16.mxu1 %v18745_v33  ;;  %2512 = vmatprep.subr.bf16.mxu0 %v18745_v33 }
 0x1f3   : > { %9798 = vmatprep.mubr.msk.bf16.mxu1 %vm1383_vm0, %v12078_v52  ;;  %9918 = vmatprep.mubr.msk.bf16.mxu0 %vm1383_vm0, %v12080_v2  ;;  %v12154_v52 = vld [vmem:[%s18382_s3 + $0xf0] ss:$8 sps:$4 sm:$0xff]  }
 0x1f4   : > { %v12155_v2 = vld [vmem:[%s18382_s3 + $0x2f0] ss:$8 sps:$4 sm:$0xff]  }
 0x1f5   : > { %1641 = vmatpush1.bf16.msra.mxu1 %v13221_v61  ;;  %2513 = vmatpush1.bf16.msra.mxu0 %v13221_v61 }
 0x1f6   : > { %1642 = vmatprep.subr.bf16.mxu1 %v18745_v33  ;;  %2514 = vmatprep.subr.bf16.mxu0 %v18745_v33 }
 0x1f8   : > { %1469 = vmatmul.mubr.bf16.gmra.mxu1 %v12082_v20  ;;  %2123 = vmatmul.mubr.bf16.gmra.mxu0 %v12083_v32  ;;  %v12158_v20 = vld [vmem:[%s18382_s3 + $0x104] ss:$8 sps:$4 sm:$0xff]  }
 0x1f9   : > { %1643 = vmatpush1.bf16.msra.mxu1 %v13206_v59  ;;  %2515 = vmatpush1.bf16.msra.mxu0 %v13206_v59  ;;  %v12161_v32 = vld [vmem:[%s18382_s3 + $0x384] ss:$8 sps:$4 sm:$0xff]  }
 0x1fa   : > { %1644 = vmatprep.subr.bf16.mxu1 %v18745_v33  ;;  %2516 = vmatprep.subr.bf16.mxu0 %v18745_v33 }
 0x1fb   : > { %9799 = vmatprep.mubr.msk.bf16.mxu1 %vm1383_vm0, %v12084_v9  ;;  %9919 = vmatprep.mubr.msk.bf16.mxu0 %vm1383_vm0, %v12086_v36  ;;  %v12156_v9 = vld [vmem:[%s18382_s3 + $0x100] ss:$8 sps:$4 sm:$0xff]  }
 0x1fc   : > { %v12159_v36 = vld [vmem:[%s18382_s3 + $0x380] ss:$8 sps:$4 sm:$0xff]  }
 0x1fd   : > { %1645 = vmatpush1.bf16.msra.mxu1 %v13193_v60  ;;  %2517 = vmatpush1.bf16.msra.mxu0 %v13193_v60 }
 0x1fe   : > { %1652 = vmatprep.subr.bf16.mxu1 %v18745_v33  ;;  %2524 = vmatprep.subr.bf16.mxu0 %v18745_v33 }
 0x200   : > { %1477 = vmatmul.mubr.bf16.gmra.mxu1 %v12088_v39  ;;  %2131 = vmatmul.mubr.bf16.gmra.mxu0 %v12089_v51  ;;  %v12162_v39 = vld [vmem:[%s18382_s3 + $0x114] ss:$8 sps:$4 sm:$0xff]  }
 0x201   : > { %1653 = vmatpush2.bf16.msra.mxu1 %v13340_v56  ;;  %2525 = vmatpush2.bf16.msra.mxu0 %v13340_v56  ;;  %v12164_v51 = vld [vmem:[%s18382_s3 + $0x394] ss:$8 sps:$4 sm:$0xff]  }
 0x202   : > { %1654 = vmatprep.subr.bf16.mxu1 %v18745_v33  ;;  %2526 = vmatprep.subr.bf16.mxu0 %v18745_v33 }
 0x203   : > { %9800 = vmatprep.mubr.msk.bf16.mxu1 %vm1383_vm0, %v12090_v46  ;;  %9920 = vmatprep.mubr.msk.bf16.mxu0 %vm1383_vm0, %v12092_v48  ;;  %v12166_v46 = vld [vmem:[%s18382_s3 + $0x110] ss:$8 sps:$4 sm:$0xff]  }
 0x204   : > { %v12167_v48 = vld [vmem:[%s18382_s3 + $0x390] ss:$8 sps:$4 sm:$0xff]  }
 0x205   : > { %1655 = vmatpush2.bf16.msra.mxu1 %v13321_v7  ;;  %2527 = vmatpush2.bf16.msra.mxu0 %v13321_v7 }
 0x206   : > { %1656 = vmatprep.subr.bf16.mxu1 %v18745_v33  ;;  %2528 = vmatprep.subr.bf16.mxu0 %v18745_v33 }
 0x208   : > { %1485 = vmatmul.mubr.bf16.gmra.mxu1 %v12094_v1  ;;  %2139 = vmatmul.mubr.bf16.gmra.mxu0 %v12095_v23  ;;  %v12168_v1 = vld [vmem:[%s18382_s3 + $0x124] ss:$8 sps:$4 sm:$0xff]  }
 0x209   : > { %1657 = vmatpush2.bf16.msra.mxu1 %v13314_v5  ;;  %2529 = vmatpush2.bf16.msra.mxu0 %v13314_v5  ;;  %v12170_v23 = vld [vmem:[%s18382_s3 + $0x3a4] ss:$8 sps:$4 sm:$0xff]  }
 0x20a   : > { %1658 = vmatprep.subr.bf16.mxu1 %v18745_v33  ;;  %2530 = vmatprep.subr.bf16.mxu0 %v18745_v33 }
 0x20b   : > { %9801 = vmatprep.mubr.msk.bf16.mxu1 %vm1383_vm0, %v12096_v47  ;;  %9921 = vmatprep.mubr.msk.bf16.mxu0 %vm1383_vm0, %v12098_v8  ;;  %v12172_v47 = vld [vmem:[%s18382_s3 + $0x120] ss:$8 sps:$4 sm:$0xff]  }
 0x20c   : > { %v12173_v8 = vld [vmem:[%s18382_s3 + $0x3a0] ss:$8 sps:$4 sm:$0xff]  }
 0x20d   : > { %1659 = vmatpush2.bf16.msra.mxu1 %v13302_v49  ;;  %2531 = vmatpush2.bf16.msra.mxu0 %v13302_v49 }
 0x20e   : > { %1660 = vmatprep.subr.bf16.mxu1 %v18745_v33  ;;  %2532 = vmatprep.subr.bf16.mxu0 %v18745_v33 }
 0x210   : > { %1493 = vmatmul.mubr.bf16.gmra.mxu1 %v12100_v43  ;;  %2147 = vmatmul.mubr.bf16.gmra.mxu0 %v12101_v31  ;;  %v12174_v43 = vld [vmem:[%s18382_s3 + $0x134] ss:$8 sps:$4 sm:$0xff]  }
 0x211   : > { %1661 = vmatpush2.bf16.msra.mxu1 %v13291_v11  ;;  %2533 = vmatpush2.bf16.msra.mxu0 %v13291_v11  ;;  %v12176_v31 = vld [vmem:[%s18382_s3 + $0x3b4] ss:$8 sps:$4 sm:$0xff]  }
 0x212   : > { %9802 = vmatprep.mubr.msk.bf16.mxu1 %vm1383_vm0, %v12102_v55  ;;  %9922 = vmatprep.mubr.msk.bf16.mxu0 %vm1383_vm0, %v12104_v44  ;;  %v12178_v55 = vld [vmem:[%s18382_s3 + $0x130] ss:$8 sps:$4 sm:$0xff]  }
 0x213   : > { %1848 = vmatprep.subr.bf16.mxu1 %v18745_v33  ;;  %2938 = vmatprep.subr.bf16.mxu0 %v18745_v33  ;;  %v12179_v44 = vld [vmem:[%s18382_s3 + $0x3b0] ss:$8 sps:$4 sm:$0xff]  }
 0x218   : > { %1501 = vmatmul.mubr.bf16.gmra.mxu1 %v12106_v3  ;;  %2155 = vmatmul.mubr.bf16.gmra.mxu0 %v12107_v15  ;;  %v12180_v3 = vld [vmem:[%s18382_s3 + $0x144] ss:$8 sps:$4 sm:$0xff]  }
 0x219   : > { %9835 = vmatprep.mubr.msk.bf16.mxu1 %vm1383_vm0, %v12110_v34  ;;  %9995 = vmatprep.mubr.msk.bf16.mxu0 %vm1383_vm0, %v12113_v16  ;;  %v12182_v15 = vld [vmem:[%s18382_s3 + $0x3c4] ss:$8 sps:$4 sm:$0xff]   ;;  %v12184_v34 = vld [vmem:[%s18382_s3 + $0x140] ss:$8 sps:$4 sm:$0xff]  }
 0x21a   : > { %v12185_v16 = vld [vmem:[%s18382_s3 + $0x3c0] ss:$8 sps:$4 sm:$0xff]  }
 0x220   : > { %1663 = vmatmul.mubr.bf16.vlgmr.msra.gmra.mxu1 %v12108_v22  ;;  %2535 = vmatmul.mubr.bf16.vlgmr.msra.gmra.mxu0 %v12111_v53  ;;  %v12186_v22 = vld [vmem:[%s18382_s3 + $0x154] ss:$8 sps:$4 sm:$0xff]  }
 0x221   : > { %1849 = vmatpush1.bf16.msra.mxu1 %v13272_v41  ;;  %2939 = vmatpush1.bf16.msra.mxu0 %v13272_v41  ;;  %v12188_v53 = vld [vmem:[%s18382_s3 + $0x3d4] ss:$8 sps:$4 sm:$0xff]  }
 0x222   : > { %1850 = vmatprep.subr.bf16.mxu1 %v18745_v33  ;;  %2940 = vmatprep.subr.bf16.mxu0 %v18745_v33 }
 0x223   : > { %9836 = vmatprep.mubr.msk.bf16.mxu1 %vm1383_vm0, %v12114_v54  ;;  %9996 = vmatprep.mubr.msk.bf16.mxu0 %vm1383_vm0, %v12116_v38  ;;  %v12190_v54 = vld [vmem:[%s18382_s3 + $0x150] ss:$8 sps:$4 sm:$0xff]  }
 0x224   : > { %v12191_v38 = vld [vmem:[%s18382_s3 + $0x3d0] ss:$8 sps:$4 sm:$0xff]  }
 0x225   : > { %1851 = vmatpush1.bf16.msra.mxu1 %v13259_v35  ;;  %2941 = vmatpush1.bf16.msra.mxu0 %v13259_v35 }
 0x226   : > { %1852 = vmatprep.subr.bf16.mxu1 %v18745_v33  ;;  %2942 = vmatprep.subr.bf16.mxu0 %v18745_v33 }
 0x228   : > { %1671 = vmatmul.mubr.bf16.gmra.mxu1 %v12118_v13  ;;  %2543 = vmatmul.mubr.bf16.gmra.mxu0 %v12119_v50  ;;  %v12192_v13 = vld [vmem:[%s18382_s3 + $0x164] ss:$8 sps:$4 sm:$0xff]  }
 0x229   : > { %1853 = vmatpush1.bf16.msra.mxu1 %v13252_v0  ;;  %2943 = vmatpush1.bf16.msra.mxu0 %v13252_v0  ;;  %v12194_v50 = vld [vmem:[%s18382_s3 + $0x3e4] ss:$8 sps:$4 sm:$0xff]  }
 0x22a   : > { %1854 = vmatprep.subr.bf16.mxu1 %v18745_v33  ;;  %2944 = vmatprep.subr.bf16.mxu0 %v18745_v33 }
 0x22b   : > { %9837 = vmatprep.mubr.msk.bf16.mxu1 %vm1383_vm0, %v12120_v62  ;;  %9997 = vmatprep.mubr.msk.bf16.mxu0 %vm1383_vm0, %v12122_v26  ;;  %v12196_v62 = vld [vmem:[%s18382_s3 + $0x160] ss:$8 sps:$4 sm:$0xff]  }
 0x22c   : > { %v12197_v26 = vld [vmem:[%s18382_s3 + $0x3e0] ss:$8 sps:$4 sm:$0xff]  }
 0x22d   : > { %1855 = vmatpush1.bf16.msra.mxu1 %v13239_v42  ;;  %2945 = vmatpush1.bf16.msra.mxu0 %v13239_v42 }
 0x22e   : > { %1856 = vmatprep.subr.bf16.mxu1 %v18745_v33  ;;  %2946 = vmatprep.subr.bf16.mxu0 %v18745_v33 }
 0x230   : > { %1679 = vmatmul.mubr.bf16.gmra.mxu1 %v12124_v6  ;;  %2551 = vmatmul.mubr.bf16.gmra.mxu0 %v12125_v18  ;;  %v12198_v6 = vld [vmem:[%s18382_s3 + $0x174] ss:$8 sps:$4 sm:$0xff]  }
 0x231   : > { %1857 = vmatpush1.bf16.msra.mxu1 %v13228_v63  ;;  %2947 = vmatpush1.bf16.msra.mxu0 %v13228_v63  ;;  %v12200_v18 = vld [vmem:[%s18382_s3 + $0x3f4] ss:$8 sps:$4 sm:$0xff]  }
 0x232   : > { %1858 = vmatprep.subr.bf16.mxu1 %v18745_v33  ;;  %2948 = vmatprep.subr.bf16.mxu0 %v18745_v33 }
 0x233   : > { %9838 = vmatprep.mubr.msk.bf16.mxu1 %vm1383_vm0, %v12126_v12  ;;  %9998 = vmatprep.mubr.msk.bf16.mxu0 %vm1383_vm0, %v12128_v14  ;;  %v12202_v12 = vld [vmem:[%s18382_s3 + $0x170] ss:$8 sps:$4 sm:$0xff]  }
 0x234   : > { %v12203_v14 = vld [vmem:[%s18382_s3 + $0x3f0] ss:$8 sps:$4 sm:$0xff]  }
 0x235   : > { %1859 = vmatpush1.bf16.msra.mxu1 %v13221_v61  ;;  %2949 = vmatpush1.bf16.msra.mxu0 %v13221_v61 }
 0x236   : > { %1860 = vmatprep.subr.bf16.mxu1 %v18745_v33  ;;  %2950 = vmatprep.subr.bf16.mxu0 %v18745_v33 }
 0x238   : > { %1687 = vmatmul.mubr.bf16.gmra.mxu1 %v12130_v29  ;;  %2559 = vmatmul.mubr.bf16.gmra.mxu0 %v12131_v30  ;;  %v12206_v29 = vld [vmem:[%s18382_s3 + $0x204] ss:$8 sps:$4 sm:$0xff]  }
 0x239   : > { %1861 = vmatpush1.bf16.msra.mxu1 %v13206_v59  ;;  %2951 = vmatpush1.bf16.msra.mxu0 %v13206_v59  ;;  %v12209_v30 = vld [vmem:[%s18382_s3 + $0x484] ss:$8 sps:$4 sm:$0xff]  }
 0x23a   : > { %1862 = vmatprep.subr.bf16.mxu1 %v18745_v33  ;;  %2952 = vmatprep.subr.bf16.mxu0 %v18745_v33 }
 0x23b   : > { %9839 = vmatprep.mubr.msk.bf16.mxu1 %vm1383_vm0, %v12132_v27  ;;  %9999 = vmatprep.mubr.msk.bf16.mxu0 %vm1383_vm0, %v12134_v28  ;;  %v12204_v27 = vld [vmem:[%s18382_s3 + $0x200] ss:$8 sps:$4 sm:$0xff]  }
 0x23c   : > { %v12207_v28 = vld [vmem:[%s18382_s3 + $0x480] ss:$8 sps:$4 sm:$0xff]  }
 0x23d   : > { %1863 = vmatpush1.bf16.msra.mxu1 %v13193_v60  ;;  %2953 = vmatpush1.bf16.msra.mxu0 %v13193_v60 }
 0x23e   : > { %1870 = vmatprep.subr.bf16.mxu1 %v18745_v33  ;;  %2960 = vmatprep.subr.bf16.mxu0 %v18745_v33 }
 0x240   : > { %1695 = vmatmul.mubr.bf16.gmra.mxu1 %v12136_v57  ;;  %2567 = vmatmul.mubr.bf16.gmra.mxu0 %v12137_v10  ;;  %v12210_v57 = vld [vmem:[%s18382_s3 + $0x214] ss:$8 sps:$4 sm:$0xff]  }
 0x241   : > { %1871 = vmatpush2.bf16.msra.mxu1 %v13340_v56  ;;  %2961 = vmatpush2.bf16.msra.mxu0 %v13340_v56  ;;  %v12212_v10 = vld [vmem:[%s18382_s3 + $0x494] ss:$8 sps:$4 sm:$0xff]  }
 0x242   : > { %1872 = vmatprep.subr.bf16.mxu1 %v18745_v33  ;;  %2962 = vmatprep.subr.bf16.mxu0 %v18745_v33 }
 0x243   : > { %9840 = vmatprep.mubr.msk.bf16.mxu1 %vm1383_vm0, %v12138_v17  ;;  %10000 = vmatprep.mubr.msk.bf16.mxu0 %vm1383_vm0, %v12140_v24 }
 0x245   : > { %1873 = vmatpush2.bf16.msra.mxu1 %v13321_v7  ;;  %2963 = vmatpush2.bf16.msra.mxu0 %v13321_v7 }
 0x246   : > { %1874 = vmatprep.subr.bf16.mxu1 %v18745_v33  ;;  %2964 = vmatprep.subr.bf16.mxu0 %v18745_v33 }
 0x248   : > { %1703 = vmatmul.mubr.bf16.gmra.mxu1 %v12142_v21  ;;  %2575 = vmatmul.mubr.bf16.gmra.mxu0 %v12143_v4 }
 0x249   : > { %1875 = vmatpush2.bf16.msra.mxu1 %v13314_v5  ;;  %2965 = vmatpush2.bf16.msra.mxu0 %v13314_v5 }
 0x24a   : > { %1876 = vmatprep.subr.bf16.mxu1 %v18745_v33  ;;  %2966 = vmatprep.subr.bf16.mxu0 %v18745_v33 }
 0x24b   : > { %9841 = vmatprep.mubr.msk.bf16.mxu1 %vm1383_vm0, %v12144_v37  ;;  %10001 = vmatprep.mubr.msk.bf16.mxu0 %vm1383_vm0, %v12146_v40 }
 0x24d   : > { %1877 = vmatpush2.bf16.msra.mxu1 %v13302_v49  ;;  %2967 = vmatpush2.bf16.msra.mxu0 %v13302_v49 }
 0x24e   : > { %1878 = vmatprep.subr.bf16.mxu1 %v18745_v33  ;;  %2968 = vmatprep.subr.bf16.mxu0 %v18745_v33 }
 0x250   : > { %1711 = vmatmul.mubr.bf16.gmra.mxu1 %v12148_v45  ;;  %2583 = vmatmul.mubr.bf16.gmra.mxu0 %v12149_v25  ;;  %v12214_v45 = vld [vmem:[%s18382_s3 + $0x210] ss:$8 sps:$4 sm:$0xff]  }
 0x251   : > { %1879 = vmatpush2.bf16.msra.mxu1 %v13291_v11  ;;  %2969 = vmatpush2.bf16.msra.mxu0 %v13291_v11  ;;  %v12215_v25 = vld [vmem:[%s18382_s3 + $0x490] ss:$8 sps:$4 sm:$0xff]  }
 0x252   : > { %9842 = vmatprep.mubr.msk.bf16.mxu1 %vm1383_vm0, %v12150_v58  ;;  %10002 = vmatprep.mubr.msk.bf16.mxu0 %vm1383_vm0, %v12152_v19 }
 0x253   : > { %2284 = vmatprep.subr.bf16.mxu1 %v18745_v33  ;;  %3374 = vmatprep.subr.bf16.mxu0 %v18745_v33 }
 0x258   : > { %1719 = vmatmul.mubr.bf16.gmra.mxu1 %v12154_v52  ;;  %2591 = vmatmul.mubr.bf16.gmra.mxu0 %v12155_v2 }
 0x259   : > { %9875 = vmatprep.mubr.msk.bf16.mxu1 %vm1383_vm0, %v12158_v20  ;;  %10075 = vmatprep.mubr.msk.bf16.mxu0 %vm1383_vm0, %v12161_v32  ;;  %v12216_v20 = vld [vmem:[%s18382_s3 + $0x224] ss:$8 sps:$4 sm:$0xff]  }
 0x25a   : > { %v12218_v32 = vld [vmem:[%s18382_s3 + $0x4a4] ss:$8 sps:$4 sm:$0xff]  }
 0x260   : > { %1881 = vmatmul.mubr.bf16.vlgmr.msra.gmra.mxu1 %v12156_v9  ;;  %2971 = vmatmul.mubr.bf16.vlgmr.msra.gmra.mxu0 %v12159_v36 }
 0x261   : > { %2285 = vmatpush1.bf16.msra.mxu1 %v13272_v41  ;;  %3375 = vmatpush1.bf16.msra.mxu0 %v13272_v41 }
 0x262   : > { %2286 = vmatprep.subr.bf16.mxu1 %v18745_v33  ;;  %3376 = vmatprep.subr.bf16.mxu0 %v18745_v33 }
 0x263   : > { %9876 = vmatprep.mubr.msk.bf16.mxu1 %vm1383_vm0, %v12162_v39  ;;  %10076 = vmatprep.mubr.msk.bf16.mxu0 %vm1383_vm0, %v12164_v51 }
 0x265   : > { %2287 = vmatpush1.bf16.msra.mxu1 %v13259_v35  ;;  %3377 = vmatpush1.bf16.msra.mxu0 %v13259_v35 }
 0x266   : > { %2288 = vmatprep.subr.bf16.mxu1 %v18745_v33  ;;  %3378 = vmatprep.subr.bf16.mxu0 %v18745_v33 }
 0x268   : > { %1889 = vmatmul.mubr.bf16.gmra.mxu1 %v12166_v46  ;;  %2979 = vmatmul.mubr.bf16.gmra.mxu0 %v12167_v48 }
 0x269   : > { %2289 = vmatpush1.bf16.msra.mxu1 %v13252_v0  ;;  %3379 = vmatpush1.bf16.msra.mxu0 %v13252_v0 }
 0x26a   : > { %2290 = vmatprep.subr.bf16.mxu1 %v18745_v33  ;;  %3380 = vmatprep.subr.bf16.mxu0 %v18745_v33 }
 0x26b   : > { %9877 = vmatprep.mubr.msk.bf16.mxu1 %vm1383_vm0, %v12168_v1  ;;  %10077 = vmatprep.mubr.msk.bf16.mxu0 %vm1383_vm0, %v12170_v23  ;;  %v12220_v1 = vld [vmem:[%s18382_s3 + $0x220] ss:$8 sps:$4 sm:$0xff]  }
 0x26c   : > { %v12221_v23 = vld [vmem:[%s18382_s3 + $0x4a0] ss:$8 sps:$4 sm:$0xff]  }
 0x26d   : > { %2291 = vmatpush1.bf16.msra.mxu1 %v13239_v42  ;;  %3381 = vmatpush1.bf16.msra.mxu0 %v13239_v42 }
 0x26e   : > { %2292 = vmatprep.subr.bf16.mxu1 %v18745_v33  ;;  %3382 = vmatprep.subr.bf16.mxu0 %v18745_v33 }
 0x270   : > { %1897 = vmatmul.mubr.bf16.gmra.mxu1 %v12172_v47  ;;  %2987 = vmatmul.mubr.bf16.gmra.mxu0 %v12173_v8  ;;  %v12272_v47 = vld [vmem:[%s18382_s3 + $0x5b4] ss:$8 sps:$4 sm:$0xff]  }
 0x271   : > { %2293 = vmatpush1.bf16.msra.mxu1 %v13228_v63  ;;  %3383 = vmatpush1.bf16.msra.mxu0 %v13228_v63 }
 0x272   : > { %2294 = vmatprep.subr.bf16.mxu1 %v18745_v33  ;;  %3384 = vmatprep.subr.bf16.mxu0 %v18745_v33 }
 0x273   : > { %9878 = vmatprep.mubr.msk.bf16.mxu1 %vm1383_vm0, %v12174_v43  ;;  %10078 = vmatprep.mubr.msk.bf16.mxu0 %vm1383_vm0, %v12176_v31 }
 0x275   : > { %2295 = vmatpush1.bf16.msra.mxu1 %v13221_v61  ;;  %3385 = vmatpush1.bf16.msra.mxu0 %v13221_v61 }
 0x276   : > { %2296 = vmatprep.subr.bf16.mxu1 %v18745_v33  ;;  %3386 = vmatprep.subr.bf16.mxu0 %v18745_v33 }
 0x278   : > { %1905 = vmatmul.mubr.bf16.gmra.mxu1 %v12178_v55  ;;  %2995 = vmatmul.mubr.bf16.gmra.mxu0 %v12179_v44  ;;  %v12222_v55 = vld [vmem:[%s18382_s3 + $0x234] ss:$8 sps:$4 sm:$0xff]  }
 0x279   : > { %2297 = vmatpush1.bf16.msra.mxu1 %v13206_v59  ;;  %3387 = vmatpush1.bf16.msra.mxu0 %v13206_v59  ;;  %v12224_v44 = vld [vmem:[%s18382_s3 + $0x4b4] ss:$8 sps:$4 sm:$0xff]  }
 0x27a   : > { %2298 = vmatprep.subr.bf16.mxu1 %v18745_v33  ;;  %3388 = vmatprep.subr.bf16.mxu0 %v18745_v33 }
 0x27b   : > { %9879 = vmatprep.mubr.msk.bf16.mxu1 %vm1383_vm0, %v12180_v3  ;;  %10079 = vmatprep.mubr.msk.bf16.mxu0 %vm1383_vm0, %v12182_v15 }
 0x27d   : > { %2299 = vmatpush1.bf16.msra.mxu1 %v13193_v60  ;;  %3389 = vmatpush1.bf16.msra.mxu0 %v13193_v60 }
 0x27e   : > { %2306 = vmatprep.subr.bf16.mxu1 %v18745_v33  ;;  %3396 = vmatprep.subr.bf16.mxu0 %v18745_v33 }
 0x280   : > { %1913 = vmatmul.mubr.bf16.gmra.mxu1 %v12184_v34  ;;  %3003 = vmatmul.mubr.bf16.gmra.mxu0 %v12185_v16 }
 0x281   : > { %2307 = vmatpush2.bf16.msra.mxu1 %v13340_v56  ;;  %3397 = vmatpush2.bf16.msra.mxu0 %v13340_v56 }
 0x282   : > { %2308 = vmatprep.subr.bf16.mxu1 %v18745_v33  ;;  %3398 = vmatprep.subr.bf16.mxu0 %v18745_v33 }
 0x283   : > { %9880 = vmatprep.mubr.msk.bf16.mxu1 %vm1383_vm0, %v12186_v22  ;;  %10080 = vmatprep.mubr.msk.bf16.mxu0 %vm1383_vm0, %v12188_v53 }
 0x285   : > { %2309 = vmatpush2.bf16.msra.mxu1 %v13321_v7  ;;  %3399 = vmatpush2.bf16.msra.mxu0 %v13321_v7 }
 0x286   : > { %2310 = vmatprep.subr.bf16.mxu1 %v18745_v33  ;;  %3400 = vmatprep.subr.bf16.mxu0 %v18745_v33 }
 0x288   : > { %1921 = vmatmul.mubr.bf16.gmra.mxu1 %v12190_v54  ;;  %3011 = vmatmul.mubr.bf16.gmra.mxu0 %v12191_v38  ;;  %v12226_v54 = vld [vmem:[%s18382_s3 + $0x230] ss:$8 sps:$4 sm:$0xff]  }
 0x289   : > { %2311 = vmatpush2.bf16.msra.mxu1 %v13314_v5  ;;  %3401 = vmatpush2.bf16.msra.mxu0 %v13314_v5  ;;  %v12227_v38 = vld [vmem:[%s18382_s3 + $0x4b0] ss:$8 sps:$4 sm:$0xff]  }
 0x28a   : > { %2312 = vmatprep.subr.bf16.mxu1 %v18745_v33  ;;  %3402 = vmatprep.subr.bf16.mxu0 %v18745_v33 }
 0x28b   : > { %9881 = vmatprep.mubr.msk.bf16.mxu1 %vm1383_vm0, %v12192_v13  ;;  %10081 = vmatprep.mubr.msk.bf16.mxu0 %vm1383_vm0, %v12194_v50  ;;  %v12270_v13 = vld [vmem:[%s18382_s3 + $0x334] ss:$8 sps:$4 sm:$0xff]  }
 0x28d   : > { %2313 = vmatpush2.bf16.msra.mxu1 %v13302_v49  ;;  %3403 = vmatpush2.bf16.msra.mxu0 %v13302_v49 }
 0x28e   : > { %2314 = vmatprep.subr.bf16.mxu1 %v18745_v33  ;;  %3404 = vmatprep.subr.bf16.mxu0 %v18745_v33 }
 0x290   : > { %1929 = vmatmul.mubr.bf16.gmra.mxu1 %v12196_v62  ;;  %3019 = vmatmul.mubr.bf16.gmra.mxu0 %v12197_v26 }
 0x291   : > { %2315 = vmatpush2.bf16.msra.mxu1 %v13291_v11  ;;  %3405 = vmatpush2.bf16.msra.mxu0 %v13291_v11 }
 0x292   : > { %9882 = vmatprep.mubr.msk.bf16.mxu1 %vm1383_vm0, %v12198_v6  ;;  %10082 = vmatprep.mubr.msk.bf16.mxu0 %vm1383_vm0, %v12200_v18  ;;  %v12228_v6 = vld [vmem:[%s18382_s3 + $0x244] ss:$8 sps:$4 sm:$0xff]  }
 0x293   : > { %2720 = vmatprep.subr.bf16.mxu1 %v18745_v33  ;;  %3810 = vmatprep.subr.bf16.mxu0 %v18745_v33  ;;  %v12230_v18 = vld [vmem:[%s18382_s3 + $0x4c4] ss:$8 sps:$4 sm:$0xff]  }
 0x298   : > { %1937 = vmatmul.mubr.bf16.gmra.mxu1 %v12202_v12  ;;  %3027 = vmatmul.mubr.bf16.gmra.mxu0 %v12203_v14 }
 0x299   : > { %9955 = vmatprep.mubr.msk.bf16.mxu1 %vm1383_vm0, %v12206_v29  ;;  %10155 = vmatprep.mubr.msk.bf16.mxu0 %vm1383_vm0, %v12209_v30 }
 0x2a0   : > { %v13866_v17 = vpop.f32.mrf.mxu1  ;;  %v13868_v24 = vpop.f32.mrf.mxu0  ;;  %2317 = vmatmul.mubr.bf16.vlgmr.msra.gmra.mxu1 %v12204_v27  ;;  %3407 = vmatmul.mubr.bf16.vlgmr.msra.gmra.mxu0 %v12207_v28 }
 0x2a1   : > { %18759 = vst [vmem:[#allocation10_spill] sm:$0xff] %v13868_v24  ;;  %2721 = vmatpush1.bf16.msra.mxu1 %v13272_v41  ;;  %3811 = vmatpush1.bf16.msra.mxu0 %v13272_v41 }
 0x2a2   : > { %v1448_v21 = vpop.f32.mrf.mxu1  ;;  %v2102_v4 = vpop.f32.mrf.mxu0  ;;  %2722 = vmatprep.subr.bf16.mxu1 %v18745_v33  ;;  %3812 = vmatprep.subr.bf16.mxu0 %v18745_v33 }
 0x2a3   : > { %9956 = vmatprep.mubr.msk.bf16.mxu1 %vm1383_vm0, %v12210_v57  ;;  %10156 = vmatprep.mubr.msk.bf16.mxu0 %vm1383_vm0, %v12212_v10  ;;  %v12232_v57 = vld [vmem:[%s18382_s3 + $0x240] ss:$8 sps:$4 sm:$0xff]  }
 0x2a4   : > { %v13876_v37 = vpop.f32.mrf.mxu1  ;;  %v13878_v40 = vpop.f32.mrf.mxu0  ;;  %v12233_v10 = vld [vmem:[%s18382_s3 + $0x4c0] ss:$8 sps:$4 sm:$0xff]  }
 0x2a5   : > { %18760 = vst [vmem:[#allocation23_spill] sm:$0xff] %v13878_v40  ;;  %2723 = vmatpush1.bf16.msra.mxu1 %v13259_v35  ;;  %3813 = vmatpush1.bf16.msra.mxu0 %v13259_v35 }
 0x2a6   : > { %v1451_v52 = vpop.f32.mrf.mxu1  ;;  %v2105_v2 = vpop.f32.mrf.mxu0  ;;  %2724 = vmatprep.subr.bf16.mxu1 %v18745_v33  ;;  %3814 = vmatprep.subr.bf16.mxu0 %v18745_v33 }
 0x2a7   : > { %v12234_v52 = vld [vmem:[%s18382_s3 + $0x254] ss:$8 sps:$4 sm:$0xff]  }
 0x2a8   : > { %v13900_v9 = vpop.f32.mrf.mxu1  ;;  %v13902_v36 = vpop.f32.mrf.mxu0  ;;  %2325 = vmatmul.mubr.bf16.gmra.mxu1 %v12214_v45  ;;  %3415 = vmatmul.mubr.bf16.gmra.mxu0 %v12215_v25  ;;  %v12236_v2 = vld [vmem:[%s18382_s3 + $0x4d4] ss:$8 sps:$4 sm:$0xff]  }
 0x2a9   : > { %18761 = vst [vmem:[#allocation11_spill] sm:$0xff] %v13902_v36  ;;  %2725 = vmatpush1.bf16.msra.mxu1 %v13252_v0  ;;  %3815 = vmatpush1.bf16.msra.mxu0 %v13252_v0  ;;  %v12294_v36 = vld [vmem:[%s18382_s3 + $0x374] ss:$8 sps:$4 sm:$0xff]  }
 0x2aa   : > { %v1456_v39 = vpop.f32.mrf.mxu1  ;;  %v2110_v51 = vpop.f32.mrf.mxu0  ;;  %2726 = vmatprep.subr.bf16.mxu1 %v18745_v33  ;;  %3816 = vmatprep.subr.bf16.mxu0 %v18745_v33 }
 0x2ab   : > { %9957 = vmatprep.mubr.msk.bf16.mxu1 %vm1383_vm0, %v12216_v20  ;;  %10157 = vmatprep.mubr.msk.bf16.mxu0 %vm1383_vm0, %v12218_v32 }
 0x2ac   : > { %v13910_v46 = vpop.f32.mrf.mxu1  ;;  %v13912_v48 = vpop.f32.mrf.mxu0 }
 0x2ad   : > { %18762 = vst [vmem:[#allocation4_spill] sm:$0xff] %v13912_v48  ;;  %2727 = vmatpush1.bf16.msra.mxu1 %v13239_v42  ;;  %3817 = vmatpush1.bf16.msra.mxu0 %v13239_v42 }
 0x2ae   : > { %v1459_v43 = vpop.f32.mrf.mxu1  ;;  %v2113_v31 = vpop.f32.mrf.mxu0  ;;  %2728 = vmatprep.subr.bf16.mxu1 %v18745_v33  ;;  %3818 = vmatprep.subr.bf16.mxu0 %v18745_v33 }
 0x2af   : > { %v12238_v43 = vld [vmem:[%s18382_s3 + $0x250] ss:$8 sps:$4 sm:$0xff]  }
 0x2b0   : > { %v13934_v3 = vpop.f32.mrf.mxu1  ;;  %v13936_v15 = vpop.f32.mrf.mxu0  ;;  %2333 = vmatmul.mubr.bf16.gmra.mxu1 %v12220_v1  ;;  %3423 = vmatmul.mubr.bf16.gmra.mxu0 %v12221_v23  ;;  %v12239_v31 = vld [vmem:[%s18382_s3 + $0x4d0] ss:$8 sps:$4 sm:$0xff]  }
 0x2b1   : > { %18763 = vst [vmem:[#allocation3_spill] sm:$0xff] %v13936_v15  ;;  %2729 = vmatpush1.bf16.msra.mxu1 %v13228_v63  ;;  %3819 = vmatpush1.bf16.msra.mxu0 %v13228_v63 }
 0x2b2   : > { %v1464_v34 = vpop.f32.mrf.mxu1  ;;  %v2118_v16 = vpop.f32.mrf.mxu0  ;;  %2730 = vmatprep.subr.bf16.mxu1 %v18745_v33  ;;  %3820 = vmatprep.subr.bf16.mxu0 %v18745_v33 }
 0x2b3   : > { %9958 = vmatprep.mubr.msk.bf16.mxu1 %vm1383_vm0, %v12222_v55  ;;  %10158 = vmatprep.mubr.msk.bf16.mxu0 %vm1383_vm0, %v12224_v44 }
 0x2b4   : > { %v13944_v22 = vpop.f32.mrf.mxu1  ;;  %v13946_v53 = vpop.f32.mrf.mxu0 }
 0x2b5   : > { %18764 = vst [vmem:[#allocation14_spill] sm:$0xff] %v13946_v53  ;;  %2731 = vmatpush1.bf16.msra.mxu1 %v13221_v61  ;;  %3821 = vmatpush1.bf16.msra.mxu0 %v13221_v61 }
 0x2b6   : > { %v1467_v62 = vpop.f32.mrf.mxu1  ;;  %v2121_v26 = vpop.f32.mrf.mxu0  ;;  %2732 = vmatprep.subr.bf16.mxu1 %v18745_v33  ;;  %3822 = vmatprep.subr.bf16.mxu0 %v18745_v33 }
 0x2b8   : > { %v13968_v12 = vpop.f32.mrf.mxu1  ;;  %v13970_v14 = vpop.f32.mrf.mxu0  ;;  %2341 = vmatmul.mubr.bf16.gmra.mxu1 %v12226_v54  ;;  %3431 = vmatmul.mubr.bf16.gmra.mxu0 %v12227_v38  ;;  %v12240_v54 = vld [vmem:[%s18382_s3 + $0x264] ss:$8 sps:$4 sm:$0xff]  }
 0x2b9   : > { %18765 = vst [vmem:[#allocation19_spill] sm:$0xff] %v13970_v14  ;;  %2733 = vmatpush1.bf16.msra.mxu1 %v13206_v59  ;;  %3823 = vmatpush1.bf16.msra.mxu0 %v13206_v59  ;;  %v12242_v38 = vld [vmem:[%s18382_s3 + $0x4e4] ss:$8 sps:$4 sm:$0xff]  }
 0x2ba   : > { %v1472_v29 = vpop.f32.mrf.mxu1  ;;  %v2126_v30 = vpop.f32.mrf.mxu0  ;;  %2734 = vmatprep.subr.bf16.mxu1 %v18745_v33  ;;  %3824 = vmatprep.subr.bf16.mxu0 %v18745_v33  ;;  %v12288_v14 = vld [vmem:[%s18382_s3 + $0x364] ss:$8 sps:$4 sm:$0xff]  }
 0x2bb   : > { %9959 = vmatprep.mubr.msk.bf16.mxu1 %vm1383_vm0, %v12228_v6  ;;  %10159 = vmatprep.mubr.msk.bf16.mxu0 %vm1383_vm0, %v12230_v18 }
 0x2bc   : > { %v13978_v27 = vpop.f32.mrf.mxu1  ;;  %v13980_v28 = vpop.f32.mrf.mxu0 }
 0x2bd   : > { %18766 = vst [vmem:[#allocation16_spill] sm:$0xff] %v13980_v28  ;;  %2735 = vmatpush1.bf16.msra.mxu1 %v13193_v60  ;;  %3825 = vmatpush1.bf16.msra.mxu0 %v13193_v60 }
 0x2be   : > { %v1475_v45 = vpop.f32.mrf.mxu1  ;;  %v2129_v25 = vpop.f32.mrf.mxu0  ;;  %2742 = vmatprep.subr.bf16.mxu1 %v18745_v33  ;;  %3832 = vmatprep.subr.bf16.mxu0 %v18745_v33 }
 0x2c0   : > { %v14002_v20 = vpop.f32.mrf.mxu1  ;;  %v14004_v32 = vpop.f32.mrf.mxu0  ;;  %2349 = vmatmul.mubr.bf16.gmra.mxu1 %v12232_v57  ;;  %3439 = vmatmul.mubr.bf16.gmra.mxu0 %v12233_v10  ;;  %v12244_v57 = vld [vmem:[%s18382_s3 + $0x260] ss:$8 sps:$4 sm:$0xff]  }
 0x2c1   : > { %18767 = vst [vmem:[#allocation6_spill] sm:$0xff] %v14004_v32  ;;  %2743 = vmatpush2.bf16.msra.mxu1 %v13340_v56  ;;  %3833 = vmatpush2.bf16.msra.mxu0 %v13340_v56  ;;  %v12245_v10 = vld [vmem:[%s18382_s3 + $0x4e0] ss:$8 sps:$4 sm:$0xff]  }
 0x2c2   : > { %v1480_v39 = vpop.f32.mrf.mxu1  ;;  %v2134_v51 = vpop.f32.mrf.mxu0  ;;  %2744 = vmatprep.subr.bf16.mxu1 %v18745_v33  ;;  %3834 = vmatprep.subr.bf16.mxu0 %v18745_v33 }
 0x2c3   : > { %9960 = vmatprep.mubr.msk.bf16.mxu1 %vm1383_vm0, %v12234_v52  ;;  %10160 = vmatprep.mubr.msk.bf16.mxu0 %vm1383_vm0, %v12236_v2  ;;  %v12246_v39 = vld [vmem:[%s18382_s3 + $0x274] ss:$8 sps:$4 sm:$0xff]  }
 0x2c4   : > { %v14012_v1 = vpop.f32.mrf.mxu1  ;;  %v14014_v23 = vpop.f32.mrf.mxu0  ;;  %v12248_v51 = vld [vmem:[%s18382_s3 + $0x4f4] ss:$8 sps:$4 sm:$0xff]  }
 0x2c5   : > { %18768 = vst [vmem:[#allocation20_spill] sm:$0xff] %v14014_v23  ;;  %2745 = vmatpush2.bf16.msra.mxu1 %v13321_v7  ;;  %3835 = vmatpush2.bf16.msra.mxu0 %v13321_v7 }
 0x2c6   : > { %v1483_v34 = vpop.f32.mrf.mxu1  ;;  %v2137_v16 = vpop.f32.mrf.mxu0  ;;  %2746 = vmatprep.subr.bf16.mxu1 %v18745_v33  ;;  %3836 = vmatprep.subr.bf16.mxu0 %v18745_v33 }
 0x2c8   : > { %v14036_v62 = vpop.f32.mrf.mxu1  ;;  %v14038_v26 = vpop.f32.mrf.mxu0  ;;  %2357 = vmatmul.mubr.bf16.gmra.mxu1 %v12238_v43  ;;  %3447 = vmatmul.mubr.bf16.gmra.mxu0 %v12239_v31 }
 0x2c9   : > { %18769 = vst [vmem:[#allocation21_spill] sm:$0xff] %v14038_v26  ;;  %2747 = vmatpush2.bf16.msra.mxu1 %v13314_v5  ;;  %3837 = vmatpush2.bf16.msra.mxu0 %v13314_v5  ;;  %v12282_v26 = vld [vmem:[%s18382_s3 + $0x354] ss:$8 sps:$4 sm:$0xff]  }
 0x2ca   : > { %v1488_v6 = vpop.f32.mrf.mxu1  ;;  %v2142_v18 = vpop.f32.mrf.mxu0  ;;  %2748 = vmatprep.subr.bf16.mxu1 %v18745_v33  ;;  %3838 = vmatprep.subr.bf16.mxu0 %v18745_v33 }
 0x2cb   : > { %9961 = vmatprep.mubr.msk.bf16.mxu1 %vm1383_vm0, %v12240_v54  ;;  %10161 = vmatprep.mubr.msk.bf16.mxu0 %vm1383_vm0, %v12242_v38  ;;  %v12250_v6 = vld [vmem:[%s18382_s3 + $0x270] ss:$8 sps:$4 sm:$0xff]  }
 0x2cc   : > { %v14046_v29 = vpop.f32.mrf.mxu1  ;;  %v14048_v30 = vpop.f32.mrf.mxu0  ;;  %v12251_v18 = vld [vmem:[%s18382_s3 + $0x4f0] ss:$8 sps:$4 sm:$0xff]  }
 0x2cd   : > { %18770 = vst [vmem:[#allocation2_spill] sm:$0xff] %v14048_v30  ;;  %2749 = vmatpush2.bf16.msra.mxu1 %v13302_v49  ;;  %3839 = vmatpush2.bf16.msra.mxu0 %v13302_v49 }
 0x2ce   : > { %v1491_v52 = vpop.f32.mrf.mxu1  ;;  %v2145_v2 = vpop.f32.mrf.mxu0  ;;  %2750 = vmatprep.subr.bf16.mxu1 %v18745_v33  ;;  %3840 = vmatprep.subr.bf16.mxu0 %v18745_v33 }
 0x2cf   : > { %v12254_v52 = vld [vmem:[%s18382_s3 + $0x304] ss:$8 sps:$4 sm:$0xff]  }
 0x2d0   : > { %v14070_v43 = vpop.f32.mrf.mxu1  ;;  %v14072_v31 = vpop.f32.mrf.mxu0  ;;  %2365 = vmatmul.mubr.bf16.gmra.mxu1 %v12244_v57  ;;  %3455 = vmatmul.mubr.bf16.gmra.mxu0 %v12245_v10  ;;  %v12257_v2 = vld [vmem:[%s18382_s3 + $0x584] ss:$8 sps:$4 sm:$0xff]  }
 0x2d1   : > { %18771 = vst [vmem:[#allocation12_spill] sm:$0xff] %v14072_v31  ;;  %2751 = vmatpush2.bf16.msra.mxu1 %v13291_v11  ;;  %3841 = vmatpush2.bf16.msra.mxu0 %v13291_v11  ;;  %v12266_v57 = vld [vmem:[%s18382_s3 + $0x5a4] ss:$8 sps:$4 sm:$0xff]  }
 0x2d2   : > { %v1496_v34 = vpop.f32.mrf.mxu1  ;;  %v2150_v16 = vpop.f32.mrf.mxu0  ;;  %9962 = vmatprep.mubr.msk.bf16.mxu1 %vm1383_vm0, %v12246_v39  ;;  %10162 = vmatprep.mubr.msk.bf16.mxu0 %vm1383_vm0, %v12248_v51 }
 0x2d3   : > { %3156 = vmatprep.subr.bf16.mxu1 %v18745_v33  ;;  %4246 = vmatprep.subr.bf16.mxu0 %v18745_v33 }
 0x2d4   : > { %v14080_v54 = vpop.f32.mrf.mxu1  ;;  %v14082_v38 = vpop.f32.mrf.mxu0 }
 0x2d5   : > { %18772 = vst [vmem:[#allocation26_spill] sm:$0xff] %v14082_v38 }
 0x2d6   : > { %v1499_v39 = vpop.f32.mrf.mxu1  ;;  %v2153_v51 = vpop.f32.mrf.mxu0 }
 0x2d7   : > { %v12252_v39 = vld [vmem:[%s18382_s3 + $0x300] ss:$8 sps:$4 sm:$0xff]  }
 0x2d8   : > { %v14100_v34 = vpop.f32.mrf.mxu1  ;;  %v14102_v16 = vpop.f32.mrf.mxu0  ;;  %2373 = vmatmul.mubr.bf16.gmra.mxu1 %v12250_v6  ;;  %3463 = vmatmul.mubr.bf16.gmra.mxu0 %v12251_v18  ;;  %v12255_v51 = vld [vmem:[%s18382_s3 + $0x580] ss:$8 sps:$4 sm:$0xff]   ;;  %v12264_v6 = vld [vmem:[%s18382_s3 + $0x324] ss:$8 sps:$4 sm:$0xff]  }
 0x2d9   : > { %18773 = vst [vmem:[#allocation13_spill] sm:$0xff] %v14102_v16  ;;  %10035 = vmatprep.mubr.msk.bf16.mxu1 %vm1383_vm0, %v12254_v52  ;;  %10235 = vmatprep.mubr.msk.bf16.mxu0 %vm1383_vm0, %v12257_v2  ;;  %v12258_v52 = vld [vmem:[%s18382_s3 + $0x314] ss:$8 sps:$4 sm:$0xff]   ;;  %v12276_v16 = vld [vmem:[%s18382_s3 + $0x344] ss:$8 sps:$4 sm:$0xff]  }
 0x2da   : > { %v1504_v10 = vpop.f32.mrf.mxu1  ;;  %v2158_v25 = vpop.f32.mrf.mxu0  ;;  %v12260_v2 = vld [vmem:[%s18382_s3 + $0x594] ss:$8 sps:$4 sm:$0xff]  }
 0x2dc   : > { %v14106_v44 = vpop.f32.mrf.mxu1  ;;  %v14108_v4 = vpop.f32.mrf.mxu0 }
 0x2dd   : > { %18774 = vst [vmem:[#allocation8_spill] sm:$0xff] %v14108_v4 }
 0x2de   : > { %v1507_v10 = vpop.f32.mrf.mxu1  ;;  %v2161_v25 = vpop.f32.mrf.mxu0 }
 0x2e0   : > { %v14126_v50 = vpop.f32.mrf.mxu1  ;;  %v14128_v8 = vpop.f32.mrf.mxu0  ;;  %2753 = vmatmul.mubr.bf16.vlgmr.msra.gmra.mxu1 %v12252_v39  ;;  %3843 = vmatmul.mubr.bf16.vlgmr.msra.gmra.mxu0 %v12255_v51  ;;  %v12262_v39 = vld [vmem:[%s18382_s3 + $0x310] ss:$8 sps:$4 sm:$0xff]  }
 0x2e1   : > { %3157 = vmatpush1.bf16.msra.mxu1 %v13272_v41  ;;  %4247 = vmatpush1.bf16.msra.mxu0 %v13272_v41  ;;  %v12263_v51 = vld [vmem:[%s18382_s3 + $0x590] ss:$8 sps:$4 sm:$0xff]  }
 0x2e2   : > { %v1666_v10 = vpop.f32.mrf.mxu1  ;;  %v2538_v25 = vpop.f32.mrf.mxu0  ;;  %3158 = vmatprep.subr.bf16.mxu1 %v18745_v33  ;;  %4248 = vmatprep.subr.bf16.mxu0 %v18745_v33 }
 0x2e3   : > { %10036 = vmatprep.mubr.msk.bf16.mxu1 %vm1383_vm0, %v12258_v52  ;;  %10236 = vmatprep.mubr.msk.bf16.mxu0 %vm1383_vm0, %v12260_v2 }
 0x2e4   : > { %v14136_v18 = vpop.f32.mrf.mxu1  ;;  %v14138_v19 = vpop.f32.mrf.mxu0 }
 0x2e5   : > { %3159 = vmatpush1.bf16.msra.mxu1 %v13259_v35  ;;  %4249 = vmatpush1.bf16.msra.mxu0 %v13259_v35 }
 0x2e6   : > { %v1669_v2 = vpop.f32.mrf.mxu1  ;;  %v2541_v25 = vpop.f32.mrf.mxu0  ;;  %3160 = vmatprep.subr.bf16.mxu1 %v18745_v33  ;;  %4250 = vmatprep.subr.bf16.mxu0 %v18745_v33 }
 0x2e8   : > { %v14160_v45 = vpop.f32.mrf.mxu1  ;;  %v14162_v52 = vpop.f32.mrf.mxu0  ;;  %2761 = vmatmul.mubr.bf16.gmra.mxu1 %v12262_v39  ;;  %3851 = vmatmul.mubr.bf16.gmra.mxu0 %v12263_v51  ;;  %v12268_v39 = vld [vmem:[%s18382_s3 + $0x320] ss:$8 sps:$4 sm:$0xff]  }
 0x2e9   : > { %18775 = vst [vmem:[#allocation22_spill] sm:$0xff] %v14162_v52  ;;  %3161 = vmatpush1.bf16.msra.mxu1 %v13252_v0  ;;  %4251 = vmatpush1.bf16.msra.mxu0 %v13252_v0  ;;  %v12269_v51 = vld [vmem:[%s18382_s3 + $0x5a0] ss:$8 sps:$4 sm:$0xff]  }
 0x2ea   : > { %v1674_v2 = vpop.f32.mrf.mxu1  ;;  %v2546_v25 = vpop.f32.mrf.mxu0  ;;  %3162 = vmatprep.subr.bf16.mxu1 %v18745_v33  ;;  %4252 = vmatprep.subr.bf16.mxu0 %v18745_v33 }
 0x2eb   : > { %10037 = vmatprep.mubr.msk.bf16.mxu1 %vm1383_vm0, %v12264_v6  ;;  %10237 = vmatprep.mubr.msk.bf16.mxu0 %vm1383_vm0, %v12266_v57 }
 0x2ec   : > { %v14170_v55 = vpop.f32.mrf.mxu1  ;;  %v14172_v21 = vpop.f32.mrf.mxu0 }
 0x2ed   : > { %18776 = vst [vmem:[#allocation18_spill] sm:$0xff] %v14172_v21  ;;  %3163 = vmatpush1.bf16.msra.mxu1 %v13239_v42  ;;  %4253 = vmatpush1.bf16.msra.mxu0 %v13239_v42 }
 0x2ee   : > { %v1677_v57 = vpop.f32.mrf.mxu1  ;;  %v2549_v25 = vpop.f32.mrf.mxu0  ;;  %3164 = vmatprep.subr.bf16.mxu1 %v18745_v33  ;;  %4254 = vmatprep.subr.bf16.mxu0 %v18745_v33 }
 0x2f0   : > { %v14194_v2 = vpop.f32.mrf.mxu1  ;;  %v14196_v6 = vpop.f32.mrf.mxu0  ;;  %2769 = vmatmul.mubr.bf16.gmra.mxu1 %v12268_v39  ;;  %3859 = vmatmul.mubr.bf16.gmra.mxu0 %v12269_v51  ;;  %v12274_v39 = vld [vmem:[%s18382_s3 + $0x330] ss:$8 sps:$4 sm:$0xff]  }
 0x2f1   : > { %18777 = vst [vmem:[#allocation9_spill] sm:$0xff] %v14196_v6  ;;  %3165 = vmatpush1.bf16.msra.mxu1 %v13228_v63  ;;  %4255 = vmatpush1.bf16.msra.mxu0 %v13228_v63  ;;  %v12275_v51 = vld [vmem:[%s18382_s3 + $0x5b0] ss:$8 sps:$4 sm:$0xff]  }
 0x2f2   : > { %v1682_v57 = vpop.f32.mrf.mxu1  ;;  %v2554_v25 = vpop.f32.mrf.mxu0  ;;  %3166 = vmatprep.subr.bf16.mxu1 %v18745_v33  ;;  %4256 = vmatprep.subr.bf16.mxu0 %v18745_v33 }
 0x2f3   : > { %10038 = vmatprep.mubr.msk.bf16.mxu1 %vm1383_vm0, %v12270_v13  ;;  %10238 = vmatprep.mubr.msk.bf16.mxu0 %vm1383_vm0, %v12272_v47  ;;  %v12278_v57 = vld [vmem:[%s18382_s3 + $0x5c4] ss:$8 sps:$4 sm:$0xff]  }
 0x2f4   : > { %v14204_v58 = vpop.f32.mrf.mxu1  ;;  %v14206_v10 = vpop.f32.mrf.mxu0 }
 0x2f5   : > { %18778 = vst [vmem:[#allocation24_spill] sm:$0xff] %v14206_v10  ;;  %3167 = vmatpush1.bf16.msra.mxu1 %v13221_v61  ;;  %4257 = vmatpush1.bf16.msra.mxu0 %v13221_v61 }
 0x2f6   : > { %v1685_v47 = vpop.f32.mrf.mxu1  ;;  %v2557_v25 = vpop.f32.mrf.mxu0  ;;  %3168 = vmatprep.subr.bf16.mxu1 %v18745_v33  ;;  %4258 = vmatprep.subr.bf16.mxu0 %v18745_v33 }
 0x2f8   : > { %v14228_v4 = vpop.f32.mrf.mxu1  ;;  %v14230_v13 = vpop.f32.mrf.mxu0  ;;  %2777 = vmatmul.mubr.bf16.gmra.mxu1 %v12274_v39  ;;  %3867 = vmatmul.mubr.bf16.gmra.mxu0 %v12275_v51  ;;  %v12280_v39 = vld [vmem:[%s18382_s3 + $0x340] ss:$8 sps:$4 sm:$0xff]  }
 0x2f9   : > { %18779 = vst [vmem:[#allocation7_spill] sm:$0xff] %v14230_v13  ;;  %3169 = vmatpush1.bf16.msra.mxu1 %v13206_v59  ;;  %4259 = vmatpush1.bf16.msra.mxu0 %v13206_v59  ;;  %v12281_v51 = vld [vmem:[%s18382_s3 + $0x5c0] ss:$8 sps:$4 sm:$0xff]  }
 0x2fa   : > { %v1690_v47 = vpop.f32.mrf.mxu1  ;;  %v2562_v25 = vpop.f32.mrf.mxu0  ;;  %3170 = vmatprep.subr.bf16.mxu1 %v18745_v33  ;;  %4260 = vmatprep.subr.bf16.mxu0 %v18745_v33 }
 0x2fb   : > { %10039 = vmatprep.mubr.msk.bf16.mxu1 %vm1383_vm0, %v12276_v16  ;;  %10239 = vmatprep.mubr.msk.bf16.mxu0 %vm1383_vm0, %v12278_v57  ;;  %v12284_v47 = vld [vmem:[%s18382_s3 + $0x5d4] ss:$8 sps:$4 sm:$0xff]  }
 0x2fc   : > { %v14238_v31 = vpop.f32.mrf.mxu1  ;;  %v14240_v38 = vpop.f32.mrf.mxu0 }
 0x2fd   : > { %18780 = vst [vmem:[#allocation17_spill] sm:$0xff] %v14240_v38  ;;  %3171 = vmatpush1.bf16.msra.mxu1 %v13193_v60  ;;  %4261 = vmatpush1.bf16.msra.mxu0 %v13193_v60 }
 0x2fe   : > { %v1693_v57 = vpop.f32.mrf.mxu1  ;;  %v2565_v25 = vpop.f32.mrf.mxu0  ;;  %3178 = vmatprep.subr.bf16.mxu1 %v18745_v33  ;;  %4268 = vmatprep.subr.bf16.mxu0 %v18745_v33 }
 0x300   : > { %v14262_v30 = vpop.f32.mrf.mxu1  ;;  %v14264_v16 = vpop.f32.mrf.mxu0  ;;  %2785 = vmatmul.mubr.bf16.gmra.mxu1 %v12280_v39  ;;  %3875 = vmatmul.mubr.bf16.gmra.mxu0 %v12281_v51  ;;  %v12286_v39 = vld [vmem:[%s18382_s3 + $0x350] ss:$8 sps:$4 sm:$0xff]  }
 0x301   : > { %18781 = vst [vmem:[#allocation25_spill] sm:$0xff] %v14264_v16  ;;  %3179 = vmatpush2.bf16.msra.mxu1 %v13340_v56  ;;  %4269 = vmatpush2.bf16.msra.mxu0 %v13340_v56  ;;  %v12287_v51 = vld [vmem:[%s18382_s3 + $0x5d0] ss:$8 sps:$4 sm:$0xff]  }
 0x302   : > { %v1698_v57 = vpop.f32.mrf.mxu1  ;;  %v2570_v25 = vpop.f32.mrf.mxu0  ;;  %3180 = vmatprep.subr.bf16.mxu1 %v18745_v33  ;;  %4270 = vmatprep.subr.bf16.mxu0 %v18745_v33 }
 0x303   : > { %10040 = vmatprep.mubr.msk.bf16.mxu1 %vm1383_vm0, %v12282_v26  ;;  %10240 = vmatprep.mubr.msk.bf16.mxu0 %vm1383_vm0, %v12284_v47  ;;  %v12290_v57 = vld [vmem:[%s18382_s3 + $0x5e4] ss:$8 sps:$4 sm:$0xff]  }
 0x304   : > { %v14272_v32 = vpop.f32.mrf.mxu1  ;;  %v14274_v23 = vpop.f32.mrf.mxu0 }
 0x305   : > { %18782 = vst [vmem:[#allocation5_spill] sm:$0xff] %v14274_v23  ;;  %3181 = vmatpush2.bf16.msra.mxu1 %v13321_v7  ;;  %4271 = vmatpush2.bf16.msra.mxu0 %v13321_v7 }
 0x306   : > { %v1701_v47 = vpop.f32.mrf.mxu1  ;;  %v2573_v25 = vpop.f32.mrf.mxu0  ;;  %3182 = vmatprep.subr.bf16.mxu1 %v18745_v33  ;;  %4272 = vmatprep.subr.bf16.mxu0 %v18745_v33 }
 0x308   : > { %v14296_v28 = vpop.f32.mrf.mxu1  ;;  %v14298_v26 = vpop.f32.mrf.mxu0  ;;  %2793 = vmatmul.mubr.bf16.gmra.mxu1 %v12286_v39  ;;  %3883 = vmatmul.mubr.bf16.gmra.mxu0 %v12287_v51  ;;  %v12292_v39 = vld [vmem:[%s18382_s3 + $0x360] ss:$8 sps:$4 sm:$0xff]  }
 0x309   : > { %18783 = vst [vmem:[#allocation15_spill] sm:$0xff] %v14298_v26  ;;  %3183 = vmatpush2.bf16.msra.mxu1 %v13314_v5  ;;  %4273 = vmatpush2.bf16.msra.mxu0 %v13314_v5  ;;  %v12293_v51 = vld [vmem:[%s18382_s3 + $0x5e0] ss:$8 sps:$4 sm:$0xff]  }
 0x30a   : > { %v1706_v47 = vpop.f32.mrf.mxu1  ;;  %v2578_v25 = vpop.f32.mrf.mxu0  ;;  %3184 = vmatprep.subr.bf16.mxu1 %v18745_v33  ;;  %4274 = vmatprep.subr.bf16.mxu0 %v18745_v33 }
 0x30b   : > { %10041 = vmatprep.mubr.msk.bf16.mxu1 %vm1383_vm0, %v12288_v14  ;;  %10241 = vmatprep.mubr.msk.bf16.mxu0 %vm1383_vm0, %v12290_v57  ;;  %v12296_v47 = vld [vmem:[%s18382_s3 + $0x5f4] ss:$8 sps:$4 sm:$0xff]  }
 0x30c   : > { %v14306_v15 = vpop.f32.mrf.mxu1  ;;  %v14308_v53 = vpop.f32.mrf.mxu0 }
 0x30d   : > { %18784 = vst [vmem:[#allocation27_spill] sm:$0xff] %v14308_v53  ;;  %3185 = vmatpush2.bf16.msra.mxu1 %v13302_v49  ;;  %4275 = vmatpush2.bf16.msra.mxu0 %v13302_v49 }
 0x30e   : > { %v1709_v57 = vpop.f32.mrf.mxu1  ;;  %v2581_v25 = vpop.f32.mrf.mxu0  ;;  %3186 = vmatprep.subr.bf16.mxu1 %v18745_v33  ;;  %4276 = vmatprep.subr.bf16.mxu0 %v18745_v33 }
 0x310   : > { %v14330_v48 = vpop.f32.mrf.mxu1  ;;  %v14332_v14 = vpop.f32.mrf.mxu0  ;;  %2801 = vmatmul.mubr.bf16.gmra.mxu1 %v12292_v39  ;;  %3891 = vmatmul.mubr.bf16.gmra.mxu0 %v12293_v51  ;;  %v12298_v39 = vld [vmem:[%s18382_s3 + $0x370] ss:$8 sps:$4 sm:$0xff]  }
 0x311   : > { %18785 = vst [vmem:[#allocation28_spill] sm:$0xff] %v14332_v14  ;;  %3187 = vmatpush2.bf16.msra.mxu1 %v13291_v11  ;;  %4277 = vmatpush2.bf16.msra.mxu0 %v13291_v11  ;;  %v12299_v51 = vld [vmem:[%s18382_s3 + $0x5f0] ss:$8 sps:$4 sm:$0xff]  }
 0x312   : > { %v1714_v57 = vpop.f32.mrf.mxu1  ;;  %v2586_v25 = vpop.f32.mrf.mxu0  ;;  %10042 = vmatprep.mubr.msk.bf16.mxu1 %vm1383_vm0, %v12294_v36  ;;  %10242 = vmatprep.mubr.msk.bf16.mxu0 %vm1383_vm0, %v12296_v47 }
 0x313   : > { %3592 = vmatprep.subr.bf16.mxu1 %v18745_v33  ;;  %4682 = vmatprep.subr.bf16.mxu0 %v18745_v33  ;;  %v12302_v57 = vld [vmem:[%s18382_s3 + $0x404] ss:$8 sps:$4 sm:$0xff]  }
 0x314   : > { %v14340_v24 = vpop.f32.mrf.mxu1  ;;  %v14342_v40 = vpop.f32.mrf.mxu0  ;;  %v12305_v25 = vld [vmem:[%s18382_s3 + $0x684] ss:$8 sps:$4 sm:$0xff]  }
 0x315   : > { %18786 = vst [vmem:[#allocation29_spill] sm:$0xff] %v14342_v40 }
 0x316   : > { %v1717_v26 = vpop.f32.mrf.mxu1  ;;  %v2589_v53 = vpop.f32.mrf.mxu0 }
 0x317   : > { %v12300_v53 = vld [vmem:[%s18382_s3 + $0x400] ss:$8 sps:$4 sm:$0xff]  }
 0x318   : > { %v14360_v16 = vpop.f32.mrf.mxu1  ;;  %v14362_v23 = vpop.f32.mrf.mxu0  ;;  %2809 = vmatmul.mubr.bf16.gmra.mxu1 %v12298_v39  ;;  %3899 = vmatmul.mubr.bf16.gmra.mxu0 %v12299_v51  ;;  %v12303_v26 = vld [vmem:[%s18382_s3 + $0x680] ss:$8 sps:$4 sm:$0xff]  }
 0x319   : > { %18787 = vst [vmem:[#allocation30_spill] sm:$0xff] %v14362_v23  ;;  %10115 = vmatprep.mubr.msk.bf16.mxu1 %vm1383_vm0, %v12302_v57  ;;  %10315 = vmatprep.mubr.msk.bf16.mxu0 %vm1383_vm0, %v12305_v25  ;;  %v12306_v57 = vld [vmem:[%s18382_s3 + $0x414] ss:$8 sps:$4 sm:$0xff]   ;;  %v12312_v23 = vld [vmem:[%s18382_s3 + $0x424] ss:$8 sps:$4 sm:$0xff]  }
 0x31a   : > { %v1722_v47 = vpop.f32.mrf.mxu1  ;;  %v2594_v36 = vpop.f32.mrf.mxu0  ;;  %v12308_v25 = vld [vmem:[%s18382_s3 + $0x694] ss:$8 sps:$4 sm:$0xff]  }
 0x31c   : > { %v14366_v14 = vpop.f32.mrf.mxu1  ;;  %v14368_v40 = vpop.f32.mrf.mxu0 }
 0x31d   : > { %18788 = vst [vmem:[#allocation31_spill] sm:$0xff] %v14368_v40 }
 0x31e   : > { %v1725_v47 = vpop.f32.mrf.mxu1  ;;  %v2597_v36 = vpop.f32.mrf.mxu0 }
 0x320   : > { %v14386_v13 = vpop.f32.mrf.mxu1  ;;  %v14388_v38 = vpop.f32.mrf.mxu0  ;;  %3189 = vmatmul.mubr.bf16.vlgmr.msra.gmra.mxu1 %v12300_v53  ;;  %4279 = vmatmul.mubr.bf16.vlgmr.msra.gmra.mxu0 %v12303_v26  ;;  %v12310_v53 = vld [vmem:[%s18382_s3 + $0x410] ss:$8 sps:$4 sm:$0xff]  }
 0x321   : > { %18789 = vst [vmem:[#allocation32_spill] sm:$0xff] %v14386_v13  ;;  %18790 = vst [vmem:[#allocation33_spill] sm:$0xff] %v14388_v38  ;;  %3593 = vmatpush1.bf16.msra.mxu1 %v13272_v41  ;;  %4683 = vmatpush1.bf16.msra.mxu0 %v13272_v41  ;;  %v12311_v26 = vld [vmem:[%s18382_s3 + $0x690] ss:$8 sps:$4 sm:$0xff]  }
 0x322   : > { %v1884_v47 = vpop.f32.mrf.mxu1  ;;  %v2974_v36 = vpop.f32.mrf.mxu0  ;;  %3594 = vmatprep.subr.bf16.mxu1 %v18745_v33  ;;  %4684 = vmatprep.subr.bf16.mxu0 %v18745_v33 }
 0x323   : > { %10116 = vmatprep.mubr.msk.bf16.mxu1 %vm1383_vm0, %v12306_v57  ;;  %10316 = vmatprep.mubr.msk.bf16.mxu0 %vm1383_vm0, %v12308_v25  ;;  %v12314_v47 = vld [vmem:[%s18382_s3 + $0x6a4] ss:$8 sps:$4 sm:$0xff]  }
 0x324   : > { %v14396_v51 = vpop.f32.mrf.mxu1  ;;  %v14398_v39 = vpop.f32.mrf.mxu0 }
 0x325   : > { %18791 = vst [vmem:[#allocation34_spill] sm:$0xff] %v14396_v51  ;;  %18792 = vst [vmem:[#allocation35_spill] sm:$0xff] %v14398_v39  ;;  %3595 = vmatpush1.bf16.msra.mxu1 %v13259_v35  ;;  %4685 = vmatpush1.bf16.msra.mxu0 %v13259_v35  ;;  %v12318_v51 = vld [vmem:[%s18382_s3 + $0x434] ss:$8 sps:$4 sm:$0xff]  }
 0x326   : > { %v1887_v25 = vpop.f32.mrf.mxu1  ;;  %v2977_v36 = vpop.f32.mrf.mxu0  ;;  %3596 = vmatprep.subr.bf16.mxu1 %v18745_v33  ;;  %4686 = vmatprep.subr.bf16.mxu0 %v18745_v33 }
 0x328   : > { %v14420_v13 = vpop.f32.mrf.mxu1  ;;  %v14422_v57 = vpop.f32.mrf.mxu0  ;;  %3197 = vmatmul.mubr.bf16.gmra.mxu1 %v12310_v53  ;;  %4287 = vmatmul.mubr.bf16.gmra.mxu0 %v12311_v26  ;;  %v12316_v53 = vld [vmem:[%s18382_s3 + $0x420] ss:$8 sps:$4 sm:$0xff]  }
 0x329   : > { %18793 = vst [vmem:[#allocation36_spill] sm:$0xff] %v14420_v13  ;;  %18794 = vst [vmem:[#allocation37_spill] sm:$0xff] %v14422_v57  ;;  %3597 = vmatpush1.bf16.msra.mxu1 %v13252_v0  ;;  %4687 = vmatpush1.bf16.msra.mxu0 %v13252_v0  ;;  %v12317_v26 = vld [vmem:[%s18382_s3 + $0x6a0] ss:$8 sps:$4 sm:$0xff]  }
 0x32a   : > { %v1892_v25 = vpop.f32.mrf.mxu1  ;;  %v2982_v36 = vpop.f32.mrf.mxu0  ;;  %3598 = vmatprep.subr.bf16.mxu1 %v18745_v33  ;;  %4688 = vmatprep.subr.bf16.mxu0 %v18745_v33 }
 0x32b   : > { %10117 = vmatprep.mubr.msk.bf16.mxu1 %vm1383_vm0, %v12312_v23  ;;  %10317 = vmatprep.mubr.msk.bf16.mxu0 %vm1383_vm0, %v12314_v47  ;;  %v12320_v25 = vld [vmem:[%s18382_s3 + $0x6b4] ss:$8 sps:$4 sm:$0xff]  }
 0x32c   : > { %v14430_v38 = vpop.f32.mrf.mxu1  ;;  %v14432_v39 = vpop.f32.mrf.mxu0 }
 0x32d   : > { %18795 = vst [vmem:[#allocation38_spill] sm:$0xff] %v14430_v38  ;;  %18796 = vst [vmem:[#allocation39_spill] sm:$0xff] %v14432_v39  ;;  %3599 = vmatpush1.bf16.msra.mxu1 %v13239_v42  ;;  %4689 = vmatpush1.bf16.msra.mxu0 %v13239_v42  ;;  %v12324_v38 = vld [vmem:[%s18382_s3 + $0x444] ss:$8 sps:$4 sm:$0xff]  }
 0x32e   : > { %v1895_v47 = vpop.f32.mrf.mxu1  ;;  %v2985_v36 = vpop.f32.mrf.mxu0  ;;  %3600 = vmatprep.subr.bf16.mxu1 %v18745_v33  ;;  %4690 = vmatprep.subr.bf16.mxu0 %v18745_v33 }
 0x330   : > { %v14454_v13 = vpop.f32.mrf.mxu1  ;;  %v14456_v23 = vpop.f32.mrf.mxu0  ;;  %3205 = vmatmul.mubr.bf16.gmra.mxu1 %v12316_v53  ;;  %4295 = vmatmul.mubr.bf16.gmra.mxu0 %v12317_v26  ;;  %v12322_v53 = vld [vmem:[%s18382_s3 + $0x430] ss:$8 sps:$4 sm:$0xff]  }
 0x331   : > { %18797 = vst [vmem:[#allocation40_spill] sm:$0xff] %v14454_v13  ;;  %18798 = vst [vmem:[#allocation41_spill] sm:$0xff] %v14456_v23  ;;  %3601 = vmatpush1.bf16.msra.mxu1 %v13228_v63  ;;  %4691 = vmatpush1.bf16.msra.mxu0 %v13228_v63  ;;  %v12323_v26 = vld [vmem:[%s18382_s3 + $0x6b0] ss:$8 sps:$4 sm:$0xff]  }
 0x332   : > { %v1900_v47 = vpop.f32.mrf.mxu1  ;;  %v2990_v36 = vpop.f32.mrf.mxu0  ;;  %3602 = vmatprep.subr.bf16.mxu1 %v18745_v33  ;;  %4692 = vmatprep.subr.bf16.mxu0 %v18745_v33 }
 0x333   : > { %10118 = vmatprep.mubr.msk.bf16.mxu1 %vm1383_vm0, %v12318_v51  ;;  %10318 = vmatprep.mubr.msk.bf16.mxu0 %vm1383_vm0, %v12320_v25  ;;  %v12326_v47 = vld [vmem:[%s18382_s3 + $0x6c4] ss:$8 sps:$4 sm:$0xff]  }
 0x334   : > { %v14464_v57 = vpop.f32.mrf.mxu1  ;;  %v14466_v39 = vpop.f32.mrf.mxu0 }
 0x335   : > { %18799 = vst [vmem:[#allocation42_spill] sm:$0xff] %v14464_v57  ;;  %18800 = vst [vmem:[#allocation43_spill] sm:$0xff] %v14466_v39  ;;  %3603 = vmatpush1.bf16.msra.mxu1 %v13221_v61  ;;  %4693 = vmatpush1.bf16.msra.mxu0 %v13221_v61  ;;  %v12330_v57 = vld [vmem:[%s18382_s3 + $0x454] ss:$8 sps:$4 sm:$0xff]  }
 0x336   : > { %v1903_v25 = vpop.f32.mrf.mxu1  ;;  %v2993_v36 = vpop.f32.mrf.mxu0  ;;  %3604 = vmatprep.subr.bf16.mxu1 %v18745_v33  ;;  %4694 = vmatprep.subr.bf16.mxu0 %v18745_v33 }
 0x338   : > { %v14488_v13 = vpop.f32.mrf.mxu1  ;;  %v14490_v51 = vpop.f32.mrf.mxu0  ;;  %3213 = vmatmul.mubr.bf16.gmra.mxu1 %v12322_v53  ;;  %4303 = vmatmul.mubr.bf16.gmra.mxu0 %v12323_v26  ;;  %v12328_v53 = vld [vmem:[%s18382_s3 + $0x440] ss:$8 sps:$4 sm:$0xff]  }
 0x339   : > { %18801 = vst [vmem:[#allocation44_spill] sm:$0xff] %v14488_v13  ;;  %18802 = vst [vmem:[#allocation45_spill] sm:$0xff] %v14490_v51  ;;  %3605 = vmatpush1.bf16.msra.mxu1 %v13206_v59  ;;  %4695 = vmatpush1.bf16.msra.mxu0 %v13206_v59  ;;  %v12329_v26 = vld [vmem:[%s18382_s3 + $0x6c0] ss:$8 sps:$4 sm:$0xff]  }
 0x33a   : > { %v1908_v25 = vpop.f32.mrf.mxu1  ;;  %v2998_v36 = vpop.f32.mrf.mxu0  ;;  %3606 = vmatprep.subr.bf16.mxu1 %v18745_v33  ;;  %4696 = vmatprep.subr.bf16.mxu0 %v18745_v33 }
 0x33b   : > { %10119 = vmatprep.mubr.msk.bf16.mxu1 %vm1383_vm0, %v12324_v38  ;;  %10319 = vmatprep.mubr.msk.bf16.mxu0 %vm1383_vm0, %v12326_v47  ;;  %v12332_v25 = vld [vmem:[%s18382_s3 + $0x6d4] ss:$8 sps:$4 sm:$0xff]  }
 0x33c   : > { %v14498_v23 = vpop.f32.mrf.mxu1  ;;  %v14500_v39 = vpop.f32.mrf.mxu0 }
 0x33d   : > { %18803 = vst [vmem:[#allocation46_spill] sm:$0xff] %v14498_v23  ;;  %18804 = vst [vmem:[#allocation47_spill] sm:$0xff] %v14500_v39  ;;  %3607 = vmatpush1.bf16.msra.mxu1 %v13193_v60  ;;  %4697 = vmatpush1.bf16.msra.mxu0 %v13193_v60  ;;  %v12336_v23 = vld [vmem:[%s18382_s3 + $0x464] ss:$8 sps:$4 sm:$0xff]  }
 0x33e   : > { %v1911_v47 = vpop.f32.mrf.mxu1  ;;  %v3001_v36 = vpop.f32.mrf.mxu0  ;;  %3614 = vmatprep.subr.bf16.mxu1 %v18745_v33  ;;  %4704 = vmatprep.subr.bf16.mxu0 %v18745_v33 }
 0x340   : > { %v14522_v13 = vpop.f32.mrf.mxu1  ;;  %v14524_v38 = vpop.f32.mrf.mxu0  ;;  %3221 = vmatmul.mubr.bf16.gmra.mxu1 %v12328_v53  ;;  %4311 = vmatmul.mubr.bf16.gmra.mxu0 %v12329_v26  ;;  %v12334_v53 = vld [vmem:[%s18382_s3 + $0x450] ss:$8 sps:$4 sm:$0xff]  }
 0x341   : > { %18805 = vst [vmem:[#allocation48_spill] sm:$0xff] %v14522_v13  ;;  %18806 = vst [vmem:[#allocation49_spill] sm:$0xff] %v14524_v38  ;;  %3615 = vmatpush2.bf16.msra.mxu1 %v13340_v56  ;;  %4705 = vmatpush2.bf16.msra.mxu0 %v13340_v56  ;;  %v12335_v26 = vld [vmem:[%s18382_s3 + $0x6d0] ss:$8 sps:$4 sm:$0xff]  }
 0x342   : > { %v1916_v47 = vpop.f32.mrf.mxu1  ;;  %v3006_v36 = vpop.f32.mrf.mxu0  ;;  %3616 = vmatprep.subr.bf16.mxu1 %v18745_v33  ;;  %4706 = vmatprep.subr.bf16.mxu0 %v18745_v33 }
 0x343   : > { %10120 = vmatprep.mubr.msk.bf16.mxu1 %vm1383_vm0, %v12330_v57  ;;  %10320 = vmatprep.mubr.msk.bf16.mxu0 %vm1383_vm0, %v12332_v25  ;;  %v12338_v47 = vld [vmem:[%s18382_s3 + $0x6e4] ss:$8 sps:$4 sm:$0xff]  }
 0x344   : > { %v14532_v51 = vpop.f32.mrf.mxu1  ;;  %v14534_v39 = vpop.f32.mrf.mxu0 }
 0x345   : > { %18807 = vst [vmem:[#allocation50_spill] sm:$0xff] %v14532_v51  ;;  %18808 = vst [vmem:[#allocation51_spill] sm:$0xff] %v14534_v39  ;;  %3617 = vmatpush2.bf16.msra.mxu1 %v13321_v7  ;;  %4707 = vmatpush2.bf16.msra.mxu0 %v13321_v7  ;;  %v12342_v51 = vld [vmem:[%s18382_s3 + $0x474] ss:$8 sps:$4 sm:$0xff]  }
 0x346   : > { %v1919_v25 = vpop.f32.mrf.mxu1  ;;  %v3009_v36 = vpop.f32.mrf.mxu0  ;;  %3618 = vmatprep.subr.bf16.mxu1 %v18745_v33  ;;  %4708 = vmatprep.subr.bf16.mxu0 %v18745_v33 }
 0x348   : > { %v14556_v13 = vpop.f32.mrf.mxu1  ;;  %v14558_v57 = vpop.f32.mrf.mxu0  ;;  %3229 = vmatmul.mubr.bf16.gmra.mxu1 %v12334_v53  ;;  %4319 = vmatmul.mubr.bf16.gmra.mxu0 %v12335_v26  ;;  %v12340_v53 = vld [vmem:[%s18382_s3 + $0x460] ss:$8 sps:$4 sm:$0xff]  }
 0x349   : > { %18809 = vst [vmem:[#allocation52_spill] sm:$0xff] %v14556_v13  ;;  %18810 = vst [vmem:[#allocation53_spill] sm:$0xff] %v14558_v57  ;;  %3619 = vmatpush2.bf16.msra.mxu1 %v13314_v5  ;;  %4709 = vmatpush2.bf16.msra.mxu0 %v13314_v5  ;;  %v12341_v26 = vld [vmem:[%s18382_s3 + $0x6e0] ss:$8 sps:$4 sm:$0xff]  }
 0x34a   : > { %v1924_v25 = vpop.f32.mrf.mxu1  ;;  %v3014_v36 = vpop.f32.mrf.mxu0  ;;  %3620 = vmatprep.subr.bf16.mxu1 %v18745_v33  ;;  %4710 = vmatprep.subr.bf16.mxu0 %v18745_v33 }
 0x34b   : > { %10121 = vmatprep.mubr.msk.bf16.mxu1 %vm1383_vm0, %v12336_v23  ;;  %10321 = vmatprep.mubr.msk.bf16.mxu0 %vm1383_vm0, %v12338_v47  ;;  %v12344_v25 = vld [vmem:[%s18382_s3 + $0x6f4] ss:$8 sps:$4 sm:$0xff]  }
 0x34c   : > { %v14566_v38 = vpop.f32.mrf.mxu1  ;;  %v14568_v39 = vpop.f32.mrf.mxu0 }
 0x34d   : > { %18811 = vst [vmem:[#allocation54_spill] sm:$0xff] %v14566_v38  ;;  %18812 = vst [vmem:[#allocation55_spill] sm:$0xff] %v14568_v39  ;;  %3621 = vmatpush2.bf16.msra.mxu1 %v13302_v49  ;;  %4711 = vmatpush2.bf16.msra.mxu0 %v13302_v49 }
 0x34e   : > { %v1927_v47 = vpop.f32.mrf.mxu1  ;;  %v3017_v36 = vpop.f32.mrf.mxu0  ;;  %3622 = vmatprep.subr.bf16.mxu1 %v18745_v33  ;;  %4712 = vmatprep.subr.bf16.mxu0 %v18745_v33 }
 0x350   : > { %v14590_v13 = vpop.f32.mrf.mxu1  ;;  %v14592_v23 = vpop.f32.mrf.mxu0  ;;  %3237 = vmatmul.mubr.bf16.gmra.mxu1 %v12340_v53  ;;  %4327 = vmatmul.mubr.bf16.gmra.mxu0 %v12341_v26  ;;  %v12346_v53 = vld [vmem:[%s18382_s3 + $0x470] ss:$8 sps:$4 sm:$0xff]  }
 0x351   : > { %18813 = vst [vmem:[#allocation56_spill] sm:$0xff] %v14590_v13  ;;  %18814 = vst [vmem:[#allocation57_spill] sm:$0xff] %v14592_v23  ;;  %3623 = vmatpush2.bf16.msra.mxu1 %v13291_v11  ;;  %4713 = vmatpush2.bf16.msra.mxu0 %v13291_v11  ;;  %v12347_v26 = vld [vmem:[%s18382_s3 + $0x6f0] ss:$8 sps:$4 sm:$0xff]  }
 0x352   : > { %v1932_v47 = vpop.f32.mrf.mxu1  ;;  %v3022_v36 = vpop.f32.mrf.mxu0  ;;  %10122 = vmatprep.mubr.msk.bf16.mxu1 %vm1383_vm0, %v12342_v51  ;;  %10322 = vmatprep.mubr.msk.bf16.mxu0 %vm1383_vm0, %v12344_v25 }
 0x353   : > { %4028 = vmatprep.subr.bf16.mxu1 %v18745_v33  ;;  %5118 = vmatprep.subr.bf16.mxu0 %v18745_v33  ;;  %v12350_v47 = vld [vmem:[%s18382_s3 + $0x504] ss:$8 sps:$4 sm:$0xff]  }
 0x354   : > { %v14600_v57 = vpop.f32.mrf.mxu1  ;;  %v14602_v39 = vpop.f32.mrf.mxu0  ;;  %v12353_v36 = vld [vmem:[%s18382_s3 + $0x784] ss:$8 sps:$4 sm:$0xff]  }
 0x355   : > { %18815 = vst [vmem:[#allocation58_spill] sm:$0xff] %v14600_v57  ;;  %18816 = vst [vmem:[#allocation59_spill] sm:$0xff] %v14602_v39 }
 0x356   : > { %v1935_v38 = vpop.f32.mrf.mxu1  ;;  %v3025_v40 = vpop.f32.mrf.mxu0 }
 0x357   : > { %v12348_v40 = vld [vmem:[%s18382_s3 + $0x500] ss:$8 sps:$4 sm:$0xff]  }
 0x358   : > { %v14620_v6 = vpop.f32.mrf.mxu1  ;;  %v14622_v10 = vpop.f32.mrf.mxu0  ;;  %3245 = vmatmul.mubr.bf16.gmra.mxu1 %v12346_v53  ;;  %4335 = vmatmul.mubr.bf16.gmra.mxu0 %v12347_v26  ;;  %v12351_v38 = vld [vmem:[%s18382_s3 + $0x780] ss:$8 sps:$4 sm:$0xff]  }
 0x359   : > { %18817 = vst [vmem:[#allocation60_spill] sm:$0xff] %v14620_v6  ;;  %18818 = vst [vmem:[#allocation61_spill] sm:$0xff] %v14622_v10  ;;  %10195 = vmatprep.mubr.msk.bf16.mxu1 %vm1383_vm0, %v12350_v47  ;;  %10395 = vmatprep.mubr.msk.bf16.mxu0 %vm1383_vm0, %v12353_v36  ;;  %v12354_v47 = vld [vmem:[%s18382_s3 + $0x514] ss:$8 sps:$4 sm:$0xff]   ;;  %v12360_v10 = vld [vmem:[%s18382_s3 + $0x524] ss:$8 sps:$4 sm:$0xff]  }
 0x35a   : > { %v1940_v25 = vpop.f32.mrf.mxu1  ;;  %v3030_v51 = vpop.f32.mrf.mxu0  ;;  %v12356_v36 = vld [vmem:[%s18382_s3 + $0x794] ss:$8 sps:$4 sm:$0xff]  }
 0x35c   : > { %v14626_v23 = vpop.f32.mrf.mxu1  ;;  %v14628_v39 = vpop.f32.mrf.mxu0 }
 0x35d   : > { %18819 = vst [vmem:[#allocation62_spill] sm:$0xff] %v14626_v23  ;;  %18820 = vst [vmem:[#allocation63_spill] sm:$0xff] %v14628_v39 }
 0x35e   : > { %v1943_v25 = vpop.f32.mrf.mxu1  ;;  %v3033_v51 = vpop.f32.mrf.mxu0 }
 0x360   : > { %v14646_v13 = vpop.f32.mrf.mxu1  ;;  %v14648_v57 = vpop.f32.mrf.mxu0  ;;  %3625 = vmatmul.mubr.bf16.vlgmr.msra.gmra.mxu1 %v12348_v40  ;;  %4715 = vmatmul.mubr.bf16.vlgmr.msra.gmra.mxu0 %v12351_v38  ;;  %v12358_v40 = vld [vmem:[%s18382_s3 + $0x510] ss:$8 sps:$4 sm:$0xff]  }
 0x361   : > { %18821 = vst [vmem:[#allocation64_spill] sm:$0xff] %v14648_v57  ;;  %4029 = vmatpush1.bf16.msra.mxu1 %v13272_v41  ;;  %5119 = vmatpush1.bf16.msra.mxu0 %v13272_v41  ;;  %v12359_v38 = vld [vmem:[%s18382_s3 + $0x790] ss:$8 sps:$4 sm:$0xff]   ;;  %v12366_v57 = vld [vmem:[%s18382_s3 + $0x534] ss:$8 sps:$4 sm:$0xff]  }
 0x362   : > { %v2320_v25 = vpop.f32.mrf.mxu1  ;;  %v3410_v51 = vpop.f32.mrf.mxu0  ;;  %4030 = vmatprep.subr.bf16.mxu1 %v18745_v33  ;;  %5120 = vmatprep.subr.bf16.mxu0 %v18745_v33 }
 0x363   : > { %10196 = vmatprep.mubr.msk.bf16.mxu1 %vm1383_vm0, %v12354_v47  ;;  %10396 = vmatprep.mubr.msk.bf16.mxu0 %vm1383_vm0, %v12356_v36  ;;  %v12362_v25 = vld [vmem:[%s18382_s3 + $0x7a4] ss:$8 sps:$4 sm:$0xff]  }
 0x364   : > { %v14656_v26 = vpop.f32.mrf.mxu1  ;;  %v14658_v53 = vpop.f32.mrf.mxu0 }
 0x365   : > { %18822 = vst [vmem:[#allocation65_spill] sm:$0xff] %v14658_v53  ;;  %4031 = vmatpush1.bf16.msra.mxu1 %v13259_v35  ;;  %5121 = vmatpush1.bf16.msra.mxu0 %v13259_v35 }
 0x366   : > { %v2323_v36 = vpop.f32.mrf.mxu1  ;;  %v3413_v51 = vpop.f32.mrf.mxu0  ;;  %4032 = vmatprep.subr.bf16.mxu1 %v18745_v33  ;;  %5122 = vmatprep.subr.bf16.mxu0 %v18745_v33 }
 0x368   : > { %v14680_v39 = vpop.f32.mrf.mxu1  ;;  %v14682_v47 = vpop.f32.mrf.mxu0  ;;  %3633 = vmatmul.mubr.bf16.gmra.mxu1 %v12358_v40  ;;  %4723 = vmatmul.mubr.bf16.gmra.mxu0 %v12359_v38  ;;  %v12364_v40 = vld [vmem:[%s18382_s3 + $0x520] ss:$8 sps:$4 sm:$0xff]  }
 0x369   : > { %18823 = vst [vmem:[#allocation66_spill] sm:$0xff] %v14680_v39  ;;  %18824 = vst [vmem:[#allocation67_spill] sm:$0xff] %v14682_v47  ;;  %4033 = vmatpush1.bf16.msra.mxu1 %v13252_v0  ;;  %5123 = vmatpush1.bf16.msra.mxu0 %v13252_v0  ;;  %v12365_v38 = vld [vmem:[%s18382_s3 + $0x7a0] ss:$8 sps:$4 sm:$0xff]   ;;  %v12372_v39 = vld [vmem:[%s18382_s3 + $0x544] ss:$8 sps:$4 sm:$0xff]  }
 0x36a   : > { %v2328_v36 = vpop.f32.mrf.mxu1  ;;  %v3418_v51 = vpop.f32.mrf.mxu0  ;;  %4034 = vmatprep.subr.bf16.mxu1 %v18745_v33  ;;  %5124 = vmatprep.subr.bf16.mxu0 %v18745_v33 }
 0x36b   : > { %10197 = vmatprep.mubr.msk.bf16.mxu1 %vm1383_vm0, %v12360_v10  ;;  %10397 = vmatprep.mubr.msk.bf16.mxu0 %vm1383_vm0, %v12362_v25  ;;  %v12368_v36 = vld [vmem:[%s18382_s3 + $0x7b4] ss:$8 sps:$4 sm:$0xff]  }
 0x36c   : > { %v14690_v6 = vpop.f32.mrf.mxu1  ;;  %v14692_v23 = vpop.f32.mrf.mxu0 }
 0x36d   : > { %18825 = vst [vmem:[#allocation68_spill] sm:$0xff] %v14690_v6  ;;  %18826 = vst [vmem:[#allocation69_spill] sm:$0xff] %v14692_v23  ;;  %4035 = vmatpush1.bf16.msra.mxu1 %v13239_v42  ;;  %5125 = vmatpush1.bf16.msra.mxu0 %v13239_v42 }
 0x36e   : > { %v2331_v25 = vpop.f32.mrf.mxu1  ;;  %v3421_v51 = vpop.f32.mrf.mxu0  ;;  %4036 = vmatprep.subr.bf16.mxu1 %v18745_v33  ;;  %5126 = vmatprep.subr.bf16.mxu0 %v18745_v33 }
 0x370   : > { %v14714_v53 = vpop.f32.mrf.mxu1  ;;  %v14716_v10 = vpop.f32.mrf.mxu0  ;;  %3641 = vmatmul.mubr.bf16.gmra.mxu1 %v12364_v40  ;;  %4731 = vmatmul.mubr.bf16.gmra.mxu0 %v12365_v38  ;;  %v12370_v40 = vld [vmem:[%s18382_s3 + $0x530] ss:$8 sps:$4 sm:$0xff]  }
 0x371   : > { %18827 = vst [vmem:[#allocation70_spill] sm:$0xff] %v14714_v53  ;;  %18828 = vst [vmem:[#allocation71_spill] sm:$0xff] %v14716_v10  ;;  %4037 = vmatpush1.bf16.msra.mxu1 %v13228_v63  ;;  %5127 = vmatpush1.bf16.msra.mxu0 %v13228_v63  ;;  %v12371_v38 = vld [vmem:[%s18382_s3 + $0x7b0] ss:$8 sps:$4 sm:$0xff]  }
 0x372   : > { %v2336_v25 = vpop.f32.mrf.mxu1  ;;  %v3426_v51 = vpop.f32.mrf.mxu0  ;;  %4038 = vmatprep.subr.bf16.mxu1 %v18745_v33  ;;  %5128 = vmatprep.subr.bf16.mxu0 %v18745_v33 }
 0x373   : > { %10198 = vmatprep.mubr.msk.bf16.mxu1 %vm1383_vm0, %v12366_v57  ;;  %10398 = vmatprep.mubr.msk.bf16.mxu0 %vm1383_vm0, %v12368_v36  ;;  %v12374_v25 = vld [vmem:[%s18382_s3 + $0x7c4] ss:$8 sps:$4 sm:$0xff]  }
 0x374   : > { %v14724_v47 = vpop.f32.mrf.mxu1  ;;  %v14726_v23 = vpop.f32.mrf.mxu0 }
 0x375   : > { %18829 = vst [vmem:[#allocation72_spill] sm:$0xff] %v14724_v47  ;;  %18830 = vst [vmem:[#allocation73_spill] sm:$0xff] %v14726_v23  ;;  %4039 = vmatpush1.bf16.msra.mxu1 %v13221_v61  ;;  %5129 = vmatpush1.bf16.msra.mxu0 %v13221_v61  ;;  %v12378_v47 = vld [vmem:[%s18382_s3 + $0x554] ss:$8 sps:$4 sm:$0xff]  }
 0x376   : > { %v2339_v36 = vpop.f32.mrf.mxu1  ;;  %v3429_v51 = vpop.f32.mrf.mxu0  ;;  %4040 = vmatprep.subr.bf16.mxu1 %v18745_v33  ;;  %5130 = vmatprep.subr.bf16.mxu0 %v18745_v33 }
 0x378   : > { %v14748_v53 = vpop.f32.mrf.mxu1  ;;  %v14750_v57 = vpop.f32.mrf.mxu0  ;;  %3649 = vmatmul.mubr.bf16.gmra.mxu1 %v12370_v40  ;;  %4739 = vmatmul.mubr.bf16.gmra.mxu0 %v12371_v38  ;;  %v12376_v40 = vld [vmem:[%s18382_s3 + $0x540] ss:$8 sps:$4 sm:$0xff]  }
 0x379   : > { %18831 = vst [vmem:[#allocation74_spill] sm:$0xff] %v14748_v53  ;;  %18832 = vst [vmem:[#allocation75_spill] sm:$0xff] %v14750_v57  ;;  %4041 = vmatpush1.bf16.msra.mxu1 %v13206_v59  ;;  %5131 = vmatpush1.bf16.msra.mxu0 %v13206_v59  ;;  %v12377_v38 = vld [vmem:[%s18382_s3 + $0x7c0] ss:$8 sps:$4 sm:$0xff]  }
 0x37a   : > { %v2344_v36 = vpop.f32.mrf.mxu1  ;;  %v3434_v51 = vpop.f32.mrf.mxu0  ;;  %4042 = vmatprep.subr.bf16.mxu1 %v18745_v33  ;;  %5132 = vmatprep.subr.bf16.mxu0 %v18745_v33 }
 0x37b   : > { %10199 = vmatprep.mubr.msk.bf16.mxu1 %vm1383_vm0, %v12372_v39  ;;  %10399 = vmatprep.mubr.msk.bf16.mxu0 %vm1383_vm0, %v12374_v25  ;;  %v12380_v36 = vld [vmem:[%s18382_s3 + $0x7d4] ss:$8 sps:$4 sm:$0xff]  }
 0x37c   : > { %v14758_v10 = vpop.f32.mrf.mxu1  ;;  %v14760_v23 = vpop.f32.mrf.mxu0 }
 0x37d   : > { %18833 = vst [vmem:[#allocation76_spill] sm:$0xff] %v14758_v10  ;;  %18834 = vst [vmem:[#allocation77_spill] sm:$0xff] %v14760_v23  ;;  %4043 = vmatpush1.bf16.msra.mxu1 %v13193_v60  ;;  %5133 = vmatpush1.bf16.msra.mxu0 %v13193_v60  ;;  %v12384_v10 = vld [vmem:[%s18382_s3 + $0x564] ss:$8 sps:$4 sm:$0xff]  }
 0x37e   : > { %v2347_v25 = vpop.f32.mrf.mxu1  ;;  %v3437_v51 = vpop.f32.mrf.mxu0  ;;  %4050 = vmatprep.subr.bf16.mxu1 %v18745_v33  ;;  %5140 = vmatprep.subr.bf16.mxu0 %v18745_v33 }
 0x380   : > { %v14782_v53 = vpop.f32.mrf.mxu1  ;;  %v14784_v39 = vpop.f32.mrf.mxu0  ;;  %3657 = vmatmul.mubr.bf16.gmra.mxu1 %v12376_v40  ;;  %4747 = vmatmul.mubr.bf16.gmra.mxu0 %v12377_v38  ;;  %v12382_v40 = vld [vmem:[%s18382_s3 + $0x550] ss:$8 sps:$4 sm:$0xff]  }
 0x381   : > { %18835 = vst [vmem:[#allocation78_spill] sm:$0xff] %v14782_v53  ;;  %18836 = vst [vmem:[#allocation79_spill] sm:$0xff] %v14784_v39  ;;  %4051 = vmatpush2.bf16.msra.mxu1 %v13340_v56  ;;  %5141 = vmatpush2.bf16.msra.mxu0 %v13340_v56  ;;  %v12383_v38 = vld [vmem:[%s18382_s3 + $0x7d0] ss:$8 sps:$4 sm:$0xff]  }
 0x382   : > { %v2352_v25 = vpop.f32.mrf.mxu1  ;;  %v3442_v51 = vpop.f32.mrf.mxu0  ;;  %4052 = vmatprep.subr.bf16.mxu1 %v18745_v33  ;;  %5142 = vmatprep.subr.bf16.mxu0 %v18745_v33 }
 0x383   : > { %10200 = vmatprep.mubr.msk.bf16.mxu1 %vm1383_vm0, %v12378_v47  ;;  %10400 = vmatprep.mubr.msk.bf16.mxu0 %vm1383_vm0, %v12380_v36  ;;  %v12386_v25 = vld [vmem:[%s18382_s3 + $0x7e4] ss:$8 sps:$4 sm:$0xff]  }
 0x384   : > { %v14792_v57 = vpop.f32.mrf.mxu1  ;;  %v14794_v23 = vpop.f32.mrf.mxu0 }
 0x385   : > { %18837 = vst [vmem:[#allocation80_spill] sm:$0xff] %v14792_v57  ;;  %18838 = vst [vmem:[#allocation81_spill] sm:$0xff] %v14794_v23  ;;  %4053 = vmatpush2.bf16.msra.mxu1 %v13321_v7  ;;  %5143 = vmatpush2.bf16.msra.mxu0 %v13321_v7  ;;  %v12390_v57 = vld [vmem:[%s18382_s3 + $0x574] ss:$8 sps:$4 sm:$0xff]  }
 0x386   : > { %v2355_v36 = vpop.f32.mrf.mxu1  ;;  %v3445_v51 = vpop.f32.mrf.mxu0  ;;  %4054 = vmatprep.subr.bf16.mxu1 %v18745_v33  ;;  %5144 = vmatprep.subr.bf16.mxu0 %v18745_v33 }
 0x388   : > { %v14816_v53 = vpop.f32.mrf.mxu1  ;;  %v14818_v47 = vpop.f32.mrf.mxu0  ;;  %3665 = vmatmul.mubr.bf16.gmra.mxu1 %v12382_v40  ;;  %4755 = vmatmul.mubr.bf16.gmra.mxu0 %v12383_v38  ;;  %v12388_v40 = vld [vmem:[%s18382_s3 + $0x560] ss:$8 sps:$4 sm:$0xff]  }
 0x389   : > { %18839 = vst [vmem:[#allocation82_spill] sm:$0xff] %v14816_v53  ;;  %18840 = vst [vmem:[#allocation83_spill] sm:$0xff] %v14818_v47  ;;  %4055 = vmatpush2.bf16.msra.mxu1 %v13314_v5  ;;  %5145 = vmatpush2.bf16.msra.mxu0 %v13314_v5  ;;  %v12389_v38 = vld [vmem:[%s18382_s3 + $0x7e0] ss:$8 sps:$4 sm:$0xff]  }
 0x38a   : > { %v2360_v36 = vpop.f32.mrf.mxu1  ;;  %v3450_v51 = vpop.f32.mrf.mxu0  ;;  %4056 = vmatprep.subr.bf16.mxu1 %v18745_v33  ;;  %5146 = vmatprep.subr.bf16.mxu0 %v18745_v33 }
 0x38b   : > { %10201 = vmatprep.mubr.msk.bf16.mxu1 %vm1383_vm0, %v12384_v10  ;;  %10401 = vmatprep.mubr.msk.bf16.mxu0 %vm1383_vm0, %v12386_v25  ;;  %v12392_v36 = vld [vmem:[%s18382_s3 + $0x7f4] ss:$8 sps:$4 sm:$0xff]  }
 0x38c   : > { %v14826_v39 = vpop.f32.mrf.mxu1  ;;  %v14828_v23 = vpop.f32.mrf.mxu0 }
 0x38d   : > { %18841 = vst [vmem:[#allocation84_spill] sm:$0xff] %v14826_v39  ;;  %18842 = vst [vmem:[#allocation85_spill] sm:$0xff] %v14828_v23  ;;  %4057 = vmatpush2.bf16.msra.mxu1 %v13302_v49  ;;  %5147 = vmatpush2.bf16.msra.mxu0 %v13302_v49 }
 0x38e   : > { %v2363_v25 = vpop.f32.mrf.mxu1  ;;  %v3453_v51 = vpop.f32.mrf.mxu0  ;;  %4058 = vmatprep.subr.bf16.mxu1 %v18745_v33  ;;  %5148 = vmatprep.subr.bf16.mxu0 %v18745_v33 }
 0x390   : > { %v14850_v53 = vpop.f32.mrf.mxu1  ;;  %v14852_v10 = vpop.f32.mrf.mxu0  ;;  %3673 = vmatmul.mubr.bf16.gmra.mxu1 %v12388_v40  ;;  %4763 = vmatmul.mubr.bf16.gmra.mxu0 %v12389_v38  ;;  %v12394_v40 = vld [vmem:[%s18382_s3 + $0x570] ss:$8 sps:$4 sm:$0xff]  }
 0x391   : > { %18843 = vst [vmem:[#allocation86_spill] sm:$0xff] %v14850_v53  ;;  %18844 = vst [vmem:[#allocation87_spill] sm:$0xff] %v14852_v10  ;;  %4059 = vmatpush2.bf16.msra.mxu1 %v13291_v11  ;;  %5149 = vmatpush2.bf16.msra.mxu0 %v13291_v11  ;;  %v12395_v38 = vld [vmem:[%s18382_s3 + $0x7f0] ss:$8 sps:$4 sm:$0xff]  }
 0x392   : > { %v2368_v25 = vpop.f32.mrf.mxu1  ;;  %v3458_v51 = vpop.f32.mrf.mxu0  ;;  %10202 = vmatprep.mubr.msk.bf16.mxu1 %vm1383_vm0, %v12390_v57  ;;  %10402 = vmatprep.mubr.msk.bf16.mxu0 %vm1383_vm0, %v12392_v36 }
 0x393   : > { %4464 = vmatprep.subr.bf16.mxu1 %v18745_v33  ;;  %5554 = vmatprep.subr.bf16.mxu0 %v18745_v33  ;;  %v12398_v25 = vld [vmem:[%s18382_s3 + $0x604] ss:$8 sps:$4 sm:$0xff]  }
 0x394   : > { %v14860_v47 = vpop.f32.mrf.mxu1  ;;  %v14862_v23 = vpop.f32.mrf.mxu0  ;;  %v12401_v51 = vld [vmem:[%s18382_s3 + $0x884] ss:$8 sps:$4 sm:$0xff]  }
 0x395   : > { %18845 = vst [vmem:[#allocation88_spill] sm:$0xff] %v14860_v47  ;;  %18846 = vst [vmem:[#allocation89_spill] sm:$0xff] %v14862_v23 }
 0x396   : > { %v2371_v39 = vpop.f32.mrf.mxu1  ;;  %v3461_v6 = vpop.f32.mrf.mxu0 }
 0x397   : > { %v12396_v6 = vld [vmem:[%s18382_s3 + $0x600] ss:$8 sps:$4 sm:$0xff]  }
 0x398   : > { %v14880_v52 = vpop.f32.mrf.mxu1  ;;  %v14882_v21 = vpop.f32.mrf.mxu0  ;;  %3681 = vmatmul.mubr.bf16.gmra.mxu1 %v12394_v40  ;;  %4771 = vmatmul.mubr.bf16.gmra.mxu0 %v12395_v38  ;;  %v12399_v39 = vld [vmem:[%s18382_s3 + $0x880] ss:$8 sps:$4 sm:$0xff]  }
 0x399   : > { %18847 = vst [vmem:[#allocation90_spill] sm:$0xff] %v14880_v52  ;;  %18848 = vst [vmem:[#allocation91_spill] sm:$0xff] %v14882_v21  ;;  %10275 = vmatprep.mubr.msk.bf16.mxu1 %vm1383_vm0, %v12398_v25  ;;  %10475 = vmatprep.mubr.msk.bf16.mxu0 %vm1383_vm0, %v12401_v51  ;;  %v12402_v25 = vld [vmem:[%s18382_s3 + $0x614] ss:$8 sps:$4 sm:$0xff]   ;;  %v12408_v21 = vld [vmem:[%s18382_s3 + $0x624] ss:$8 sps:$4 sm:$0xff]  }
 0x39a   : > { %v2376_v36 = vpop.f32.mrf.mxu1  ;;  %v3466_v57 = vpop.f32.mrf.mxu0  ;;  %v12404_v51 = vld [vmem:[%s18382_s3 + $0x894] ss:$8 sps:$4 sm:$0xff]  }
 0x39c   : > { %v14886_v10 = vpop.f32.mrf.mxu1  ;;  %v14888_v23 = vpop.f32.mrf.mxu0 }
 0x39d   : > { %18849 = vst [vmem:[#allocation92_spill] sm:$0xff] %v14886_v10  ;;  %18850 = vst [vmem:[#allocation93_spill] sm:$0xff] %v14888_v23 }
 0x39e   : > { %v2379_v36 = vpop.f32.mrf.mxu1  ;;  %v3469_v57 = vpop.f32.mrf.mxu0 }
 0x3a0   : > { %v14906_v53 = vpop.f32.mrf.mxu1  ;;  %v14908_v47 = vpop.f32.mrf.mxu0  ;;  %4061 = vmatmul.mubr.bf16.vlgmr.msra.gmra.mxu1 %v12396_v6  ;;  %5151 = vmatmul.mubr.bf16.vlgmr.msra.gmra.mxu0 %v12399_v39  ;;  %v12406_v6 = vld [vmem:[%s18382_s3 + $0x610] ss:$8 sps:$4 sm:$0xff]  }
 0x3a1   : > { %18851 = vst [vmem:[#allocation94_spill] sm:$0xff] %v14906_v53  ;;  %18852 = vst [vmem:[#allocation95_spill] sm:$0xff] %v14908_v47  ;;  %4465 = vmatpush1.bf16.msra.mxu1 %v13272_v41  ;;  %5555 = vmatpush1.bf16.msra.mxu0 %v13272_v41  ;;  %v12407_v39 = vld [vmem:[%s18382_s3 + $0x890] ss:$8 sps:$4 sm:$0xff]  }
 0x3a2   : > { %v2756_v36 = vpop.f32.mrf.mxu1  ;;  %v3846_v57 = vpop.f32.mrf.mxu0  ;;  %4466 = vmatprep.subr.bf16.mxu1 %v18745_v33  ;;  %5556 = vmatprep.subr.bf16.mxu0 %v18745_v33 }
 0x3a3   : > { %10276 = vmatprep.mubr.msk.bf16.mxu1 %vm1383_vm0, %v12402_v25  ;;  %10476 = vmatprep.mubr.msk.bf16.mxu0 %vm1383_vm0, %v12404_v51  ;;  %v12410_v36 = vld [vmem:[%s18382_s3 + $0x8a4] ss:$8 sps:$4 sm:$0xff]  }
 0x3a4   : > { %v14916_v38 = vpop.f32.mrf.mxu1  ;;  %v14918_v40 = vpop.f32.mrf.mxu0 }
 0x3a5   : > { %18853 = vst [vmem:[#allocation96_spill] sm:$0xff] %v14916_v38  ;;  %18854 = vst [vmem:[#allocation97_spill] sm:$0xff] %v14918_v40  ;;  %4467 = vmatpush1.bf16.msra.mxu1 %v13259_v35  ;;  %5557 = vmatpush1.bf16.msra.mxu0 %v13259_v35  ;;  %v12414_v38 = vld [vmem:[%s18382_s3 + $0x634] ss:$8 sps:$4 sm:$0xff]  }
 0x3a6   : > { %v2759_v51 = vpop.f32.mrf.mxu1  ;;  %v3849_v57 = vpop.f32.mrf.mxu0  ;;  %4468 = vmatprep.subr.bf16.mxu1 %v18745_v33  ;;  %5558 = vmatprep.subr.bf16.mxu0 %v18745_v33 }
 0x3a8   : > { %v14940_v53 = vpop.f32.mrf.mxu1  ;;  %v14942_v25 = vpop.f32.mrf.mxu0  ;;  %4069 = vmatmul.mubr.bf16.gmra.mxu1 %v12406_v6  ;;  %5159 = vmatmul.mubr.bf16.gmra.mxu0 %v12407_v39  ;;  %v12412_v6 = vld [vmem:[%s18382_s3 + $0x620] ss:$8 sps:$4 sm:$0xff]  }
 0x3a9   : > { %18855 = vst [vmem:[#allocation98_spill] sm:$0xff] %v14940_v53  ;;  %18856 = vst [vmem:[#allocation99_spill] sm:$0xff] %v14942_v25  ;;  %4469 = vmatpush1.bf16.msra.mxu1 %v13252_v0  ;;  %5559 = vmatpush1.bf16.msra.mxu0 %v13252_v0  ;;  %v12413_v39 = vld [vmem:[%s18382_s3 + $0x8a0] ss:$8 sps:$4 sm:$0xff]  }
 0x3aa   : > { %v2764_v51 = vpop.f32.mrf.mxu1  ;;  %v3854_v57 = vpop.f32.mrf.mxu0  ;;  %4470 = vmatprep.subr.bf16.mxu1 %v18745_v33  ;;  %5560 = vmatprep.subr.bf16.mxu0 %v18745_v33 }
 0x3ab   : > { %10277 = vmatprep.mubr.msk.bf16.mxu1 %vm1383_vm0, %v12408_v21  ;;  %10477 = vmatprep.mubr.msk.bf16.mxu0 %vm1383_vm0, %v12410_v36  ;;  %v12416_v51 = vld [vmem:[%s18382_s3 + $0x8b4] ss:$8 sps:$4 sm:$0xff]  }
 0x3ac   : > { %v14950_v47 = vpop.f32.mrf.mxu1  ;;  %v14952_v40 = vpop.f32.mrf.mxu0 }
 0x3ad   : > { %18857 = vst [vmem:[#allocation100_spill] sm:$0xff] %v14950_v47  ;;  %18858 = vst [vmem:[#allocation101_spill] sm:$0xff] %v14952_v40  ;;  %4471 = vmatpush1.bf16.msra.mxu1 %v13239_v42  ;;  %5561 = vmatpush1.bf16.msra.mxu0 %v13239_v42  ;;  %v12420_v47 = vld [vmem:[%s18382_s3 + $0x644] ss:$8 sps:$4 sm:$0xff]  }
 0x3ae   : > { %v2767_v36 = vpop.f32.mrf.mxu1  ;;  %v3857_v57 = vpop.f32.mrf.mxu0  ;;  %4472 = vmatprep.subr.bf16.mxu1 %v18745_v33  ;;  %5562 = vmatprep.subr.bf16.mxu0 %v18745_v33 }
 0x3b0   : > { %v14974_v53 = vpop.f32.mrf.mxu1  ;;  %v14976_v21 = vpop.f32.mrf.mxu0  ;;  %4077 = vmatmul.mubr.bf16.gmra.mxu1 %v12412_v6  ;;  %5167 = vmatmul.mubr.bf16.gmra.mxu0 %v12413_v39  ;;  %v12418_v6 = vld [vmem:[%s18382_s3 + $0x630] ss:$8 sps:$4 sm:$0xff]  }
 0x3b1   : > { %18859 = vst [vmem:[#allocation102_spill] sm:$0xff] %v14974_v53  ;;  %18860 = vst [vmem:[#allocation103_spill] sm:$0xff] %v14976_v21  ;;  %4473 = vmatpush1.bf16.msra.mxu1 %v13228_v63  ;;  %5563 = vmatpush1.bf16.msra.mxu0 %v13228_v63  ;;  %v12419_v39 = vld [vmem:[%s18382_s3 + $0x8b0] ss:$8 sps:$4 sm:$0xff]  }
 0x3b2   : > { %v2772_v36 = vpop.f32.mrf.mxu1  ;;  %v3862_v57 = vpop.f32.mrf.mxu0  ;;  %4474 = vmatprep.subr.bf16.mxu1 %v18745_v33  ;;  %5564 = vmatprep.subr.bf16.mxu0 %v18745_v33 }
 0x3b3   : > { %10278 = vmatprep.mubr.msk.bf16.mxu1 %vm1383_vm0, %v12414_v38  ;;  %10478 = vmatprep.mubr.msk.bf16.mxu0 %vm1383_vm0, %v12416_v51  ;;  %v12422_v36 = vld [vmem:[%s18382_s3 + $0x8c4] ss:$8 sps:$4 sm:$0xff]  }
 0x3b4   : > { %v14984_v25 = vpop.f32.mrf.mxu1  ;;  %v14986_v40 = vpop.f32.mrf.mxu0 }
 0x3b5   : > { %18861 = vst [vmem:[#allocation104_spill] sm:$0xff] %v14984_v25  ;;  %18862 = vst [vmem:[#allocation105_spill] sm:$0xff] %v14986_v40  ;;  %4475 = vmatpush1.bf16.msra.mxu1 %v13221_v61  ;;  %5565 = vmatpush1.bf16.msra.mxu0 %v13221_v61  ;;  %v12426_v25 = vld [vmem:[%s18382_s3 + $0x654] ss:$8 sps:$4 sm:$0xff]  }
 0x3b6   : > { %v2775_v51 = vpop.f32.mrf.mxu1  ;;  %v3865_v57 = vpop.f32.mrf.mxu0  ;;  %4476 = vmatprep.subr.bf16.mxu1 %v18745_v33  ;;  %5566 = vmatprep.subr.bf16.mxu0 %v18745_v33 }
 0x3b8   : > { %v15008_v53 = vpop.f32.mrf.mxu1  ;;  %v15010_v38 = vpop.f32.mrf.mxu0  ;;  %4085 = vmatmul.mubr.bf16.gmra.mxu1 %v12418_v6  ;;  %5175 = vmatmul.mubr.bf16.gmra.mxu0 %v12419_v39  ;;  %v12424_v6 = vld [vmem:[%s18382_s3 + $0x640] ss:$8 sps:$4 sm:$0xff]  }
 0x3b9   : > { %18863 = vst [vmem:[#allocation106_spill] sm:$0xff] %v15008_v53  ;;  %18864 = vst [vmem:[#allocation107_spill] sm:$0xff] %v15010_v38  ;;  %4477 = vmatpush1.bf16.msra.mxu1 %v13206_v59  ;;  %5567 = vmatpush1.bf16.msra.mxu0 %v13206_v59  ;;  %v12425_v39 = vld [vmem:[%s18382_s3 + $0x8c0] ss:$8 sps:$4 sm:$0xff]  }
 0x3ba   : > { %v2780_v51 = vpop.f32.mrf.mxu1  ;;  %v3870_v57 = vpop.f32.mrf.mxu0  ;;  %4478 = vmatprep.subr.bf16.mxu1 %v18745_v33  ;;  %5568 = vmatprep.subr.bf16.mxu0 %v18745_v33 }
 0x3bb   : > { %10279 = vmatprep.mubr.msk.bf16.mxu1 %vm1383_vm0, %v12420_v47  ;;  %10479 = vmatprep.mubr.msk.bf16.mxu0 %vm1383_vm0, %v12422_v36  ;;  %v12428_v51 = vld [vmem:[%s18382_s3 + $0x8d4] ss:$8 sps:$4 sm:$0xff]  }
 0x3bc   : > { %v15018_v21 = vpop.f32.mrf.mxu1  ;;  %v15020_v40 = vpop.f32.mrf.mxu0 }
 0x3bd   : > { %18865 = vst [vmem:[#allocation108_spill] sm:$0xff] %v15018_v21  ;;  %18866 = vst [vmem:[#allocation109_spill] sm:$0xff] %v15020_v40  ;;  %4479 = vmatpush1.bf16.msra.mxu1 %v13193_v60  ;;  %5569 = vmatpush1.bf16.msra.mxu0 %v13193_v60  ;;  %v12432_v21 = vld [vmem:[%s18382_s3 + $0x664] ss:$8 sps:$4 sm:$0xff]  }
 0x3be   : > { %v2783_v36 = vpop.f32.mrf.mxu1  ;;  %v3873_v57 = vpop.f32.mrf.mxu0  ;;  %4486 = vmatprep.subr.bf16.mxu1 %v18745_v33  ;;  %5576 = vmatprep.subr.bf16.mxu0 %v18745_v33 }
 0x3c0   : > { %v15042_v53 = vpop.f32.mrf.mxu1  ;;  %v15044_v47 = vpop.f32.mrf.mxu0  ;;  %4093 = vmatmul.mubr.bf16.gmra.mxu1 %v12424_v6  ;;  %5183 = vmatmul.mubr.bf16.gmra.mxu0 %v12425_v39  ;;  %v12430_v6 = vld [vmem:[%s18382_s3 + $0x650] ss:$8 sps:$4 sm:$0xff]  }
 0x3c1   : > { %18867 = vst [vmem:[#allocation110_spill] sm:$0xff] %v15042_v53  ;;  %18868 = vst [vmem:[#allocation111_spill] sm:$0xff] %v15044_v47  ;;  %4487 = vmatpush2.bf16.msra.mxu1 %v13340_v56  ;;  %5577 = vmatpush2.bf16.msra.mxu0 %v13340_v56  ;;  %v12431_v39 = vld [vmem:[%s18382_s3 + $0x8d0] ss:$8 sps:$4 sm:$0xff]  }
 0x3c2   : > { %v2788_v36 = vpop.f32.mrf.mxu1  ;;  %v3878_v57 = vpop.f32.mrf.mxu0  ;;  %4488 = vmatprep.subr.bf16.mxu1 %v18745_v33  ;;  %5578 = vmatprep.subr.bf16.mxu0 %v18745_v33 }
 0x3c3   : > { %10280 = vmatprep.mubr.msk.bf16.mxu1 %vm1383_vm0, %v12426_v25  ;;  %10480 = vmatprep.mubr.msk.bf16.mxu0 %vm1383_vm0, %v12428_v51  ;;  %v12434_v36 = vld [vmem:[%s18382_s3 + $0x8e4] ss:$8 sps:$4 sm:$0xff]  }
 0x3c4   : > { %v15052_v38 = vpop.f32.mrf.mxu1  ;;  %v15054_v40 = vpop.f32.mrf.mxu0 }
 0x3c5   : > { %18869 = vst [vmem:[#allocation112_spill] sm:$0xff] %v15052_v38  ;;  %18870 = vst [vmem:[#allocation113_spill] sm:$0xff] %v15054_v40  ;;  %4489 = vmatpush2.bf16.msra.mxu1 %v13321_v7  ;;  %5579 = vmatpush2.bf16.msra.mxu0 %v13321_v7  ;;  %v12438_v38 = vld [vmem:[%s18382_s3 + $0x674] ss:$8 sps:$4 sm:$0xff]  }
 0x3c6   : > { %v2791_v51 = vpop.f32.mrf.mxu1  ;;  %v3881_v57 = vpop.f32.mrf.mxu0  ;;  %4490 = vmatprep.subr.bf16.mxu1 %v18745_v33  ;;  %5580 = vmatprep.subr.bf16.mxu0 %v18745_v33 }
 0x3c8   : > { %v15076_v53 = vpop.f32.mrf.mxu1  ;;  %v15078_v25 = vpop.f32.mrf.mxu0  ;;  %4101 = vmatmul.mubr.bf16.gmra.mxu1 %v12430_v6  ;;  %5191 = vmatmul.mubr.bf16.gmra.mxu0 %v12431_v39  ;;  %v12436_v6 = vld [vmem:[%s18382_s3 + $0x660] ss:$8 sps:$4 sm:$0xff]  }
 0x3c9   : > { %18871 = vst [vmem:[#allocation114_spill] sm:$0xff] %v15076_v53  ;;  %18872 = vst [vmem:[#allocation115_spill] sm:$0xff] %v15078_v25  ;;  %4491 = vmatpush2.bf16.msra.mxu1 %v13314_v5  ;;  %5581 = vmatpush2.bf16.msra.mxu0 %v13314_v5  ;;  %v12437_v39 = vld [vmem:[%s18382_s3 + $0x8e0] ss:$8 sps:$4 sm:$0xff]  }
 0x3ca   : > { %v2796_v51 = vpop.f32.mrf.mxu1  ;;  %v3886_v57 = vpop.f32.mrf.mxu0  ;;  %4492 = vmatprep.subr.bf16.mxu1 %v18745_v33  ;;  %5582 = vmatprep.subr.bf16.mxu0 %v18745_v33 }
 0x3cb   : > { %10281 = vmatprep.mubr.msk.bf16.mxu1 %vm1383_vm0, %v12432_v21  ;;  %10481 = vmatprep.mubr.msk.bf16.mxu0 %vm1383_vm0, %v12434_v36  ;;  %v12440_v51 = vld [vmem:[%s18382_s3 + $0x8f4] ss:$8 sps:$4 sm:$0xff]  }
 0x3cc   : > { %v15086_v47 = vpop.f32.mrf.mxu1  ;;  %v15088_v40 = vpop.f32.mrf.mxu0 }
 0x3cd   : > { %18873 = vst [vmem:[#allocation116_spill] sm:$0xff] %v15086_v47  ;;  %18874 = vst [vmem:[#allocation117_spill] sm:$0xff] %v15088_v40  ;;  %4493 = vmatpush2.bf16.msra.mxu1 %v13302_v49  ;;  %5583 = vmatpush2.bf16.msra.mxu0 %v13302_v49 }
 0x3ce   : > { %v2799_v36 = vpop.f32.mrf.mxu1  ;;  %v3889_v57 = vpop.f32.mrf.mxu0  ;;  %4494 = vmatprep.subr.bf16.mxu1 %v18745_v33  ;;  %5584 = vmatprep.subr.bf16.mxu0 %v18745_v33 }
 0x3d0   : > { %v15110_v53 = vpop.f32.mrf.mxu1  ;;  %v15112_v21 = vpop.f32.mrf.mxu0  ;;  %4109 = vmatmul.mubr.bf16.gmra.mxu1 %v12436_v6  ;;  %5199 = vmatmul.mubr.bf16.gmra.mxu0 %v12437_v39  ;;  %v12442_v6 = vld [vmem:[%s18382_s3 + $0x670] ss:$8 sps:$4 sm:$0xff]  }
 0x3d1   : > { %18875 = vst [vmem:[#allocation118_spill] sm:$0xff] %v15110_v53  ;;  %18876 = vst [vmem:[#allocation119_spill] sm:$0xff] %v15112_v21  ;;  %4495 = vmatpush2.bf16.msra.mxu1 %v13291_v11  ;;  %5585 = vmatpush2.bf16.msra.mxu0 %v13291_v11  ;;  %v12443_v39 = vld [vmem:[%s18382_s3 + $0x8f0] ss:$8 sps:$4 sm:$0xff]  }
 0x3d2   : > { %v2804_v36 = vpop.f32.mrf.mxu1  ;;  %v3894_v57 = vpop.f32.mrf.mxu0  ;;  %10282 = vmatprep.mubr.msk.bf16.mxu1 %vm1383_vm0, %v12438_v38  ;;  %10482 = vmatprep.mubr.msk.bf16.mxu0 %vm1383_vm0, %v12440_v51 }
 0x3d3   : > { %4900 = vmatprep.subr.bf16.mxu1 %v18745_v33  ;;  %5990 = vmatprep.subr.bf16.mxu0 %v18745_v33  ;;  %v12446_v36 = vld [vmem:[%s18382_s3 + $0x704] ss:$8 sps:$4 sm:$0xff]  }
 0x3d4   : > { %v15120_v25 = vpop.f32.mrf.mxu1  ;;  %v15122_v40 = vpop.f32.mrf.mxu0  ;;  %v12449_v57 = vld [vmem:[%s18382_s3 + $0x984] ss:$8 sps:$4 sm:$0xff]  }
 0x3d5   : > { %18877 = vst [vmem:[#allocation120_spill] sm:$0xff] %v15120_v25  ;;  %18878 = vst [vmem:[#allocation121_spill] sm:$0xff] %v15122_v40 }
 0x3d6   : > { %v2807_v47 = vpop.f32.mrf.mxu1  ;;  %v3897_v23 = vpop.f32.mrf.mxu0 }
 0x3d7   : > { %v12444_v23 = vld [vmem:[%s18382_s3 + $0x700] ss:$8 sps:$4 sm:$0xff]  }
 0x3d8   : > { %v15140_v52 = vpop.f32.mrf.mxu1  ;;  %v15142_v10 = vpop.f32.mrf.mxu0  ;;  %4117 = vmatmul.mubr.bf16.gmra.mxu1 %v12442_v6  ;;  %5207 = vmatmul.mubr.bf16.gmra.mxu0 %v12443_v39  ;;  %v12447_v47 = vld [vmem:[%s18382_s3 + $0x980] ss:$8 sps:$4 sm:$0xff]  }
 0x3d9   : > { %18879 = vst [vmem:[#allocation122_spill] sm:$0xff] %v15140_v52  ;;  %18880 = vst [vmem:[#allocation123_spill] sm:$0xff] %v15142_v10  ;;  %10355 = vmatprep.mubr.msk.bf16.mxu1 %vm1383_vm0, %v12446_v36  ;;  %10555 = vmatprep.mubr.msk.bf16.mxu0 %vm1383_vm0, %v12449_v57  ;;  %v12450_v36 = vld [vmem:[%s18382_s3 + $0x714] ss:$8 sps:$4 sm:$0xff]   ;;  %v12456_v10 = vld [vmem:[%s18382_s3 + $0x724] ss:$8 sps:$4 sm:$0xff]  }
 0x3da   : > { %v2812_v51 = vpop.f32.mrf.mxu1  ;;  %v3902_v38 = vpop.f32.mrf.mxu0  ;;  %v12452_v57 = vld [vmem:[%s18382_s3 + $0x994] ss:$8 sps:$4 sm:$0xff]  }
 0x3dc   : > { %v15146_v21 = vpop.f32.mrf.mxu1  ;;  %v15148_v40 = vpop.f32.mrf.mxu0 }
 0x3dd   : > { %18881 = vst [vmem:[#allocation124_spill] sm:$0xff] %v15146_v21  ;;  %18882 = vst [vmem:[#allocation125_spill] sm:$0xff] %v15148_v40 }
 0x3de   : > { %v2815_v51 = vpop.f32.mrf.mxu1  ;;  %v3905_v38 = vpop.f32.mrf.mxu0 }
 0x3e0   : > { %v15166_v53 = vpop.f32.mrf.mxu1  ;;  %v15168_v25 = vpop.f32.mrf.mxu0  ;;  %4497 = vmatmul.mubr.bf16.vlgmr.msra.gmra.mxu1 %v12444_v23  ;;  %5587 = vmatmul.mubr.bf16.vlgmr.msra.gmra.mxu0 %v12447_v47  ;;  %v12454_v23 = vld [vmem:[%s18382_s3 + $0x710] ss:$8 sps:$4 sm:$0xff]  }
 0x3e1   : > { %18883 = vst [vmem:[#allocation126_spill] sm:$0xff] %v15166_v53  ;;  %18884 = vst [vmem:[#allocation127_spill] sm:$0xff] %v15168_v25  ;;  %4901 = vmatpush1.bf16.msra.mxu1 %v13272_v41  ;;  %5991 = vmatpush1.bf16.msra.mxu0 %v13272_v41  ;;  %v12455_v47 = vld [vmem:[%s18382_s3 + $0x990] ss:$8 sps:$4 sm:$0xff]   ;;  %v12462_v25 = vld [vmem:[%s18382_s3 + $0x734] ss:$8 sps:$4 sm:$0xff]  }
 0x3e2   : > { %v3192_v51 = vpop.f32.mrf.mxu1  ;;  %v4282_v38 = vpop.f32.mrf.mxu0  ;;  %4902 = vmatprep.subr.bf16.mxu1 %v18745_v33  ;;  %5992 = vmatprep.subr.bf16.mxu0 %v18745_v33 }
 0x3e3   : > { %10356 = vmatprep.mubr.msk.bf16.mxu1 %vm1383_vm0, %v12450_v36  ;;  %10556 = vmatprep.mubr.msk.bf16.mxu0 %vm1383_vm0, %v12452_v57  ;;  %v12458_v51 = vld [vmem:[%s18382_s3 + $0x9a4] ss:$8 sps:$4 sm:$0xff]  }
 0x3e4   : > { %v15176_v39 = vpop.f32.mrf.mxu1  ;;  %v15178_v6 = vpop.f32.mrf.mxu0 }
 0x3e5   : > { %18885 = vst [vmem:[#allocation128_spill] sm:$0xff] %v15176_v39  ;;  %18886 = vst [vmem:[#allocation129_spill] sm:$0xff] %v15178_v6  ;;  %4903 = vmatpush1.bf16.msra.mxu1 %v13259_v35  ;;  %5993 = vmatpush1.bf16.msra.mxu0 %v13259_v35 }
 0x3e6   : > { %v3195_v57 = vpop.f32.mrf.mxu1  ;;  %v4285_v38 = vpop.f32.mrf.mxu0  ;;  %4904 = vmatprep.subr.bf16.mxu1 %v18745_v33  ;;  %5994 = vmatprep.subr.bf16.mxu0 %v18745_v33 }
 0x3e8   : > { %v15200_v40 = vpop.f32.mrf.mxu1  ;;  %v15202_v36 = vpop.f32.mrf.mxu0  ;;  %4505 = vmatmul.mubr.bf16.gmra.mxu1 %v12454_v23  ;;  %5595 = vmatmul.mubr.bf16.gmra.mxu0 %v12455_v47  ;;  %v12460_v23 = vld [vmem:[%s18382_s3 + $0x720] ss:$8 sps:$4 sm:$0xff]  }
 0x3e9   : > { %18887 = vst [vmem:[#allocation130_spill] sm:$0xff] %v15200_v40  ;;  %18888 = vst [vmem:[#allocation131_spill] sm:$0xff] %v15202_v36  ;;  %4905 = vmatpush1.bf16.msra.mxu1 %v13252_v0  ;;  %5995 = vmatpush1.bf16.msra.mxu0 %v13252_v0  ;;  %v12461_v47 = vld [vmem:[%s18382_s3 + $0x9a0] ss:$8 sps:$4 sm:$0xff]   ;;  %v12468_v40 = vld [vmem:[%s18382_s3 + $0x744] ss:$8 sps:$4 sm:$0xff]  }
 0x3ea   : > { %v3200_v57 = vpop.f32.mrf.mxu1  ;;  %v4290_v38 = vpop.f32.mrf.mxu0  ;;  %4906 = vmatprep.subr.bf16.mxu1 %v18745_v33  ;;  %5996 = vmatprep.subr.bf16.mxu0 %v18745_v33 }
 0x3eb   : > { %10357 = vmatprep.mubr.msk.bf16.mxu1 %vm1383_vm0, %v12456_v10  ;;  %10557 = vmatprep.mubr.msk.bf16.mxu0 %vm1383_vm0, %v12458_v51  ;;  %v12464_v57 = vld [vmem:[%s18382_s3 + $0x9b4] ss:$8 sps:$4 sm:$0xff]  }
 0x3ec   : > { %v15210_v52 = vpop.f32.mrf.mxu1  ;;  %v15212_v21 = vpop.f32.mrf.mxu0 }
 0x3ed   : > { %18889 = vst [vmem:[#allocation132_spill] sm:$0xff] %v15210_v52  ;;  %18890 = vst [vmem:[#allocation133_spill] sm:$0xff] %v15212_v21  ;;  %4907 = vmatpush1.bf16.msra.mxu1 %v13239_v42  ;;  %5997 = vmatpush1.bf16.msra.mxu0 %v13239_v42 }
 0x3ee   : > { %v3203_v51 = vpop.f32.mrf.mxu1  ;;  %v4293_v38 = vpop.f32.mrf.mxu0  ;;  %4908 = vmatprep.subr.bf16.mxu1 %v18745_v33  ;;  %5998 = vmatprep.subr.bf16.mxu0 %v18745_v33 }
 0x3f0   : > { %v15234_v6 = vpop.f32.mrf.mxu1  ;;  %v15236_v10 = vpop.f32.mrf.mxu0  ;;  %4513 = vmatmul.mubr.bf16.gmra.mxu1 %v12460_v23  ;;  %5603 = vmatmul.mubr.bf16.gmra.mxu0 %v12461_v47  ;;  %v12466_v23 = vld [vmem:[%s18382_s3 + $0x730] ss:$8 sps:$4 sm:$0xff]  }
 0x3f1   : > { %18891 = vst [vmem:[#allocation134_spill] sm:$0xff] %v15234_v6  ;;  %18892 = vst [vmem:[#allocation135_spill] sm:$0xff] %v15236_v10  ;;  %4909 = vmatpush1.bf16.msra.mxu1 %v13228_v63  ;;  %5999 = vmatpush1.bf16.msra.mxu0 %v13228_v63  ;;  %v12467_v47 = vld [vmem:[%s18382_s3 + $0x9b0] ss:$8 sps:$4 sm:$0xff]  }
 0x3f2   : > { %v3208_v51 = vpop.f32.mrf.mxu1  ;;  %v4298_v38 = vpop.f32.mrf.mxu0  ;;  %4910 = vmatprep.subr.bf16.mxu1 %v18745_v33  ;;  %6000 = vmatprep.subr.bf16.mxu0 %v18745_v33 }
 0x3f3   : > { %10358 = vmatprep.mubr.msk.bf16.mxu1 %vm1383_vm0, %v12462_v25  ;;  %10558 = vmatprep.mubr.msk.bf16.mxu0 %vm1383_vm0, %v12464_v57  ;;  %v12470_v51 = vld [vmem:[%s18382_s3 + $0x9c4] ss:$8 sps:$4 sm:$0xff]  }
 0x3f4   : > { %v15244_v36 = vpop.f32.mrf.mxu1  ;;  %v15246_v21 = vpop.f32.mrf.mxu0 }
 0x3f5   : > { %18893 = vst [vmem:[#allocation136_spill] sm:$0xff] %v15244_v36  ;;  %18894 = vst [vmem:[#allocation137_spill] sm:$0xff] %v15246_v21  ;;  %4911 = vmatpush1.bf16.msra.mxu1 %v13221_v61  ;;  %6001 = vmatpush1.bf16.msra.mxu0 %v13221_v61  ;;  %v12474_v36 = vld [vmem:[%s18382_s3 + $0x754] ss:$8 sps:$4 sm:$0xff]  }
 0x3f6   : > { %v3211_v57 = vpop.f32.mrf.mxu1  ;;  %v4301_v38 = vpop.f32.mrf.mxu0  ;;  %4912 = vmatprep.subr.bf16.mxu1 %v18745_v33  ;;  %6002 = vmatprep.subr.bf16.mxu0 %v18745_v33 }
 0x3f8   : > { %v15268_v6 = vpop.f32.mrf.mxu1  ;;  %v15270_v25 = vpop.f32.mrf.mxu0  ;;  %4521 = vmatmul.mubr.bf16.gmra.mxu1 %v12466_v23  ;;  %5611 = vmatmul.mubr.bf16.gmra.mxu0 %v12467_v47  ;;  %v12472_v23 = vld [vmem:[%s18382_s3 + $0x740] ss:$8 sps:$4 sm:$0xff]  }
 0x3f9   : > { %18895 = vst [vmem:[#allocation138_spill] sm:$0xff] %v15268_v6  ;;  %18896 = vst [vmem:[#allocation139_spill] sm:$0xff] %v15270_v25  ;;  %4913 = vmatpush1.bf16.msra.mxu1 %v13206_v59  ;;  %6003 = vmatpush1.bf16.msra.mxu0 %v13206_v59  ;;  %v12473_v47 = vld [vmem:[%s18382_s3 + $0x9c0] ss:$8 sps:$4 sm:$0xff]  }
 0x3fa   : > { %v3216_v57 = vpop.f32.mrf.mxu1  ;;  %v4306_v38 = vpop.f32.mrf.mxu0  ;;  %4914 = vmatprep.subr.bf16.mxu1 %v18745_v33  ;;  %6004 = vmatprep.subr.bf16.mxu0 %v18745_v33 }
 0x3fb   : > { %10359 = vmatprep.mubr.msk.bf16.mxu1 %vm1383_vm0, %v12468_v40  ;;  %10559 = vmatprep.mubr.msk.bf16.mxu0 %vm1383_vm0, %v12470_v51  ;;  %v12476_v57 = vld [vmem:[%s18382_s3 + $0x9d4] ss:$8 sps:$4 sm:$0xff]  }
 0x3fc   : > { %v15278_v10 = vpop.f32.mrf.mxu1  ;;  %v15280_v21 = vpop.f32.mrf.mxu0 }
 0x3fd   : > { %18897 = vst [vmem:[#allocation140_spill] sm:$0xff] %v15278_v10  ;;  %18898 = vst [vmem:[#allocation141_spill] sm:$0xff] %v15280_v21  ;;  %4915 = vmatpush1.bf16.msra.mxu1 %v13193_v60  ;;  %6005 = vmatpush1.bf16.msra.mxu0 %v13193_v60  ;;  %v12480_v10 = vld [vmem:[%s18382_s3 + $0x764] ss:$8 sps:$4 sm:$0xff]  }
 0x3fe   : > { %v3219_v51 = vpop.f32.mrf.mxu1  ;;  %v4309_v38 = vpop.f32.mrf.mxu0  ;;  %4922 = vmatprep.subr.bf16.mxu1 %v18745_v33  ;;  %6012 = vmatprep.subr.bf16.mxu0 %v18745_v33 }
 0x400   : > { %v15302_v6 = vpop.f32.mrf.mxu1  ;;  %v15304_v40 = vpop.f32.mrf.mxu0  ;;  %4529 = vmatmul.mubr.bf16.gmra.mxu1 %v12472_v23  ;;  %5619 = vmatmul.mubr.bf16.gmra.mxu0 %v12473_v47  ;;  %v12478_v23 = vld [vmem:[%s18382_s3 + $0x750] ss:$8 sps:$4 sm:$0xff]  }
 0x401   : > { %18899 = vst [vmem:[#allocation142_spill] sm:$0xff] %v15302_v6  ;;  %18900 = vst [vmem:[#allocation143_spill] sm:$0xff] %v15304_v40  ;;  %4923 = vmatpush2.bf16.msra.mxu1 %v13340_v56  ;;  %6013 = vmatpush2.bf16.msra.mxu0 %v13340_v56  ;;  %v12479_v47 = vld [vmem:[%s18382_s3 + $0x9d0] ss:$8 sps:$4 sm:$0xff]  }
 0x402   : > { %v3224_v51 = vpop.f32.mrf.mxu1  ;;  %v4314_v38 = vpop.f32.mrf.mxu0  ;;  %4924 = vmatprep.subr.bf16.mxu1 %v18745_v33  ;;  %6014 = vmatprep.subr.bf16.mxu0 %v18745_v33 }
 0x403   : > { %10360 = vmatprep.mubr.msk.bf16.mxu1 %vm1383_vm0, %v12474_v36  ;;  %10560 = vmatprep.mubr.msk.bf16.mxu0 %vm1383_vm0, %v12476_v57  ;;  %v12482_v51 = vld [vmem:[%s18382_s3 + $0x9e4] ss:$8 sps:$4 sm:$0xff]  }
 0x404   : > { %v15312_v25 = vpop.f32.mrf.mxu1  ;;  %v15314_v21 = vpop.f32.mrf.mxu0 }
 0x405   : > { %18901 = vst [vmem:[#allocation144_spill] sm:$0xff] %v15312_v25  ;;  %18902 = vst [vmem:[#allocation145_spill] sm:$0xff] %v15314_v21  ;;  %4925 = vmatpush2.bf16.msra.mxu1 %v13321_v7  ;;  %6015 = vmatpush2.bf16.msra.mxu0 %v13321_v7  ;;  %v12486_v25 = vld [vmem:[%s18382_s3 + $0x774] ss:$8 sps:$4 sm:$0xff]  }
 0x406   : > { %v3227_v57 = vpop.f32.mrf.mxu1  ;;  %v4317_v38 = vpop.f32.mrf.mxu0  ;;  %4926 = vmatprep.subr.bf16.mxu1 %v18745_v33  ;;  %6016 = vmatprep.subr.bf16.mxu0 %v18745_v33 }
 0x408   : > { %v15336_v6 = vpop.f32.mrf.mxu1  ;;  %v15338_v36 = vpop.f32.mrf.mxu0  ;;  %4537 = vmatmul.mubr.bf16.gmra.mxu1 %v12478_v23  ;;  %5627 = vmatmul.mubr.bf16.gmra.mxu0 %v12479_v47  ;;  %v12484_v23 = vld [vmem:[%s18382_s3 + $0x760] ss:$8 sps:$4 sm:$0xff]  }
 0x409   : > { %18903 = vst [vmem:[#allocation146_spill] sm:$0xff] %v15336_v6  ;;  %18904 = vst [vmem:[#allocation147_spill] sm:$0xff] %v15338_v36  ;;  %4927 = vmatpush2.bf16.msra.mxu1 %v13314_v5  ;;  %6017 = vmatpush2.bf16.msra.mxu0 %v13314_v5  ;;  %v12485_v47 = vld [vmem:[%s18382_s3 + $0x9e0] ss:$8 sps:$4 sm:$0xff]  }
 0x40a   : > { %v3232_v57 = vpop.f32.mrf.mxu1  ;;  %v4322_v38 = vpop.f32.mrf.mxu0  ;;  %4928 = vmatprep.subr.bf16.mxu1 %v18745_v33  ;;  %6018 = vmatprep.subr.bf16.mxu0 %v18745_v33 }
 0x40b   : > { %10361 = vmatprep.mubr.msk.bf16.mxu1 %vm1383_vm0, %v12480_v10  ;;  %10561 = vmatprep.mubr.msk.bf16.mxu0 %vm1383_vm0, %v12482_v51  ;;  %v12488_v57 = vld [vmem:[%s18382_s3 + $0x9f4] ss:$8 sps:$4 sm:$0xff]  }
 0x40c   : > { %v15346_v40 = vpop.f32.mrf.mxu1  ;;  %v15348_v21 = vpop.f32.mrf.mxu0 }
 0x40d   : > { %18905 = vst [vmem:[#allocation148_spill] sm:$0xff] %v15346_v40  ;;  %18906 = vst [vmem:[#allocation149_spill] sm:$0xff] %v15348_v21  ;;  %4929 = vmatpush2.bf16.msra.mxu1 %v13302_v49  ;;  %6019 = vmatpush2.bf16.msra.mxu0 %v13302_v49 }
 0x40e   : > { %v3235_v51 = vpop.f32.mrf.mxu1  ;;  %v4325_v38 = vpop.f32.mrf.mxu0  ;;  %4930 = vmatprep.subr.bf16.mxu1 %v18745_v33  ;;  %6020 = vmatprep.subr.bf16.mxu0 %v18745_v33 }
 0x410   : > { %v15370_v6 = vpop.f32.mrf.mxu1  ;;  %v15372_v10 = vpop.f32.mrf.mxu0  ;;  %4545 = vmatmul.mubr.bf16.gmra.mxu1 %v12484_v23  ;;  %5635 = vmatmul.mubr.bf16.gmra.mxu0 %v12485_v47  ;;  %v12490_v23 = vld [vmem:[%s18382_s3 + $0x770] ss:$8 sps:$4 sm:$0xff]  }
 0x411   : > { %18907 = vst [vmem:[#allocation150_spill] sm:$0xff] %v15370_v6  ;;  %18908 = vst [vmem:[#allocation151_spill] sm:$0xff] %v15372_v10  ;;  %4931 = vmatpush2.bf16.msra.mxu1 %v13291_v11  ;;  %6021 = vmatpush2.bf16.msra.mxu0 %v13291_v11  ;;  %v12491_v47 = vld [vmem:[%s18382_s3 + $0x9f0] ss:$8 sps:$4 sm:$0xff]  }
 0x412   : > { %v3240_v51 = vpop.f32.mrf.mxu1  ;;  %v4330_v38 = vpop.f32.mrf.mxu0  ;;  %10362 = vmatprep.mubr.msk.bf16.mxu1 %vm1383_vm0, %v12486_v25  ;;  %10562 = vmatprep.mubr.msk.bf16.mxu0 %vm1383_vm0, %v12488_v57 }
 0x413   : > { %5336 = vmatprep.subr.bf16.mxu1 %v18745_v33  ;;  %6426 = vmatprep.subr.bf16.mxu0 %v18745_v33  ;;  %v12494_v51 = vld [vmem:[%s18382_s3 + $0x804] ss:$8 sps:$4 sm:$0xff]  }
 0x414   : > { %v15380_v36 = vpop.f32.mrf.mxu1  ;;  %v15382_v21 = vpop.f32.mrf.mxu0  ;;  %v12497_v38 = vld [vmem:[%s18382_s3 + $0xa84] ss:$8 sps:$4 sm:$0xff]  }
 0x415   : > { %18909 = vst [vmem:[#allocation152_spill] sm:$0xff] %v15380_v36  ;;  %18910 = vst [vmem:[#allocation153_spill] sm:$0xff] %v15382_v21 }
 0x416   : > { %v3243_v40 = vpop.f32.mrf.mxu1  ;;  %v4333_v52 = vpop.f32.mrf.mxu0 }
 0x417   : > { %v12492_v52 = vld [vmem:[%s18382_s3 + $0x800] ss:$8 sps:$4 sm:$0xff]  }
 0x418   : > { %v15400_v53 = vpop.f32.mrf.mxu1  ;;  %v15402_v39 = vpop.f32.mrf.mxu0  ;;  %4553 = vmatmul.mubr.bf16.gmra.mxu1 %v12490_v23  ;;  %5643 = vmatmul.mubr.bf16.gmra.mxu0 %v12491_v47  ;;  %v12495_v40 = vld [vmem:[%s18382_s3 + $0xa80] ss:$8 sps:$4 sm:$0xff]  }
 0x419   : > { %18911 = vst [vmem:[#allocation154_spill] sm:$0xff] %v15400_v53  ;;  %18912 = vst [vmem:[#allocation155_spill] sm:$0xff] %v15402_v39  ;;  %10435 = vmatprep.mubr.msk.bf16.mxu1 %vm1383_vm0, %v12494_v51  ;;  %10635 = vmatprep.mubr.msk.bf16.mxu0 %vm1383_vm0, %v12497_v38  ;;  %v12498_v51 = vld [vmem:[%s18382_s3 + $0x814] ss:$8 sps:$4 sm:$0xff]   ;;  %v12504_v39 = vld [vmem:[%s18382_s3 + $0x824] ss:$8 sps:$4 sm:$0xff]  }
 0x41a   : > { %v3248_v57 = vpop.f32.mrf.mxu1  ;;  %v4338_v25 = vpop.f32.mrf.mxu0  ;;  %v12500_v38 = vld [vmem:[%s18382_s3 + $0xa94] ss:$8 sps:$4 sm:$0xff]  }
 0x41c   : > { %v15406_v10 = vpop.f32.mrf.mxu1  ;;  %v15408_v21 = vpop.f32.mrf.mxu0 }
 0x41d   : > { %18913 = vst [vmem:[#allocation156_spill] sm:$0xff] %v15406_v10  ;;  %18914 = vst [vmem:[#allocation157_spill] sm:$0xff] %v15408_v21 }
 0x41e   : > { %v3251_v57 = vpop.f32.mrf.mxu1  ;;  %v4341_v25 = vpop.f32.mrf.mxu0 }
 0x420   : > { %v15426_v6 = vpop.f32.mrf.mxu1  ;;  %v15428_v36 = vpop.f32.mrf.mxu0  ;;  %4933 = vmatmul.mubr.bf16.vlgmr.msra.gmra.mxu1 %v12492_v52  ;;  %6023 = vmatmul.mubr.bf16.vlgmr.msra.gmra.mxu0 %v12495_v40  ;;  %v12502_v52 = vld [vmem:[%s18382_s3 + $0x810] ss:$8 sps:$4 sm:$0xff]  }
 0x421   : > { %18915 = vst [vmem:[#allocation158_spill] sm:$0xff] %v15426_v6  ;;  %18916 = vst [vmem:[#allocation159_spill] sm:$0xff] %v15428_v36  ;;  %5337 = vmatpush1.bf16.msra.mxu1 %v13272_v41  ;;  %6427 = vmatpush1.bf16.msra.mxu0 %v13272_v41  ;;  %v12503_v40 = vld [vmem:[%s18382_s3 + $0xa90] ss:$8 sps:$4 sm:$0xff]  }
 0x422   : > { %v3628_v57 = vpop.f32.mrf.mxu1  ;;  %v4718_v25 = vpop.f32.mrf.mxu0  ;;  %5338 = vmatprep.subr.bf16.mxu1 %v18745_v33  ;;  %6428 = vmatprep.subr.bf16.mxu0 %v18745_v33 }
 0x423   : > { %10436 = vmatprep.mubr.msk.bf16.mxu1 %vm1383_vm0, %v12498_v51  ;;  %10636 = vmatprep.mubr.msk.bf16.mxu0 %vm1383_vm0, %v12500_v38  ;;  %v12506_v57 = vld [vmem:[%s18382_s3 + $0xaa4] ss:$8 sps:$4 sm:$0xff]  }
 0x424   : > { %v15436_v47 = vpop.f32.mrf.mxu1  ;;  %v15438_v23 = vpop.f32.mrf.mxu0 }
 0x425   : > { %18917 = vst [vmem:[#allocation160_spill] sm:$0xff] %v15436_v47  ;;  %18918 = vst [vmem:[#allocation161_spill] sm:$0xff] %v15438_v23  ;;  %5339 = vmatpush1.bf16.msra.mxu1 %v13259_v35  ;;  %6429 = vmatpush1.bf16.msra.mxu0 %v13259_v35  ;;  %v12510_v47 = vld [vmem:[%s18382_s3 + $0x834] ss:$8 sps:$4 sm:$0xff]  }
 0x426   : > { %v3631_v38 = vpop.f32.mrf.mxu1  ;;  %v4721_v25 = vpop.f32.mrf.mxu0  ;;  %5340 = vmatprep.subr.bf16.mxu1 %v18745_v33  ;;  %6430 = vmatprep.subr.bf16.mxu0 %v18745_v33 }
 0x428   : > { %v15460_v6 = vpop.f32.mrf.mxu1  ;;  %v15462_v51 = vpop.f32.mrf.mxu0  ;;  %4941 = vmatmul.mubr.bf16.gmra.mxu1 %v12502_v52  ;;  %6031 = vmatmul.mubr.bf16.gmra.mxu0 %v12503_v40  ;;  %v12508_v52 = vld [vmem:[%s18382_s3 + $0x820] ss:$8 sps:$4 sm:$0xff]  }
 0x429   : > { %18919 = vst [vmem:[#allocation162_spill] sm:$0xff] %v15460_v6  ;;  %18920 = vst [vmem:[#allocation163_spill] sm:$0xff] %v15462_v51  ;;  %5341 = vmatpush1.bf16.msra.mxu1 %v13252_v0  ;;  %6431 = vmatpush1.bf16.msra.mxu0 %v13252_v0  ;;  %v12509_v40 = vld [vmem:[%s18382_s3 + $0xaa0] ss:$8 sps:$4 sm:$0xff]  }
 0x42a   : > { %v3636_v38 = vpop.f32.mrf.mxu1  ;;  %v4726_v25 = vpop.f32.mrf.mxu0  ;;  %5342 = vmatprep.subr.bf16.mxu1 %v18745_v33  ;;  %6432 = vmatprep.subr.bf16.mxu0 %v18745_v33 }
 0x42b   : > { %10437 = vmatprep.mubr.msk.bf16.mxu1 %vm1383_vm0, %v12504_v39  ;;  %10637 = vmatprep.mubr.msk.bf16.mxu0 %vm1383_vm0, %v12506_v57  ;;  %v12512_v38 = vld [vmem:[%s18382_s3 + $0xab4] ss:$8 sps:$4 sm:$0xff]  }
 0x42c   : > { %v15470_v36 = vpop.f32.mrf.mxu1  ;;  %v15472_v23 = vpop.f32.mrf.mxu0 }
 0x42d   : > { %18921 = vst [vmem:[#allocation164_spill] sm:$0xff] %v15470_v36  ;;  %18922 = vst [vmem:[#allocation165_spill] sm:$0xff] %v15472_v23  ;;  %5343 = vmatpush1.bf16.msra.mxu1 %v13239_v42  ;;  %6433 = vmatpush1.bf16.msra.mxu0 %v13239_v42  ;;  %v12516_v36 = vld [vmem:[%s18382_s3 + $0x844] ss:$8 sps:$4 sm:$0xff]  }
 0x42e   : > { %v3639_v57 = vpop.f32.mrf.mxu1  ;;  %v4729_v25 = vpop.f32.mrf.mxu0  ;;  %5344 = vmatprep.subr.bf16.mxu1 %v18745_v33  ;;  %6434 = vmatprep.subr.bf16.mxu0 %v18745_v33 }
 0x430   : > { %v15494_v6 = vpop.f32.mrf.mxu1  ;;  %v15496_v39 = vpop.f32.mrf.mxu0  ;;  %4949 = vmatmul.mubr.bf16.gmra.mxu1 %v12508_v52  ;;  %6039 = vmatmul.mubr.bf16.gmra.mxu0 %v12509_v40  ;;  %v12514_v52 = vld [vmem:[%s18382_s3 + $0x830] ss:$8 sps:$4 sm:$0xff]  }
 0x431   : > { %18923 = vst [vmem:[#allocation166_spill] sm:$0xff] %v15494_v6  ;;  %18924 = vst [vmem:[#allocation167_spill] sm:$0xff] %v15496_v39  ;;  %5345 = vmatpush1.bf16.msra.mxu1 %v13228_v63  ;;  %6435 = vmatpush1.bf16.msra.mxu0 %v13228_v63  ;;  %v12515_v40 = vld [vmem:[%s18382_s3 + $0xab0] ss:$8 sps:$4 sm:$0xff]  }
 0x432   : > { %v3644_v57 = vpop.f32.mrf.mxu1  ;;  %v4734_v25 = vpop.f32.mrf.mxu0  ;;  %5346 = vmatprep.subr.bf16.mxu1 %v18745_v33  ;;  %6436 = vmatprep.subr.bf16.mxu0 %v18745_v33 }
 0x433   : > { %10438 = vmatprep.mubr.msk.bf16.mxu1 %vm1383_vm0, %v12510_v47  ;;  %10638 = vmatprep.mubr.msk.bf16.mxu0 %vm1383_vm0, %v12512_v38  ;;  %v12518_v57 = vld [vmem:[%s18382_s3 + $0xac4] ss:$8 sps:$4 sm:$0xff]  }
 0x434   : > { %v15504_v51 = vpop.f32.mrf.mxu1  ;;  %v15506_v23 = vpop.f32.mrf.mxu0 }
 0x435   : > { %18925 = vst [vmem:[#allocation168_spill] sm:$0xff] %v15504_v51  ;;  %18926 = vst [vmem:[#allocation169_spill] sm:$0xff] %v15506_v23  ;;  %5347 = vmatpush1.bf16.msra.mxu1 %v13221_v61  ;;  %6437 = vmatpush1.bf16.msra.mxu0 %v13221_v61  ;;  %v12522_v51 = vld [vmem:[%s18382_s3 + $0x854] ss:$8 sps:$4 sm:$0xff]  }
 0x436   : > { %v3647_v38 = vpop.f32.mrf.mxu1  ;;  %v4737_v25 = vpop.f32.mrf.mxu0  ;;  %5348 = vmatprep.subr.bf16.mxu1 %v18745_v33  ;;  %6438 = vmatprep.subr.bf16.mxu0 %v18745_v33 }
 0x438   : > { %v15528_v6 = vpop.f32.mrf.mxu1  ;;  %v15530_v47 = vpop.f32.mrf.mxu0  ;;  %4957 = vmatmul.mubr.bf16.gmra.mxu1 %v12514_v52  ;;  %6047 = vmatmul.mubr.bf16.gmra.mxu0 %v12515_v40  ;;  %v12520_v52 = vld [vmem:[%s18382_s3 + $0x840] ss:$8 sps:$4 sm:$0xff]  }
 0x439   : > { %18927 = vst [vmem:[#allocation170_spill] sm:$0xff] %v15528_v6  ;;  %18928 = vst [vmem:[#allocation171_spill] sm:$0xff] %v15530_v47  ;;  %5349 = vmatpush1.bf16.msra.mxu1 %v13206_v59  ;;  %6439 = vmatpush1.bf16.msra.mxu0 %v13206_v59  ;;  %v12521_v40 = vld [vmem:[%s18382_s3 + $0xac0] ss:$8 sps:$4 sm:$0xff]  }
 0x43a   : > { %v3652_v38 = vpop.f32.mrf.mxu1  ;;  %v4742_v25 = vpop.f32.mrf.mxu0  ;;  %5350 = vmatprep.subr.bf16.mxu1 %v18745_v33  ;;  %6440 = vmatprep.subr.bf16.mxu0 %v18745_v33 }
 0x43b   : > { %10439 = vmatprep.mubr.msk.bf16.mxu1 %vm1383_vm0, %v12516_v36  ;;  %10639 = vmatprep.mubr.msk.bf16.mxu0 %vm1383_vm0, %v12518_v57  ;;  %v12524_v38 = vld [vmem:[%s18382_s3 + $0xad4] ss:$8 sps:$4 sm:$0xff]  }
 0x43c   : > { %v15538_v39 = vpop.f32.mrf.mxu1  ;;  %v15540_v23 = vpop.f32.mrf.mxu0 }
 0x43d   : > { %18929 = vst [vmem:[#allocation172_spill] sm:$0xff] %v15538_v39  ;;  %18930 = vst [vmem:[#allocation173_spill] sm:$0xff] %v15540_v23  ;;  %5351 = vmatpush1.bf16.msra.mxu1 %v13193_v60  ;;  %6441 = vmatpush1.bf16.msra.mxu0 %v13193_v60  ;;  %v12528_v39 = vld [vmem:[%s18382_s3 + $0x864] ss:$8 sps:$4 sm:$0xff]  }
 0x43e   : > { %v3655_v57 = vpop.f32.mrf.mxu1  ;;  %v4745_v25 = vpop.f32.mrf.mxu0  ;;  %5358 = vmatprep.subr.bf16.mxu1 %v18745_v33  ;;  %6448 = vmatprep.subr.bf16.mxu0 %v18745_v33 }
 0x440   : > { %v15562_v6 = vpop.f32.mrf.mxu1  ;;  %v15564_v36 = vpop.f32.mrf.mxu0  ;;  %4965 = vmatmul.mubr.bf16.gmra.mxu1 %v12520_v52  ;;  %6055 = vmatmul.mubr.bf16.gmra.mxu0 %v12521_v40  ;;  %v12526_v52 = vld [vmem:[%s18382_s3 + $0x850] ss:$8 sps:$4 sm:$0xff]  }
 0x441   : > { %18931 = vst [vmem:[#allocation174_spill] sm:$0xff] %v15562_v6  ;;  %18932 = vst [vmem:[#allocation175_spill] sm:$0xff] %v15564_v36  ;;  %5359 = vmatpush2.bf16.msra.mxu1 %v13340_v56  ;;  %6449 = vmatpush2.bf16.msra.mxu0 %v13340_v56  ;;  %v12527_v40 = vld [vmem:[%s18382_s3 + $0xad0] ss:$8 sps:$4 sm:$0xff]  }
 0x442   : > { %v3660_v57 = vpop.f32.mrf.mxu1  ;;  %v4750_v25 = vpop.f32.mrf.mxu0  ;;  %5360 = vmatprep.subr.bf16.mxu1 %v18745_v33  ;;  %6450 = vmatprep.subr.bf16.mxu0 %v18745_v33 }
 0x443   : > { %10440 = vmatprep.mubr.msk.bf16.mxu1 %vm1383_vm0, %v12522_v51  ;;  %10640 = vmatprep.mubr.msk.bf16.mxu0 %vm1383_vm0, %v12524_v38  ;;  %v12530_v57 = vld [vmem:[%s18382_s3 + $0xae4] ss:$8 sps:$4 sm:$0xff]  }
 0x444   : > { %v15572_v47 = vpop.f32.mrf.mxu1  ;;  %v15574_v23 = vpop.f32.mrf.mxu0 }
 0x445   : > { %18933 = vst [vmem:[#allocation176_spill] sm:$0xff] %v15572_v47  ;;  %18934 = vst [vmem:[#allocation177_spill] sm:$0xff] %v15574_v23  ;;  %5361 = vmatpush2.bf16.msra.mxu1 %v13321_v7  ;;  %6451 = vmatpush2.bf16.msra.mxu0 %v13321_v7  ;;  %v12534_v47 = vld [vmem:[%s18382_s3 + $0x874] ss:$8 sps:$4 sm:$0xff]  }
 0x446   : > { %v3663_v38 = vpop.f32.mrf.mxu1  ;;  %v4753_v25 = vpop.f32.mrf.mxu0  ;;  %5362 = vmatprep.subr.bf16.mxu1 %v18745_v33  ;;  %6452 = vmatprep.subr.bf16.mxu0 %v18745_v33 }
 0x448   : > { %v15596_v6 = vpop.f32.mrf.mxu1  ;;  %v15598_v51 = vpop.f32.mrf.mxu0  ;;  %4973 = vmatmul.mubr.bf16.gmra.mxu1 %v12526_v52  ;;  %6063 = vmatmul.mubr.bf16.gmra.mxu0 %v12527_v40  ;;  %v12532_v52 = vld [vmem:[%s18382_s3 + $0x860] ss:$8 sps:$4 sm:$0xff]  }
 0x449   : > { %18935 = vst [vmem:[#allocation178_spill] sm:$0xff] %v15596_v6  ;;  %18936 = vst [vmem:[#allocation179_spill] sm:$0xff] %v15598_v51  ;;  %5363 = vmatpush2.bf16.msra.mxu1 %v13314_v5  ;;  %6453 = vmatpush2.bf16.msra.mxu0 %v13314_v5  ;;  %v12533_v40 = vld [vmem:[%s18382_s3 + $0xae0] ss:$8 sps:$4 sm:$0xff]  }
 0x44a   : > { %v3668_v38 = vpop.f32.mrf.mxu1  ;;  %v4758_v25 = vpop.f32.mrf.mxu0  ;;  %5364 = vmatprep.subr.bf16.mxu1 %v18745_v33  ;;  %6454 = vmatprep.subr.bf16.mxu0 %v18745_v33 }
 0x44b   : > { %10441 = vmatprep.mubr.msk.bf16.mxu1 %vm1383_vm0, %v12528_v39  ;;  %10641 = vmatprep.mubr.msk.bf16.mxu0 %vm1383_vm0, %v12530_v57  ;;  %v12536_v38 = vld [vmem:[%s18382_s3 + $0xaf4] ss:$8 sps:$4 sm:$0xff]  }
 0x44c   : > { %v15606_v36 = vpop.f32.mrf.mxu1  ;;  %v15608_v23 = vpop.f32.mrf.mxu0  ;;  %v12570_v39 = vld [vmem:[%s18383_s4 + $0x78] sm:$0xff]  }
 0x44d   : > { %18937 = vst [vmem:[#allocation180_spill] sm:$0xff] %v15606_v36  ;;  %18938 = vst [vmem:[#allocation181_spill] sm:$0xff] %v15608_v23  ;;  %5365 = vmatpush2.bf16.msra.mxu1 %v13302_v49  ;;  %6455 = vmatpush2.bf16.msra.mxu0 %v13302_v49 }
 0x44e   : > { %v3671_v57 = vpop.f32.mrf.mxu1  ;;  %v4761_v25 = vpop.f32.mrf.mxu0  ;;  %5366 = vmatprep.subr.bf16.mxu1 %v18745_v33  ;;  %6456 = vmatprep.subr.bf16.mxu0 %v18745_v33 }
 0x450   : > { %v15633_v51 = vpop.f32.mrf.mxu1  ;;  %v15635_v57 = vpop.f32.mrf.mxu0  ;;  %4981 = vmatmul.mubr.bf16.gmra.mxu1 %v12532_v52  ;;  %6071 = vmatmul.mubr.bf16.gmra.mxu0 %v12533_v40  ;;  %v12538_v52 = vld [vmem:[%s18382_s3 + $0x870] ss:$8 sps:$4 sm:$0xff]  }
 0x451   : > { %18939 = vst [vmem:[#allocation182_spill] sm:$0xff] %v15633_v51  ;;  %18940 = vst [vmem:[#allocation183_spill] sm:$0xff] %v15635_v57  ;;  %5367 = vmatpush2.bf16.msra.mxu1 %v13291_v11  ;;  %6457 = vmatpush2.bf16.msra.mxu0 %v13291_v11  ;;  %v12539_v40 = vld [vmem:[%s18382_s3 + $0xaf0] ss:$8 sps:$4 sm:$0xff]  }
 0x452   : > { %v3676_v25 = vpop.f32.mrf.mxu1  ;;  %v4766_v23 = vpop.f32.mrf.mxu0  ;;  %10442 = vmatprep.mubr.msk.bf16.mxu1 %vm1383_vm0, %v12534_v47  ;;  %10642 = vmatprep.mubr.msk.bf16.mxu0 %vm1383_vm0, %v12536_v38  ;;  %v12542_v38 = vld [vmem:[%s18382_s3 + $0x904] ss:$8 sps:$4 sm:$0xff]   ;;  %v12571_v51 = vld [vmem:[%s18383_s4 + $0x38] sm:$0xff]  }
 0x453   : > { %5772 = vmatprep.subr.bf16.mxu1 %v18745_v33  ;;  %11044 = vmatprep.subr.bf16.mxu0 %v12570_v39  ;;  %v12545_v39 = vld [vmem:[%s18382_s3 + $0xb84] ss:$8 sps:$4 sm:$0xff]  }
 0x454   : > { %v15642_v6 = vpop.f32.mrf.mxu1  ;;  %v15644_v36 = vpop.f32.mrf.mxu0 }
 0x455   : > { %18941 = vst [vmem:[#allocation184_spill] sm:$0xff] %v15642_v6  ;;  %18942 = vst [vmem:[#allocation185_spill] sm:$0xff] %v15644_v36 }
 0x456   : > { %v3679_v25 = vpop.f32.mrf.mxu1  ;;  %v4769_v21 = vpop.f32.mrf.mxu0 }
 0x457   : > { %v12540_v21 = vld [vmem:[%s18382_s3 + $0x900] ss:$8 sps:$4 sm:$0xff]  }
 0x458   : > { %v15662_v53 = vpop.f32.mrf.mxu1  ;;  %v15664_v10 = vpop.f32.mrf.mxu0  ;;  %4989 = vmatmul.mubr.bf16.gmra.mxu1 %v12538_v52  ;;  %6079 = vmatmul.mubr.bf16.gmra.mxu0 %v12539_v40  ;;  %v12543_v25 = vld [vmem:[%s18382_s3 + $0xb80] ss:$8 sps:$4 sm:$0xff]   ;;  %v12572_v40 = vld [vmem:[%s18383_s4 + $0x70] sm:$0xff]  }
 0x459   : > { %18943 = vst [vmem:[#allocation186_spill] sm:$0xff] %v15662_v53  ;;  %18944 = vst [vmem:[#allocation187_spill] sm:$0xff] %v15664_v10  ;;  %10515 = vmatprep.mubr.msk.bf16.mxu1 %vm1383_vm0, %v12542_v38  ;;  %10715 = vmatprep.mubr.msk.bf16.mxu0 %vm1383_vm0, %v12545_v39  ;;  %v12548_v39 = vld [vmem:[%s18382_s3 + $0xb94] ss:$8 sps:$4 sm:$0xff]  }
 0x45a   : > { %v3684_v47 = vpop.f32.mrf.mxu1  ;;  %v4774_v23 = vpop.f32.mrf.mxu0 }
 0x45b   : > { %v12546_v23 = vld [vmem:[%s18382_s3 + $0x914] ss:$8 sps:$4 sm:$0xff]  }
 0x45c   : > { %v15668_v57 = vpop.f32.mrf.mxu1  ;;  %v15670_v36 = vpop.f32.mrf.mxu0 }
 0x45d   : > { %18945 = vst [vmem:[#allocation188_spill] sm:$0xff] %v15668_v57  ;;  %18946 = vst [vmem:[#allocation189_spill] sm:$0xff] %v15670_v36  ;;  %v12550_v36 = vld [vmem:[%s18382_s3 + $0x910] ss:$8 sps:$4 sm:$0xff]  }
 0x45e   : > { %v3687_v47 = vpop.f32.mrf.mxu1  ;;  %v4777_v38 = vpop.f32.mrf.mxu0 }
 0x460   : > { %v15691_v6 = vpop.f32.mrf.mxu1  ;;  %v15693_v52 = vpop.f32.mrf.mxu0  ;;  %5369 = vmatmul.mubr.bf16.vlgmr.msra.gmra.mxu1 %v12540_v21  ;;  %6459 = vmatmul.mubr.bf16.vlgmr.msra.gmra.mxu0 %v12543_v25  ;;  %v12573_v21 = vld [vmem:[%s18383_s4 + $0x30] sm:$0xff]  }
 0x461   : > { %18947 = vst [vmem:[#allocation190_spill] sm:$0xff] %v15691_v6  ;;  %18948 = vst [vmem:[#allocation191_spill] sm:$0xff] %v15693_v52  ;;  %5773 = vmatpush1.bf16.msra.mxu1 %v13272_v41  ;;  %10516 = vmatprep.mubr.msk.bf16.mxu1 %vm1383_vm0, %v12546_v23  ;;  %v12551_v23 = vld [vmem:[%s18382_s3 + $0xb90] ss:$8 sps:$4 sm:$0xff]  }
 0x462   : > { %v4064_v47 = vpop.f32.mrf.mxu1  ;;  %v5154_v38 = vpop.f32.mrf.mxu0  ;;  %5774 = vmatprep.subr.bf16.mxu1 %v18745_v33  ;;  %10716 = vmatprep.mubr.msk.bf16.mxu0 %vm1383_vm0, %v12548_v39 }
 0x463   : > { %11045 = vmatpush3.bf16.msra.mxu0 %v12571_v51  ;;  %v12552_v47 = vld [vmem:[%s18382_s3 + $0x924] ss:$8 sps:$4 sm:$0xff]  }
 0x464   : > { %v15705_v25 = vpop.f32.mrf.mxu1  ;;  %v15707_v10 = vpop.f32.mrf.mxu0  ;;  %11046 = vmatprep.subr.bf16.mxu0 %v12572_v40  ;;  %v12554_v40 = vld [vmem:[%s18382_s3 + $0xba4] ss:$8 sps:$4 sm:$0xff]  }
 0x465   : > { %18949 = vst [vmem:[#allocation192_spill] sm:$0xff] %v15705_v25  ;;  %18950 = vst [vmem:[#allocation193_spill] sm:$0xff] %v15707_v10  ;;  %5775 = vmatpush1.bf16.msra.mxu1 %v13259_v35  ;;  %v12580_v51 = vld [vmem:[%s18383_s4 + $0x68] sm:$0xff]   ;;  %v18973_v25 = vpack.c.bf16 %v14136_v18, %v14126_v50 }
 0x466   : > { %v4067_v38 = vpop.f32.mrf.mxu1  ;;  %v5157_v53 = vpop.f32.mrf.mxu0  ;;  %5776 = vmatprep.subr.bf16.mxu1 %v18745_v33  ;;  %v12556_v10 = vld [vmem:[%s18382_s3 + $0x920] ss:$8 sps:$4 sm:$0xff]  }
 0x467   : > { %11047 = vmatpush3.bf16.msra.mxu0 %v12573_v21  ;;  %v12581_v53 = vld [vmem:[%s18383_s4 + $0x28] sm:$0xff]   ;;  %v12582_v21 = vld [vmem:[%s18383_s4 + $0x60] sm:$0xff]  }
 0x468   : > { %v15730_v39 = vpop.f32.mrf.mxu1  ;;  %v15732_v57 = vpop.f32.mrf.mxu0  ;;  %5377 = vmatmul.mubr.bf16.gmra.mxu1 %v12550_v36  ;;  %6467 = vmatmul.mubr.bf16.gmra.mxu0 %v12551_v23 }
 0x469   : > { %18951 = vst [vmem:[#allocation194_spill] sm:$0xff] %v15730_v39  ;;  %18952 = vst [vmem:[#allocation195_spill] sm:$0xff] %v15732_v57  ;;  %5777 = vmatpush1.bf16.msra.mxu1 %v13252_v0  ;;  %10517 = vmatprep.mubr.msk.bf16.mxu1 %vm1383_vm0, %v12552_v47  ;;  %v12557_v47 = vld [vmem:[%s18382_s3 + $0xba0] ss:$8 sps:$4 sm:$0xff]   ;;  %v12562_v39 = vld [vmem:[%s18382_s3 + $0x930] ss:$8 sps:$4 sm:$0xff]  }
 0x46a   : > { %v4072_v38 = vpop.f32.mrf.mxu1  ;;  %v5162_v52 = vpop.f32.mrf.mxu0  ;;  %5778 = vmatprep.subr.bf16.mxu1 %v18745_v33  ;;  %10717 = vmatprep.mubr.msk.bf16.mxu0 %vm1383_vm0, %v12554_v40 }
 0x46b   : > { %11048 = vmatprep.subr.bf16.mxu0 %v12580_v51  ;;  %v12558_v51 = vld [vmem:[%s18382_s3 + $0x934] ss:$8 sps:$4 sm:$0xff]   ;;  %v12583_v52 = vld [vmem:[%s18383_s4 + $0x20] sm:$0xff]  }
 0x46c   : > { %v15744_v36 = vpop.f32.mrf.mxu1  ;;  %v15746_v23 = vpop.f32.mrf.mxu0  ;;  %11049 = vmatpush3.bf16.msra.mxu0 %v12581_v53  ;;  %v12560_v53 = vld [vmem:[%s18382_s3 + $0xbb4] ss:$8 sps:$4 sm:$0xff]  }
 0x46d   : > { %18953 = vst [vmem:[#allocation196_spill] sm:$0xff] %v15744_v36  ;;  %18954 = vst [vmem:[#allocation197_spill] sm:$0xff] %v15746_v23  ;;  %5779 = vmatpush1.bf16.msra.mxu1 %v13239_v42  ;;  %11050 = vmatprep.subr.bf16.mxu0 %v12582_v21 }
 0x46e   : > { %v4075_v38 = vpop.f32.mrf.mxu1  ;;  %v5165_v6 = vpop.f32.mrf.mxu0  ;;  %5780 = vmatprep.subr.bf16.mxu1 %v18745_v33 }
 0x46f   : > { %v12590_v6 = vld [vmem:[%s18383_s4 + $0x58] sm:$0xff]  }
 0x470   : > { %v15769_v40 = vpop.f32.mrf.mxu1  ;;  %v15771_v57 = vpop.f32.mrf.mxu0  ;;  %5385 = vmatmul.mubr.bf16.gmra.mxu1 %v12556_v10  ;;  %6475 = vmatmul.mubr.bf16.gmra.mxu0 %v12557_v47  ;;  %v12591_v10 = vld [vmem:[%s18383_s4 + $0x18] sm:$0xff]  }
 0x471   : > { %18955 = vst [vmem:[#allocation198_spill] sm:$0xff] %v15769_v40  ;;  %18956 = vst [vmem:[#allocation199_spill] sm:$0xff] %v15771_v57  ;;  %5781 = vmatpush1.bf16.msra.mxu1 %v13228_v63  ;;  %10518 = vmatprep.mubr.msk.bf16.mxu1 %vm1383_vm0, %v12558_v51  ;;  %v12563_v51 = vld [vmem:[%s18382_s3 + $0xbb0] ss:$8 sps:$4 sm:$0xff]   ;;  %v12568_v40 = vld [vmem:[%s18382_s3 + $0x940] ss:$8 sps:$4 sm:$0xff]  }
 0x472   : > { %v4080_v21 = vpop.f32.mrf.mxu1  ;;  %v5170_v38 = vpop.f32.mrf.mxu0  ;;  %5782 = vmatprep.subr.bf16.mxu1 %v18745_v33  ;;  %10718 = vmatprep.mubr.msk.bf16.mxu0 %vm1383_vm0, %v12560_v53 }
 0x473   : > { %11051 = vmatpush3.bf16.msra.mxu0 %v12583_v52  ;;  %v12564_v21 = vld [vmem:[%s18382_s3 + $0x944] ss:$8 sps:$4 sm:$0xff]   ;;  %v12592_v52 = vld [vmem:[%s18383_s4 + $0x50] sm:$0xff]  }
 0x474   : > { %v15783_v47 = vpop.f32.mrf.mxu1  ;;  %v15785_v23 = vpop.f32.mrf.mxu0  ;;  %11052 = vmatprep.subr.bf16.mxu0 %v12590_v6  ;;  %v12566_v6 = vld [vmem:[%s18382_s3 + $0xbc4] ss:$8 sps:$4 sm:$0xff]  }
 0x475   : > { %18957 = vst [vmem:[#allocation200_spill] sm:$0xff] %v15783_v47  ;;  %18958 = vst [vmem:[#allocation201_spill] sm:$0xff] %v15785_v23  ;;  %5783 = vmatpush1.bf16.msra.mxu1 %v13221_v61 }
 0x476   : > { %v4083_v38 = vpop.f32.mrf.mxu1  ;;  %v5173_v36 = vpop.f32.mrf.mxu0  ;;  %5784 = vmatprep.subr.bf16.mxu1 %v18745_v33 }
 0x477   : > { %11053 = vmatpush3.bf16.msra.mxu0 %v12591_v10  ;;  %v12593_v36 = vld [vmem:[%s18383_s4 + $0x10] sm:$0xff]   ;;  %v12600_v10 = vld [vmem:[%s18383_s4 + $0x48] sm:$0xff]  }
 0x478   : > { %v15808_v53 = vpop.f32.mrf.mxu1  ;;  %v15810_v57 = vpop.f32.mrf.mxu0  ;;  %5393 = vmatmul.mubr.bf16.gmra.mxu1 %v12562_v39  ;;  %6483 = vmatmul.mubr.bf16.gmra.mxu0 %v12563_v51 }
 0x479   : > { %18959 = vst [vmem:[#allocation202_spill] sm:$0xff] %v15808_v53  ;;  %18960 = vst [vmem:[#allocation203_spill] sm:$0xff] %v15810_v57  ;;  %5785 = vmatpush1.bf16.msra.mxu1 %v13206_v59  ;;  %10519 = vmatprep.mubr.msk.bf16.mxu1 %vm1383_vm0, %v12564_v21  ;;  %v12569_v21 = vld [vmem:[%s18382_s3 + $0xbc0] ss:$8 sps:$4 sm:$0xff]   ;;  %v12578_v53 = vld [vmem:[%s18382_s3 + $0x950] ss:$8 sps:$4 sm:$0xff]  }
 0x47a   : > { %v4088_v38 = vpop.f32.mrf.mxu1  ;;  %v5178_v23 = vpop.f32.mrf.mxu0  ;;  %5786 = vmatprep.subr.bf16.mxu1 %v18745_v33  ;;  %10719 = vmatprep.mubr.msk.bf16.mxu0 %vm1383_vm0, %v12566_v6 }
 0x47b   : > { %11054 = vmatprep.subr.bf16.mxu0 %v12592_v52  ;;  %v12574_v52 = vld [vmem:[%s18382_s3 + $0x954] ss:$8 sps:$4 sm:$0xff]   ;;  %v12601_v23 = vld [vmem:[%s18383_s4 + $0x8] sm:$0xff]  }
 0x47c   : > { %v15822_v39 = vpop.f32.mrf.mxu1  ;;  %v15824_v51 = vpop.f32.mrf.mxu0  ;;  %11055 = vmatpush3.bf16.msra.mxu0 %v12593_v36  ;;  %v12576_v36 = vld [vmem:[%s18382_s3 + $0xbd4] ss:$8 sps:$4 sm:$0xff]  }
 0x47d   : > { %18961 = vst [vmem:[#allocation204_spill] sm:$0xff] %v15822_v39  ;;  %18962 = vst [vmem:[#allocation205_spill] sm:$0xff] %v15824_v51  ;;  %5787 = vmatpush1.bf16.msra.mxu1 %v13193_v60  ;;  %11056 = vmatprep.subr.bf16.mxu0 %v12600_v10 }
 0x47e   : > { %v4091_v38 = vpop.f32.mrf.mxu1  ;;  %v5181_v47 = vpop.f32.mrf.mxu0  ;;  %5794 = vmatprep.subr.bf16.mxu1 %v18745_v33 }
 0x47f   : > { %v12602_v47 = vld [vmem:[%s18383_s4 + $0x40] sm:$0xff]  }
 0x480   : > { %v15847_v6 = vpop.f32.mrf.mxu1  ;;  %v15849_v57 = vpop.f32.mrf.mxu0  ;;  %5401 = vmatmul.mubr.bf16.gmra.mxu1 %v12568_v40  ;;  %6491 = vmatmul.mubr.bf16.gmra.mxu0 %v12569_v21  ;;  %v12603_v40 = vld [vmem:[%s18383_s4] sm:$0xff]  }
 0x481   : > { %18963 = vst [vmem:[#allocation206_spill] sm:$0xff] %v15847_v6  ;;  %18964 = vst [vmem:[#allocation207_spill] sm:$0xff] %v15849_v57  ;;  %5795 = vmatpush2.bf16.msra.mxu1 %v13340_v56  ;;  %10520 = vmatprep.mubr.msk.bf16.mxu1 %vm1383_vm0, %v12574_v52  ;;  %v12579_v52 = vld [vmem:[%s18382_s3 + $0xbd0] ss:$8 sps:$4 sm:$0xff]   ;;  %v12596_v6 = vld [vmem:[%s18382_s3 + $0xbf4] ss:$8 sps:$4 sm:$0xff]  }
 0x482   : > { %v4096_v10 = vpop.f32.mrf.mxu1  ;;  %v5186_v38 = vpop.f32.mrf.mxu0  ;;  %5796 = vmatprep.subr.bf16.mxu1 %v18745_v33  ;;  %10720 = vmatprep.mubr.msk.bf16.mxu0 %vm1383_vm0, %v12576_v36 }
 0x483   : > { %11057 = vmatpush3.bf16.msra.mxu0 %v12601_v23  ;;  %v12584_v10 = vld [vmem:[%s18382_s3 + $0x964] ss:$8 sps:$4 sm:$0xff]   ;;  %v12619_v23 = vld [vmem:[%s18383_s4 + $0x178] sm:$0xff]  }
 0x484   : > { %v15861_v21 = vpop.f32.mrf.mxu1  ;;  %v15863_v51 = vpop.f32.mrf.mxu0  ;;  %11058 = vmatprep.subr.bf16.mxu0 %v12602_v47  ;;  %v12586_v47 = vld [vmem:[%s18382_s3 + $0xbe4] ss:$8 sps:$4 sm:$0xff]  }
 0x485   : > { %18965 = vst [vmem:[#allocation208_spill] sm:$0xff] %v15861_v21  ;;  %18966 = vst [vmem:[#allocation209_spill] sm:$0xff] %v15863_v51  ;;  %5797 = vmatpush2.bf16.msra.mxu1 %v13321_v7 }
 0x486   : > { %v4099_v38 = vpop.f32.mrf.mxu1  ;;  %v5189_v39 = vpop.f32.mrf.mxu0  ;;  %5798 = vmatprep.subr.bf16.mxu1 %v18745_v33 }
 0x487   : > { %11059 = vmatpush3.bf16.msra.mxu0 %v12603_v40 }
 0x488   : > { %v15886_v36 = vpop.f32.mrf.mxu1  ;;  %v15888_v57 = vpop.f32.mrf.mxu0  ;;  %5409 = vmatmul.mubr.bf16.gmra.mxu1 %v12578_v53  ;;  %6499 = vmatmul.mubr.bf16.gmra.mxu0 %v12579_v52  ;;  %v12588_v53 = vld [vmem:[%s18382_s3 + $0x960] ss:$8 sps:$4 sm:$0xff]  }
 0x489   : > { %18967 = vst [vmem:[#allocation210_spill] sm:$0xff] %v15886_v36  ;;  %18968 = vst [vmem:[#allocation211_spill] sm:$0xff] %v15888_v57  ;;  %5799 = vmatpush2.bf16.msra.mxu1 %v13314_v5  ;;  %10521 = vmatprep.mubr.msk.bf16.mxu1 %vm1383_vm0, %v12584_v10  ;;  %v12589_v52 = vld [vmem:[%s18382_s3 + $0xbe0] ss:$8 sps:$4 sm:$0xff]  }
 0x48a   : > { %v4104_v39 = vpop.f32.mrf.mxu1  ;;  %v5194_v38 = vpop.f32.mrf.mxu0  ;;  %5800 = vmatprep.subr.bf16.mxu1 %v18745_v33  ;;  %10721 = vmatprep.mubr.msk.bf16.mxu0 %vm1383_vm0, %v12586_v47 }
 0x48b   : > { %11172 = vmatprep.subr.bf16.mxu0 %v12619_v23  ;;  %v12594_v23 = vld [vmem:[%s18382_s3 + $0x974] ss:$8 sps:$4 sm:$0xff]  }
 0x48c   : > { %v15894_v40 = vpop.f32.mrf.mxu1  ;;  %v15896_v51 = vpop.f32.mrf.mxu0 }
 0x48d   : > { %18969 = vst [vmem:[#allocation212_spill] sm:$0xff] %v15894_v40  ;;  %18970 = vst [vmem:[#allocation213_spill] sm:$0xff] %v15896_v51  ;;  %5801 = vmatpush2.bf16.msra.mxu1 %v13302_v49  ;;  %v12598_v51 = vld [vmem:[%s18382_s3 + $0x970] ss:$8 sps:$4 sm:$0xff]  }
 0x48e   : > { %v4107_v47 = vpop.f32.mrf.mxu1  ;;  %v5197_v38 = vpop.f32.mrf.mxu0  ;;  %5802 = vmatprep.subr.bf16.mxu1 %v18745_v33 }
 0x490   : > { %v15916_v21 = vpop.f32.mrf.mxu1  ;;  %v15918_v10 = vpop.f32.mrf.mxu0  ;;  %5417 = vmatmul.mubr.bf16.gmra.mxu1 %v12588_v53  ;;  %6507 = vmatmul.mubr.bf16.gmra.mxu0 %v12589_v52  ;;  %v12599_v53 = vld [vmem:[%s18382_s3 + $0xbf0] ss:$8 sps:$4 sm:$0xff]  }
 0x491   : > { %18971 = vst [vmem:[#allocation214_spill] sm:$0xff] %v15918_v10  ;;  %5803 = vmatpush2.bf16.msra.mxu1 %v13291_v11  ;;  %10522 = vmatprep.mubr.msk.bf16.mxu1 %vm1383_vm0, %v12594_v23 }
 0x492   : > { %v4112_v39 = vpop.f32.mrf.mxu1  ;;  %v5202_v57 = vpop.f32.mrf.mxu0  ;;  %10722 = vmatprep.mubr.msk.bf16.mxu0 %vm1383_vm0, %v12596_v6  ;;  %6208 = vmatprep.subr.bf16.mxu1 %v18745_v33  ;;  %v12606_v6 = vld [vmem:[%s18382_s3 + $0xa04] ss:$8 sps:$4 sm:$0xff]  }
 0x494   : > { %v15924_v47 = vpop.f32.mrf.mxu1  ;;  %v15926_v38 = vpop.f32.mrf.mxu0 }
 0x495   : > { %18972 = vst [vmem:[#allocation215_spill] sm:$0xff] %v15926_v38 }
 0x496   : > { %v4115_v39 = vpop.f32.mrf.mxu1  ;;  %v5205_v23 = vpop.f32.mrf.mxu0 }
 0x497   : > { %v12604_v39 = vld [vmem:[%s18382_s3 + $0xa00] ss:$8 sps:$4 sm:$0xff]   ;;  %v18976_v23 = vpack.c.bf16 %v13876_v37, %v13866_v17  ;;  %v12622_v17 = vld [vmem:[%s18383_s4 + $0x130] sm:$0xff]  }
 0x498   : > { %v15941_v36 = vpop.f32.mrf.mxu1  ;;  %v15943_v40 = vpop.f32.mrf.mxu0  ;;  %5425 = vmatmul.mubr.bf16.gmra.mxu1 %v12598_v51  ;;  %6515 = vmatmul.mubr.bf16.gmra.mxu0 %v12599_v53 }
 0x499   : > { %8381 = vmatprep.mubr.bf16.mxu0 %v18973_v25  ;;  %10595 = vmatprep.mubr.msk.bf16.mxu1 %vm1383_vm0, %v12606_v6  ;;  %v12607_v25 = vld [vmem:[%s18382_s3 + $0xa14] ss:$8 sps:$4 sm:$0xff]  }
 0x49a   : > { %v4120_v52 = vpop.f32.mrf.mxu1  ;;  %v5210_v57 = vpop.f32.mrf.mxu0 }
 0x49b   : > { %v12620_v52 = vld [vmem:[%s18383_s4 + $0x138] sm:$0xff]  }
 0x49c   : > { %v15949_v10 = vpop.f32.mrf.mxu1  ;;  %v15951_v38 = vpop.f32.mrf.mxu0 }
 0x49e   : > { %v4123_v50 = vpop.f32.mrf.mxu1  ;;  %v5213_v18 = vpop.f32.mrf.mxu0 }
 0x49f   : > { %v12621_v50 = vld [vmem:[%s18383_s4 + $0x170] sm:$0xff]   ;;  %v18977_v18 = vpack.c.bf16 %v14170_v55, %v14160_v45 }
 0x4a0   : > { %v15966_v57 = vpop.f32.mrf.mxu1  ;;  %v15968_v6 = vpop.f32.mrf.mxu0  ;;  %5805 = vmatmul.mubr.bf16.vlgmr.msra.gmra.mxu1 %v12604_v39  ;;  %8382 = vmatmul.mubr.bf16.vlgmr.msra.gmra.mxu0 %v18976_v23  ;;  %v12609_v55 = vld [vmem:[%s18382_s3 + $0xa10] ss:$8 sps:$4 sm:$0xff]   ;;  %v12626_v23 = vld [vmem:[%s18383_s4 + $0x168] sm:$0xff]  }
 0x4a1   : > { %18974 = vst [vmem:[#allocation216_spill] sm:$0xff] %v15966_v57  ;;  %18975 = vst [vmem:[#allocation217_spill] sm:$0xff] %v15968_v6  ;;  %6209 = vmatpush1.bf16.msra.mxu1 %v13272_v41  ;;  %8389 = vmatprep.mubr.bf16.mxu0 %v18977_v18 }
 0x4a2   : > { %v4500_v53 = vpop.f32.mrf.mxu1  ;;  %v5590_v51 = vpop.f32.mrf.mxu0  ;;  %6210 = vmatprep.subr.bf16.mxu1 %v18745_v33  ;;  %10596 = vmatprep.mubr.msk.bf16.mxu1 %vm1383_vm0, %v12607_v25 }
 0x4a3   : > { %11173 = vmatpush3.bf16.msra.mxu0 %v12620_v52  ;;  %v12610_v52 = vld [vmem:[%s18382_s3 + $0xa24] ss:$8 sps:$4 sm:$0xff]  }
 0x4a4   : > { %v15985_v37 = vpop.f32.mrf.mxu1  ;;  %v15987_v39 = vpop.f32.mrf.mxu0  ;;  %11174 = vmatprep.subr.bf16.mxu0 %v12621_v50  ;;  %v12628_v51 = vld [vmem:[%s18383_s4 + $0x160] sm:$0xff]  }
 0x4a5   : > { %18978 = vst [vmem:[#allocation218_spill] sm:$0xff] %v15985_v37  ;;  %18979 = vst [vmem:[#allocation219_spill] sm:$0xff] %v15987_v39  ;;  %6211 = vmatpush1.bf16.msra.mxu1 %v13259_v35 }
 0x4a6   : > { %v4503_v53 = vpop.f32.mrf.mxu1  ;;  %v5593_v25 = vpop.f32.mrf.mxu0  ;;  %6212 = vmatprep.subr.bf16.mxu1 %v18745_v33 }
 0x4a7   : > { %11175 = vmatpush3.bf16.msra.mxu0 %v12622_v17  ;;  %v18982_v53 = vpack.c.bf16 %v13910_v46, %v13900_v9  ;;  %v12627_v25 = vld [vmem:[%s18383_s4 + $0x128] sm:$0xff]   ;;  %v18983_v17 = vpack.c.bf16 %v14204_v58, %v14194_v2 }
 0x4a8   : > { %v16004_v50 = vpop.f32.mrf.mxu1  ;;  %v16006_v18 = vpop.f32.mrf.mxu0  ;;  %5813 = vmatmul.mubr.bf16.gmra.mxu1 %v12609_v55  ;;  %11176 = vmatprep.subr.bf16.mxu0 %v12626_v23  ;;  %v12612_v58 = vld [vmem:[%s18382_s3 + $0xa20] ss:$8 sps:$4 sm:$0xff]  }
 0x4a9   : > { %18980 = vst [vmem:[#allocation220_spill] sm:$0xff] %v16004_v50  ;;  %18981 = vst [vmem:[#allocation221_spill] sm:$0xff] %v16006_v18  ;;  %8390 = vmatmul.mubr.bf16.gmra.mxu0 %v18982_v53  ;;  %6213 = vmatpush1.bf16.msra.mxu1 %v13252_v0  ;;  %v12613_v53 = vld [vmem:[%s18382_s3 + $0xa34] ss:$8 sps:$4 sm:$0xff]  }
 0x4aa   : > { %8397 = vmatprep.mubr.bf16.mxu0 %v18983_v17  ;;  %v4508_v45 = vpop.f32.mrf.mxu1  ;;  %v5598_v55 = vpop.f32.mrf.mxu0  ;;  %6214 = vmatprep.subr.bf16.mxu1 %v18745_v33 }
 0x4ab   : > { %10597 = vmatprep.mubr.msk.bf16.mxu1 %vm1383_vm0, %v12610_v52  ;;  %11177 = vmatpush3.bf16.msra.mxu0 %v12627_v25  ;;  %v12629_v25 = vld [vmem:[%s18383_s4 + $0x120] sm:$0xff]  }
 0x4ac   : > { %v16023_v9 = vpop.f32.mrf.mxu1  ;;  %v16025_v46 = vpop.f32.mrf.mxu0  ;;  %11178 = vmatprep.subr.bf16.mxu0 %v12628_v51  ;;  %v18988_v51 = vpack.c.bf16 %v13944_v22, %v13934_v3  ;;  %v12634_v3 = vld [vmem:[%s18383_s4 + $0x118] sm:$0xff]  }
 0x4ad   : > { %18984 = vst [vmem:[#allocation222_spill] sm:$0xff] %v16023_v9  ;;  %18985 = vst [vmem:[#allocation223_spill] sm:$0xff] %v16025_v46  ;;  %6215 = vmatpush1.bf16.msra.mxu1 %v13239_v42 }
 0x4ae   : > { %v4511_v52 = vpop.f32.mrf.mxu1  ;;  %v5601_v23 = vpop.f32.mrf.mxu0  ;;  %6216 = vmatprep.subr.bf16.mxu1 %v18745_v33 }
 0x4af   : > { %v12633_v52 = vld [vmem:[%s18383_s4 + $0x158] sm:$0xff]   ;;  %v18989_v23 = vpack.c.bf16 %v14238_v31, %v14228_v4  ;;  %11179 = vmatpush3.bf16.msra.mxu0 %v12629_v25  ;;  %v12616_v25 = vld [vmem:[%s18382_s3 + $0xa44] ss:$8 sps:$4 sm:$0xff]  }
 0x4b0   : > { %v16042_v17 = vpop.f32.mrf.mxu1  ;;  %v16044_v55 = vpop.f32.mrf.mxu0  ;;  %5821 = vmatmul.mubr.bf16.gmra.mxu1 %v12612_v58  ;;  %v12615_v4 = vld [vmem:[%s18382_s3 + $0xa30] ss:$8 sps:$4 sm:$0xff]   ;;  %11180 = vmatprep.subr.bf16.mxu0 %v12633_v52 }
 0x4b1   : > { %18986 = vst [vmem:[#allocation224_spill] sm:$0xff] %v16042_v17  ;;  %18987 = vst [vmem:[#allocation225_spill] sm:$0xff] %v16044_v55  ;;  %8398 = vmatmul.mubr.bf16.gmra.mxu0 %v18988_v51  ;;  %6217 = vmatpush1.bf16.msra.mxu1 %v13228_v63  ;;  %v12635_v51 = vld [vmem:[%s18383_s4 + $0x150] sm:$0xff]   ;;  %v19176_v17 = vld [vmem:[#allocation137_spill] sm:$0xff] }
 0x4b2   : > { %8405 = vmatprep.mubr.bf16.mxu0 %v18989_v23  ;;  %v4516_v45 = vpop.f32.mrf.mxu1  ;;  %v5606_v2 = vpop.f32.mrf.mxu0  ;;  %6218 = vmatprep.subr.bf16.mxu1 %v18745_v33 }
 0x4b3   : > { %10598 = vmatprep.mubr.msk.bf16.mxu1 %vm1383_vm0, %v12613_v53  ;;  %11181 = vmatpush3.bf16.msra.mxu0 %v12634_v3  ;;  %v18995_v3 = vpack.c.bf16 %v14272_v32, %v14262_v30  ;;  %v12640_v2 = vld [vmem:[%s18383_s4 + $0x148] sm:$0xff]  }
 0x4b4   : > { %v16061_v22 = vpop.f32.mrf.mxu1  ;;  %v16063_v58 = vpop.f32.mrf.mxu0  ;;  %11182 = vmatprep.subr.bf16.mxu0 %v12635_v51  ;;  %v12618_v32 = vld [vmem:[%s18382_s3 + $0xa40] ss:$8 sps:$4 sm:$0xff]  }
 0x4b5   : > { %18990 = vst [vmem:[#allocation226_spill] sm:$0xff] %v16061_v22  ;;  %18991 = vst [vmem:[#allocation227_spill] sm:$0xff] %v16063_v58  ;;  %6219 = vmatpush1.bf16.msra.mxu1 %v13221_v61  ;;  %v19177_v22 = vld [vmem:[#allocation135_spill] sm:$0xff] }
 0x4b6   : > { %v4519_v45 = vpop.f32.mrf.mxu1  ;;  %v5609_v53 = vpop.f32.mrf.mxu0  ;;  %6220 = vmatprep.subr.bf16.mxu1 %v18745_v33 }
 0x4b7   : > { %v18994_v45 = vpack.c.bf16 %v13978_v27, %v13968_v12  ;;  %v12636_v53 = vld [vmem:[%s18383_s4 + $0x110] sm:$0xff]  }
 0x4b8   : > { %v16080_v52 = vpop.f32.mrf.mxu1  ;;  %v16082_v23 = vpop.f32.mrf.mxu0  ;;  %5829 = vmatmul.mubr.bf16.gmra.mxu1 %v12615_v4  ;;  %11183 = vmatpush3.bf16.msra.mxu0 %v12636_v53  ;;  %v12641_v53 = vld [vmem:[%s18383_s4 + $0x108] sm:$0xff]  }
 0x4b9   : > { %18992 = vst [vmem:[#allocation228_spill] sm:$0xff] %v16080_v52  ;;  %18993 = vst [vmem:[#allocation229_spill] sm:$0xff] %v16082_v23  ;;  %8406 = vmatmul.mubr.bf16.gmra.mxu0 %v18994_v45  ;;  %6221 = vmatpush1.bf16.msra.mxu1 %v13206_v59  ;;  %v12623_v45 = vld [vmem:[%s18382_s3 + $0xa54] ss:$8 sps:$4 sm:$0xff]   ;;  %v19174_v52 = vld [vmem:[#allocation3_spill] sm:$0xff] }
 0x4ba   : > { %8413 = vmatprep.mubr.bf16.mxu0 %v18995_v3  ;;  %v4524_v31 = vpop.f32.mrf.mxu1  ;;  %v5614_v4 = vpop.f32.mrf.mxu0  ;;  %6222 = vmatprep.subr.bf16.mxu1 %v18745_v33 }
 0x4bb   : > { %10599 = vmatprep.mubr.msk.bf16.mxu1 %vm1383_vm0, %v12616_v25  ;;  %11184 = vmatprep.subr.bf16.mxu0 %v12640_v2  ;;  %v19000_v2 = vpack.c.bf16 %v14012_v1, %v14002_v20  ;;  %v12643_v20 = vld [vmem:[%s18383_s4 + $0x100] sm:$0xff]  }
 0x4bc   : > { %v16099_v12 = vpop.f32.mrf.mxu1  ;;  %v16101_v27 = vpop.f32.mrf.mxu0  ;;  %11185 = vmatpush3.bf16.msra.mxu0 %v12641_v53  ;;  %v12630_v53 = vld [vmem:[%s18382_s3 + $0xa64] ss:$8 sps:$4 sm:$0xff]  }
 0x4bd   : > { %18996 = vst [vmem:[#allocation230_spill] sm:$0xff] %v16099_v12  ;;  %18997 = vst [vmem:[#allocation231_spill] sm:$0xff] %v16101_v27  ;;  %6223 = vmatpush1.bf16.msra.mxu1 %v13193_v60 }
 0x4be   : > { %v4527_v25 = vpop.f32.mrf.mxu1  ;;  %v5617_v51 = vpop.f32.mrf.mxu0  ;;  %6230 = vmatprep.subr.bf16.mxu1 %v18745_v33 }
 0x4bf   : > { %v12642_v25 = vld [vmem:[%s18383_s4 + $0x140] sm:$0xff]   ;;  %v19001_v51 = vpack.c.bf16 %v14306_v15, %v14296_v28  ;;  %v12625_v15 = vld [vmem:[%s18382_s3 + $0xa50] ss:$8 sps:$4 sm:$0xff]  }
 0x4c0   : > { %v16118_v3 = vpop.f32.mrf.mxu1  ;;  %v16120_v4 = vpop.f32.mrf.mxu0  ;;  %5837 = vmatmul.mubr.bf16.gmra.mxu1 %v12618_v32  ;;  %11186 = vmatprep.subr.bf16.mxu0 %v12642_v25 }
 0x4c1   : > { %18998 = vst [vmem:[#allocation232_spill] sm:$0xff] %v16118_v3  ;;  %18999 = vst [vmem:[#allocation233_spill] sm:$0xff] %v16120_v4  ;;  %8414 = vmatmul.mubr.bf16.gmra.mxu0 %v19000_v2  ;;  %6231 = vmatpush2.bf16.msra.mxu1 %v13340_v56  ;;  %v12659_v2 = vld [vmem:[%s18383_s4 + $0x278] sm:$0xff]   ;;  %v12680_v4 = vld [vmem:[%s18383_s4 + $0x248] sm:$0xff]  }
 0x4c2   : > { %8421 = vmatprep.mubr.bf16.mxu0 %v19001_v51  ;;  %v4532_v31 = vpop.f32.mrf.mxu1  ;;  %v5622_v30 = vpop.f32.mrf.mxu0  ;;  %6232 = vmatprep.subr.bf16.mxu1 %v18745_v33 }
 0x4c3   : > { %10600 = vmatprep.mubr.msk.bf16.mxu1 %vm1383_vm0, %v12623_v45  ;;  %11187 = vmatpush3.bf16.msra.mxu0 %v12643_v20 }
 0x4c4   : > { %v16137_v1 = vpop.f32.mrf.mxu1  ;;  %v16139_v32 = vpop.f32.mrf.mxu0  ;;  %11300 = vmatprep.subr.bf16.mxu0 %v12659_v2 }
 0x4c5   : > { %19002 = vst [vmem:[#allocation234_spill] sm:$0xff] %v16137_v1  ;;  %19003 = vst [vmem:[#allocation235_spill] sm:$0xff] %v16139_v32  ;;  %6233 = vmatpush2.bf16.msra.mxu1 %v13321_v7  ;;  %v19148_v1 = vld [vmem:[#allocation129_spill] sm:$0xff] }
 0x4c6   : > { %v4535_v31 = vpop.f32.mrf.mxu1  ;;  %v5625_v45 = vpop.f32.mrf.mxu0  ;;  %6234 = vmatprep.subr.bf16.mxu1 %v18745_v33 }
 0x4c7   : > { %v19006_v31 = vpack.c.bf16 %v14046_v29, %v14036_v62  ;;  %v19007_v45 = vpack.c.bf16 %v14340_v24, %v14330_v48  ;;  %v12632_v62 = vld [vmem:[%s18382_s3 + $0xa60] ss:$8 sps:$4 sm:$0xff]  }
 0x4c8   : > { %v16156_v25 = vpop.f32.mrf.mxu1  ;;  %v16158_v51 = vpop.f32.mrf.mxu0  ;;  %5845 = vmatmul.mubr.bf16.gmra.mxu1 %v12625_v15 }
 0x4c9   : > { %19004 = vst [vmem:[#allocation236_spill] sm:$0xff] %v16156_v25  ;;  %19005 = vst [vmem:[#allocation237_spill] sm:$0xff] %v16158_v51  ;;  %8422 = vmatmul.mubr.bf16.gmra.mxu0 %v19006_v31  ;;  %6235 = vmatpush2.bf16.msra.mxu1 %v13314_v5  ;;  %v12693_v25 = vld [vmem:[%s18383_s4 + $0xb0] sm:$0xff]  }
 0x4ca   : > { %8429 = vmatprep.mubr.bf16.mxu0 %v19007_v45  ;;  %v4540_v20 = vpop.f32.mrf.mxu1  ;;  %v5630_v30 = vpop.f32.mrf.mxu0  ;;  %6236 = vmatprep.subr.bf16.mxu1 %v18745_v33  ;;  %v19012_v45 = vpack.c.bf16 %v14080_v54, %v14070_v43  ;;  %v12639_v43 = vld [vmem:[%s18382_s3 + $0xa70] ss:$8 sps:$4 sm:$0xff]  }
 0x4cb   : > { %10601 = vmatprep.mubr.msk.bf16.mxu1 %vm1383_vm0, %v12630_v53  ;;  %v12637_v53 = vld [vmem:[%s18382_s3 + $0xa74] ss:$8 sps:$4 sm:$0xff]   ;;  %v19013_v20 = vpack.c.bf16 %v14366_v14, %v14360_v16  ;;  %v12646_v14 = vld [vmem:[%s18382_s3 + $0xb04] ss:$8 sps:$4 sm:$0xff]  }
 0x4cc   : > { %v16169_v28 = vpop.f32.mrf.mxu1  ;;  %v16171_v15 = vpop.f32.mrf.mxu0 }
 0x4cd   : > { %19008 = vst [vmem:[#allocation238_spill] sm:$0xff] %v16169_v28  ;;  %19009 = vst [vmem:[#allocation239_spill] sm:$0xff] %v16171_v15  ;;  %6237 = vmatpush2.bf16.msra.mxu1 %v13302_v49 }
 0x4ce   : > { %v4543_v48 = vpop.f32.mrf.mxu1  ;;  %v5633_v30 = vpop.f32.mrf.mxu0  ;;  %6238 = vmatprep.subr.bf16.mxu1 %v18745_v33 }
 0x4d0   : > { %v16185_v2 = vpop.f32.mrf.mxu1  ;;  %v16187_v31 = vpop.f32.mrf.mxu0  ;;  %5853 = vmatmul.mubr.bf16.gmra.mxu1 %v12632_v62 }
 0x4d1   : > { %19010 = vst [vmem:[#allocation240_spill] sm:$0xff] %v16185_v2  ;;  %19011 = vst [vmem:[#allocation241_spill] sm:$0xff] %v16187_v31  ;;  %8430 = vmatmul.mubr.bf16.gmra.mxu0 %v19012_v45  ;;  %6239 = vmatpush2.bf16.msra.mxu1 %v13291_v11  ;;  %v19076_v2 = vld [vmem:[#allocation67_spill] sm:$0xff] }
 0x4d2   : > { %8437 = vmatprep.mubr.bf16.mxu0 %v19013_v20  ;;  %v4548_v48 = vpop.f32.mrf.mxu1  ;;  %v5638_v30 = vpop.f32.mrf.mxu0  ;;  %10602 = vmatprep.mubr.msk.bf16.mxu1 %vm1383_vm0, %v12637_v53 }
 0x4d3   : > { %6644 = vmatprep.subr.bf16.mxu1 %v18745_v33  ;;  %v19018_v48 = vpack.c.bf16 %v14106_v44, %v14100_v34  ;;  %v19019_v30 = vpack.c.bf16 %v14138_v19, %v14128_v8 }
 0x4d4   : > { %v16198_v24 = vpop.f32.mrf.mxu1  ;;  %v16200_v29 = vpop.f32.mrf.mxu0 }
 0x4d5   : > { %19014 = vst [vmem:[#allocation242_spill] sm:$0xff] %v16198_v24  ;;  %19015 = vst [vmem:[#allocation243_spill] sm:$0xff] %v16200_v29 }
 0x4d6   : > { %v4551_v62 = vpop.f32.mrf.mxu1  ;;  %v5641_v53 = vpop.f32.mrf.mxu0 }
 0x4d8   : > { %v16212_v45 = vpop.f32.mrf.mxu1  ;;  %v16214_v20 = vpop.f32.mrf.mxu0  ;;  %5861 = vmatmul.mubr.bf16.gmra.mxu1 %v12639_v43  ;;  %v12644_v43 = vld [vmem:[%s18382_s3 + $0xb00] ss:$8 sps:$4 sm:$0xff]  }
 0x4d9   : > { %19016 = vst [vmem:[#allocation244_spill] sm:$0xff] %v16212_v45  ;;  %19017 = vst [vmem:[#allocation245_spill] sm:$0xff] %v16214_v20  ;;  %8438 = vmatmul.mubr.bf16.gmra.mxu0 %v19018_v48  ;;  %10675 = vmatprep.mubr.msk.bf16.mxu1 %vm1383_vm0, %v12646_v14  ;;  %v19022_v48 = vpack.c.bf16 %v14656_v26, %v14646_v13  ;;  %v12662_v13 = vld [vmem:[%s18383_s4 + $0x230] sm:$0xff]  }
 0x4da   : > { %8575 = vmatprep.mubr.bf16.mxu0 %v19019_v30  ;;  %v4556_v16 = vpop.f32.mrf.mxu1  ;;  %v5646_v54 = vpop.f32.mrf.mxu0  ;;  %v12661_v30 = vld [vmem:[%s18383_s4 + $0x270] sm:$0xff]  }
 0x4db   : > { %v12647_v54 = vld [vmem:[%s18382_s3 + $0xb14] ss:$8 sps:$4 sm:$0xff]  }
 0x4dc   : > { %v16223_v31 = vpop.f32.mrf.mxu1  ;;  %v16225_v62 = vpop.f32.mrf.mxu0  ;;  %v12660_v16 = vld [vmem:[%s18383_s4 + $0x238] sm:$0xff]  }
 0x4dd   : > { %19020 = vst [vmem:[#allocation246_spill] sm:$0xff] %v16223_v31  ;;  %19021 = vst [vmem:[#allocation247_spill] sm:$0xff] %v16225_v62  ;;  %v12668_v62 = vld [vmem:[%s18383_s4 + $0x260] sm:$0xff]   ;;  %v19075_v31 = vld [vmem:[#allocation69_spill] sm:$0xff] }
 0x4de   : > { %v4559_v19 = vpop.f32.mrf.mxu1  ;;  %v5649_v8 = vpop.f32.mrf.mxu0  ;;  %v19077_v24 = vpack.c.bf16 %v19075_v31, %v19076_v2 }
 0x4df   : > { %v19023_v19 = vld [vmem:[#allocation18_spill] sm:$0xff] }
 0x4e0   : > { %v16240_v14 = vpop.f32.mrf.mxu1  ;;  %v16242_v53 = vpop.f32.mrf.mxu0  ;;  %6241 = vmatmul.mubr.bf16.vlgmr.msra.gmra.mxu1 %v12644_v43  ;;  %v19024_v8 = vld [vmem:[#allocation22_spill] sm:$0xff] }
 0x4e1   : > { %8576 = vmatmul.mubr.bf16.vlgmr.msra.gmra.mxu0 %v19022_v48  ;;  %6645 = vmatpush1.bf16.msra.mxu1 %v13272_v41  ;;  %v19025_v34 = vpack.c.bf16 %v19023_v19, %v19024_v8  ;;  %v12649_v41 = vld [vmem:[%s18382_s3 + $0xb10] ss:$8 sps:$4 sm:$0xff]   ;;  %v12666_v48 = vld [vmem:[%s18383_s4 + $0x268] sm:$0xff]  }
 0x4e2   : > { %v4936_v44 = vpop.f32.mrf.mxu1  ;;  %v6026_v20 = vpop.f32.mrf.mxu0  ;;  %6646 = vmatprep.subr.bf16.mxu1 %v18745_v33  ;;  %10676 = vmatprep.mubr.msk.bf16.mxu1 %vm1383_vm0, %v12647_v54  ;;  %v19026_v8 = vld [vmem:[#allocation68_spill] sm:$0xff] }
 0x4e3   : > { %8583 = vmatprep.mubr.bf16.mxu0 %v19025_v34  ;;  %11301 = vmatpush3.bf16.msra.mxu0 %v12660_v16  ;;  %v12650_v16 = vld [vmem:[%s18382_s3 + $0xb24] ss:$8 sps:$4 sm:$0xff]   ;;  %v19030_v44 = vld [vmem:[#allocation9_spill] sm:$0xff] }
 0x4e4   : > { %v16259_v26 = vpop.f32.mrf.mxu1  ;;  %v16261_v43 = vpop.f32.mrf.mxu0  ;;  %11302 = vmatprep.subr.bf16.mxu0 %v12661_v30 }
 0x4e5   : > { %6647 = vmatpush1.bf16.msra.mxu1 %v13259_v35  ;;  %v19027_v35 = vld [vmem:[#allocation66_spill] sm:$0xff] }
 0x4e6   : > { %v4939_v34 = vpop.f32.mrf.mxu1  ;;  %v6029_v54 = vpop.f32.mrf.mxu0  ;;  %6648 = vmatprep.subr.bf16.mxu1 %v18745_v33 }
 0x4e7   : > { %11303 = vmatpush3.bf16.msra.mxu0 %v12662_v13  ;;  %v19028_v34 = vpack.c.bf16 %v19026_v8, %v19027_v35  ;;  %v12667_v54 = vld [vmem:[%s18383_s4 + $0x228] sm:$0xff]   ;;  %v19029_v13 = vld [vmem:[#allocation24_spill] sm:$0xff] }
 0x4e8   : > { %v16278_v30 = vpop.f32.mrf.mxu1  ;;  %v16280_v19 = vpop.f32.mrf.mxu0  ;;  %6249 = vmatmul.mubr.bf16.gmra.mxu1 %v12649_v41  ;;  %v19031_v20 = vpack.c.bf16 %v19029_v13, %v19030_v44  ;;  %11304 = vmatprep.subr.bf16.mxu0 %v12666_v48  ;;  %v12653_v48 = vld [vmem:[%s18382_s3 + $0xb34] ss:$8 sps:$4 sm:$0xff]  }
 0x4e9   : > { %8584 = vmatmul.mubr.bf16.gmra.mxu0 %v19028_v34  ;;  %6649 = vmatpush1.bf16.msra.mxu1 %v13252_v0  ;;  %v12652_v0 = vld [vmem:[%s18382_s3 + $0xb20] ss:$8 sps:$4 sm:$0xff]  }
 0x4ea   : > { %8591 = vmatprep.mubr.bf16.mxu0 %v19031_v20  ;;  %v4944_v29 = vpop.f32.mrf.mxu1  ;;  %v6034_v41 = vpop.f32.mrf.mxu0  ;;  %6650 = vmatprep.subr.bf16.mxu1 %v18745_v33  ;;  %v12669_v34 = vld [vmem:[%s18383_s4 + $0x220] sm:$0xff]  }
 0x4eb   : > { %10677 = vmatprep.mubr.msk.bf16.mxu1 %vm1383_vm0, %v12650_v16  ;;  %11305 = vmatpush3.bf16.msra.mxu0 %v12667_v54  ;;  %v19032_v41 = vld [vmem:[#allocation72_spill] sm:$0xff]  ;;  %v19036_v29 = vld [vmem:[#allocation7_spill] sm:$0xff] }
 0x4ec   : > { %v16297_v8 = vpop.f32.mrf.mxu1  ;;  %v16299_v35 = vpop.f32.mrf.mxu0  ;;  %11306 = vmatprep.subr.bf16.mxu0 %v12668_v62 }
 0x4ed   : > { %6651 = vmatpush1.bf16.msra.mxu1 %v13239_v42  ;;  %v19033_v42 = vld [vmem:[#allocation70_spill] sm:$0xff] }
 0x4ee   : > { %v4947_v44 = vpop.f32.mrf.mxu1  ;;  %v6037_v16 = vpop.f32.mrf.mxu0  ;;  %6652 = vmatprep.subr.bf16.mxu1 %v18745_v33  ;;  %v19034_v62 = vpack.c.bf16 %v19032_v41, %v19033_v42 }
 0x4ef   : > { %v12673_v44 = vld [vmem:[%s18383_s4 + $0x258] sm:$0xff]   ;;  %11307 = vmatpush3.bf16.msra.mxu0 %v12669_v34  ;;  %v12675_v34 = vld [vmem:[%s18383_s4 + $0x250] sm:$0xff]  }
 0x4f0   : > { %v16316_v54 = vpop.f32.mrf.mxu1  ;;  %v16318_v13 = vpop.f32.mrf.mxu0  ;;  %6257 = vmatmul.mubr.bf16.gmra.mxu1 %v12652_v0  ;;  %v19035_v16 = vld [vmem:[#allocation17_spill] sm:$0xff]  ;;  %11308 = vmatprep.subr.bf16.mxu0 %v12673_v44 }
 0x4f1   : > { %8592 = vmatmul.mubr.bf16.gmra.mxu0 %v19034_v62  ;;  %6653 = vmatpush1.bf16.msra.mxu1 %v13228_v63  ;;  %v19037_v20 = vpack.c.bf16 %v19035_v16, %v19036_v29  ;;  %v12674_v0 = vld [vmem:[%s18383_s4 + $0x218] sm:$0xff]   ;;  %v19038_v16 = vld [vmem:[#allocation76_spill] sm:$0xff] }
 0x4f2   : > { %v4952_v51 = vpop.f32.mrf.mxu1  ;;  %v6042_v15 = vpop.f32.mrf.mxu0  ;;  %6654 = vmatprep.subr.bf16.mxu1 %v18745_v33  ;;  %10678 = vmatprep.mubr.msk.bf16.mxu1 %vm1383_vm0, %v12653_v48  ;;  %v12655_v63 = vld [vmem:[%s18382_s3 + $0xb30] ss:$8 sps:$4 sm:$0xff]   ;;  %v12656_v48 = vld [vmem:[%s18382_s3 + $0xb44] ss:$8 sps:$4 sm:$0xff]  }
 0x4f3   : > { %8599 = vmatprep.mubr.bf16.mxu0 %v19037_v20  ;;  %11309 = vmatpush3.bf16.msra.mxu0 %v12674_v0  ;;  %v19041_v0 = vld [vmem:[#allocation5_spill] sm:$0xff] }
 0x4f4   : > { %v16335_v41 = vpop.f32.mrf.mxu1  ;;  %v16337_v42 = vpop.f32.mrf.mxu0  ;;  %v19042_v15 = vld [vmem:[#allocation25_spill] sm:$0xff]  ;;  %11310 = vmatprep.subr.bf16.mxu0 %v12675_v34 }
 0x4f5   : > { %6655 = vmatpush1.bf16.msra.mxu1 %v13221_v61  ;;  %v19039_v61 = vld [vmem:[#allocation74_spill] sm:$0xff]  ;;  %v19043_v51 = vpack.c.bf16 %v19041_v0, %v19042_v15  ;;  %v12663_v34 = vld [vmem:[%s18382_s3 + $0xb54] ss:$8 sps:$4 sm:$0xff]  }
 0x4f6   : > { %v4955_v20 = vpop.f32.mrf.mxu1  ;;  %v6045_v29 = vpop.f32.mrf.mxu0  ;;  %6656 = vmatprep.subr.bf16.mxu1 %v18745_v33 }
 0x4f7   : > { %v19040_v20 = vpack.c.bf16 %v19038_v16, %v19039_v61  ;;  %v12676_v29 = vld [vmem:[%s18383_s4 + $0x210] sm:$0xff]  }
 0x4f8   : > { %v16354_v62 = vpop.f32.mrf.mxu1  ;;  %v16356_v44 = vpop.f32.mrf.mxu0  ;;  %6265 = vmatmul.mubr.bf16.gmra.mxu1 %v12655_v63  ;;  %11311 = vmatpush3.bf16.msra.mxu0 %v12676_v29 }
 0x4f9   : > { %8600 = vmatmul.mubr.bf16.gmra.mxu0 %v19040_v20  ;;  %6657 = vmatpush1.bf16.msra.mxu1 %v13206_v59  ;;  %v12658_v59 = vld [vmem:[%s18382_s3 + $0xb40] ss:$8 sps:$4 sm:$0xff]  }
 0x4fa   : > { %8607 = vmatprep.mubr.bf16.mxu0 %v19043_v51  ;;  %v4960_v32 = vpop.f32.mrf.mxu1  ;;  %v6050_v63 = vpop.f32.mrf.mxu0  ;;  %6658 = vmatprep.subr.bf16.mxu1 %v18745_v33  ;;  %v12681_v20 = vld [vmem:[%s18383_s4 + $0x208] sm:$0xff]  }
 0x4fb   : > { %10679 = vmatprep.mubr.msk.bf16.mxu1 %vm1383_vm0, %v12656_v48  ;;  %11312 = vmatprep.subr.bf16.mxu0 %v12680_v4  ;;  %v19044_v63 = vld [vmem:[#allocation80_spill] sm:$0xff]  ;;  %v19048_v32 = vld [vmem:[#allocation15_spill] sm:$0xff] }
 0x4fc   : > { %v16373_v16 = vpop.f32.mrf.mxu1  ;;  %v16375_v61 = vpop.f32.mrf.mxu0  ;;  %11313 = vmatpush3.bf16.msra.mxu0 %v12681_v20  ;;  %v12708_v20 = vld [vmem:[%s18383_s4 + $0x378] sm:$0xff]  }
 0x4fd   : > { %6659 = vmatpush1.bf16.msra.mxu1 %v13193_v60  ;;  %v19045_v60 = vld [vmem:[#allocation78_spill] sm:$0xff] }
 0x4fe   : > { %v4963_v15 = vpop.f32.mrf.mxu1  ;;  %v6053_v48 = vpop.f32.mrf.mxu0  ;;  %6666 = vmatprep.subr.bf16.mxu1 %v18745_v33  ;;  %v19046_v4 = vpack.c.bf16 %v19044_v63, %v19045_v60 }
 0x4ff   : > { %v12682_v15 = vld [vmem:[%s18383_s4 + $0x240] sm:$0xff]   ;;  %v19047_v48 = vld [vmem:[#allocation27_spill] sm:$0xff] }
 0x500   : > { %v16392_v29 = vpop.f32.mrf.mxu1  ;;  %v16394_v0 = vpop.f32.mrf.mxu0  ;;  %6273 = vmatmul.mubr.bf16.gmra.mxu1 %v12658_v59  ;;  %v19049_v51 = vpack.c.bf16 %v19047_v48, %v19048_v32  ;;  %v12683_v59 = vld [vmem:[%s18383_s4 + $0x200] sm:$0xff]   ;;  %11314 = vmatprep.subr.bf16.mxu0 %v12682_v15  ;;  %v19050_v48 = vld [vmem:[#allocation84_spill] sm:$0xff] }
 0x501   : > { %8608 = vmatmul.mubr.bf16.gmra.mxu0 %v19046_v4  ;;  %6667 = vmatpush2.bf16.msra.mxu1 %v13340_v56  ;;  %v12665_v56 = vld [vmem:[%s18382_s3 + $0xb50] ss:$8 sps:$4 sm:$0xff]  }
 0x502   : > { %8615 = vmatprep.mubr.bf16.mxu0 %v19049_v51  ;;  %v4968_v23 = vpop.f32.mrf.mxu1  ;;  %v6058_v27 = vpop.f32.mrf.mxu0  ;;  %6668 = vmatprep.subr.bf16.mxu1 %v18745_v33 }
 0x503   : > { %10680 = vmatprep.mubr.msk.bf16.mxu1 %vm1383_vm0, %v12663_v34  ;;  %v12670_v34 = vld [vmem:[%s18382_s3 + $0xb64] ss:$8 sps:$4 sm:$0xff]   ;;  %11315 = vmatpush3.bf16.msra.mxu0 %v12683_v59  ;;  %v19054_v27 = vld [vmem:[#allocation28_spill] sm:$0xff] }
 0x504   : > { %v16411_v63 = vpop.f32.mrf.mxu1  ;;  %v16413_v60 = vpop.f32.mrf.mxu0  ;;  %11428 = vmatprep.subr.bf16.mxu0 %v12708_v20  ;;  %v12687_v20 = vld [vmem:[%s18383_s4 + $0xf8] sm:$0xff]  }
 0x505   : > { %6669 = vmatpush2.bf16.msra.mxu1 %v13321_v7  ;;  %v19051_v7 = vld [vmem:[#allocation82_spill] sm:$0xff] }
 0x506   : > { %v4971_v51 = vpop.f32.mrf.mxu1  ;;  %v6061_v32 = vpop.f32.mrf.mxu0  ;;  %6670 = vmatprep.subr.bf16.mxu1 %v18745_v33 }
 0x507   : > { %v19052_v51 = vpack.c.bf16 %v19050_v48, %v19051_v7  ;;  %v19053_v32 = vld [vmem:[#allocation29_spill] sm:$0xff]  ;;  %v12672_v48 = vld [vmem:[%s18382_s3 + $0xb60] ss:$8 sps:$4 sm:$0xff]  }
 0x508   : > { %v16430_v4 = vpop.f32.mrf.mxu1  ;;  %v16432_v15 = vpop.f32.mrf.mxu0  ;;  %6281 = vmatmul.mubr.bf16.gmra.mxu1 %v12665_v56  ;;  %v19055_v23 = vpack.c.bf16 %v19053_v32, %v19054_v27  ;;  %v19056_v32 = vld [vmem:[#allocation88_spill] sm:$0xff] }
 0x509   : > { %8616 = vmatmul.mubr.bf16.gmra.mxu0 %v19052_v51  ;;  %6671 = vmatpush2.bf16.msra.mxu1 %v13314_v5 }
 0x50a   : > { %8623 = vmatprep.mubr.bf16.mxu0 %v19055_v23  ;;  %v4976_v59 = vpop.f32.mrf.mxu1  ;;  %v6066_v55 = vpop.f32.mrf.mxu0  ;;  %6672 = vmatprep.subr.bf16.mxu1 %v18745_v33 }
 0x50b   : > { %10681 = vmatprep.mubr.msk.bf16.mxu1 %vm1383_vm0, %v12670_v34  ;;  %v12677_v34 = vld [vmem:[%s18382_s3 + $0xb74] ss:$8 sps:$4 sm:$0xff]   ;;  %v19057_v59 = vld [vmem:[#allocation86_spill] sm:$0xff] }
 0x50c   : > { %v16443_v58 = vpop.f32.mrf.mxu1  ;;  %v16445_v56 = vpop.f32.mrf.mxu0 }
 0x50d   : > { %6673 = vmatpush2.bf16.msra.mxu1 %v13302_v49  ;;  %v19058_v49 = vpack.c.bf16 %v19056_v32, %v19057_v59 }
 0x50e   : > { %v4979_v55 = vpop.f32.mrf.mxu1  ;;  %v6069_v27 = vpop.f32.mrf.mxu0  ;;  %6674 = vmatprep.subr.bf16.mxu1 %v18745_v33  ;;  %v19059_v33 = vld [vmem:[#allocation31_spill] sm:$0xff] }
 0x50f   : > { %v19060_v55 = vld [vmem:[#allocation30_spill] sm:$0xff] }
 0x510   : > { %v16462_v7 = vpop.f32.mrf.mxu1  ;;  %v16464_v51 = vpop.f32.mrf.mxu0  ;;  %6289 = vmatmul.mubr.bf16.gmra.mxu1 %v12672_v48  ;;  %v19061_v27 = vpack.c.bf16 %v19059_v33, %v19060_v55  ;;  %v12679_v48 = vld [vmem:[%s18382_s3 + $0xb70] ss:$8 sps:$4 sm:$0xff]   ;;  %v19064_v33 = vld [vmem:[#allocation90_spill] sm:$0xff] }
 0x511   : > { %8624 = vmatmul.mubr.bf16.gmra.mxu0 %v19058_v49  ;;  %6675 = vmatpush2.bf16.msra.mxu1 %v13291_v11  ;;  %v19063_v49 = vld [vmem:[#allocation92_spill] sm:$0xff] }
 0x512   : > { %8631 = vmatprep.mubr.bf16.mxu0 %v19061_v27  ;;  %v4984_v23 = vpop.f32.mrf.mxu1  ;;  %v6074_v5 = vpop.f32.mrf.mxu0  ;;  %10682 = vmatprep.mubr.msk.bf16.mxu1 %vm1383_vm0, %v12677_v34  ;;  %v19065_v55 = vpack.c.bf16 %v19063_v49, %v19064_v33  ;;  %v19066_v27 = vld [vmem:[#allocation65_spill] sm:$0xff]  ;;  %v19067_v11 = vld [vmem:[#allocation64_spill] sm:$0xff] }
 0x513   : > { %11108 = vmatprep.subr.bf16.mxu1 %v12687_v20  ;;  %v12686_v5 = vld [vmem:[%s18382_s3 + $0xc04] ss:$8 sps:$4 sm:$0xff]   ;;  %v19068_v6 = vpack.c.bf16 %v19066_v27, %v19067_v11  ;;  %v12710_v33 = vld [vmem:[%s18383_s4 + $0x338] sm:$0xff]   ;;  %v19072_v49 = vld [vmem:[#allocation128_spill] sm:$0xff] }
 0x514   : > { %v16474_v18 = vpop.f32.mrf.mxu1  ;;  %v16476_v46 = vpop.f32.mrf.mxu0 }
 0x516   : > { %v4987_v23 = vpop.f32.mrf.mxu1  ;;  %v6077_v34 = vpop.f32.mrf.mxu0 }
 0x517   : > { %v12711_v34 = vld [vmem:[%s18383_s4 + $0x370] sm:$0xff]  }
 0x518   : > { %v16488_v20 = vpop.f32.mrf.mxu1  ;;  %v16490_v59 = vpop.f32.mrf.mxu0  ;;  %6297 = vmatmul.mubr.bf16.gmra.mxu1 %v12679_v48  ;;  %v12684_v48 = vld [vmem:[%s18382_s3 + $0xc00] ss:$8 sps:$4 sm:$0xff]  }
 0x519   : > { %19062 = vst [vmem:[#allocation18_spill] sm:$0xff] %v16490_v59  ;;  %8632 = vmatmul.mubr.bf16.gmra.mxu0 %v19065_v55  ;;  %10755 = vmatprep.mubr.msk.bf16.mxu1 %vm1383_vm0, %v12686_v5  ;;  %v12692_v5 = vld [vmem:[%s18383_s4 + $0xf0] sm:$0xff]  }
 0x51a   : > { %8769 = vmatprep.mubr.bf16.mxu0 %v19068_v6  ;;  %v4992_v32 = vpop.f32.mrf.mxu1  ;;  %v6082_v39 = vpop.f32.mrf.mxu0  ;;  %v12688_v6 = vld [vmem:[%s18383_s4 + $0xb8] sm:$0xff]  }
 0x51b   : > { %v12689_v32 = vld [vmem:[%s18382_s3 + $0xc14] ss:$8 sps:$4 sm:$0xff]  }
 0x51c   : > { %v16499_v45 = vpop.f32.mrf.mxu1  ;;  %v16501_v23 = vpop.f32.mrf.mxu0 }
 0x51d   : > { %19069 = vst [vmem:[#allocation22_spill] sm:$0xff] %v16501_v23 }
 0x51e   : > { %v4995_v11 = vpop.f32.mrf.mxu1  ;;  %v6085_v39 = vpop.f32.mrf.mxu0 }
 0x51f   : > { %v19073_v11 = vld [vmem:[#allocation126_spill] sm:$0xff] }
 0x520   : > { %v16522_v55 = vpop.f32.mrf.mxu1  ;;  %v16524_v27 = vpop.f32.mrf.mxu0  ;;  %6677 = vmatmul.mubr.bf16.vlgmr.msra.gmra.mxu1 %v12684_v48  ;;  %v19074_v39 = vpack.c.bf16 %v19072_v49, %v19073_v11  ;;  %v12697_v48 = vld [vmem:[%s18383_s4 + $0xe8] sm:$0xff]   ;;  %v12712_v49 = vld [vmem:[%s18383_s4 + $0x330] sm:$0xff]   ;;  %v12702_v11 = vld [vmem:[%s18383_s4 + $0xe0] sm:$0xff]  }
 0x521   : > { %19070 = vst [vmem:[#allocation68_spill] sm:$0xff] %v16522_v55  ;;  %19071 = vst [vmem:[#allocation66_spill] sm:$0xff] %v16524_v27  ;;  %11109 = vmatpush3.bf16.msra.mxu1 %v12688_v6  ;;  %10756 = vmatprep.mubr.msk.bf16.mxu1 %vm1383_vm0, %v12689_v32  ;;  %v12694_v6 = vld [vmem:[%s18382_s3 + $0xc24] ss:$8 sps:$4 sm:$0xff]   ;;  %v19085_v27 = vld [vmem:[#allocation73_spill] sm:$0xff] }
 0x522   : > { %8770 = vmatmul.mubr.bf16.vlgmr.msra.gmra.mxu0 %v19074_v39  ;;  %v5372_v28 = vpop.f32.mrf.mxu1  ;;  %v6462_v3 = vpop.f32.mrf.mxu0  ;;  %11110 = vmatprep.subr.bf16.mxu1 %v12692_v5 }
 0x523   : > { %8777 = vmatprep.mubr.bf16.mxu0 %v19077_v24  ;;  %11429 = vmatpush3.bf16.msra.mxu0 %v12710_v33  ;;  %v12691_v3 = vld [vmem:[%s18382_s3 + $0xc10] ss:$8 sps:$4 sm:$0xff]   ;;  %v12698_v33 = vld [vmem:[%s18383_s4 + $0xa8] sm:$0xff]   ;;  %v12720_v28 = vld [vmem:[%s18383_s4 + $0x360] sm:$0xff]  }
 0x524   : > { %v16545_v2 = vpop.f32.mrf.mxu1  ;;  %v16547_v24 = vpop.f32.mrf.mxu0  ;;  %11430 = vmatprep.subr.bf16.mxu0 %v12711_v34  ;;  %v12717_v34 = vld [vmem:[%s18383_s4 + $0x368] sm:$0xff]  }
 0x525   : > { %19078 = vst [vmem:[#allocation24_spill] sm:$0xff] %v16545_v2  ;;  %19079 = vst [vmem:[#allocation9_spill] sm:$0xff] %v16547_v24  ;;  %11111 = vmatpush3.bf16.msra.mxu1 %v12693_v25  ;;  %v12719_v25 = vld [vmem:[%s18383_s4 + $0x328] sm:$0xff]  }
 0x526   : > { %v5375_v32 = vpop.f32.mrf.mxu1  ;;  %v6465_v5 = vpop.f32.mrf.mxu0  ;;  %11112 = vmatprep.subr.bf16.mxu1 %v12697_v48  ;;  %v19086_v24 = vld [vmem:[#allocation71_spill] sm:$0xff] }
 0x527   : > { %11431 = vmatpush3.bf16.msra.mxu0 %v12712_v49  ;;  %v19082_v32 = vld [vmem:[#allocation132_spill] sm:$0xff]  ;;  %v19083_v5 = vld [vmem:[#allocation130_spill] sm:$0xff]  ;;  %v19087_v49 = vpack.c.bf16 %v19085_v27, %v19086_v24 }
 0x528   : > { %v16571_v39 = vpop.f32.mrf.mxu1  ;;  %v16573_v48 = vpop.f32.mrf.mxu0  ;;  %6685 = vmatmul.mubr.bf16.gmra.mxu1 %v12691_v3  ;;  %v19084_v31 = vpack.c.bf16 %v19082_v32, %v19083_v5  ;;  %v12703_v3 = vld [vmem:[%s18383_s4 + $0xa0] sm:$0xff]   ;;  %11432 = vmatprep.subr.bf16.mxu0 %v12717_v34  ;;  %v12699_v34 = vld [vmem:[%s18382_s3 + $0xc34] ss:$8 sps:$4 sm:$0xff]  }
 0x529   : > { %19080 = vst [vmem:[#allocation72_spill] sm:$0xff] %v16571_v39  ;;  %19081 = vst [vmem:[#allocation70_spill] sm:$0xff] %v16573_v48  ;;  %10757 = vmatprep.mubr.msk.bf16.mxu1 %vm1383_vm0, %v12694_v6  ;;  %11113 = vmatpush3.bf16.msra.mxu1 %v12698_v33  ;;  %v12721_v27 = vld [vmem:[%s18383_s4 + $0x320] sm:$0xff]   ;;  %v12709_v32 = vld [vmem:[%s18383_s4 + $0x98] sm:$0xff]  }
 0x52a   : > { %8778 = vmatmul.mubr.bf16.gmra.mxu0 %v19084_v31  ;;  %v5380_v55 = vpop.f32.mrf.mxu1  ;;  %v6470_v2 = vpop.f32.mrf.mxu0  ;;  %11114 = vmatprep.subr.bf16.mxu1 %v12702_v11  ;;  %v12707_v31 = vld [vmem:[%s18383_s4 + $0xd8] sm:$0xff]   ;;  %v12716_v5 = vld [vmem:[%s18383_s4 + $0xd0] sm:$0xff]   ;;  %v19093_v33 = vld [vmem:[#allocation134_spill] sm:$0xff] }
 0x52b   : > { %8785 = vmatprep.mubr.bf16.mxu0 %v19087_v49  ;;  %11433 = vmatpush3.bf16.msra.mxu0 %v12719_v25  ;;  %v12696_v2 = vld [vmem:[%s18382_s3 + $0xc20] ss:$8 sps:$4 sm:$0xff]   ;;  %v12728_v49 = vld [vmem:[%s18383_s4 + $0x318] sm:$0xff]  }
 0x52c   : > { %v16594_v24 = vpop.f32.mrf.mxu1  ;;  %v16596_v55 = vpop.f32.mrf.mxu0  ;;  %11434 = vmatprep.subr.bf16.mxu0 %v12720_v28  ;;  %v12726_v28 = vld [vmem:[%s18383_s4 + $0x358] sm:$0xff]  }
 0x52d   : > { %19088 = vst [vmem:[#allocation17_spill] sm:$0xff] %v16594_v24  ;;  %19089 = vst [vmem:[#allocation7_spill] sm:$0xff] %v16596_v55  ;;  %11115 = vmatpush3.bf16.msra.mxu1 %v12703_v3  ;;  %v19095_v48 = vld [vmem:[#allocation77_spill] sm:$0xff]  ;;  %v19096_v55 = vld [vmem:[#allocation75_spill] sm:$0xff] }
 0x52e   : > { %v5383_v11 = vpop.f32.mrf.mxu1  ;;  %v6473_v25 = vpop.f32.mrf.mxu0  ;;  %11116 = vmatprep.subr.bf16.mxu1 %v12707_v31  ;;  %v12729_v31 = vld [vmem:[%s18383_s4 + $0x350] sm:$0xff]  }
 0x52f   : > { %11435 = vmatpush3.bf16.msra.mxu0 %v12721_v27  ;;  %v19092_v25 = vld [vmem:[#allocation136_spill] sm:$0xff]  ;;  %v19097_v27 = vpack.c.bf16 %v19095_v48, %v19096_v55 }
 0x530   : > { %v16620_v11 = vpop.f32.mrf.mxu1  ;;  %v16622_v3 = vpop.f32.mrf.mxu0  ;;  %6693 = vmatmul.mubr.bf16.gmra.mxu1 %v12696_v2  ;;  %v19094_v6 = vpack.c.bf16 %v19092_v25, %v19093_v33  ;;  %v12718_v2 = vld [vmem:[%s18383_s4 + $0x90] sm:$0xff]   ;;  %11436 = vmatprep.subr.bf16.mxu0 %v12726_v28  ;;  %v12735_v25 = vld [vmem:[%s18383_s4 + $0x348] sm:$0xff]  }
 0x531   : > { %19090 = vst [vmem:[#allocation76_spill] sm:$0xff] %v16620_v11  ;;  %19091 = vst [vmem:[#allocation74_spill] sm:$0xff] %v16622_v3  ;;  %10758 = vmatprep.mubr.msk.bf16.mxu1 %vm1383_vm0, %v12699_v34  ;;  %11117 = vmatpush3.bf16.msra.mxu1 %v12709_v32  ;;  %v12730_v48 = vld [vmem:[%s18383_s4 + $0x310] sm:$0xff]   ;;  %v12704_v32 = vld [vmem:[%s18382_s3 + $0xc44] ss:$8 sps:$4 sm:$0xff]  }
 0x532   : > { %8786 = vmatmul.mubr.bf16.gmra.mxu0 %v19094_v6  ;;  %v5388_v39 = vpop.f32.mrf.mxu1  ;;  %v6478_v24 = vpop.f32.mrf.mxu0  ;;  %11118 = vmatprep.subr.bf16.mxu1 %v12716_v5  ;;  %v12725_v6 = vld [vmem:[%s18383_s4 + $0xc8] sm:$0xff]   ;;  %v19103_v34 = vld [vmem:[#allocation138_spill] sm:$0xff] }
 0x533   : > { %8793 = vmatprep.mubr.bf16.mxu0 %v19097_v27  ;;  %11437 = vmatpush3.bf16.msra.mxu0 %v12728_v49  ;;  %v12701_v24 = vld [vmem:[%s18382_s3 + $0xc30] ss:$8 sps:$4 sm:$0xff]   ;;  %v12727_v49 = vld [vmem:[%s18383_s4 + $0x88] sm:$0xff]  }
 0x534   : > { %v16643_v55 = vpop.f32.mrf.mxu1  ;;  %v16645_v39 = vpop.f32.mrf.mxu0  ;;  %11438 = vmatprep.subr.bf16.mxu0 %v12729_v31  ;;  %v12734_v31 = vld [vmem:[%s18383_s4 + $0xc0] sm:$0xff]   ;;  %v12737_v27 = vld [vmem:[%s18383_s4 + $0x308] sm:$0xff]  }
 0x535   : > { %19098 = vst [vmem:[#allocation5_spill] sm:$0xff] %v16643_v55  ;;  %19099 = vst [vmem:[#allocation25_spill] sm:$0xff] %v16645_v39  ;;  %11119 = vmatpush3.bf16.msra.mxu1 %v12718_v2  ;;  %v19106_v3 = vld [vmem:[#allocation79_spill] sm:$0xff] }
 0x536   : > { %v5391_v28 = vpop.f32.mrf.mxu1  ;;  %v6481_v5 = vpop.f32.mrf.mxu0  ;;  %11120 = vmatprep.subr.bf16.mxu1 %v12725_v6  ;;  %v12738_v6 = vld [vmem:[%s18383_s4 + $0x340] sm:$0xff]  }
 0x537   : > { %11439 = vmatpush3.bf16.msra.mxu0 %v12730_v48  ;;  %v19102_v5 = vld [vmem:[#allocation140_spill] sm:$0xff]  ;;  %v19105_v48 = vld [vmem:[#allocation81_spill] sm:$0xff] }
 0x538   : > { %v16669_v28 = vpop.f32.mrf.mxu1  ;;  %v16671_v2 = vpop.f32.mrf.mxu0  ;;  %6701 = vmatmul.mubr.bf16.gmra.mxu1 %v12701_v24  ;;  %v19104_v33 = vpack.c.bf16 %v19102_v5, %v19103_v34  ;;  %v19107_v39 = vpack.c.bf16 %v19105_v48, %v19106_v3  ;;  %11440 = vmatprep.subr.bf16.mxu0 %v12735_v25  ;;  %v12736_v24 = vld [vmem:[%s18383_s4 + $0x80] sm:$0xff]   ;;  %v12740_v3 = vld [vmem:[%s18383_s4 + $0x1f8] sm:$0xff]   ;;  %v19112_v48 = vld [vmem:[#allocation144_spill] sm:$0xff] }
 0x539   : > { %19100 = vst [vmem:[#allocation80_spill] sm:$0xff] %v16669_v28  ;;  %19101 = vst [vmem:[#allocation78_spill] sm:$0xff] %v16671_v2  ;;  %10759 = vmatprep.mubr.msk.bf16.mxu1 %vm1383_vm0, %v12704_v32  ;;  %11121 = vmatpush3.bf16.msra.mxu1 %v12727_v49  ;;  %v12713_v49 = vld [vmem:[%s18382_s3 + $0xc54] ss:$8 sps:$4 sm:$0xff]   ;;  %v19113_v32 = vld [vmem:[#allocation142_spill] sm:$0xff] }
 0x53a   : > { %8794 = vmatmul.mubr.bf16.gmra.mxu0 %v19104_v33  ;;  %v5396_v11 = vpop.f32.mrf.mxu1  ;;  %v6486_v55 = vpop.f32.mrf.mxu0  ;;  %11122 = vmatprep.subr.bf16.mxu1 %v12734_v31  ;;  %v12739_v33 = vld [vmem:[%s18383_s4 + $0x300] sm:$0xff]   ;;  %v19114_v34 = vpack.c.bf16 %v19112_v48, %v19113_v32  ;;  %v19115_v2 = vld [vmem:[#allocation85_spill] sm:$0xff] }
 0x53b   : > { %8801 = vmatprep.mubr.bf16.mxu0 %v19107_v39  ;;  %11441 = vmatpush3.bf16.msra.mxu0 %v12737_v27  ;;  %v12706_v55 = vld [vmem:[%s18382_s3 + $0xc40] ss:$8 sps:$4 sm:$0xff]   ;;  %v12749_v27 = vld [vmem:[%s18383_s4 + $0x478] sm:$0xff]  }
 0x53c   : > { %v16692_v39 = vpop.f32.mrf.mxu1  ;;  %v16694_v11 = vpop.f32.mrf.mxu0  ;;  %11442 = vmatprep.subr.bf16.mxu0 %v12738_v6  ;;  %v19125_v28 = vld [vmem:[#allocation89_spill] sm:$0xff] }
 0x53d   : > { %19108 = vst [vmem:[#allocation27_spill] sm:$0xff] %v16692_v39  ;;  %19109 = vst [vmem:[#allocation15_spill] sm:$0xff] %v16694_v11  ;;  %11123 = vmatpush3.bf16.msra.mxu1 %v12736_v24  ;;  %v19116_v11 = vld [vmem:[#allocation83_spill] sm:$0xff] }
 0x53e   : > { %v5399_v25 = vpop.f32.mrf.mxu1  ;;  %v6489_v31 = vpop.f32.mrf.mxu0  ;;  %11236 = vmatprep.subr.bf16.mxu1 %v12740_v3 }
 0x53f   : > { %11443 = vmatpush3.bf16.msra.mxu0 %v12739_v33  ;;  %v19117_v25 = vpack.c.bf16 %v19115_v2, %v19116_v11  ;;  %v12722_v11 = vld [vmem:[%s18382_s3 + $0xc64] ss:$8 sps:$4 sm:$0xff]  }
 0x540   : > { %v16709_v5 = vpop.f32.mrf.mxu1  ;;  %v16711_v6 = vpop.f32.mrf.mxu0  ;;  %6709 = vmatmul.mubr.bf16.gmra.mxu1 %v12706_v55  ;;  %11556 = vmatprep.subr.bf16.mxu0 %v12749_v27  ;;  %v12715_v55 = vld [vmem:[%s18382_s3 + $0xc50] ss:$8 sps:$4 sm:$0xff]  }
 0x541   : > { %19110 = vst [vmem:[#allocation84_spill] sm:$0xff] %v16709_v5  ;;  %19111 = vst [vmem:[#allocation82_spill] sm:$0xff] %v16711_v6  ;;  %10760 = vmatprep.mubr.msk.bf16.mxu1 %vm1383_vm0, %v12713_v49 }
 0x542   : > { %8802 = vmatmul.mubr.bf16.gmra.mxu0 %v19114_v34  ;;  %v5404_v24 = vpop.f32.mrf.mxu1  ;;  %v6494_v31 = vpop.f32.mrf.mxu0  ;;  %v19126_v34 = vld [vmem:[#allocation87_spill] sm:$0xff] }
 0x543   : > { %8809 = vmatprep.mubr.bf16.mxu0 %v19117_v25  ;;  %v19122_v25 = vld [vmem:[#allocation148_spill] sm:$0xff]  ;;  %v19123_v24 = vld [vmem:[#allocation146_spill] sm:$0xff]  ;;  %v19127_v5 = vpack.c.bf16 %v19125_v28, %v19126_v34 }
 0x544   : > { %v16720_v33 = vpop.f32.mrf.mxu1  ;;  %v16722_v3 = vpop.f32.mrf.mxu0  ;;  %v19124_v31 = vpack.c.bf16 %v19122_v25, %v19123_v24  ;;  %v12731_v28 = vld [vmem:[%s18382_s3 + $0xc74] ss:$8 sps:$4 sm:$0xff]   ;;  %v19133_v24 = vld [vmem:[#allocation150_spill] sm:$0xff] }
 0x545   : > { %19118 = vst [vmem:[#allocation29_spill] sm:$0xff] %v16720_v33  ;;  %19119 = vst [vmem:[#allocation28_spill] sm:$0xff] %v16722_v3  ;;  %v19135_v33 = vld [vmem:[#allocation93_spill] sm:$0xff] }
 0x546   : > { %v5407_v32 = vpop.f32.mrf.mxu1  ;;  %v6497_v49 = vpop.f32.mrf.mxu0 }
 0x547   : > { %v19136_v49 = vld [vmem:[#allocation91_spill] sm:$0xff] }
 0x548   : > { %v16734_v27 = vpop.f32.mrf.mxu1  ;;  %v16736_v48 = vpop.f32.mrf.mxu0  ;;  %6717 = vmatmul.mubr.bf16.gmra.mxu1 %v12715_v55  ;;  %v12724_v55 = vld [vmem:[%s18382_s3 + $0xc60] ss:$8 sps:$4 sm:$0xff]  }
 0x549   : > { %19120 = vst [vmem:[#allocation88_spill] sm:$0xff] %v16734_v27  ;;  %19121 = vst [vmem:[#allocation86_spill] sm:$0xff] %v16736_v48  ;;  %10761 = vmatprep.mubr.msk.bf16.mxu1 %vm1383_vm0, %v12722_v11  ;;  %v19132_v11 = vld [vmem:[#allocation152_spill] sm:$0xff]  ;;  %v19137_v27 = vpack.c.bf16 %v19135_v33, %v19136_v49 }
 0x54a   : > { %8810 = vmatmul.mubr.bf16.gmra.mxu0 %v19124_v31  ;;  %v5412_v2 = vpop.f32.mrf.mxu1  ;;  %v6502_v6 = vpop.f32.mrf.mxu0  ;;  %v19134_v31 = vpack.c.bf16 %v19132_v11, %v19133_v24 }
 0x54b   : > { %8817 = vmatprep.mubr.bf16.mxu0 %v19127_v5 }
 0x54c   : > { %v16745_v3 = vpop.f32.mrf.mxu1  ;;  %v16747_v32 = vpop.f32.mrf.mxu0 }
 0x54d   : > { %19128 = vst [vmem:[#allocation31_spill] sm:$0xff] %v16745_v3  ;;  %19129 = vst [vmem:[#allocation30_spill] sm:$0xff] %v16747_v32  ;;  %v19146_v3 = vld [vmem:[#allocation10_spill] sm:$0xff] }
 0x54e   : > { %v5415_v5 = vpop.f32.mrf.mxu1  ;;  %v6505_v6 = vpop.f32.mrf.mxu0 }
 0x54f   : > { %v19149_v6 = vld [vmem:[#allocation127_spill] sm:$0xff] }
 0x550   : > { %v16759_v34 = vpop.f32.mrf.mxu1  ;;  %v16761_v2 = vpop.f32.mrf.mxu0  ;;  %6725 = vmatmul.mubr.bf16.gmra.mxu1 %v12724_v55  ;;  %v12733_v55 = vld [vmem:[%s18382_s3 + $0xc70] ss:$8 sps:$4 sm:$0xff]  }
 0x551   : > { %19130 = vst [vmem:[#allocation92_spill] sm:$0xff] %v16759_v34  ;;  %19131 = vst [vmem:[#allocation90_spill] sm:$0xff] %v16761_v2  ;;  %10762 = vmatprep.mubr.msk.bf16.mxu1 %vm1383_vm0, %v12731_v28  ;;  %v19143_v28 = vld [vmem:[#allocation154_spill] sm:$0xff]  ;;  %v19150_v34 = vpack.c.bf16 %v19148_v1, %v19149_v6  ;;  %v12742_v1 = vld [vmem:[%s18383_s4 + $0x1f0] sm:$0xff]  }
 0x552   : > { %8818 = vmatmul.mubr.bf16.gmra.mxu0 %v19134_v31  ;;  %v5420_v25 = vpop.f32.mrf.mxu1  ;;  %v6510_v48 = vpop.f32.mrf.mxu0  ;;  %v19145_v31 = vld [vmem:[#allocation23_spill] sm:$0xff] }
 0x553   : > { %8825 = vmatprep.mubr.bf16.mxu0 %v19137_v27  ;;  %v19142_v48 = vld [vmem:[#allocation156_spill] sm:$0xff]  ;;  %v19147_v39 = vpack.c.bf16 %v19145_v31, %v19146_v3 }
 0x554   : > { %v16770_v32 = vpop.f32.mrf.mxu1  ;;  %v16772_v5 = vpop.f32.mrf.mxu0  ;;  %v19144_v24 = vpack.c.bf16 %v19142_v48, %v19143_v28  ;;  %v19154_v31 = vld [vmem:[#allocation32_spill] sm:$0xff] }
 0x555   : > { %19138 = vst [vmem:[#allocation65_spill] sm:$0xff] %v16770_v32  ;;  %19139 = vst [vmem:[#allocation64_spill] sm:$0xff] %v16772_v5  ;;  %v19156_v48 = vld [vmem:[#allocation192_spill] sm:$0xff]  ;;  %v19171_v32 = vld [vmem:[#allocation194_spill] sm:$0xff] }
 0x556   : > { %v5423_v33 = vpop.f32.mrf.mxu1  ;;  %v6513_v27 = vpop.f32.mrf.mxu0 }
 0x558   : > { %v16781_v49 = vpop.f32.mrf.mxu1  ;;  %v16783_v25 = vpop.f32.mrf.mxu0  ;;  %6733 = vmatmul.mubr.bf16.gmra.mxu1 %v12733_v55  ;;  %v19157_v55 = vld [vmem:[#allocation190_spill] sm:$0xff] }
 0x559   : > { %19140 = vst [vmem:[#allocation128_spill] sm:$0xff] %v16781_v49  ;;  %19141 = vst [vmem:[#allocation126_spill] sm:$0xff] %v16783_v25  ;;  %8478 = vmatprep.mubr.bf16.mxu1 %v19147_v39  ;;  %v12741_v39 = vld [vmem:[%s18383_s4 + $0x1b8] sm:$0xff]   ;;  %v19158_v25 = vpack.c.bf16 %v19156_v48, %v19157_v55  ;;  %v12743_v49 = vld [vmem:[%s18383_s4 + $0x1b0] sm:$0xff]  }
 0x55a   : > { %8826 = vmatmul.mubr.bf16.gmra.mxu0 %v19144_v24  ;;  %v5428_v11 = vpop.f32.mrf.mxu1  ;;  %v6518_v33 = vpop.f32.mrf.mxu0  ;;  %v19153_v24 = vld [vmem:[#allocation34_spill] sm:$0xff] }
 0x55b   : > { %8963 = vmatprep.mubr.bf16.mxu0 %v19150_v34  ;;  %v12751_v34 = vld [vmem:[%s18383_s4 + $0x438] sm:$0xff]   ;;  %v19155_v33 = vpack.c.bf16 %v19153_v24, %v19154_v31  ;;  %v19163_v24 = vld [vmem:[#allocation131_spill] sm:$0xff] }
 0x55c   : > { %v16794_v27 = vpop.f32.mrf.mxu1  ;;  %v16796_v2 = vpop.f32.mrf.mxu0 }
 0x55d   : > { %19151 = vst [vmem:[#allocation69_spill] sm:$0xff] %v16794_v27  ;;  %19152 = vst [vmem:[#allocation67_spill] sm:$0xff] %v16796_v2  ;;  %v19160_v2 = vld [vmem:[#allocation11_spill] sm:$0xff]  ;;  %v19162_v27 = vld [vmem:[#allocation133_spill] sm:$0xff] }
 0x55e   : > { %v5431_v3 = vpop.f32.mrf.mxu1  ;;  %v6521_v28 = vpop.f32.mrf.mxu0  ;;  %v19164_v31 = vpack.c.bf16 %v19162_v27, %v19163_v24  ;;  %v19170_v27 = vld [vmem:[#allocation196_spill] sm:$0xff] }
 0x55f   : > { %v12752_v3 = vld [vmem:[%s18383_s4 + $0x470] sm:$0xff]  }
 0x560   : > { %v16811_v6 = vpop.f32.mrf.mxu1  ;;  %v11060_v11 = vpop.f32.mrf.mxu0  ;;  %8479 = vmatmul.mubr.bf16.vlgmr.msra.gmra.mxu1 %v19155_v33  ;;  %v19159_v28 = vld [vmem:[#allocation4_spill] sm:$0xff] }
 0x561   : > { %v19161_v5 = vpack.c.bf16 %v19159_v28, %v19160_v2  ;;  %11237 = vmatpush3.bf16.msra.mxu1 %v12741_v39  ;;  %v12753_v2 = vld [vmem:[%s18383_s4 + $0x430] sm:$0xff]  }
 0x562   : > { %8964 = vmatmul.mubr.bf16.vlgmr.msra.gmra.mxu0 %v19158_v25  ;;  %v5808_v33 = vpop.f32.mrf.mxu1  ;;  %v11061_v55 = vpop.f32.mrf.mxu0  ;;  %11238 = vmatprep.subr.bf16.mxu1 %v12742_v1  ;;  %v12744_v25 = vld [vmem:[%s18383_s4 + $0x1e8] sm:$0xff]  }
 0x563   : > { %8486 = vmatprep.mubr.bf16.mxu1 %v19161_v5  ;;  %8971 = vmatprep.mubr.bf16.mxu0 %v19164_v31  ;;  %v16834_v48 = vadd.f32 %v11061_v55, %v11060_v11  ;;  %v12745_v11 = vld [vmem:[%s18383_s4 + $0x1a8] sm:$0xff]   ;;  %v19167_v55 = vld [vmem:[#allocation38_spill] sm:$0xff] }
 0x564   : > { %11557 = vmatpush3.bf16.msra.mxu0 %v12751_v34  ;;  %v16839_v5 = vpop.f32.mrf.mxu1  ;;  %v11063_v39 = vpop.f32.mrf.mxu0  ;;  %v12755_v34 = vld [vmem:[%s18383_s4 + $0x468] sm:$0xff]  }
 0x565   : > { %19165 = vst [vmem:[#allocation132_spill] sm:$0xff] %v16834_v48  ;;  %11558 = vmatprep.subr.bf16.mxu0 %v12752_v3  ;;  %11239 = vmatpush3.bf16.msra.mxu1 %v12743_v49  ;;  %v12746_v3 = vld [vmem:[%s18383_s4 + $0x1e0] sm:$0xff]   ;;  %v12757_v49 = vld [vmem:[%s18383_s4 + $0x428] sm:$0xff]  }
 0x566   : > { %v5811_v1 = vpop.f32.mrf.mxu1  ;;  %v11064_v28 = vpop.f32.mrf.mxu0  ;;  %11240 = vmatprep.subr.bf16.mxu1 %v12744_v25  ;;  %v19168_v25 = vld [vmem:[#allocation36_spill] sm:$0xff] }
 0x567   : > { %v16849_v24 = vadd.f32 %v11064_v28, %v11063_v39  ;;  %v19169_v1 = vpack.c.bf16 %v19167_v55, %v19168_v25  ;;  %v19172_v39 = vpack.c.bf16 %v19170_v27, %v19171_v32  ;;  %v12758_v28 = vld [vmem:[%s18383_s4 + $0x460] sm:$0xff]  }
 0x568   : > { %11559 = vmatpush3.bf16.msra.mxu0 %v12753_v2  ;;  %v16857_v31 = vpop.f32.mrf.mxu1  ;;  %v19173_v2 = vld [vmem:[#allocation14_spill] sm:$0xff] }
 0x569   : > { %19166 = vst [vmem:[#allocation130_spill] sm:$0xff] %v16849_v24  ;;  %v11066_v33 = vpop.f32.mrf.mxu0  ;;  %8487 = vmatmul.mubr.bf16.gmra.mxu1 %v19169_v1  ;;  %v19175_v12 = vpack.c.bf16 %v19173_v2, %v19174_v52  ;;  %v19178_v24 = vpack.c.bf16 %v19176_v17, %v19177_v22  ;;  %v12747_v32 = vld [vmem:[%s18383_s4 + $0x1a0] sm:$0xff]   ;;  %11560 = vmatprep.subr.bf16.mxu0 %v12755_v34  ;;  %v12748_v52 = vld [vmem:[%s18383_s4 + $0x1d8] sm:$0xff]   ;;  %v19184_v2 = vld [vmem:[#allocation200_spill] sm:$0xff] }
 0x56a   : > { %8972 = vmatmul.mubr.bf16.gmra.mxu0 %v19172_v39  ;;  %v5816_v50 = vpop.f32.mrf.mxu1  ;;  %11241 = vmatpush3.bf16.msra.mxu1 %v12745_v11  ;;  %v12759_v17 = vld [vmem:[%s18383_s4 + $0x420] sm:$0xff]   ;;  %v12750_v34 = vld [vmem:[%s18383_s4 + $0x198] sm:$0xff]   ;;  %v19182_v39 = vld [vmem:[#allocation40_spill] sm:$0xff] }
 0x56b   : > { %8494 = vmatprep.mubr.bf16.mxu1 %v19175_v12  ;;  %8979 = vmatprep.mubr.bf16.mxu0 %v19178_v24  ;;  %v11067_v9 = vpop.f32.mrf.mxu0  ;;  %v12761_v24 = vld [vmem:[%s18383_s4 + $0x458] sm:$0xff]   ;;  %v19181_v1 = vld [vmem:[#allocation42_spill] sm:$0xff] }
 0x56c   : > { %v16877_v27 = vadd.f32 %v11067_v9, %v11066_v33  ;;  %11242 = vmatprep.subr.bf16.mxu1 %v12746_v3  ;;  %11561 = vmatpush3.bf16.msra.mxu0 %v12757_v49  ;;  %v16885_v50 = vpop.f32.mrf.mxu1  ;;  %v12754_v49 = vld [vmem:[%s18383_s4 + $0x1d0] sm:$0xff]   ;;  %v12763_v33 = vld [vmem:[%s18383_s4 + $0x418] sm:$0xff]  }
 0x56d   : > { %v11069_v22 = vpop.f32.mrf.mxu0  ;;  %11562 = vmatprep.subr.bf16.mxu0 %v12758_v28  ;;  %v19183_v28 = vpack.c.bf16 %v19181_v1, %v19182_v39  ;;  %v19190_v12 = vld [vmem:[#allocation141_spill] sm:$0xff]  ;;  %v12756_v1 = vld [vmem:[%s18383_s4 + $0x190] sm:$0xff]  }
 0x56e   : > { %19179 = vst [vmem:[#allocation73_spill] sm:$0xff] %v16877_v27  ;;  %v5819_v11 = vpop.f32.mrf.mxu1  ;;  %11243 = vmatpush3.bf16.msra.mxu1 %v12747_v32  ;;  %v19185_v32 = vld [vmem:[#allocation198_spill] sm:$0xff] }
 0x56f   : > { %v11070_v9 = vpop.f32.mrf.mxu0  ;;  %11244 = vmatprep.subr.bf16.mxu1 %v12748_v52  ;;  %v12764_v52 = vld [vmem:[%s18383_s4 + $0x450] sm:$0xff]   ;;  %v19188_v11 = vld [vmem:[#allocation19_spill] sm:$0xff] }
 0x570   : > { %v16895_v3 = vadd.f32 %v11070_v9, %v11069_v22  ;;  %11563 = vmatpush3.bf16.msra.mxu0 %v12759_v17  ;;  %v16903_v55 = vpop.f32.mrf.mxu1  ;;  %v19186_v22 = vpack.c.bf16 %v19184_v2, %v19185_v32  ;;  %v19187_v17 = vld [vmem:[#allocation16_spill] sm:$0xff]  ;;  %v12769_v2 = vld [vmem:[%s18383_s4 + $0x408] sm:$0xff]  }
 0x571   : > { %v11072_v25 = vpop.f32.mrf.mxu0  ;;  %8495 = vmatmul.mubr.bf16.gmra.mxu1 %v19183_v28  ;;  %v19189_v9 = vpack.c.bf16 %v19187_v17, %v19188_v11  ;;  %11564 = vmatprep.subr.bf16.mxu0 %v12761_v24  ;;  %v12760_v28 = vld [vmem:[%s18383_s4 + $0x1c8] sm:$0xff]   ;;  %v19196_v17 = vld [vmem:[#allocation44_spill] sm:$0xff] }
 0x572   : > { %19180 = vst [vmem:[#allocation71_spill] sm:$0xff] %v16895_v3  ;;  %8980 = vmatmul.mubr.bf16.gmra.mxu0 %v19186_v22  ;;  %v19191_v3 = vld [vmem:[#allocation139_spill] sm:$0xff]  ;;  %v5824_v48 = vpop.f32.mrf.mxu1  ;;  %11245 = vmatpush3.bf16.msra.mxu1 %v12750_v34  ;;  %v19204_v34 = vld [vmem:[#allocation145_spill] sm:$0xff] }
 0x573   : > { %8502 = vmatprep.mubr.bf16.mxu1 %v19189_v9  ;;  %v19192_v27 = vpack.c.bf16 %v19190_v12, %v19191_v3  ;;  %v11073_v57 = vpop.f32.mrf.mxu0  ;;  %11246 = vmatprep.subr.bf16.mxu1 %v12754_v49  ;;  %v12762_v3 = vld [vmem:[%s18383_s4 + $0x188] sm:$0xff]   ;;  %v19198_v9 = vld [vmem:[#allocation204_spill] sm:$0xff] }
 0x574   : > { %v16923_v39 = vadd.f32 %v11073_v57, %v11072_v25  ;;  %11565 = vmatpush3.bf16.msra.mxu0 %v12763_v33  ;;  %v16931_v48 = vpop.f32.mrf.mxu1  ;;  %v12767_v49 = vld [vmem:[%s18383_s4 + $0x448] sm:$0xff]   ;;  %v12766_v25 = vld [vmem:[%s18383_s4 + $0x1c0] sm:$0xff]  }
 0x575   : > { %8987 = vmatprep.mubr.bf16.mxu0 %v19192_v27  ;;  %v12765_v27 = vld [vmem:[%s18383_s4 + $0x410] sm:$0xff]   ;;  %v11075_v12 = vpop.f32.mrf.mxu0  ;;  %11566 = vmatprep.subr.bf16.mxu0 %v12764_v52  ;;  %v19195_v52 = vld [vmem:[#allocation46_spill] sm:$0xff] }
 0x576   : > { %19193 = vst [vmem:[#allocation136_spill] sm:$0xff] %v16923_v39  ;;  %v5827_v24 = vpop.f32.mrf.mxu1  ;;  %11247 = vmatpush3.bf16.msra.mxu1 %v12756_v1  ;;  %v19197_v11 = vpack.c.bf16 %v19195_v52, %v19196_v17  ;;  %v19199_v1 = vld [vmem:[#allocation202_spill] sm:$0xff] }
 0x577   : > { %v11076_v57 = vpop.f32.mrf.mxu0  ;;  %11248 = vmatprep.subr.bf16.mxu1 %v12760_v28  ;;  %v12770_v28 = vld [vmem:[%s18383_s4 + $0x440] sm:$0xff]  }
 0x578   : > { %v16941_v33 = vadd.f32 %v11076_v57, %v11075_v12  ;;  %11567 = vmatpush3.bf16.msra.mxu0 %v12765_v27  ;;  %v16949_v32 = vpop.f32.mrf.mxu1  ;;  %v19200_v12 = vpack.c.bf16 %v19198_v9, %v19199_v1  ;;  %v19201_v27 = vld [vmem:[#allocation20_spill] sm:$0xff]  ;;  %v19202_v24 = vld [vmem:[#allocation6_spill] sm:$0xff] }
 0x579   : > { %v11078_v22 = vpop.f32.mrf.mxu0  ;;  %8503 = vmatmul.mubr.bf16.gmra.mxu1 %v19197_v11  ;;  %v19203_v57 = vpack.c.bf16 %v19201_v27, %v19202_v24  ;;  %11568 = vmatprep.subr.bf16.mxu0 %v12767_v49  ;;  %v12768_v52 = vld [vmem:[%s18383_s4 + $0x180] sm:$0xff]   ;;  %v19210_v1 = vld [vmem:[#allocation48_spill] sm:$0xff] }
 0x57a   : > { %19194 = vst [vmem:[#allocation134_spill] sm:$0xff] %v16941_v33  ;;  %8988 = vmatmul.mubr.bf16.gmra.mxu0 %v19200_v12  ;;  %v19205_v33 = vld [vmem:[#allocation143_spill] sm:$0xff]  ;;  %v5832_v37 = vpop.f32.mrf.mxu1  ;;  %11249 = vmatpush3.bf16.msra.mxu1 %v12762_v3  ;;  %v12771_v11 = vld [vmem:[%s18383_s4 + $0x400] sm:$0xff]   ;;  %v19218_v3 = vld [vmem:[#allocation149_spill] sm:$0xff] }
 0x57b   : > { %8510 = vmatprep.mubr.bf16.mxu1 %v19203_v57  ;;  %v19206_v39 = vpack.c.bf16 %v19204_v34, %v19205_v33  ;;  %v11079_v59 = vpop.f32.mrf.mxu0  ;;  %11250 = vmatprep.subr.bf16.mxu1 %v12766_v25  ;;  %v12781_v33 = vld [vmem:[%s18383_s4 + $0x578] sm:$0xff]   ;;  %v19209_v9 = vld [vmem:[#allocation50_spill] sm:$0xff] }
 0x57c   : > { %v16969_v17 = vadd.f32 %v11079_v59, %v11078_v22  ;;  %11569 = vmatpush3.bf16.msra.mxu0 %v12769_v2  ;;  %v16977_v37 = vpop.f32.mrf.mxu1  ;;  %v19211_v12 = vpack.c.bf16 %v19209_v9, %v19210_v1  ;;  %v19213_v27 = vld [vmem:[#allocation206_spill] sm:$0xff]  ;;  %v19232_v1 = vld [vmem:[#allocation153_spill] sm:$0xff] }
 0x57d   : > { %8995 = vmatprep.mubr.bf16.mxu0 %v19206_v39  ;;  %v12772_v39 = vld [vmem:[%s18383_s4 + $0x2f8] sm:$0xff]   ;;  %v11081_v34 = vpop.f32.mrf.mxu0  ;;  %11570 = vmatprep.subr.bf16.mxu0 %v12770_v28  ;;  %v19212_v28 = vld [vmem:[#allocation208_spill] sm:$0xff]  ;;  %v19215_v57 = vld [vmem:[#allocation2_spill] sm:$0xff] }
 0x57e   : > { %19207 = vst [vmem:[#allocation77_spill] sm:$0xff] %v16969_v17  ;;  %v5835_v49 = vpop.f32.mrf.mxu1  ;;  %11251 = vmatpush3.bf16.msra.mxu1 %v12768_v52  ;;  %v19214_v24 = vpack.c.bf16 %v19212_v28, %v19213_v27  ;;  %v19216_v52 = vld [vmem:[#allocation21_spill] sm:$0xff] }
 0x57f   : > { %v11082_v59 = vpop.f32.mrf.mxu0  ;;  %11364 = vmatprep.subr.bf16.mxu1 %v12772_v39  ;;  %v19217_v49 = vpack.c.bf16 %v19215_v57, %v19216_v52  ;;  %v19224_v52 = vld [vmem:[#allocation52_spill] sm:$0xff] }
 0x580   : > { %v16984_v25 = vadd.f32 %v11082_v59, %v11081_v34  ;;  %11571 = vmatpush3.bf16.msra.mxu0 %v12771_v11  ;;  %v16986_v2 = vpop.f32.mrf.mxu1  ;;  %v19219_v34 = vld [vmem:[#allocation147_spill] sm:$0xff] }
 0x581   : > { %v11084_v22 = vpop.f32.mrf.mxu0  ;;  %8511 = vmatmul.mubr.bf16.gmra.mxu1 %v19211_v12  ;;  %v19220_v59 = vpack.c.bf16 %v19218_v3, %v19219_v34  ;;  %11684 = vmatprep.subr.bf16.mxu0 %v12781_v33  ;;  %v19223_v3 = vld [vmem:[#allocation54_spill] sm:$0xff]  ;;  %v19226_v33 = vld [vmem:[#allocation212_spill] sm:$0xff] }
 0x582   : > { %19208 = vst [vmem:[#allocation75_spill] sm:$0xff] %v16984_v25  ;;  %8996 = vmatmul.mubr.bf16.gmra.mxu0 %v19214_v24  ;;  %8518 = vmatprep.mubr.bf16.mxu1 %v19217_v49  ;;  %v5840_v11 = vpop.f32.mrf.mxu1  ;;  %v19225_v49 = vpack.c.bf16 %v19223_v3, %v19224_v52 }
 0x583   : > { %9003 = vmatprep.mubr.bf16.mxu0 %v19220_v59  ;;  %v11085_v39 = vpop.f32.mrf.mxu0  ;;  %v19229_v59 = vld [vmem:[#allocation26_spill] sm:$0xff]  ;;  %v19230_v11 = vld [vmem:[#allocation12_spill] sm:$0xff] }
 0x584   : > { %v17000_v25 = vadd.f32 %v11085_v39, %v11084_v22  ;;  %v17002_v17 = vpop.f32.mrf.mxu1  ;;  %v19227_v22 = vld [vmem:[#allocation210_spill] sm:$0xff]  ;;  %v19231_v39 = vpack.c.bf16 %v19229_v59, %v19230_v11 }
 0x585   : > { %v11087_v9 = vpop.f32.mrf.mxu0  ;;  %v19228_v34 = vpack.c.bf16 %v19226_v33, %v19227_v22  ;;  %v19237_v11 = vld [vmem:[#allocation58_spill] sm:$0xff] }
 0x586   : > { %19221 = vst [vmem:[#allocation140_spill] sm:$0xff] %v17000_v25  ;;  %v5843_v12 = vpop.f32.mrf.mxu1 }
 0x587   : > { %v11088_v28 = vpop.f32.mrf.mxu0  ;;  %v19233_v12 = vld [vmem:[#allocation151_spill] sm:$0xff] }
 0x588   : > { %v17006_v27 = vadd.f32 %v11088_v28, %v11087_v9  ;;  %v17008_v24 = vpop.f32.mrf.mxu1  ;;  %v19234_v25 = vpack.c.bf16 %v19232_v1, %v19233_v12  ;;  %v19238_v1 = vld [vmem:[#allocation56_spill] sm:$0xff]  ;;  %v19242_v12 = vld [vmem:[#allocation13_spill] sm:$0xff] }
 0x589   : > { %v11090_v57 = vpop.f32.mrf.mxu0  ;;  %8519 = vmatmul.mubr.bf16.gmra.mxu1 %v19225_v49 }
 0x58a   : > { %19222 = vst [vmem:[#allocation138_spill] sm:$0xff] %v17006_v27  ;;  %9004 = vmatmul.mubr.bf16.gmra.mxu0 %v19228_v34  ;;  %8526 = vmatprep.mubr.bf16.mxu1 %v19231_v39  ;;  %v5848_v9 = vpop.f32.mrf.mxu1  ;;  %v19241_v39 = vld [vmem:[#allocation8_spill] sm:$0xff] }
 0x58b   : > { %9011 = vmatprep.mubr.bf16.mxu0 %v19234_v25  ;;  %v11091_v28 = vpop.f32.mrf.mxu0  ;;  %v19239_v25 = vpack.c.bf16 %v19237_v11, %v19238_v1  ;;  %v19243_v9 = vpack.c.bf16 %v19241_v39, %v19242_v12  ;;  %v19250_v12 = vld [vmem:[#allocation62_spill] sm:$0xff] }
 0x58c   : > { %v17022_v27 = vadd.f32 %v11091_v28, %v11090_v57  ;;  %v17024_v23 = vpop.f32.mrf.mxu1  ;;  %v19240_v57 = vpack.c.bf16 %v15924_v47, %v15916_v21  ;;  %v19244_v28 = vld [vmem:[#allocation157_spill] sm:$0xff] }
 0x58d   : > { %v11093_v3 = vpop.f32.mrf.mxu0 }
 0x58e   : > { %19235 = vst [vmem:[#allocation81_spill] sm:$0xff] %v17022_v27  ;;  %v5851_v49 = vpop.f32.mrf.mxu1 }
 0x58f   : > { %v11094_v33 = vpop.f32.mrf.mxu0  ;;  %v19245_v49 = vld [vmem:[#allocation155_spill] sm:$0xff] }
 0x590   : > { %v17028_v22 = vadd.f32 %v11094_v33, %v11093_v3  ;;  %v17030_v34 = vpop.f32.mrf.mxu1  ;;  %v19246_v52 = vpack.c.bf16 %v19244_v28, %v19245_v49  ;;  %v19254_v28 = vld [vmem:[#allocation35_spill] sm:$0xff]  ;;  %v19255_v49 = vld [vmem:[#allocation33_spill] sm:$0xff] }
 0x591   : > { %v11096_v59 = vpop.f32.mrf.mxu0  ;;  %8527 = vmatmul.mubr.bf16.gmra.mxu1 %v19239_v25 }
 0x592   : > { %19236 = vst [vmem:[#allocation79_spill] sm:$0xff] %v17028_v22  ;;  %9012 = vmatmul.mubr.bf16.gmra.mxu0 %v19240_v57  ;;  %8534 = vmatprep.mubr.bf16.mxu1 %v19243_v9  ;;  %v5856_v3 = vpop.f32.mrf.mxu1  ;;  %v19251_v9 = vld [vmem:[#allocation60_spill] sm:$0xff] }
 0x593   : > { %9019 = vmatprep.mubr.bf16.mxu0 %v19246_v52  ;;  %v11097_v33 = vpop.f32.mrf.mxu0  ;;  %v19252_v52 = vpack.c.bf16 %v19250_v12, %v19251_v9  ;;  %v19256_v3 = vpack.c.bf16 %v19254_v28, %v19255_v49  ;;  %v12775_v9 = vld [vmem:[%s18383_s4 + $0x2b0] sm:$0xff]  }
 0x594   : > { %v17044_v22 = vadd.f32 %v11097_v33, %v11096_v59  ;;  %v17046_v27 = vpop.f32.mrf.mxu1  ;;  %v19253_v59 = vpack.c.bf16 %v15949_v10, %v15941_v36  ;;  %v19257_v33 = vld [vmem:[#allocation193_spill] sm:$0xff] }
 0x595   : > { %v11099_v11 = vpop.f32.mrf.mxu0  ;;  %v12773_v36 = vld [vmem:[%s18383_s4 + $0x2b8] sm:$0xff]  }
 0x596   : > { %19247 = vst [vmem:[#allocation144_spill] sm:$0xff] %v17044_v22  ;;  %v5859_v21 = vpop.f32.mrf.mxu1 }
 0x597   : > { %v11100_v47 = vpop.f32.mrf.mxu0  ;;  %v19258_v21 = vld [vmem:[#allocation191_spill] sm:$0xff] }
 0x598   : > { %v17050_v25 = vadd.f32 %v11100_v47, %v11099_v11  ;;  %v17052_v57 = vpop.f32.mrf.mxu1  ;;  %v19259_v1 = vpack.c.bf16 %v19257_v33, %v19258_v21  ;;  %v19264_v33 = vld [vmem:[#allocation94_spill] sm:$0xff] }
 0x599   : > { %19249 = vst [vmem:[#allocation85_spill] sm:$0xff] %v17052_v57  ;;  %v11102_v39 = vpop.f32.mrf.mxu0  ;;  %8535 = vmatmul.mubr.bf16.gmra.mxu1 %v19252_v52 }
 0x59a   : > { %19248 = vst [vmem:[#allocation142_spill] sm:$0xff] %v17050_v25  ;;  %9020 = vmatmul.mubr.bf16.gmra.mxu0 %v19253_v59  ;;  %8672 = vmatprep.mubr.bf16.mxu1 %v19256_v3  ;;  %v5864_v11 = vpop.f32.mrf.mxu1  ;;  %v19263_v3 = vld [vmem:[#allocation96_spill] sm:$0xff] }
 0x59b   : > { %9157 = vmatprep.mubr.bf16.mxu0 %v19259_v1  ;;  %v11103_v47 = vpop.f32.mrf.mxu0  ;;  %v12774_v1 = vld [vmem:[%s18383_s4 + $0x2f0] sm:$0xff]   ;;  %v19265_v21 = vpack.c.bf16 %v19263_v3, %v19264_v33  ;;  %v19266_v11 = vpack.c.bf16 %v16259_v26, %v16240_v14  ;;  %v19271_v3 = vld [vmem:[#allocation195_spill] sm:$0xff] }
 0x59c   : > { %v17066_v25 = vadd.f32 %v11103_v47, %v11102_v39  ;;  %v17068_v22 = vpop.f32.mrf.mxu1  ;;  %v12783_v39 = vld [vmem:[%s18383_s4 + $0x538] sm:$0xff]   ;;  %v12784_v47 = vld [vmem:[%s18383_s4 + $0x570] sm:$0xff]   ;;  %v12776_v26 = vld [vmem:[%s18383_s4 + $0x2e8] sm:$0xff]  }
 0x59d   : > { %v11105_v12 = vpop.f32.mrf.mxu0 }
 0x59e   : > { %19260 = vst [vmem:[#allocation83_spill] sm:$0xff] %v17066_v25  ;;  %v5867_v10 = vpop.f32.mrf.mxu1  ;;  %v19285_v25 = vld [vmem:[#allocation199_spill] sm:$0xff] }
 0x59f   : > { %v11106_v52 = vpop.f32.mrf.mxu0  ;;  %v19268_v10 = vld [vmem:[#allocation37_spill] sm:$0xff] }
 0x5a0   : > { %v17078_v59 = vadd.f32 %v11106_v52, %v11105_v12  ;;  %v17083_v28 = vpop.f32.mrf.mxu1  ;;  %v19267_v12 = vld [vmem:[#allocation39_spill] sm:$0xff] }
 0x5a1   : > { %19262 = vst [vmem:[#allocation146_spill] sm:$0xff] %v17083_v28  ;;  %v11188_v49 = vpop.f32.mrf.mxu0  ;;  %8673 = vmatmul.mubr.bf16.vlgmr.msra.gmra.mxu1 %v19265_v21  ;;  %v19269_v52 = vpack.c.bf16 %v19267_v12, %v19268_v10 }
 0x5a2   : > { %19261 = vst [vmem:[#allocation148_spill] sm:$0xff] %v17078_v59  ;;  %9158 = vmatmul.mubr.bf16.vlgmr.msra.gmra.mxu0 %v19266_v11  ;;  %11365 = vmatpush3.bf16.msra.mxu1 %v12773_v36  ;;  %v19270_v59 = vld [vmem:[#allocation197_spill] sm:$0xff]  ;;  %v6244_v21 = vpop.f32.mrf.mxu1  ;;  %v12785_v36 = vld [vmem:[%s18383_s4 + $0x530] sm:$0xff]  }
 0x5a3   : > { %8680 = vmatprep.mubr.bf16.mxu1 %v19269_v52  ;;  %v19272_v33 = vpack.c.bf16 %v19270_v59, %v19271_v3  ;;  %v11189_v14 = vpop.f32.mrf.mxu0  ;;  %11366 = vmatprep.subr.bf16.mxu1 %v12774_v1  ;;  %v19282_v59 = vld [vmem:[#allocation41_spill] sm:$0xff] }
 0x5a4   : > { %v17106_v11 = vadd.f32 %v11189_v14, %v11188_v49  ;;  %11685 = vmatpush3.bf16.msra.mxu0 %v12783_v39  ;;  %v17111_v12 = vpop.f32.mrf.mxu1  ;;  %v12777_v49 = vld [vmem:[%s18383_s4 + $0x2a8] sm:$0xff]   ;;  %v19277_v14 = vld [vmem:[#allocation100_spill] sm:$0xff] }
 0x5a5   : > { %9165 = vmatprep.mubr.bf16.mxu0 %v19272_v33  ;;  %19274 = vst [vmem:[#allocation87_spill] sm:$0xff] %v17111_v12  ;;  %v11191_v10 = vpop.f32.mrf.mxu0  ;;  %11686 = vmatprep.subr.bf16.mxu0 %v12784_v47  ;;  %v12787_v39 = vld [vmem:[%s18383_s4 + $0x568] sm:$0xff]   ;;  %v12778_v47 = vld [vmem:[%s18383_s4 + $0x2e0] sm:$0xff]   ;;  %v19284_v12 = vld [vmem:[#allocation201_spill] sm:$0xff] }
 0x5a6   : > { %19273 = vst [vmem:[#allocation89_spill] sm:$0xff] %v17106_v11  ;;  %11367 = vmatpush3.bf16.msra.mxu1 %v12775_v9  ;;  %v6247_v1 = vpop.f32.mrf.mxu1  ;;  %v12789_v9 = vld [vmem:[%s18383_s4 + $0x528] sm:$0xff]  }
 0x5a7   : > { %v11192_v52 = vpop.f32.mrf.mxu0  ;;  %11368 = vmatprep.subr.bf16.mxu1 %v12776_v26  ;;  %v19278_v26 = vld [vmem:[#allocation98_spill] sm:$0xff] }
 0x5a8   : > { %v17121_v3 = vadd.f32 %v11192_v52, %v11191_v10  ;;  %11687 = vmatpush3.bf16.msra.mxu0 %v12785_v36  ;;  %v17129_v33 = vpop.f32.mrf.mxu1  ;;  %v19279_v1 = vpack.c.bf16 %v19277_v14, %v19278_v26  ;;  %v19280_v10 = vpack.c.bf16 %v16297_v8, %v16278_v30  ;;  %v12790_v52 = vld [vmem:[%s18383_s4 + $0x560] sm:$0xff]   ;;  %v19281_v36 = vld [vmem:[#allocation43_spill] sm:$0xff] }
 0x5a9   : > { %19276 = vst [vmem:[#allocation150_spill] sm:$0xff] %v17129_v33  ;;  %v11194_v21 = vpop.f32.mrf.mxu0  ;;  %v19283_v28 = vpack.c.bf16 %v19281_v36, %v19282_v59  ;;  %v12779_v30 = vld [vmem:[%s18383_s4 + $0x2a0] sm:$0xff]   ;;  %11688 = vmatprep.subr.bf16.mxu0 %v12787_v39  ;;  %v12780_v59 = vld [vmem:[%s18383_s4 + $0x2d8] sm:$0xff]   ;;  %v19292_v36 = vpack.c.bf16 %v16335_v41, %v16316_v54  ;;  %v12788_v54 = vld [vmem:[%s18383_s4 + $0x290] sm:$0xff]  }
 0x5aa   : > { %19275 = vst [vmem:[#allocation152_spill] sm:$0xff] %v17121_v3  ;;  %8681 = vmatmul.mubr.bf16.gmra.mxu1 %v19279_v1  ;;  %9166 = vmatmul.mubr.bf16.gmra.mxu0 %v19280_v10  ;;  %v19286_v3 = vpack.c.bf16 %v19284_v12, %v19285_v25  ;;  %v6252_v11 = vpop.f32.mrf.mxu1  ;;  %v12791_v25 = vld [vmem:[%s18383_s4 + $0x520] sm:$0xff]   ;;  %v12782_v39 = vld [vmem:[%s18383_s4 + $0x298] sm:$0xff]   ;;  %v19289_v1 = vld [vmem:[#allocation104_spill] sm:$0xff] }
 0x5ab   : > { %8688 = vmatprep.mubr.bf16.mxu1 %v19283_v28  ;;  %v11195_v57 = vpop.f32.mrf.mxu0  ;;  %11369 = vmatpush3.bf16.msra.mxu1 %v12777_v49  ;;  %v19290_v10 = vld [vmem:[#allocation102_spill] sm:$0xff] }
 0x5ac   : > { %9173 = vmatprep.mubr.bf16.mxu0 %v19286_v3  ;;  %v17149_v8 = vadd.f32 %v11195_v57, %v11194_v21  ;;  %11370 = vmatprep.subr.bf16.mxu1 %v12778_v47  ;;  %v17157_v28 = vpop.f32.mrf.mxu1  ;;  %v12793_v3 = vld [vmem:[%s18383_s4 + $0x558] sm:$0xff]  }
 0x5ad   : > { %11689 = vmatpush3.bf16.msra.mxu0 %v12789_v9  ;;  %19287 = vst [vmem:[#allocation93_spill] sm:$0xff] %v17157_v28  ;;  %v11197_v11 = vpop.f32.mrf.mxu0  ;;  %v12786_v9 = vld [vmem:[%s18383_s4 + $0x2d0] sm:$0xff]   ;;  %v12795_v21 = vld [vmem:[%s18383_s4 + $0x518] sm:$0xff]  }
 0x5ae   : > { %11690 = vmatprep.subr.bf16.mxu0 %v12790_v52  ;;  %v6255_v49 = vpop.f32.mrf.mxu1  ;;  %v19291_v52 = vpack.c.bf16 %v19289_v1, %v19290_v10  ;;  %v12792_v1 = vld [vmem:[%s18383_s4 + $0x2c8] sm:$0xff]  }
 0x5af   : > { %v11198_v57 = vpop.f32.mrf.mxu0  ;;  %11371 = vmatpush3.bf16.msra.mxu1 %v12779_v30  ;;  %v12796_v30 = vld [vmem:[%s18383_s4 + $0x550] sm:$0xff]   ;;  %v19296_v49 = vld [vmem:[#allocation205_spill] sm:$0xff] }
 0x5b0   : > { %v17167_v47 = vadd.f32 %v11198_v57, %v11197_v11  ;;  %11372 = vmatprep.subr.bf16.mxu1 %v12780_v59  ;;  %v17175_v14 = vpop.f32.mrf.mxu1  ;;  %v19293_v59 = vld [vmem:[#allocation47_spill] sm:$0xff] }
 0x5b1   : > { %11691 = vmatpush3.bf16.msra.mxu0 %v12791_v25  ;;  %19288 = vst [vmem:[#allocation91_spill] sm:$0xff] %v17175_v14  ;;  %v11200_v26 = vpop.f32.mrf.mxu0  ;;  %v19294_v25 = vld [vmem:[#allocation45_spill] sm:$0xff]  ;;  %v19297_v57 = vld [vmem:[#allocation203_spill] sm:$0xff] }
 0x5b2   : > { %8689 = vmatmul.mubr.bf16.gmra.mxu1 %v19291_v52  ;;  %9174 = vmatmul.mubr.bf16.gmra.mxu0 %v19292_v36  ;;  %v19295_v11 = vpack.c.bf16 %v19293_v59, %v19294_v25  ;;  %v19298_v12 = vpack.c.bf16 %v19296_v49, %v19297_v57  ;;  %v6260_v33 = vpop.f32.mrf.mxu1  ;;  %v12798_v52 = vld [vmem:[%s18383_s4 + $0x2c0] sm:$0xff]   ;;  %v12801_v36 = vld [vmem:[%s18383_s4 + $0x508] sm:$0xff]   ;;  %v19300_v25 = vld [vmem:[#allocation108_spill] sm:$0xff]  ;;  %v19303_v57 = vpack.c.bf16 %v16373_v16, %v16354_v62 }
 0x5b3   : > { %v11201_v28 = vpop.f32.mrf.mxu0  ;;  %11373 = vmatpush3.bf16.msra.mxu1 %v12782_v39  ;;  %11692 = vmatprep.subr.bf16.mxu0 %v12793_v3  ;;  %v12800_v62 = vld [vmem:[%s18383_s4 + $0x280] sm:$0xff]  }
 0x5b4   : > { %8696 = vmatprep.mubr.bf16.mxu1 %v19295_v11  ;;  %9181 = vmatprep.mubr.bf16.mxu0 %v19298_v12  ;;  %v17195_v41 = vadd.f32 %v11201_v28, %v11200_v26  ;;  %v12797_v12 = vld [vmem:[%s18383_s4 + $0x510] sm:$0xff]   ;;  %v17203_v33 = vpop.f32.mrf.mxu1  ;;  %v19301_v11 = vld [vmem:[#allocation106_spill] sm:$0xff] }
 0x5b5   : > { %11374 = vmatprep.subr.bf16.mxu1 %v12786_v9  ;;  %11693 = vmatpush3.bf16.msra.mxu0 %v12795_v21  ;;  %19299 = vst [vmem:[#allocation156_spill] sm:$0xff] %v17203_v33  ;;  %v11203_v39 = vpop.f32.mrf.mxu0  ;;  %v12794_v9 = vld [vmem:[%s18383_s4 + $0x288] sm:$0xff]   ;;  %v19302_v49 = vpack.c.bf16 %v19300_v25, %v19301_v11  ;;  %v12803_v25 = vld [vmem:[%s18383_s4 + $0x500] sm:$0xff]  }
 0x5b6   : > { %11694 = vmatprep.subr.bf16.mxu0 %v12796_v30  ;;  %v6263_v3 = vpop.f32.mrf.mxu1  ;;  %v12799_v21 = vld [vmem:[%s18383_s4 + $0x548] sm:$0xff]  }
 0x5b7   : > { %v11204_v28 = vpop.f32.mrf.mxu0  ;;  %11375 = vmatpush3.bf16.msra.mxu1 %v12788_v54  ;;  %v12802_v54 = vld [vmem:[%s18383_s4 + $0x540] sm:$0xff]   ;;  %v19307_v3 = vld [vmem:[#allocation209_spill] sm:$0xff] }
 0x5b8   : > { %v17213_v26 = vadd.f32 %v11204_v28, %v11203_v39  ;;  %11376 = vmatprep.subr.bf16.mxu1 %v12792_v1  ;;  %v17221_v30 = vpop.f32.mrf.mxu1  ;;  %v19304_v1 = vld [vmem:[#allocation51_spill] sm:$0xff] }
 0x5b9   : > { %11695 = vmatpush3.bf16.msra.mxu0 %v12797_v12  ;;  %v11206_v59 = vpop.f32.mrf.mxu0  ;;  %v19305_v12 = vld [vmem:[#allocation49_spill] sm:$0xff]  ;;  %v19308_v28 = vld [vmem:[#allocation207_spill] sm:$0xff] }
 0x5ba   : > { %8697 = vmatmul.mubr.bf16.gmra.mxu1 %v19302_v49  ;;  %9182 = vmatmul.mubr.bf16.gmra.mxu0 %v19303_v57  ;;  %v19306_v39 = vpack.c.bf16 %v19304_v1, %v19305_v12  ;;  %v19309_v10 = vpack.c.bf16 %v19307_v3, %v19308_v28  ;;  %v6268_v14 = vpop.f32.mrf.mxu1  ;;  %v19311_v57 = vld [vmem:[#allocation112_spill] sm:$0xff]  ;;  %v19314_v12 = vpack.c.bf16 %v16411_v63, %v16392_v29  ;;  %v19316_v3 = vld [vmem:[#allocation53_spill] sm:$0xff]  ;;  %v19330_v29 = vld [vmem:[#allocation215_spill] sm:$0xff] }
 0x5bb   : > { %v11207_v33 = vpop.f32.mrf.mxu0  ;;  %11377 = vmatpush3.bf16.msra.mxu1 %v12794_v9  ;;  %11696 = vmatprep.subr.bf16.mxu0 %v12799_v21 }
 0x5bc   : > { %8704 = vmatprep.mubr.bf16.mxu1 %v19306_v39  ;;  %9189 = vmatprep.mubr.bf16.mxu0 %v19309_v10  ;;  %v17241_v16 = vadd.f32 %v11207_v33, %v11206_v59  ;;  %v12804_v10 = vld [vmem:[%s18383_s4 + $0x3f8] sm:$0xff]   ;;  %v17249_v14 = vpop.f32.mrf.mxu1  ;;  %v19315_v39 = vld [vmem:[#allocation55_spill] sm:$0xff] }
 0x5bd   : > { %11378 = vmatprep.subr.bf16.mxu1 %v12798_v52  ;;  %11697 = vmatpush3.bf16.msra.mxu0 %v12801_v36  ;;  %v11209_v9 = vpop.f32.mrf.mxu0  ;;  %v17256_v52 = vld [vmem:[%s18383_s4 + $0x638] sm:$0xff]   ;;  %v19317_v28 = vpack.c.bf16 %v19315_v39, %v19316_v3 }
 0x5be   : > { %11698 = vmatprep.subr.bf16.mxu0 %v12802_v54  ;;  %v6271_v11 = vpop.f32.mrf.mxu1  ;;  %v19312_v54 = vld [vmem:[#allocation110_spill] sm:$0xff] }
 0x5bf   : > { %v11210_v33 = vpop.f32.mrf.mxu0  ;;  %11379 = vmatpush3.bf16.msra.mxu1 %v12800_v62  ;;  %v19313_v1 = vpack.c.bf16 %v19311_v57, %v19312_v54  ;;  %v19318_v62 = vld [vmem:[#allocation213_spill] sm:$0xff] }
 0x5c0   : > { %v17258_v36 = vadd.f32 %v11210_v33, %v11209_v9  ;;  %11492 = vmatprep.subr.bf16.mxu1 %v12804_v10  ;;  %v17260_v59 = vpop.f32.mrf.mxu1  ;;  %v19319_v9 = vld [vmem:[#allocation211_spill] sm:$0xff] }
 0x5c1   : > { %11699 = vmatpush3.bf16.msra.mxu0 %v12803_v25  ;;  %19310 = vst [vmem:[#allocation154_spill] sm:$0xff] %v17260_v59  ;;  %v11212_v49 = vpop.f32.mrf.mxu0  ;;  %v19320_v11 = vpack.c.bf16 %v19318_v62, %v19319_v9  ;;  %v19324_v62 = vld [vmem:[#allocation114_spill] sm:$0xff] }
 0x5c2   : > { %8705 = vmatmul.mubr.bf16.gmra.mxu1 %v19313_v1  ;;  %9190 = vmatmul.mubr.bf16.gmra.mxu0 %v19314_v12  ;;  %v6276_v25 = vpop.f32.mrf.mxu1 }
 0x5c3   : > { %8712 = vmatprep.mubr.bf16.mxu1 %v19317_v28  ;;  %9197 = vmatprep.mubr.bf16.mxu0 %v19320_v11  ;;  %v11213_v10 = vpop.f32.mrf.mxu0  ;;  %v19323_v28 = vld [vmem:[#allocation116_spill] sm:$0xff]  ;;  %v19327_v11 = vld [vmem:[#allocation59_spill] sm:$0xff]  ;;  %v19328_v25 = vld [vmem:[#allocation57_spill] sm:$0xff] }
 0x5c4   : > { %11944 = vmatprep.subr.bf16.mxu0 %v17256_v52  ;;  %v17275_v33 = vadd.f32 %v11213_v10, %v11212_v49  ;;  %v17277_v57 = vpop.f32.mrf.mxu1  ;;  %v19325_v9 = vpack.c.bf16 %v19323_v28, %v19324_v62  ;;  %v19326_v49 = vpack.c.bf16 %v16443_v58, %v16430_v4  ;;  %v19329_v10 = vpack.c.bf16 %v19327_v11, %v19328_v25  ;;  %v19335_v25 = vld [vmem:[#allocation120_spill] sm:$0xff] }
 0x5c5   : > { %19321 = vst [vmem:[#allocation23_spill] sm:$0xff] %v17277_v57  ;;  %v11215_v54 = vpop.f32.mrf.mxu0 }
 0x5c6   : > { %v6279_v63 = vpop.f32.mrf.mxu1 }
 0x5c7   : > { %v11216_v1 = vpop.f32.mrf.mxu0  ;;  %v19331_v63 = vld [vmem:[#allocation214_spill] sm:$0xff] }
 0x5c8   : > { %v17281_v12 = vadd.f32 %v11216_v1, %v11215_v54  ;;  %v17283_v39 = vpop.f32.mrf.mxu1  ;;  %v19332_v21 = vpack.c.bf16 %v19330_v29, %v19331_v63  ;;  %v19336_v29 = vld [vmem:[#allocation118_spill] sm:$0xff]  ;;  %v19340_v63 = vld [vmem:[#allocation61_spill] sm:$0xff] }
 0x5c9   : > { %19322 = vst [vmem:[#allocation10_spill] sm:$0xff] %v17283_v39  ;;  %v11218_v3 = vpop.f32.mrf.mxu0  ;;  %v19461_v39 = vld [vmem:[#allocation181_spill] sm:$0xff] }
 0x5ca   : > { %8713 = vmatmul.mubr.bf16.gmra.mxu1 %v19325_v9  ;;  %9198 = vmatmul.mubr.bf16.gmra.mxu0 %v19326_v49  ;;  %v6284_v54 = vpop.f32.mrf.mxu1 }
 0x5cb   : > { %8720 = vmatprep.mubr.bf16.mxu1 %v19329_v10  ;;  %9205 = vmatprep.mubr.bf16.mxu0 %v19332_v21  ;;  %v11219_v1 = vpop.f32.mrf.mxu0  ;;  %v19337_v21 = vpack.c.bf16 %v19335_v25, %v19336_v29  ;;  %v19339_v10 = vld [vmem:[#allocation63_spill] sm:$0xff] }
 0x5cc   : > { %v17297_v59 = vadd.f32 %v11219_v1, %v11218_v3  ;;  %v17299_v57 = vpop.f32.mrf.mxu1  ;;  %v19338_v3 = vpack.c.bf16 %v16474_v18, %v16462_v7  ;;  %v19341_v54 = vpack.c.bf16 %v19339_v10, %v19340_v63  ;;  %v19342_v1 = vpack.c.bf16 %v15951_v38, %v15943_v40  ;;  %v19345_v63 = vld [vmem:[#allocation124_spill] sm:$0xff]  ;;  %v19346_v40 = vld [vmem:[#allocation122_spill] sm:$0xff] }
 0x5cd   : > { %19333 = vst [vmem:[#allocation129_spill] sm:$0xff] %v17299_v57  ;;  %v11221_v28 = vpop.f32.mrf.mxu0  ;;  %v19347_v38 = vpack.c.bf16 %v19345_v63, %v19346_v40 }
 0x5ce   : > { %v6287_v58 = vpop.f32.mrf.mxu1 }
 0x5cf   : > { %v11222_v4 = vpop.f32.mrf.mxu0 }
 0x5d0   : > { %v17303_v9 = vadd.f32 %v11222_v4, %v11221_v28  ;;  %v17305_v49 = vpop.f32.mrf.mxu1 }
 0x5d1   : > { %19334 = vst [vmem:[#allocation127_spill] sm:$0xff] %v17305_v49  ;;  %v11224_v11 = vpop.f32.mrf.mxu0 }
 0x5d2   : > { %8721 = vmatmul.mubr.bf16.gmra.mxu1 %v19337_v21  ;;  %9206 = vmatmul.mubr.bf16.gmra.mxu0 %v19338_v3  ;;  %v6292_v28 = vpop.f32.mrf.mxu1 }
 0x5d3   : > { %8728 = vmatprep.mubr.bf16.mxu1 %v19341_v54  ;;  %9213 = vmatprep.mubr.bf16.mxu0 %v19342_v1  ;;  %v11225_v58 = vpop.f32.mrf.mxu0  ;;  %v19349_v54 = vld [vmem:[#allocation97_spill] sm:$0xff]  ;;  %v19350_v1 = vld [vmem:[#allocation95_spill] sm:$0xff] }
 0x5d4   : > { %v17319_v4 = vadd.f32 %v11225_v58, %v11224_v11  ;;  %v17321_v62 = vpop.f32.mrf.mxu1  ;;  %v19348_v11 = vpack.c.bf16 %v16499_v45, %v16488_v20  ;;  %v19351_v28 = vpack.c.bf16 %v19349_v54, %v19350_v1  ;;  %v19352_v58 = vpack.c.bf16 %v16261_v43, %v16242_v53  ;;  %v12805_v45 = vld [vmem:[%s18383_s4 + $0x3b8] sm:$0xff]   ;;  %v12806_v53 = vld [vmem:[%s18383_s4 + $0x3f0] sm:$0xff]   ;;  %v19355_v1 = vld [vmem:[#allocation158_spill] sm:$0xff] }
 0x5d5   : > { %19343 = vst [vmem:[#allocation34_spill] sm:$0xff] %v17321_v62  ;;  %v11227_v25 = vpop.f32.mrf.mxu0  ;;  %v19354_v54 = vld [vmem:[#allocation160_spill] sm:$0xff] }
 0x5d6   : > { %v6295_v18 = vpop.f32.mrf.mxu1 }
 0x5d7   : > { %v11228_v7 = vpop.f32.mrf.mxu0 }
 0x5d8   : > { %v17325_v21 = vadd.f32 %v11228_v7, %v11227_v25  ;;  %v17327_v3 = vpop.f32.mrf.mxu1 }
 0x5d9   : > { %19344 = vst [vmem:[#allocation32_spill] sm:$0xff] %v17327_v3  ;;  %v11230_v10 = vpop.f32.mrf.mxu0 }
 0x5da   : > { %8729 = vmatmul.mubr.bf16.gmra.mxu1 %v19347_v38  ;;  %9214 = vmatmul.mubr.bf16.gmra.mxu0 %v19348_v11  ;;  %v6300_v25 = vpop.f32.mrf.mxu1 }
 0x5db   : > { %8866 = vmatprep.mubr.bf16.mxu1 %v19351_v28  ;;  %9351 = vmatprep.mubr.bf16.mxu0 %v19352_v58  ;;  %v11231_v18 = vpop.f32.mrf.mxu0  ;;  %v19356_v28 = vpack.c.bf16 %v19354_v54, %v19355_v1  ;;  %v19357_v58 = vpack.c.bf16 %v16839_v5, %v16811_v6  ;;  %v12815_v25 = vld [vmem:[%s18383_s4 + $0x630] sm:$0xff]   ;;  %v12808_v5 = vld [vmem:[%s18383_s4 + $0x3e8] sm:$0xff]  }
 0x5dc   : > { %v17341_v7 = vadd.f32 %v11231_v18, %v11230_v10  ;;  %v17343_v29 = vpop.f32.mrf.mxu1  ;;  %v19358_v18 = vld [vmem:[#allocation101_spill] sm:$0xff] }
 0x5dd   : > { %19353 = vst [vmem:[#allocation192_spill] sm:$0xff] %v17343_v29  ;;  %v11233_v63 = vpop.f32.mrf.mxu0 }
 0x5de   : > { %v6303_v20 = vpop.f32.mrf.mxu1 }
 0x5df   : > { %v11234_v38 = vpop.f32.mrf.mxu0  ;;  %v19359_v20 = vld [vmem:[#allocation99_spill] sm:$0xff] }
 0x5e0   : > { %v17353_v43 = vadd.f32 %v11234_v38, %v11233_v63  ;;  %v17355_v10 = vpop.f32.mrf.mxu1  ;;  %v19360_v40 = vpack.c.bf16 %v19358_v18, %v19359_v20  ;;  %v12807_v63 = vld [vmem:[%s18383_s4 + $0x3b0] sm:$0xff]   ;;  %v19361_v38 = vpack.c.bf16 %v16299_v35, %v16280_v19  ;;  %v12809_v19 = vld [vmem:[%s18383_s4 + $0x3a8] sm:$0xff]  }
 0x5e1   : > { %v12817_v35 = vld [vmem:[%s18383_s4 + $0x628] sm:$0xff]   ;;  %v19362_v20 = vld [vmem:[#allocation164_spill] sm:$0xff] }
 0x5e2   : > { %v11316_v11 = vpop.f32.mrf.mxu0  ;;  %8867 = vmatmul.mubr.bf16.vlgmr.msra.gmra.mxu1 %v19356_v28  ;;  %9352 = vmatmul.mubr.bf16.vlgmr.msra.gmra.mxu0 %v19357_v58  ;;  %v6680_v54 = vpop.f32.mrf.mxu1 }
 0x5e3   : > { %8874 = vmatprep.mubr.bf16.mxu1 %v19360_v40  ;;  %11493 = vmatpush3.bf16.msra.mxu1 %v12805_v45  ;;  %v19365_v54 = vpack.c.bf16 %v16885_v50, %v16857_v31  ;;  %v12811_v31 = vld [vmem:[%s18383_s4 + $0x3a0] sm:$0xff]  }
 0x5e4   : > { %9359 = vmatprep.mubr.bf16.mxu0 %v19361_v38  ;;  %v11317_v6 = vpop.f32.mrf.mxu0  ;;  %11494 = vmatprep.subr.bf16.mxu1 %v12806_v53  ;;  %v17381_v40 = vpop.f32.mrf.mxu1 }
 0x5e5   : > { %v17378_v1 = vadd.f32 %v11317_v6, %v11316_v11  ;;  %11945 = vmatpush3.bf16.msra.mxu0 %v17256_v52  ;;  %v12810_v52 = vld [vmem:[%s18383_s4 + $0x3e0] sm:$0xff]  }
 0x5e6   : > { %v11319_v45 = vpop.f32.mrf.mxu0  ;;  %11946 = vmatprep.subr.bf16.mxu0 %v12815_v25  ;;  %v6683_v28 = vpop.f32.mrf.mxu1  ;;  %v12819_v6 = vld [vmem:[%s18383_s4 + $0x620] sm:$0xff]  }
 0x5e7   : > { %11495 = vmatpush3.bf16.msra.mxu1 %v12807_v63  ;;  %v19363_v63 = vld [vmem:[#allocation162_spill] sm:$0xff] }
 0x5e8   : > { %v11320_v58 = vpop.f32.mrf.mxu0  ;;  %11496 = vmatprep.subr.bf16.mxu1 %v12808_v5  ;;  %v17394_v11 = vpop.f32.mrf.mxu1  ;;  %v19364_v38 = vpack.c.bf16 %v19362_v20, %v19363_v63  ;;  %v19366_v5 = vld [vmem:[#allocation105_spill] sm:$0xff] }
 0x5e9   : > { %v17389_v53 = vadd.f32 %v11320_v58, %v11319_v45  ;;  %11947 = vmatpush3.bf16.msra.mxu0 %v12815_v25  ;;  %v19367_v45 = vld [vmem:[#allocation103_spill] sm:$0xff]  ;;  %v19369_v25 = vpack.c.bf16 %v16337_v42, %v16318_v13  ;;  %v12812_v20 = vld [vmem:[%s18383_s4 + $0x3d8] sm:$0xff]  }
 0x5ea   : > { %v11322_v18 = vpop.f32.mrf.mxu0  ;;  %8875 = vmatmul.mubr.bf16.gmra.mxu1 %v19364_v38  ;;  %9360 = vmatmul.mubr.bf16.gmra.mxu0 %v19365_v54  ;;  %v19368_v28 = vpack.c.bf16 %v19366_v5, %v19367_v45  ;;  %v6688_v58 = vpop.f32.mrf.mxu1  ;;  %v19370_v5 = vld [vmem:[#allocation168_spill] sm:$0xff]  ;;  %v19371_v45 = vld [vmem:[#allocation166_spill] sm:$0xff] }
 0x5eb   : > { %9367 = vmatprep.mubr.bf16.mxu0 %v19369_v25  ;;  %11497 = vmatpush3.bf16.msra.mxu1 %v12809_v19  ;;  %v12814_v19 = vld [vmem:[%s18383_s4 + $0x398] sm:$0xff]   ;;  %v19373_v25 = vpack.c.bf16 %v16931_v48, %v16903_v55  ;;  %v12823_v58 = vld [vmem:[%s18383_s4 + $0x610] sm:$0xff]  }
 0x5ec   : > { %8882 = vmatprep.mubr.bf16.mxu1 %v19368_v28  ;;  %v11323_v3 = vpop.f32.mrf.mxu0  ;;  %11948 = vmatprep.subr.bf16.mxu0 %v12817_v35  ;;  %v17419_v63 = vpop.f32.mrf.mxu1  ;;  %v19372_v28 = vpack.c.bf16 %v19370_v5, %v19371_v45  ;;  %v12818_v55 = vld [vmem:[%s18383_s4 + $0x390] sm:$0xff]   ;;  %v12820_v5 = vld [vmem:[%s18383_s4 + $0x3c8] sm:$0xff]  }
 0x5ed   : > { %v17414_v50 = vadd.f32 %v11323_v3, %v11322_v18  ;;  %11498 = vmatprep.subr.bf16.mxu1 %v12810_v52  ;;  %11949 = vmatpush3.bf16.msra.mxu0 %v12817_v35  ;;  %v12821_v3 = vld [vmem:[%s18383_s4 + $0x618] sm:$0xff]   ;;  %v12816_v35 = vld [vmem:[%s18383_s4 + $0x3d0] sm:$0xff]  }
 0x5ee   : > { %v11325_v13 = vpop.f32.mrf.mxu0  ;;  %11950 = vmatprep.subr.bf16.mxu0 %v12819_v6  ;;  %v6691_v42 = vpop.f32.mrf.mxu1 }
 0x5ef   : > { %11499 = vmatpush3.bf16.msra.mxu1 %v12811_v31  ;;  %v19374_v31 = vld [vmem:[#allocation109_spill] sm:$0xff] }
 0x5f0   : > { %v11326_v38 = vpop.f32.mrf.mxu0  ;;  %11500 = vmatprep.subr.bf16.mxu1 %v12812_v20  ;;  %v17432_v18 = vpop.f32.mrf.mxu1  ;;  %v19375_v20 = vld [vmem:[#allocation107_spill] sm:$0xff] }
 0x5f1   : > { %v17427_v52 = vadd.f32 %v11326_v38, %v11325_v13  ;;  %11951 = vmatpush3.bf16.msra.mxu0 %v12819_v6  ;;  %v19376_v13 = vpack.c.bf16 %v19374_v31, %v19375_v20  ;;  %v19377_v6 = vpack.c.bf16 %v16375_v61, %v16356_v44  ;;  %v19378_v20 = vld [vmem:[#allocation172_spill] sm:$0xff] }
 0x5f2   : > { %v11328_v54 = vpop.f32.mrf.mxu0  ;;  %8883 = vmatmul.mubr.bf16.gmra.mxu1 %v19372_v28  ;;  %9368 = vmatmul.mubr.bf16.gmra.mxu0 %v19373_v25  ;;  %v6696_v42 = vpop.f32.mrf.mxu1 }
 0x5f3   : > { %8890 = vmatprep.mubr.bf16.mxu1 %v19376_v13  ;;  %9375 = vmatprep.mubr.bf16.mxu0 %v19377_v6  ;;  %v19379_v13 = vld [vmem:[#allocation170_spill] sm:$0xff]  ;;  %v19381_v42 = vpack.c.bf16 %v16977_v37, %v16949_v32 }
 0x5f4   : > { %v11329_v38 = vpop.f32.mrf.mxu0  ;;  %11501 = vmatpush3.bf16.msra.mxu1 %v12814_v19  ;;  %11952 = vmatprep.subr.bf16.mxu0 %v12821_v3  ;;  %v17457_v45 = vpop.f32.mrf.mxu1  ;;  %v12822_v19 = vld [vmem:[%s18383_s4 + $0x388] sm:$0xff]   ;;  %v19380_v6 = vpack.c.bf16 %v19378_v20, %v19379_v13  ;;  %v12826_v32 = vld [vmem:[%s18383_s4 + $0x380] sm:$0xff]   ;;  %v12828_v20 = vld [vmem:[%s18383_s4 + $0x4f8] sm:$0xff]  }
 0x5f5   : > { %v17452_v48 = vadd.f32 %v11329_v38, %v11328_v54  ;;  %11502 = vmatprep.subr.bf16.mxu1 %v12816_v35  ;;  %11953 = vmatpush3.bf16.msra.mxu0 %v12821_v3  ;;  %v17465_v35 = vld [vmem:[%s18383_s4 + $0x608] sm:$0xff]   ;;  %v12824_v3 = vld [vmem:[%s18383_s4 + $0x3c0] sm:$0xff]  }
 0x5f6   : > { %v11331_v44 = vpop.f32.mrf.mxu0  ;;  %11954 = vmatprep.subr.bf16.mxu0 %v12823_v58  ;;  %v6699_v61 = vpop.f32.mrf.mxu1  ;;  %v17483_v38 = vld [vmem:[%s18383_s4 + $0x600] sm:$0xff]  }
 0x5f8   : > { %v11332_v28 = vpop.f32.mrf.mxu0  ;;  %11503 = vmatpush3.bf16.msra.mxu1 %v12818_v55  ;;  %v17472_v25 = vpop.f32.mrf.mxu1  ;;  %v19383_v55 = vld [vmem:[#allocation111_spill] sm:$0xff] }
 0x5f9   : > { %v17467_v54 = vadd.f32 %v11332_v28, %v11331_v44  ;;  %11504 = vmatprep.subr.bf16.mxu1 %v12820_v5  ;;  %11955 = vmatpush3.bf16.msra.mxu0 %v12823_v58  ;;  %v19382_v58 = vld [vmem:[#allocation113_spill] sm:$0xff]  ;;  %v19385_v44 = vpack.c.bf16 %v16413_v60, %v16394_v0 }
 0x5fa   : > { %v11334_v31 = vpop.f32.mrf.mxu0  ;;  %8891 = vmatmul.mubr.bf16.gmra.mxu1 %v19380_v6  ;;  %9376 = vmatmul.mubr.bf16.gmra.mxu0 %v19381_v42  ;;  %v19384_v5 = vpack.c.bf16 %v19382_v58, %v19383_v55  ;;  %v6704_v61 = vpop.f32.mrf.mxu1  ;;  %v19386_v42 = vld [vmem:[#allocation176_spill] sm:$0xff]  ;;  %v19387_v58 = vld [vmem:[#allocation174_spill] sm:$0xff] }
 0x5fb   : > { %9383 = vmatprep.mubr.bf16.mxu0 %v19385_v44  ;;  %11956 = vmatprep.subr.bf16.mxu0 %v17465_v35  ;;  %v19388_v55 = vpack.c.bf16 %v19386_v42, %v19387_v58  ;;  %v19390_v44 = vld [vmem:[#allocation117_spill] sm:$0xff]  ;;  %v19391_v61 = vld [vmem:[#allocation115_spill] sm:$0xff] }
 0x5fc   : > { %8898 = vmatprep.mubr.bf16.mxu1 %v19384_v5  ;;  %v11335_v28 = vpop.f32.mrf.mxu0  ;;  %11505 = vmatpush3.bf16.msra.mxu1 %v12822_v19  ;;  %v17501_v0 = vpop.f32.mrf.mxu1  ;;  %v19389_v5 = vpack.c.bf16 %v17002_v17, %v16986_v2 }
 0x5fd   : > { %v17495_v37 = vadd.f32 %v11335_v28, %v11334_v31  ;;  %11506 = vmatprep.subr.bf16.mxu1 %v12824_v3  ;;  %11957 = vmatpush3.bf16.msra.mxu0 %v17465_v35  ;;  %v19392_v28 = vpack.c.bf16 %v19390_v44, %v19391_v61  ;;  %v19395_v44 = vld [vmem:[#allocation178_spill] sm:$0xff] }
 0x5fe   : > { %v11337_v60 = vpop.f32.mrf.mxu0  ;;  %11958 = vmatprep.subr.bf16.mxu0 %v17483_v38  ;;  %v6707_v19 = vpop.f32.mrf.mxu1 }
 0x600   : > { %v11338_v13 = vpop.f32.mrf.mxu0  ;;  %11507 = vmatpush3.bf16.msra.mxu1 %v12826_v32  ;;  %v17507_v3 = vpop.f32.mrf.mxu1  ;;  %v19393_v32 = vpack.c.bf16 %v16445_v56, %v16432_v15  ;;  %v19397_v15 = vpack.c.bf16 %v17024_v23, %v17008_v24  ;;  %v19398_v56 = vld [vmem:[#allocation121_spill] sm:$0xff] }
 0x601   : > { %v17504_v6 = vadd.f32 %v11338_v13, %v11337_v60  ;;  %11959 = vmatpush3.bf16.msra.mxu0 %v17483_v38  ;;  %11620 = vmatprep.subr.bf16.mxu1 %v12828_v20 }
 0x602   : > { %v11340_v31 = vpop.f32.mrf.mxu0  ;;  %8899 = vmatmul.mubr.bf16.gmra.mxu1 %v19388_v55  ;;  %9384 = vmatmul.mubr.bf16.gmra.mxu0 %v19389_v5  ;;  %v6712_v20 = vpop.f32.mrf.mxu1  ;;  %v19394_v5 = vld [vmem:[#allocation180_spill] sm:$0xff] }
 0x603   : > { %8906 = vmatprep.mubr.bf16.mxu1 %v19392_v28  ;;  %9391 = vmatprep.mubr.bf16.mxu0 %v19393_v32  ;;  %v19396_v61 = vpack.c.bf16 %v19394_v5, %v19395_v44  ;;  %v19401_v32 = vpack.c.bf16 %v16476_v46, %v16464_v51  ;;  %v19406_v46 = vpack.c.bf16 %v17046_v27, %v17030_v34  ;;  %v19407_v51 = vld [vmem:[#allocation125_spill] sm:$0xff] }
 0x604   : > { %v11341_v60 = vpop.f32.mrf.mxu0  ;;  %v17523_v13 = vpop.f32.mrf.mxu1 }
 0x605   : > { %v17521_v19 = vadd.f32 %v11341_v60, %v11340_v31  ;;  %v19399_v31 = vld [vmem:[#allocation119_spill] sm:$0xff] }
 0x606   : > { %v11343_v42 = vpop.f32.mrf.mxu0  ;;  %v6715_v58 = vpop.f32.mrf.mxu1  ;;  %v19400_v28 = vpack.c.bf16 %v19398_v56, %v19399_v31  ;;  %v19404_v56 = vld [vmem:[#allocation182_spill] sm:$0xff] }
 0x608   : > { %v11344_v55 = vpop.f32.mrf.mxu0  ;;  %v17527_v17 = vpop.f32.mrf.mxu1 }
 0x609   : > { %v17525_v29 = vadd.f32 %v11344_v55, %v11343_v42 }
 0x60a   : > { %v11346_v2 = vpop.f32.mrf.mxu0  ;;  %8907 = vmatmul.mubr.bf16.gmra.mxu1 %v19396_v61  ;;  %9392 = vmatmul.mubr.bf16.gmra.mxu0 %v19397_v15  ;;  %v6720_v20 = vpop.f32.mrf.mxu1  ;;  %v19403_v15 = vld [vmem:[#allocation184_spill] sm:$0xff] }
 0x60b   : > { %8914 = vmatprep.mubr.bf16.mxu1 %v19400_v28  ;;  %9399 = vmatprep.mubr.bf16.mxu0 %v19401_v32  ;;  %v19405_v31 = vpack.c.bf16 %v19403_v15, %v19404_v56  ;;  %v19410_v32 = vld [vmem:[#allocation22_spill] sm:$0xff] }
 0x60c   : > { %v11347_v60 = vpop.f32.mrf.mxu0  ;;  %v17543_v58 = vpop.f32.mrf.mxu1  ;;  %v19411_v20 = vld [vmem:[#allocation18_spill] sm:$0xff] }
 0x60d   : > { %v17541_v42 = vadd.f32 %v11347_v60, %v11346_v2  ;;  %v19408_v2 = vld [vmem:[#allocation123_spill] sm:$0xff]  ;;  %v19412_v60 = vpack.c.bf16 %v19410_v32, %v19411_v20  ;;  %v19416_v32 = vld [vmem:[#allocation186_spill] sm:$0xff]  ;;  %v19418_v20 = vld [vmem:[#allocation85_spill] sm:$0xff] }
 0x60e   : > { %v11349_v55 = vpop.f32.mrf.mxu0  ;;  %v6723_v5 = vpop.f32.mrf.mxu1  ;;  %v19409_v28 = vpack.c.bf16 %v19407_v51, %v19408_v2 }
 0x610   : > { %v11350_v44 = vpop.f32.mrf.mxu0  ;;  %v17547_v23 = vpop.f32.mrf.mxu1 }
 0x611   : > { %v17545_v61 = vadd.f32 %v11350_v44, %v11349_v55  ;;  %19402 = vst [vmem:[#allocation190_spill] sm:$0xff] %v17547_v23  ;;  %v19453_v23 = vld [vmem:[#allocation177_spill] sm:$0xff] }
 0x612   : > { %v11352_v24 = vpop.f32.mrf.mxu0  ;;  %8915 = vmatmul.mubr.bf16.gmra.mxu1 %v19405_v31  ;;  %9400 = vmatmul.mubr.bf16.gmra.mxu0 %v19406_v46  ;;  %v6728_v55 = vpop.f32.mrf.mxu1  ;;  %v6741_v31 = vpack.c.bf16 %v17381_v40, %v17355_v10 }
 0x613   : > { %8922 = vmatprep.mubr.bf16.mxu1 %v19409_v28  ;;  %9407 = vmatprep.mubr.bf16.mxu0 %v19412_v60  ;;  %v19415_v28 = vld [vmem:[#allocation188_spill] sm:$0xff]  ;;  %v19419_v60 = vpack.c.bf16 %v17068_v22, %v19418_v20  ;;  %v19420_v55 = vld [vmem:[#allocation161_spill] sm:$0xff] }
 0x614   : > { %v11353_v5 = vpop.f32.mrf.mxu0  ;;  %v17563_v49 = vpop.f32.mrf.mxu1  ;;  %v12829_v22 = vld [vmem:[%s18383_s4 + $0x4b8] sm:$0xff]  }
 0x615   : > { %v17561_v44 = vadd.f32 %v11353_v5, %v11352_v24  ;;  %19413 = vst [vmem:[#allocation4_spill] sm:$0xff] %v17563_v49  ;;  %v19417_v24 = vpack.c.bf16 %v19415_v28, %v19416_v32  ;;  %v19421_v5 = vld [vmem:[#allocation159_spill] sm:$0xff]  ;;  %v6742_v32 = vpack.c.bf16 %v17419_v63, %v17394_v11  ;;  %v19427_v28 = vld [vmem:[#allocation165_spill] sm:$0xff] }
 0x616   : > { %v11355_v15 = vpop.f32.mrf.mxu0  ;;  %v6731_v27 = vpop.f32.mrf.mxu1  ;;  %v19428_v11 = vld [vmem:[#allocation163_spill] sm:$0xff] }
 0x617   : > { %v19422_v27 = vpack.c.bf16 %v19420_v55, %v19421_v5  ;;  %v19424_v5 = vld [vmem:[#allocation218_spill] sm:$0xff]  ;;  %v19429_v63 = vpack.c.bf16 %v19427_v28, %v19428_v11  ;;  %v19430_v28 = vld [vmem:[#allocation132_spill] sm:$0xff] }
 0x618   : > { %v11356_v34 = vpop.f32.mrf.mxu0  ;;  %v17571_v51 = vpop.f32.mrf.mxu1 }
 0x619   : > { %v17569_v46 = vadd.f32 %v11356_v34, %v11355_v15  ;;  %19414 = vst [vmem:[#allocation11_spill] sm:$0xff] %v17571_v51  ;;  %v19435_v51 = vld [vmem:[#allocation130_spill] sm:$0xff] }
 0x61a   : > { %v11358_v2 = vpop.f32.mrf.mxu0  ;;  %8923 = vmatmul.mubr.bf16.gmra.mxu1 %v19417_v24  ;;  %9408 = vmatmul.mubr.bf16.gmra.mxu0 %v19419_v60  ;;  %v6736_v56 = vpop.f32.mrf.mxu1 }
 0x61b   : > { %9060 = vmatprep.mubr.bf16.mxu1 %v19422_v27  ;;  %11960 = vmatprep.mubr.bf16.mxu0 %v6741_v31  ;;  %v12830_v56 = vld [vmem:[%s18383_s4 + $0x4f0] sm:$0xff]  }
 0x61c   : > { %v11359_v10 = vpop.f32.mrf.mxu0  ;;  %v17584_v15 = vpop.f32.mrf.mxu1  ;;  %v19425_v27 = vld [vmem:[#allocation216_spill] sm:$0xff] }
 0x61d   : > { %v17582_v40 = vadd.f32 %v11359_v10, %v11358_v2  ;;  %19423 = vst [vmem:[#allocation133_spill] sm:$0xff] %v17584_v15  ;;  %v6743_v2 = vpack.c.bf16 %v17457_v45, %v17432_v18  ;;  %v19426_v10 = vpack.c.bf16 %v19424_v5, %v19425_v27  ;;  %v12832_v18 = vld [vmem:[%s18383_s4 + $0x4e8] sm:$0xff]  }
 0x61e   : > { %v11361_v34 = vpop.f32.mrf.mxu0  ;;  %v6739_v24 = vpop.f32.mrf.mxu1 }
 0x620   : > { %v11362_v20 = vpop.f32.mrf.mxu0  ;;  %v11124_v60 = vpop.f32.mrf.mxu1 }
 0x621   : > { %v17596_v31 = vadd.f32 %v11362_v20, %v11361_v34  ;;  %v12831_v34 = vld [vmem:[%s18383_s4 + $0x4b0] sm:$0xff]  }
 0x622   : > { %v11444_v55 = vpop.f32.mrf.mxu0  ;;  %9061 = vmatmul.mubr.bf16.vlgmr.msra.gmra.mxu1 %v19426_v10  ;;  %11961 = vmatmul.mubr.bf16.vlgmr.msra.gmra.mxu0 %v6742_v32  ;;  %v11125_v24 = vpop.f32.mrf.mxu1 }
 0x623   : > { %9068 = vmatprep.mubr.bf16.mxu1 %v19429_v63  ;;  %11621 = vmatpush3.bf16.msra.mxu1 %v12829_v22  ;;  %v11126_v45 = vadd.f32 %v11125_v24, %v11124_v60  ;;  %v6744_v22 = vpack.c.bf16 %v17501_v0, %v17472_v25  ;;  %v6745_v60 = vpack.c.bf16 %v17523_v13, %v17507_v3  ;;  %v19431_v24 = vld [vmem:[#allocation89_spill] sm:$0xff]  ;;  %v19437_v13 = vld [vmem:[#allocation167_spill] sm:$0xff] }
 0x624   : > { %11964 = vmatprep.mubr.bf16.mxu0 %v6743_v2  ;;  %v11445_v20 = vpop.f32.mrf.mxu0  ;;  %11622 = vmatprep.subr.bf16.mxu1 %v12830_v56  ;;  %v11127_v32 = vpop.f32.mrf.mxu1  ;;  %v12833_v56 = vld [vmem:[%s18383_s4 + $0x4a8] sm:$0xff]   ;;  %v19436_v3 = vld [vmem:[#allocation169_spill] sm:$0xff] }
 0x625   : > { %v17612_v5 = vadd.f32 %v11445_v20, %v11444_v55  ;;  %v8481_v10 = vadd.f32 %v11126_v45, %v19430_v28  ;;  %v19433_v45 = vld [vmem:[#allocation220_spill] sm:$0xff] }
 0x626   : > { %v11447_v27 = vpop.f32.mrf.mxu0  ;;  %v11128_v11 = vpop.f32.mrf.mxu1 }
 0x627   : > { %11623 = vmatpush3.bf16.msra.mxu1 %v12831_v34  ;;  %v11129_v55 = vadd.f32 %v11128_v11, %v11127_v32  ;;  %v12834_v34 = vld [vmem:[%s18383_s4 + $0x4e0] sm:$0xff]   ;;  %v17628_v20 = vadd.f32 %v19431_v24, %v8481_v10  ;;  %v19438_v32 = vpack.c.bf16 %v19436_v3, %v19437_v13 }
 0x628   : > { %v11448_v2 = vpop.f32.mrf.mxu0  ;;  %11624 = vmatprep.subr.bf16.mxu1 %v12832_v18  ;;  %v19432_v18 = vld [vmem:[#allocation222_spill] sm:$0xff] }
 0x629   : > { %v17622_v63 = vadd.f32 %v11448_v2, %v11447_v27  ;;  %v11130_v25 = vpop.f32.mrf.mxu1  ;;  %v19434_v28 = vpack.c.bf16 %v19432_v18, %v19433_v45  ;;  %v8484_v15 = vadd.f32 %v11129_v55, %v19435_v51  ;;  %v12835_v10 = vld [vmem:[%s18383_s4 + $0x4a0] sm:$0xff]   ;;  %v12836_v51 = vld [vmem:[%s18383_s4 + $0x4d8] sm:$0xff]  }
 0x62a   : > { %v11450_v0 = vpop.f32.mrf.mxu0  ;;  %11965 = vmatmul.mubr.bf16.gmra.mxu0 %v6744_v22  ;;  %v19439_v22 = vld [vmem:[#allocation152_spill] sm:$0xff]  ;;  %v19440_v45 = vld [vmem:[#allocation73_spill] sm:$0xff] }
 0x62b   : > { %9069 = vmatmul.mubr.bf16.gmra.mxu1 %v19434_v28  ;;  %11968 = vmatprep.mubr.bf16.mxu0 %v6745_v60  ;;  %v11131_v27 = vpop.f32.mrf.mxu1  ;;  %v17646_v55 = vadd.f32 %v19439_v22, %v8484_v15  ;;  %v12838_v15 = vld [vmem:[%s18383_s4 + $0x4d0] sm:$0xff]  }
 0x62c   : > { %9076 = vmatprep.mubr.bf16.mxu1 %v19438_v32  ;;  %v11451_v11 = vpop.f32.mrf.mxu0  ;;  %11625 = vmatpush3.bf16.msra.mxu1 %v12833_v56  ;;  %v11132_v2 = vadd.f32 %v11131_v27, %v11130_v25  ;;  %v6746_v56 = vpack.c.bf16 %v17543_v58, %v17527_v17  ;;  %v19441_v58 = vld [vmem:[#allocation226_spill] sm:$0xff] }
 0x62d   : > { %v17640_v24 = vadd.f32 %v11451_v11, %v11450_v0  ;;  %11626 = vmatprep.subr.bf16.mxu1 %v12834_v34  ;;  %v11133_v18 = vpop.f32.mrf.mxu1  ;;  %v12837_v34 = vld [vmem:[%s18383_s4 + $0x498] sm:$0xff]   ;;  %v19442_v11 = vld [vmem:[#allocation224_spill] sm:$0xff] }
 0x62e   : > { %v11453_v60 = vpop.f32.mrf.mxu0  ;;  %v8489_v28 = vadd.f32 %v11132_v2, %v19440_v45  ;;  %v19444_v2 = vld [vmem:[#allocation71_spill] sm:$0xff] }
 0x62f   : > { %v11134_v3 = vpop.f32.mrf.mxu1 }
 0x630   : > { %v11454_v13 = vpop.f32.mrf.mxu0  ;;  %11627 = vmatpush3.bf16.msra.mxu1 %v12835_v10  ;;  %v11135_v25 = vadd.f32 %v11134_v3, %v11133_v18  ;;  %v17660_v32 = vadd.f32 %v17149_v8, %v8489_v28  ;;  %v19443_v10 = vpack.c.bf16 %v19441_v58, %v19442_v11  ;;  %v19445_v18 = vld [vmem:[#allocation173_spill] sm:$0xff]  ;;  %v12839_v8 = vld [vmem:[%s18383_s4 + $0x490] sm:$0xff]  }
 0x631   : > { %v17654_v0 = vadd.f32 %v11454_v13, %v11453_v60  ;;  %11628 = vmatprep.subr.bf16.mxu1 %v12836_v51  ;;  %v11136_v27 = vpop.f32.mrf.mxu1  ;;  %v19446_v60 = vld [vmem:[#allocation171_spill] sm:$0xff] }
 0x632   : > { %v11456_v17 = vpop.f32.mrf.mxu0  ;;  %11969 = vmatmul.mubr.bf16.gmra.mxu0 %v6746_v56  ;;  %v8492_v22 = vadd.f32 %v11135_v25, %v19444_v2  ;;  %v19447_v45 = vpack.c.bf16 %v19445_v18, %v19446_v60  ;;  %v12840_v56 = vld [vmem:[%s18383_s4 + $0x4c8] sm:$0xff]  }
 0x633   : > { %9077 = vmatmul.mubr.bf16.gmra.mxu1 %v19443_v10  ;;  %v11137_v51 = vpop.f32.mrf.mxu1  ;;  %v19448_v10 = vld [vmem:[#allocation136_spill] sm:$0xff] }
 0x634   : > { %9084 = vmatprep.mubr.bf16.mxu1 %v19447_v45  ;;  %v11457_v3 = vpop.f32.mrf.mxu0  ;;  %11629 = vmatpush3.bf16.msra.mxu1 %v12837_v34  ;;  %v11138_v28 = vadd.f32 %v11137_v51, %v11136_v27  ;;  %v17678_v25 = vadd.f32 %v17167_v47, %v8492_v22  ;;  %v12841_v27 = vld [vmem:[%s18383_s4 + $0x488] sm:$0xff]   ;;  %v12842_v47 = vld [vmem:[%s18383_s4 + $0x4c0] sm:$0xff]  }
 0x635   : > { %v17672_v13 = vadd.f32 %v11457_v3, %v11456_v17  ;;  %11630 = vmatprep.subr.bf16.mxu1 %v12838_v15  ;;  %v11139_v58 = vpop.f32.mrf.mxu1  ;;  %v19449_v51 = vld [vmem:[#allocation230_spill] sm:$0xff]  ;;  %v19450_v3 = vld [vmem:[#allocation228_spill] sm:$0xff] }
 0x636   : > { %v11459_v11 = vpop.f32.mrf.mxu0  ;;  %v8497_v2 = vadd.f32 %v11138_v28, %v19448_v10  ;;  %v19452_v28 = vld [vmem:[#allocation134_spill] sm:$0xff] }
 0x637   : > { %v11140_v34 = vpop.f32.mrf.mxu1 }
 0x638   : > { %v11460_v18 = vpop.f32.mrf.mxu0  ;;  %11631 = vmatpush3.bf16.msra.mxu1 %v12839_v8  ;;  %v11141_v17 = vadd.f32 %v11140_v34, %v11139_v58  ;;  %v17690_v22 = vadd.f32 %v17195_v41, %v8497_v2  ;;  %v19451_v8 = vpack.c.bf16 %v19449_v51, %v19450_v3  ;;  %v19454_v58 = vld [vmem:[#allocation175_spill] sm:$0xff]  ;;  %v12843_v41 = vld [vmem:[%s18383_s4 + $0x480] sm:$0xff]   ;;  %v12844_v51 = vld [vmem:[%s18383_s4 + $0x5f8] sm:$0xff]  }
 0x639   : > { %v17684_v15 = vadd.f32 %v11460_v18, %v11459_v11  ;;  %11632 = vmatprep.subr.bf16.mxu1 %v12840_v56  ;;  %v11142_v60 = vpop.f32.mrf.mxu1  ;;  %v19455_v11 = vpack.c.bf16 %v19453_v23, %v19454_v58 }
 0x63a   : > { %v11462_v45 = vpop.f32.mrf.mxu0  ;;  %v8500_v10 = vadd.f32 %v11141_v17, %v19452_v28 }
 0x63b   : > { %9085 = vmatmul.mubr.bf16.gmra.mxu1 %v19451_v8  ;;  %v11143_v56 = vpop.f32.mrf.mxu1  ;;  %v19456_v8 = vld [vmem:[#allocation77_spill] sm:$0xff] }
 0x63c   : > { %9092 = vmatprep.mubr.bf16.mxu1 %v19455_v11  ;;  %v11463_v34 = vpop.f32.mrf.mxu0  ;;  %11633 = vmatpush3.bf16.msra.mxu1 %v12841_v27  ;;  %v11144_v2 = vadd.f32 %v11143_v56, %v11142_v60  ;;  %v17708_v17 = vadd.f32 %v17213_v26, %v8500_v10  ;;  %v19457_v56 = vld [vmem:[#allocation234_spill] sm:$0xff]  ;;  %v19460_v10 = vld [vmem:[#allocation75_spill] sm:$0xff] }
 0x63d   : > { %v17702_v18 = vadd.f32 %v11463_v34, %v11462_v45  ;;  %11634 = vmatprep.subr.bf16.mxu1 %v12842_v47  ;;  %v11145_v23 = vpop.f32.mrf.mxu1  ;;  %v19458_v34 = vld [vmem:[#allocation232_spill] sm:$0xff] }
 0x63e   : > { %v11465_v3 = vpop.f32.mrf.mxu0  ;;  %v8505_v28 = vadd.f32 %v11144_v2, %v19456_v8  ;;  %v19459_v26 = vpack.c.bf16 %v19457_v56, %v19458_v34  ;;  %v19462_v2 = vld [vmem:[#allocation179_spill] sm:$0xff] }
 0x63f   : > { %v11146_v27 = vpop.f32.mrf.mxu1  ;;  %v19463_v8 = vpack.c.bf16 %v19461_v39, %v19462_v2 }
 0x640   : > { %v11466_v58 = vpop.f32.mrf.mxu0  ;;  %11635 = vmatpush3.bf16.msra.mxu1 %v12843_v41  ;;  %v11147_v11 = vadd.f32 %v11146_v27, %v11145_v23  ;;  %v17714_v47 = vadd.f32 %v17241_v16, %v8505_v28 }
 0x641   : > { %v17711_v49 = vadd.f32 %v11466_v58, %v11465_v3  ;;  %11748 = vmatprep.subr.bf16.mxu1 %v12844_v51  ;;  %v11148_v60 = vpop.f32.mrf.mxu1  ;;  %v19465_v58 = vld [vmem:[#allocation140_spill] sm:$0xff] }
 0x642   : > { %v11468_v45 = vpop.f32.mrf.mxu0  ;;  %v8508_v62 = vadd.f32 %v11147_v11, %v19460_v10 }
 0x643   : > { %9093 = vmatmul.mubr.bf16.gmra.mxu1 %v19459_v26  ;;  %v11149_v41 = vpop.f32.mrf.mxu1 }
 0x644   : > { %9100 = vmatprep.mubr.bf16.mxu1 %v19463_v8  ;;  %v11469_v23 = vpop.f32.mrf.mxu0  ;;  %v11150_v3 = vadd.f32 %v11149_v41, %v11148_v60  ;;  %v17726_v16 = vadd.f32 %v17258_v36, %v8508_v62  ;;  %v19467_v60 = vld [vmem:[#allocation238_spill] sm:$0xff]  ;;  %v19471_v41 = vld [vmem:[#allocation185_spill] sm:$0xff] }
 0x645   : > { %v17723_v27 = vadd.f32 %v11469_v23, %v11468_v45  ;;  %v11151_v51 = vpop.f32.mrf.mxu1  ;;  %v19468_v45 = vld [vmem:[#allocation236_spill] sm:$0xff]  ;;  %v19470_v36 = vld [vmem:[#allocation138_spill] sm:$0xff]  ;;  %v19472_v23 = vld [vmem:[#allocation183_spill] sm:$0xff] }
 0x646   : > { %v11471_v28 = vpop.f32.mrf.mxu0  ;;  %v8513_v57 = vadd.f32 %v11150_v3, %v19465_v58  ;;  %v19469_v8 = vpack.c.bf16 %v19467_v60, %v19468_v45 }
 0x647   : > { %19464 = vst [vmem:[#allocation131_spill] sm:$0xff] %v17723_v27  ;;  %v11152_v56 = vpop.f32.mrf.mxu1  ;;  %v19473_v27 = vpack.c.bf16 %v19471_v41, %v19472_v23 }
 0x648   : > { %v11472_v34 = vpop.f32.mrf.mxu0  ;;  %v11153_v26 = vadd.f32 %v11152_v56, %v11151_v51  ;;  %v17732_v39 = vadd.f32 %v17275_v33, %v8513_v57 }
 0x649   : > { %v17729_v11 = vadd.f32 %v11472_v34, %v11471_v28  ;;  %v11154_v10 = vpop.f32.mrf.mxu1  ;;  %v19475_v34 = vld [vmem:[#allocation81_spill] sm:$0xff] }
 0x64a   : > { %v11474_v2 = vpop.f32.mrf.mxu0  ;;  %v8516_v62 = vadd.f32 %v11153_v26, %v19470_v36 }
 0x64b   : > { %19466 = vst [vmem:[#allocation38_spill] sm:$0xff] %v17729_v11  ;;  %9101 = vmatmul.mubr.bf16.gmra.mxu1 %v19469_v8  ;;  %v11155_v3 = vpop.f32.mrf.mxu1 }
 0x64c   : > { %9108 = vmatprep.mubr.bf16.mxu1 %v19473_v27  ;;  %v11475_v58 = vpop.f32.mrf.mxu0  ;;  %v11156_v51 = vadd.f32 %v11155_v3, %v11154_v10  ;;  %v17744_v33 = vadd.f32 %v17281_v12, %v8516_v62  ;;  %v19477_v10 = vld [vmem:[#allocation242_spill] sm:$0xff]  ;;  %v19480_v12 = vld [vmem:[#allocation79_spill] sm:$0xff]  ;;  %v19481_v3 = vld [vmem:[#allocation189_spill] sm:$0xff] }
 0x64d   : > { %v17741_v28 = vadd.f32 %v11475_v58, %v11474_v2  ;;  %v11157_v57 = vpop.f32.mrf.mxu1  ;;  %v19478_v2 = vld [vmem:[#allocation240_spill] sm:$0xff]  ;;  %v19482_v58 = vld [vmem:[#allocation187_spill] sm:$0xff] }
 0x64e   : > { %v11477_v56 = vpop.f32.mrf.mxu0  ;;  %v8521_v11 = vadd.f32 %v11156_v51, %v19475_v34  ;;  %v19479_v23 = vpack.c.bf16 %v19477_v10, %v19478_v2 }
 0x64f   : > { %19474 = vst [vmem:[#allocation36_spill] sm:$0xff] %v17741_v28  ;;  %v11158_v60 = vpop.f32.mrf.mxu1  ;;  %v19483_v28 = vpack.c.bf16 %v19481_v3, %v19482_v58 }
 0x650   : > { %v11478_v45 = vpop.f32.mrf.mxu0  ;;  %v11159_v8 = vadd.f32 %v11158_v60, %v11157_v57  ;;  %v17750_v36 = vadd.f32 %v17297_v59, %v8521_v11 }
 0x651   : > { %v17747_v26 = vadd.f32 %v11478_v45, %v11477_v56  ;;  %v11160_v27 = vpop.f32.mrf.mxu1  ;;  %v19485_v45 = vld [vmem:[#allocation144_spill] sm:$0xff] }
 0x652   : > { %v11480_v41 = vpop.f32.mrf.mxu0  ;;  %v8524_v62 = vadd.f32 %v11159_v8, %v19480_v12 }
 0x653   : > { %19476 = vst [vmem:[#allocation196_spill] sm:$0xff] %v17747_v26  ;;  %9109 = vmatmul.mubr.bf16.gmra.mxu1 %v19479_v23  ;;  %v11161_v51 = vpop.f32.mrf.mxu1 }
 0x654   : > { %9116 = vmatprep.mubr.bf16.mxu1 %v19483_v28  ;;  %v11481_v34 = vpop.f32.mrf.mxu0  ;;  %v11162_v57 = vadd.f32 %v11161_v51, %v11160_v27  ;;  %v17762_v59 = vadd.f32 %v17303_v9, %v8524_v62  ;;  %v19487_v27 = vld [vmem:[#allocation246_spill] sm:$0xff]  ;;  %v19491_v51 = vld [vmem:[#allocation219_spill] sm:$0xff] }
 0x655   : > { %v17759_v56 = vadd.f32 %v11481_v34, %v11480_v41  ;;  %v11163_v11 = vpop.f32.mrf.mxu1  ;;  %v19488_v41 = vld [vmem:[#allocation244_spill] sm:$0xff]  ;;  %v19490_v9 = vld [vmem:[#allocation142_spill] sm:$0xff]  ;;  %v19492_v34 = vld [vmem:[#allocation217_spill] sm:$0xff] }
 0x656   : > { %v11483_v60 = vpop.f32.mrf.mxu0  ;;  %v8529_v26 = vadd.f32 %v11162_v57, %v19485_v45  ;;  %v19489_v58 = vpack.c.bf16 %v19487_v27, %v19488_v41 }
 0x657   : > { %19484 = vst [vmem:[#allocation194_spill] sm:$0xff] %v17759_v56  ;;  %v11164_v10 = vpop.f32.mrf.mxu1  ;;  %v19493_v56 = vpack.c.bf16 %v19491_v51, %v19492_v34  ;;  %v19497_v51 = vld [vmem:[#allocation68_spill] sm:$0xff] }
 0x658   : > { %v11484_v2 = vpop.f32.mrf.mxu0  ;;  %v11165_v23 = vadd.f32 %v11164_v10, %v11163_v11  ;;  %v17768_v12 = vadd.f32 %v17319_v4, %v8529_v26 }
 0x659   : > { %v17765_v8 = vadd.f32 %v11484_v2, %v11483_v60  ;;  %v11166_v28 = vpop.f32.mrf.mxu1  ;;  %v19495_v2 = vld [vmem:[#allocation83_spill] sm:$0xff] }
 0x65a   : > { %v11486_v3 = vpop.f32.mrf.mxu0  ;;  %v8532_v62 = vadd.f32 %v11165_v23, %v19490_v9  ;;  %v12845_v23 = vld [vmem:[%s18383_s4 + $0x5b8] sm:$0xff]  }
 0x65b   : > { %19486 = vst [vmem:[#allocation14_spill] sm:$0xff] %v17765_v8  ;;  %9117 = vmatmul.mubr.bf16.gmra.mxu1 %v19489_v58  ;;  %v11167_v57 = vpop.f32.mrf.mxu1 }
 0x65c   : > { %9254 = vmatprep.mubr.bf16.mxu1 %v19493_v56  ;;  %v11487_v45 = vpop.f32.mrf.mxu0  ;;  %v11168_v11 = vadd.f32 %v11167_v57, %v11166_v28  ;;  %v17780_v4 = vadd.f32 %v17325_v21, %v8532_v62  ;;  %v12846_v56 = vld [vmem:[%s18383_s4 + $0x5f0] sm:$0xff]  }
 0x65d   : > { %v17777_v60 = vadd.f32 %v11487_v45, %v11486_v3  ;;  %v11169_v26 = vpop.f32.mrf.mxu1  ;;  %v19496_v62 = vld [vmem:[#allocation24_spill] sm:$0xff] }
 0x65e   : > { %v11489_v10 = vpop.f32.mrf.mxu0  ;;  %v8537_v8 = vadd.f32 %v11168_v11, %v19495_v2  ;;  %v19498_v34 = vpack.c.bf16 %v19496_v62, %v19497_v51  ;;  %v19499_v57 = vld [vmem:[#allocation148_spill] sm:$0xff]  ;;  %v19500_v11 = vld [vmem:[#allocation223_spill] sm:$0xff]  ;;  %v19501_v2 = vld [vmem:[#allocation221_spill] sm:$0xff] }
 0x65f   : > { %19494 = vst [vmem:[#allocation3_spill] sm:$0xff] %v17777_v60  ;;  %v11170_v27 = vpop.f32.mrf.mxu1  ;;  %v19502_v60 = vpack.c.bf16 %v19500_v11, %v19501_v2  ;;  %v12849_v51 = vld [vmem:[%s18383_s4 + $0x5a8] sm:$0xff]   ;;  %v19503_v11 = vld [vmem:[#allocation17_spill] sm:$0xff]  ;;  %v19504_v2 = vld [vmem:[#allocation72_spill] sm:$0xff] }
 0x660   : > { %v11490_v41 = vpop.f32.mrf.mxu0  ;;  %v11171_v28 = vadd.f32 %v11170_v27, %v11169_v26  ;;  %v17792_v21 = vadd.f32 %v17341_v7, %v8537_v8  ;;  %v12847_v26 = vld [vmem:[%s18383_s4 + $0x5b0] sm:$0xff]   ;;  %v12848_v8 = vld [vmem:[%s18383_s4 + $0x5e8] sm:$0xff]  }
 0x661   : > { %v17789_v3 = vadd.f32 %v11490_v41, %v11489_v10  ;;  %v11252_v58 = vpop.f32.mrf.mxu1 }
 0x662   : > { %v11572_v9 = vpop.f32.mrf.mxu0  ;;  %v8540_v45 = vadd.f32 %v11171_v28, %v19499_v57 }
 0x663   : > { %9255 = vmatmul.mubr.bf16.vlgmr.msra.gmra.mxu1 %v19498_v34  ;;  %v11253_v10 = vpop.f32.mrf.mxu1 }
 0x664   : > { %9262 = vmatprep.mubr.bf16.mxu1 %v19502_v60  ;;  %11749 = vmatpush3.bf16.msra.mxu1 %v12845_v23  ;;  %v11573_v7 = vpop.f32.mrf.mxu0  ;;  %v11254_v27 = vadd.f32 %v11253_v10, %v11252_v58  ;;  %v17810_v28 = vadd.f32 %v17353_v43, %v8540_v45  ;;  %v12850_v58 = vld [vmem:[%s18383_s4 + $0x5e0] sm:$0xff]  }
 0x665   : > { %11750 = vmatprep.subr.bf16.mxu1 %v12846_v56  ;;  %v17807_v41 = vadd.f32 %v11573_v7, %v11572_v9  ;;  %v11255_v62 = vpop.f32.mrf.mxu1  ;;  %v19506_v7 = vld [vmem:[#allocation227_spill] sm:$0xff] }
 0x666   : > { %v11575_v60 = vpop.f32.mrf.mxu0  ;;  %v8675_v23 = vadd.f32 %v11254_v27, %v17628_v20 }
 0x667   : > { %v11256_v56 = vpop.f32.mrf.mxu1 }
 0x668   : > { %11751 = vmatpush3.bf16.msra.mxu1 %v12847_v26  ;;  %v11576_v34 = vpop.f32.mrf.mxu0  ;;  %v11257_v9 = vadd.f32 %v11256_v56, %v11255_v62  ;;  %v17822_v43 = vadd.f32 %v17378_v1, %v8675_v23  ;;  %v19505_v26 = vpack.c.bf16 %v19503_v11, %v19504_v2  ;;  %v12851_v62 = vld [vmem:[%s18383_s4 + $0x5a0] sm:$0xff]   ;;  %v12852_v23 = vld [vmem:[%s18383_s4 + $0x5d8] sm:$0xff]  }
 0x669   : > { %11752 = vmatprep.subr.bf16.mxu1 %v12848_v8  ;;  %v17819_v57 = vadd.f32 %v11576_v34, %v11575_v60  ;;  %v19507_v8 = vld [vmem:[#allocation225_spill] sm:$0xff] }
 0x66a   : > { %v11258_v45 = vpop.f32.mrf.mxu1  ;;  %v11578_v20 = vpop.f32.mrf.mxu0  ;;  %v8678_v10 = vadd.f32 %v11257_v9, %v17646_v55  ;;  %v19508_v27 = vpack.c.bf16 %v19506_v7, %v19507_v8  ;;  %v12853_v2 = vld [vmem:[%s18383_s4 + $0x598] sm:$0xff]  }
 0x66b   : > { %9263 = vmatmul.mubr.bf16.gmra.mxu1 %v19505_v26  ;;  %v19509_v8 = vld [vmem:[#allocation5_spill] sm:$0xff] }
 0x66c   : > { %9270 = vmatprep.mubr.bf16.mxu1 %v19508_v27  ;;  %11753 = vmatpush3.bf16.msra.mxu1 %v12849_v51  ;;  %v11259_v60 = vpop.f32.mrf.mxu1  ;;  %v11579_v1 = vpop.f32.mrf.mxu0  ;;  %v17840_v55 = vadd.f32 %v17389_v53, %v8678_v10  ;;  %v19510_v27 = vld [vmem:[#allocation76_spill] sm:$0xff] }
 0x66d   : > { %11754 = vmatprep.subr.bf16.mxu1 %v12850_v58  ;;  %v11260_v56 = vadd.f32 %v11259_v60, %v11258_v45  ;;  %v17837_v34 = vadd.f32 %v11579_v1, %v11578_v20  ;;  %v12854_v45 = vld [vmem:[%s18383_s4 + $0x5d0] sm:$0xff]   ;;  %v19512_v1 = vld [vmem:[#allocation231_spill] sm:$0xff] }
 0x66e   : > { %v11261_v9 = vpop.f32.mrf.mxu1  ;;  %v11581_v11 = vpop.f32.mrf.mxu0 }
 0x66f   : > { %v8683_v51 = vadd.f32 %v11260_v56, %v17660_v32 }
 0x670   : > { %11755 = vmatpush3.bf16.msra.mxu1 %v12851_v62  ;;  %v11262_v58 = vpop.f32.mrf.mxu1  ;;  %v11582_v26 = vpop.f32.mrf.mxu0  ;;  %v19511_v62 = vpack.c.bf16 %v19509_v8, %v19510_v27  ;;  %v12857_v27 = vld [vmem:[%s18383_s4 + $0x588] sm:$0xff]  }
 0x671   : > { %11756 = vmatprep.subr.bf16.mxu1 %v12852_v23  ;;  %v11263_v20 = vadd.f32 %v11262_v58, %v11261_v9  ;;  %v17849_v7 = vadd.f32 %v11582_v26, %v11581_v11  ;;  %v17852_v53 = vadd.f32 %v17414_v50, %v8683_v51  ;;  %v19513_v23 = vld [vmem:[#allocation229_spill] sm:$0xff]  ;;  %v12855_v9 = vld [vmem:[%s18383_s4 + $0x590] sm:$0xff]   ;;  %v12856_v51 = vld [vmem:[%s18383_s4 + $0x5c8] sm:$0xff]  }
 0x672   : > { %v11264_v10 = vpop.f32.mrf.mxu1  ;;  %v11584_v32 = vpop.f32.mrf.mxu0  ;;  %v19514_v56 = vpack.c.bf16 %v19512_v1, %v19513_v23  ;;  %v19515_v23 = vld [vmem:[#allocation27_spill] sm:$0xff] }
 0x673   : > { %9271 = vmatmul.mubr.bf16.gmra.mxu1 %v19511_v62  ;;  %v8686_v60 = vadd.f32 %v11263_v20, %v17678_v25 }
 0x674   : > { %9278 = vmatprep.mubr.bf16.mxu1 %v19514_v56  ;;  %11757 = vmatpush3.bf16.msra.mxu1 %v12853_v2  ;;  %v11265_v11 = vpop.f32.mrf.mxu1  ;;  %v11585_v50 = vpop.f32.mrf.mxu0  ;;  %v19516_v56 = vld [vmem:[#allocation80_spill] sm:$0xff] }
 0x675   : > { %11758 = vmatprep.subr.bf16.mxu1 %v12854_v45  ;;  %v11266_v58 = vadd.f32 %v11265_v11, %v11264_v10  ;;  %v17867_v26 = vadd.f32 %v11585_v50, %v11584_v32  ;;  %v17870_v25 = vadd.f32 %v17427_v52, %v8686_v60  ;;  %v12858_v10 = vld [vmem:[%s18383_s4 + $0x5c0] sm:$0xff]   ;;  %v19518_v50 = vld [vmem:[#allocation235_spill] sm:$0xff] }
 0x676   : > { %v11267_v20 = vpop.f32.mrf.mxu1  ;;  %v11587_v8 = vpop.f32.mrf.mxu0 }
 0x677   : > { %v8691_v2 = vadd.f32 %v11266_v58, %v17690_v22 }
 0x678   : > { %11759 = vmatpush3.bf16.msra.mxu1 %v12855_v9  ;;  %v11268_v45 = vpop.f32.mrf.mxu1  ;;  %v11588_v62 = vpop.f32.mrf.mxu0  ;;  %v19517_v9 = vpack.c.bf16 %v19515_v23, %v19516_v56 }
 0x679   : > { %11760 = vmatprep.subr.bf16.mxu1 %v12856_v51  ;;  %v11269_v32 = vadd.f32 %v11268_v45, %v11267_v20  ;;  %v17879_v1 = vadd.f32 %v11588_v62, %v11587_v8  ;;  %v17882_v52 = vadd.f32 %v17452_v48, %v8691_v2  ;;  %v19519_v51 = vld [vmem:[#allocation233_spill] sm:$0xff]  ;;  %v12859_v20 = vld [vmem:[%s18383_s4 + $0x580] sm:$0xff]  }
 0x67a   : > { %v11270_v60 = vpop.f32.mrf.mxu1  ;;  %v11590_v22 = vpop.f32.mrf.mxu0  ;;  %v19520_v58 = vpack.c.bf16 %v19518_v50, %v19519_v51  ;;  %v19522_v50 = vld [vmem:[#allocation29_spill] sm:$0xff] }
 0x67b   : > { %9279 = vmatmul.mubr.bf16.gmra.mxu1 %v19517_v9  ;;  %v8694_v11 = vadd.f32 %v11269_v32, %v17708_v17  ;;  %v17903_v9 = vld [vmem:[%s18383_s4 + $0x638] sm:$0xff]  }
 0x67c   : > { %9286 = vmatprep.mubr.bf16.mxu1 %v19520_v58  ;;  %11761 = vmatpush3.bf16.msra.mxu1 %v12857_v27  ;;  %v11271_v8 = vpop.f32.mrf.mxu1  ;;  %v11591_v48 = vpop.f32.mrf.mxu0 }
 0x67d   : > { %11762 = vmatprep.subr.bf16.mxu1 %v12858_v10  ;;  %v11272_v2 = vadd.f32 %v11271_v8, %v11270_v60  ;;  %v17894_v45 = vadd.f32 %v11591_v48, %v11590_v22  ;;  %v17897_v62 = vadd.f32 %v17467_v54, %v8694_v11  ;;  %v19526_v8 = vld [vmem:[#allocation237_spill] sm:$0xff] }
 0x67e   : > { %v11273_v23 = vpop.f32.mrf.mxu1  ;;  %v11593_v17 = vpop.f32.mrf.mxu0 }
 0x67f   : > { %19521 = vst [vmem:[#allocation137_spill] sm:$0xff] %v17894_v45  ;;  %v8699_v32 = vadd.f32 %v11272_v2, %v17714_v47  ;;  %v19523_v47 = vld [vmem:[#allocation84_spill] sm:$0xff] }
 0x680   : > { %11763 = vmatpush3.bf16.msra.mxu1 %v12859_v20  ;;  %v11274_v56 = vpop.f32.mrf.mxu1  ;;  %v11594_v27 = vpop.f32.mrf.mxu0  ;;  %v19524_v51 = vpack.c.bf16 %v19522_v50, %v19523_v47  ;;  %v19525_v20 = vld [vmem:[#allocation239_spill] sm:$0xff] }
 0x681   : > { %11976 = vmatprep.subr.bf16.mxu1 %v17903_v9  ;;  %v11275_v10 = vadd.f32 %v11274_v56, %v11273_v23  ;;  %v17906_v60 = vadd.f32 %v11594_v27, %v11593_v17  ;;  %v17909_v54 = vadd.f32 %v17495_v37, %v8699_v32  ;;  %v19527_v48 = vpack.c.bf16 %v19525_v20, %v19526_v8 }
 0x682   : > { %v11276_v22 = vpop.f32.mrf.mxu1  ;;  %v11596_v11 = vpop.f32.mrf.mxu0 }
 0x683   : > { %9287 = vmatmul.mubr.bf16.gmra.mxu1 %v19524_v51  ;;  %v8702_v58 = vadd.f32 %v11275_v10, %v17726_v16 }
 0x684   : > { %9294 = vmatprep.mubr.bf16.mxu1 %v19527_v48  ;;  %v11277_v2 = vpop.f32.mrf.mxu1  ;;  %v11597_v45 = vpop.f32.mrf.mxu0  ;;  %v19532_v48 = vld [vmem:[#allocation241_spill] sm:$0xff] }
 0x685   : > { %v11278_v23 = vadd.f32 %v11277_v2, %v11276_v22  ;;  %v17918_v17 = vadd.f32 %v11597_v45, %v11596_v11  ;;  %v17921_v37 = vadd.f32 %v17504_v6, %v8702_v58  ;;  %v19528_v22 = vld [vmem:[#allocation31_spill] sm:$0xff]  ;;  %v19529_v45 = vld [vmem:[#allocation88_spill] sm:$0xff] }
 0x686   : > { %v11279_v32 = vpop.f32.mrf.mxu1  ;;  %v11599_v56 = vpop.f32.mrf.mxu0  ;;  %v19530_v11 = vpack.c.bf16 %v19528_v22, %v19529_v45  ;;  %v19531_v58 = vld [vmem:[#allocation243_spill] sm:$0xff] }
 0x687   : > { %v8707_v27 = vadd.f32 %v11278_v23, %v17732_v39  ;;  %v19533_v2 = vpack.c.bf16 %v19531_v58, %v19532_v48 }
 0x688   : > { %v11280_v50 = vpop.f32.mrf.mxu1  ;;  %v11600_v47 = vpop.f32.mrf.mxu0 }
 0x689   : > { %v11281_v51 = vadd.f32 %v11280_v50, %v11279_v32  ;;  %v17924_v16 = vadd.f32 %v11600_v47, %v11599_v56  ;;  %v17927_v10 = vadd.f32 %v17521_v19, %v8707_v27 }
 0x68a   : > { %v11282_v20 = vpop.f32.mrf.mxu1  ;;  %v11602_v8 = vpop.f32.mrf.mxu0 }
 0x68b   : > { %9295 = vmatmul.mubr.bf16.gmra.mxu1 %v19530_v11  ;;  %v8710_v6 = vadd.f32 %v11281_v51, %v17744_v33 }
 0x68c   : > { %9302 = vmatprep.mubr.bf16.mxu1 %v19533_v2  ;;  %v11283_v39 = vpop.f32.mrf.mxu1  ;;  %v11603_v23 = vpop.f32.mrf.mxu0 }
 0x68d   : > { %v11284_v32 = vadd.f32 %v11283_v39, %v11282_v20  ;;  %v17936_v56 = vadd.f32 %v11603_v23, %v11602_v8  ;;  %v17939_v19 = vadd.f32 %v17525_v29, %v8710_v6  ;;  %v19534_v20 = vld [vmem:[#allocation65_spill] sm:$0xff]  ;;  %v19535_v8 = vld [vmem:[#allocation92_spill] sm:$0xff]  ;;  %v19537_v6 = vld [vmem:[#allocation247_spill] sm:$0xff] }
 0x68e   : > { %v11285_v27 = vpop.f32.mrf.mxu1  ;;  %v11605_v50 = vpop.f32.mrf.mxu0  ;;  %v19536_v2 = vpack.c.bf16 %v19534_v20, %v19535_v8  ;;  %v19538_v39 = vld [vmem:[#allocation245_spill] sm:$0xff] }
 0x68f   : > { %v8715_v47 = vadd.f32 %v11284_v32, %v17750_v36  ;;  %v19539_v23 = vpack.c.bf16 %v19537_v6, %v19538_v39 }
 0x690   : > { %v11286_v22 = vpop.f32.mrf.mxu1  ;;  %v11606_v45 = vpop.f32.mrf.mxu0 }
 0x691   : > { %v11287_v11 = vadd.f32 %v11286_v22, %v11285_v27  ;;  %v17942_v33 = vadd.f32 %v11606_v45, %v11605_v50  ;;  %v17945_v51 = vadd.f32 %v17541_v42, %v8715_v47 }
 0x692   : > { %v11288_v58 = vpop.f32.mrf.mxu1  ;;  %v11608_v48 = vpop.f32.mrf.mxu0 }
 0x693   : > { %9303 = vmatmul.mubr.bf16.gmra.mxu1 %v19536_v2  ;;  %v8718_v29 = vadd.f32 %v11287_v11, %v17762_v59 }
 0x694   : > { %9310 = vmatprep.mubr.bf16.mxu1 %v19539_v23  ;;  %v11289_v36 = vpop.f32.mrf.mxu1  ;;  %v11609_v32 = vpop.f32.mrf.mxu0 }
 0x695   : > { %v11290_v27 = vadd.f32 %v11289_v36, %v11288_v58  ;;  %v17954_v50 = vadd.f32 %v11609_v32, %v11608_v48  ;;  %v17957_v42 = vadd.f32 %v17545_v61, %v8718_v29  ;;  %v19540_v58 = vld [vmem:[#allocation69_spill] sm:$0xff]  ;;  %v19541_v48 = vld [vmem:[#allocation128_spill] sm:$0xff]  ;;  %v19544_v36 = vld [vmem:[#allocation66_spill] sm:$0xff] }
 0x696   : > { %v11291_v47 = vpop.f32.mrf.mxu1  ;;  %v11611_v22 = vpop.f32.mrf.mxu0  ;;  %v19542_v23 = vpack.c.bf16 %v19540_v58, %v19541_v48  ;;  %v19543_v29 = vld [vmem:[#allocation9_spill] sm:$0xff] }
 0x697   : > { %v8723_v45 = vadd.f32 %v11290_v27, %v17768_v12  ;;  %v19545_v32 = vpack.c.bf16 %v19543_v29, %v19544_v36 }
 0x698   : > { %v11292_v20 = vpop.f32.mrf.mxu1  ;;  %v11612_v8 = vpop.f32.mrf.mxu0 }
 0x699   : > { %v11293_v2 = vadd.f32 %v11292_v20, %v11291_v47  ;;  %v17960_v59 = vadd.f32 %v11612_v8, %v11611_v22  ;;  %v17963_v11 = vadd.f32 %v17561_v44, %v8723_v45 }
 0x69a   : > { %v11294_v6 = vpop.f32.mrf.mxu1  ;;  %v11614_v39 = vpop.f32.mrf.mxu0 }
 0x69b   : > { %9311 = vmatmul.mubr.bf16.gmra.mxu1 %v19542_v23  ;;  %v8726_v61 = vadd.f32 %v11293_v2, %v17780_v4 }
 0x69c   : > { %9448 = vmatprep.mubr.bf16.mxu1 %v19545_v32  ;;  %v11295_v12 = vpop.f32.mrf.mxu1  ;;  %v11615_v27 = vpop.f32.mrf.mxu0 }
 0x69d   : > { %v11296_v47 = vadd.f32 %v11295_v12, %v11294_v6  ;;  %v17972_v22 = vadd.f32 %v11615_v27, %v11614_v39  ;;  %v17975_v44 = vadd.f32 %v17569_v46, %v8726_v61  ;;  %v19546_v6 = vld [vmem:[#allocation87_spill] sm:$0xff]  ;;  %v19547_v39 = vld [vmem:[#allocation146_spill] sm:$0xff] }
 0x69e   : > { %v11297_v45 = vpop.f32.mrf.mxu1  ;;  %v11617_v20 = vpop.f32.mrf.mxu0  ;;  %v19548_v32 = vpack.c.bf16 %v19546_v6, %v19547_v39  ;;  %v19549_v61 = vld [vmem:[#allocation7_spill] sm:$0xff]  ;;  %v19550_v12 = vld [vmem:[#allocation70_spill] sm:$0xff] }
 0x69f   : > { %v8731_v8 = vadd.f32 %v11296_v47, %v17792_v21  ;;  %v19551_v27 = vpack.c.bf16 %v19549_v61, %v19550_v12  ;;  %v12862_v6 = vld [vmem:[%s18383_s4 + $0x628] sm:$0xff]   ;;  %v19553_v61 = vld [vmem:[#allocation150_spill] sm:$0xff] }
 0x6a0   : > { %v11298_v58 = vpop.f32.mrf.mxu1  ;;  %v11618_v48 = vpop.f32.mrf.mxu0 }
 0x6a1   : > { %v11299_v23 = vadd.f32 %v11298_v58, %v11297_v45  ;;  %v17978_v4 = vadd.f32 %v11618_v48, %v11617_v20  ;;  %v17981_v2 = vadd.f32 %v17582_v40, %v8731_v8  ;;  %v12861_v40 = vld [vmem:[%s18383_s4 + $0x630] sm:$0xff]  }
 0x6a2   : > { %v11380_v29 = vpop.f32.mrf.mxu1  ;;  %v11700_v36 = vpop.f32.mrf.mxu0 }
 0x6a3   : > { %9449 = vmatmul.mubr.bf16.vlgmr.msra.gmra.mxu1 %v19548_v32  ;;  %v8734_v46 = vadd.f32 %v11299_v23, %v17810_v28 }
 0x6a4   : > { %9456 = vmatprep.mubr.bf16.mxu1 %v19551_v27  ;;  %11984 = vmatpush3.bf16.msra.mxu1 %v17903_v9  ;;  %v11381_v21 = vpop.f32.mrf.mxu1  ;;  %v11701_v47 = vpop.f32.mrf.mxu0  ;;  %v19555_v27 = vld [vmem:[#allocation25_spill] sm:$0xff] }
 0x6a5   : > { %11977 = vmatprep.subr.bf16.mxu1 %v12861_v40  ;;  %v11382_v45 = vadd.f32 %v11381_v21, %v11380_v29  ;;  %v17994_v20 = vadd.f32 %v11701_v47, %v11700_v36  ;;  %v17997_v8 = vadd.f32 %v17596_v31, %v8734_v46  ;;  %v19552_v46 = vld [vmem:[#allocation93_spill] sm:$0xff]  ;;  %v19556_v21 = vld [vmem:[#allocation74_spill] sm:$0xff] }
 0x6a6   : > { %v11383_v28 = vpop.f32.mrf.mxu1  ;;  %v11703_v58 = vpop.f32.mrf.mxu0  ;;  %v19554_v12 = vpack.c.bf16 %v19552_v46, %v19553_v61  ;;  %v19557_v47 = vpack.c.bf16 %v19555_v27, %v19556_v21  ;;  %v12864_v46 = vld [vmem:[%s18383_s4 + $0x618] sm:$0xff]   ;;  %v19561_v21 = vld [vmem:[#allocation15_spill] sm:$0xff] }
 0x6a7   : > { %v8869_v48 = vadd.f32 %v11382_v45, %v17822_v43 }
 0x6a8   : > { %11985 = vmatpush3.bf16.msra.mxu1 %v12861_v40  ;;  %v11384_v23 = vpop.f32.mrf.mxu1  ;;  %v11704_v9 = vpop.f32.mrf.mxu0 }
 0x6a9   : > { %11978 = vmatprep.subr.bf16.mxu1 %v12862_v6  ;;  %v11385_v39 = vadd.f32 %v11384_v23, %v11383_v28  ;;  %v18003_v32 = vadd.f32 %v11704_v9, %v11703_v58  ;;  %v18006_v29 = vadd.f32 %v17612_v5, %v8869_v48  ;;  %v12863_v5 = vld [vmem:[%s18383_s4 + $0x620] sm:$0xff]  }
 0x6aa   : > { %v11386_v31 = vpop.f32.mrf.mxu1  ;;  %v11706_v36 = vpop.f32.mrf.mxu0 }
 0x6ab   : > { %9457 = vmatmul.mubr.bf16.gmra.mxu1 %v19554_v12  ;;  %v8872_v43 = vadd.f32 %v11385_v39, %v17840_v55 }
 0x6ac   : > { %9464 = vmatprep.mubr.bf16.mxu1 %v19557_v47  ;;  %11986 = vmatpush3.bf16.msra.mxu1 %v12862_v6  ;;  %v11387_v40 = vpop.f32.mrf.mxu1  ;;  %v11707_v45 = vpop.f32.mrf.mxu0  ;;  %v19562_v47 = vld [vmem:[#allocation78_spill] sm:$0xff] }
 0x6ad   : > { %11979 = vmatprep.subr.bf16.mxu1 %v12863_v5  ;;  %v11388_v28 = vadd.f32 %v11387_v40, %v11386_v31  ;;  %v18018_v58 = vadd.f32 %v11707_v45, %v11706_v36  ;;  %v18021_v48 = vadd.f32 %v17622_v63, %v8872_v43  ;;  %v19558_v36 = vld [vmem:[#allocation156_spill] sm:$0xff]  ;;  %v19559_v43 = vld [vmem:[#allocation91_spill] sm:$0xff]  ;;  %v19563_v40 = vpack.c.bf16 %v19561_v21, %v19562_v47 }
 0x6ae   : > { %v11389_v23 = vpop.f32.mrf.mxu1  ;;  %v11709_v55 = vpop.f32.mrf.mxu0  ;;  %v19560_v27 = vpack.c.bf16 %v19558_v36, %v19559_v43  ;;  %v19568_v47 = vld [vmem:[#allocation23_spill] sm:$0xff] }
 0x6af   : > { %v8877_v9 = vadd.f32 %v11388_v28, %v17852_v53 }
 0x6b0   : > { %11987 = vmatpush3.bf16.msra.mxu1 %v12863_v5  ;;  %v11390_v39 = vpop.f32.mrf.mxu1  ;;  %v11710_v6 = vpop.f32.mrf.mxu0  ;;  %v12865_v5 = vld [vmem:[%s18383_s4 + $0x610] sm:$0xff]  }
 0x6b1   : > { %11980 = vmatprep.subr.bf16.mxu1 %v12864_v46  ;;  %v11391_v61 = vadd.f32 %v11390_v39, %v11389_v23  ;;  %v18027_v12 = vadd.f32 %v11710_v6, %v11709_v55  ;;  %v18030_v31 = vadd.f32 %v17640_v24, %v8877_v9 }
 0x6b2   : > { %v11392_v63 = vpop.f32.mrf.mxu1 }
 0x6b3   : > { %9465 = vmatmul.mubr.bf16.gmra.mxu1 %v19560_v27  ;;  %v8880_v53 = vadd.f32 %v11391_v61, %v17870_v25 }
 0x6b4   : > { %9472 = vmatprep.mubr.bf16.mxu1 %v19563_v40  ;;  %11988 = vmatpush3.bf16.msra.mxu1 %v12864_v46  ;;  %v11393_v45 = vpop.f32.mrf.mxu1  ;;  %v19564_v46 = vpack.c.bf16 %v17249_v14, %v17221_v30  ;;  %v19569_v40 = vld [vmem:[#allocation154_spill] sm:$0xff] }
 0x6b5   : > { %11981 = vmatprep.subr.bf16.mxu1 %v12865_v5  ;;  %v11394_v24 = vadd.f32 %v11393_v45, %v11392_v63  ;;  %v18043_v28 = vadd.f32 %v17654_v0, %v8880_v53  ;;  %v19565_v0 = vld [vmem:[#allocation28_spill] sm:$0xff]  ;;  %v19566_v63 = vld [vmem:[#allocation82_spill] sm:$0xff]  ;;  %v19570_v45 = vpack.c.bf16 %v19568_v47, %v19569_v40 }
 0x6b6   : > { %v11395_v23 = vpop.f32.mrf.mxu1  ;;  %v19567_v36 = vpack.c.bf16 %v19565_v0, %v19566_v63  ;;  %v19575_v63 = vld [vmem:[#allocation129_spill] sm:$0xff] }
 0x6b7   : > { %v8885_v55 = vadd.f32 %v11394_v24, %v17882_v52  ;;  %v12866_v52 = vld [vmem:[%s18383_s4 + $0x608] sm:$0xff]   ;;  %v19571_v24 = vld [vmem:[#allocation30_spill] sm:$0xff] }
 0x6b8   : > { %11989 = vmatpush3.bf16.msra.mxu1 %v12865_v5  ;;  %v11396_v25 = vpop.f32.mrf.mxu1 }
 0x6b9   : > { %11982 = vmatprep.subr.bf16.mxu1 %v17465_v35  ;;  %v11397_v9 = vadd.f32 %v11396_v25, %v11395_v23  ;;  %v18048_v39 = vadd.f32 %v17672_v13, %v8885_v55 }
 0x6ba   : > { %v11398_v6 = vpop.f32.mrf.mxu1 }
 0x6bb   : > { %9473 = vmatmul.mubr.bf16.gmra.mxu1 %v19564_v46  ;;  %v8888_v61 = vadd.f32 %v11397_v9, %v17897_v62  ;;  %v19574_v46 = vld [vmem:[#allocation131_spill] sm:$0xff] }
 0x6bc   : > { %9480 = vmatprep.mubr.bf16.mxu1 %v19567_v36  ;;  %11990 = vmatpush3.bf16.msra.mxu1 %v12866_v52  ;;  %v11399_v35 = vpop.f32.mrf.mxu1 }
 0x6bd   : > { %11983 = vmatprep.subr.bf16.mxu1 %v17483_v38  ;;  %v11400_v13 = vadd.f32 %v11399_v35, %v11398_v6  ;;  %v18062_v43 = vadd.f32 %v17684_v15, %v8888_v61  ;;  %v19572_v15 = vld [vmem:[#allocation86_spill] sm:$0xff]  ;;  %v19578_v35 = vld [vmem:[#allocation64_spill] sm:$0xff] }
 0x6be   : > { %v11401_v30 = vpop.f32.mrf.mxu1  ;;  %v19573_v23 = vpack.c.bf16 %v19571_v24, %v19572_v15  ;;  %v19583_v15 = vld [vmem:[#allocation34_spill] sm:$0xff] }
 0x6bf   : > { %v8893_v14 = vadd.f32 %v11400_v13, %v17909_v54  ;;  %v19579_v13 = vld [vmem:[#allocation90_spill] sm:$0xff] }
 0x6c0   : > { %11991 = vmatpush3.bf16.msra.mxu1 %v17483_v38  ;;  %v11402_v62 = vpop.f32.mrf.mxu1 }
 0x6c1   : > { %v11403_v27 = vadd.f32 %v11402_v62, %v11401_v30  ;;  %v18067_v53 = vadd.f32 %v17702_v18, %v8893_v14  ;;  %v19580_v30 = vpack.c.bf16 %v19578_v35, %v19579_v13  ;;  %v19581_v62 = vld [vmem:[#allocation38_spill] sm:$0xff] }
 0x6c2   : > { %v11404_v21 = vpop.f32.mrf.mxu1 }
 0x6c3   : > { %9481 = vmatmul.mubr.bf16.gmra.mxu1 %v19570_v45  ;;  %v8896_v5 = vadd.f32 %v11403_v27, %v17921_v37  ;;  %v19576_v37 = vld [vmem:[#allocation10_spill] sm:$0xff]  ;;  %v19582_v45 = vld [vmem:[#allocation36_spill] sm:$0xff] }
 0x6c4   : > { %9488 = vmatprep.mubr.bf16.mxu1 %v19573_v23  ;;  %v11405_v55 = vpop.f32.mrf.mxu1  ;;  %v19577_v36 = vpack.c.bf16 %v19575_v63, %v19576_v37 }
 0x6c5   : > { %v11406_v54 = vadd.f32 %v11405_v55, %v11404_v21  ;;  %v18077_v38 = vadd.f32 %v17711_v49, %v8896_v5 }
 0x6c6   : > { %v11407_v25 = vpop.f32.mrf.mxu1 }
 0x6c7   : > { %v8901_v18 = vadd.f32 %v11406_v54, %v17927_v10  ;;  %v19586_v54 = vld [vmem:[#allocation67_spill] sm:$0xff] }
 0x6c8   : > { %v11408_v9 = vpop.f32.mrf.mxu1 }
 0x6c9   : > { %v11409_v6 = vadd.f32 %v11408_v9, %v11407_v25  ;;  %v18081_v61 = vadd.f32 %v19574_v46, %v8901_v18  ;;  %v19587_v25 = vld [vmem:[#allocation126_spill] sm:$0xff]  ;;  %v19589_v46 = vld [vmem:[#allocation196_spill] sm:$0xff] }
 0x6ca   : > { %v11410_v0 = vpop.f32.mrf.mxu1  ;;  %v19588_v18 = vpack.c.bf16 %v19586_v54, %v19587_v25 }
 0x6cb   : > { %9489 = vmatmul.mubr.bf16.gmra.mxu1 %v19577_v36  ;;  %v8904_v52 = vadd.f32 %v11409_v6, %v17939_v19  ;;  %v19584_v19 = vld [vmem:[#allocation127_spill] sm:$0xff] }
 0x6cc   : > { %9496 = vmatprep.mubr.bf16.mxu1 %v19580_v30  ;;  %v11411_v49 = vpop.f32.mrf.mxu1  ;;  %v19585_v23 = vpack.c.bf16 %v19583_v15, %v19584_v19  ;;  %v19591_v30 = vld [vmem:[#allocation192_spill] sm:$0xff] }
 0x6cd   : > { %v11412_v14 = vadd.f32 %v11411_v49, %v11410_v0  ;;  %v18091_v10 = vadd.f32 %v19581_v62, %v8904_v52  ;;  %v19590_v52 = vld [vmem:[#allocation194_spill] sm:$0xff]  ;;  %v19594_v62 = vld [vmem:[#allocation4_spill] sm:$0xff] }
 0x6ce   : > { %v11413_v27 = vpop.f32.mrf.mxu1 }
 0x6cf   : > { %v8909_v21 = vadd.f32 %v11412_v14, %v17945_v51 }
 0x6d0   : > { %v11414_v47 = vpop.f32.mrf.mxu1 }
 0x6d1   : > { %v11415_v40 = vadd.f32 %v11414_v47, %v11413_v27  ;;  %v18095_v5 = vadd.f32 %v19582_v45, %v8909_v21  ;;  %v19595_v27 = vld [vmem:[#allocation190_spill] sm:$0xff] }
 0x6d2   : > { %v11416_v24 = vpop.f32.mrf.mxu1  ;;  %v19596_v21 = vpack.c.bf16 %v19594_v62, %v19595_v27  ;;  %v19597_v45 = vld [vmem:[#allocation14_spill] sm:$0xff] }
 0x6d3   : > { %9497 = vmatmul.mubr.bf16.gmra.mxu1 %v19585_v23  ;;  %v8912_v55 = vadd.f32 %v11415_v40, %v17957_v42  ;;  %v19592_v42 = vld [vmem:[#allocation32_spill] sm:$0xff] }
 0x6d4   : > { %9504 = vmatprep.mubr.bf16.mxu1 %v19588_v18  ;;  %v11417_v9 = vpop.f32.mrf.mxu1  ;;  %v19593_v49 = vpack.c.bf16 %v19591_v30, %v19592_v42  ;;  %v19599_v18 = vld [vmem:[#allocation133_spill] sm:$0xff] }
 0x6d5   : > { %v11418_v6 = vadd.f32 %v11417_v9, %v11416_v24  ;;  %v18105_v51 = vadd.f32 %v19589_v46, %v8912_v55  ;;  %v19598_v55 = vld [vmem:[#allocation3_spill] sm:$0xff] }
 0x6d6   : > { %v11419_v0 = vpop.f32.mrf.mxu1 }
 0x6d7   : > { %v8917_v63 = vadd.f32 %v11418_v6, %v17963_v11 }
 0x6d8   : > { %v11420_v37 = vpop.f32.mrf.mxu1 }
 0x6d9   : > { %v11421_v36 = vadd.f32 %v11420_v37, %v11419_v0  ;;  %v18109_v35 = vadd.f32 %v19590_v52, %v8917_v63 }
 0x6da   : > { %v11422_v13 = vpop.f32.mrf.mxu1 }
 0x6db   : > { %9505 = vmatmul.mubr.bf16.gmra.mxu1 %v19593_v49  ;;  %v8920_v14 = vadd.f32 %v11421_v36, %v17975_v44  ;;  %v19600_v44 = vld [vmem:[#allocation11_spill] sm:$0xff] }
 0x6dc   : > { %11972 = vmatprep.mubr.bf16.mxu1 %v19596_v21  ;;  %v11423_v47 = vpop.f32.mrf.mxu1  ;;  %v19601_v9 = vpack.c.bf16 %v19599_v18, %v19600_v44  ;;  %v18157_v44 = vpop.f32.mrf.mxu0 }
 0x6dd   : > { %v11424_v40 = vadd.f32 %v11423_v47, %v11422_v13  ;;  %v18119_v11 = vadd.f32 %v19597_v45, %v8920_v14 }
 0x6de   : > { %v11425_v24 = vpop.f32.mrf.mxu1 }
 0x6df   : > { %v8925_v15 = vadd.f32 %v11424_v40, %v17981_v2 }
 0x6e0   : > { %v11426_v19 = vpop.f32.mrf.mxu1 }
 0x6e1   : > { %v11427_v23 = vadd.f32 %v11426_v19, %v11425_v24  ;;  %v18123_v54 = vadd.f32 %v19598_v55, %v8925_v15 }
 0x6e2   : > { %v11508_v25 = vpop.f32.mrf.mxu1 }
 0x6e3   : > { %11973 = vmatmul.mubr.bf16.vlgmr.msra.gmra.mxu1 %v19601_v9  ;;  %v8928_v6 = vadd.f32 %v11427_v23, %v17997_v8 }
 0x6e4   : > { %v11509_v46 = vpop.f32.mrf.mxu1 }
 0x6e5   : > { %v11510_v0 = vadd.f32 %v11509_v46, %v11508_v25  ;;  %v18130_v63 = vadd.f32 %v17789_v3, %v8928_v6  ;;  %v19602_v6 = vld [vmem:[#allocation137_spill] sm:$0xff] }
 0x6e6   : > { %v11511_v37 = vpop.f32.mrf.mxu1 }
 0x6e7   : > { %v9063_v2 = vadd.f32 %v11510_v0, %v18006_v29 }
 0x6e8   : > { %v11512_v36 = vpop.f32.mrf.mxu1 }
 0x6e9   : > { %v11513_v52 = vadd.f32 %v11512_v36, %v11511_v37  ;;  %v18134_v13 = vadd.f32 %v17807_v41, %v9063_v2  ;;  %v18163_v37 = vpop.f32.mrf.mxu0 }
 0x6eb   : > { %v11514_v30 = vpop.f32.mrf.mxu1  ;;  %v9066_v42 = vadd.f32 %v11513_v52, %v18021_v48  ;;  %v18169_v52 = vpop.f32.mrf.mxu0 }
 0x6ed   : > { %v11515_v49 = vpop.f32.mrf.mxu1  ;;  %v18138_v8 = vadd.f32 %v17819_v57, %v9066_v42 }
 0x6ee   : > { %v11516_v14 = vadd.f32 %v11515_v49, %v11514_v30 }
 0x6ef   : > { %v11517_v62 = vpop.f32.mrf.mxu1 }
 0x6f0   : > { %v9071_v3 = vadd.f32 %v11516_v14, %v18030_v31 }
 0x6f1   : > { %v11518_v27 = vpop.f32.mrf.mxu1 }
 0x6f2   : > { %v11519_v21 = vadd.f32 %v11518_v27, %v11517_v62  ;;  %v18142_v29 = vadd.f32 %v17837_v34, %v9071_v3  ;;  %v18175_v62 = vpop.f32.mrf.mxu0 }
 0x6f3   : > { %v11520_v47 = vpop.f32.mrf.mxu1 }
 0x6f4   : > { %v9074_v41 = vadd.f32 %v11519_v21, %v18043_v28 }
 0x6f5   : > { %v11521_v40 = vpop.f32.mrf.mxu1 }
 0x6f6   : > { %v11522_v45 = vadd.f32 %v11521_v40, %v11520_v47  ;;  %v18146_v48 = vadd.f32 %v17849_v7, %v9074_v41  ;;  %v18181_v47 = vpop.f32.mrf.mxu0 }
 0x6f7   : > { %v11523_v24 = vpop.f32.mrf.mxu1 }
 0x6f8   : > { %v9079_v57 = vadd.f32 %v11522_v45, %v18048_v39 }
 0x6f9   : > { %v11524_v15 = vpop.f32.mrf.mxu1 }
 0x6fa   : > { %v11525_v19 = vadd.f32 %v11524_v15, %v11523_v24  ;;  %v18150_v31 = vadd.f32 %v17867_v26, %v9079_v57  ;;  %v18187_v24 = vpop.f32.mrf.mxu0 }
 0x6fb   : > { %v11526_v23 = vpop.f32.mrf.mxu1 }
 0x6fc   : > { %v9082_v34 = vadd.f32 %v11525_v19, %v18062_v43 }
 0x6fd   : > { %v11527_v55 = vpop.f32.mrf.mxu1 }
 0x6fe   : > { %v11528_v25 = vadd.f32 %v11527_v55, %v11526_v23  ;;  %v18154_v28 = vadd.f32 %v17879_v1, %v9082_v34  ;;  %v18193_v23 = vpop.f32.mrf.mxu0 }
 0x6ff   : > { %v11529_v18 = vpop.f32.mrf.mxu1 }
 0x700   : > { %v9087_v7 = vadd.f32 %v11528_v25, %v18067_v53 }
 0x701   : > { %v11530_v9 = vpop.f32.mrf.mxu1 }
 0x702   : > { %v11531_v39 = vadd.f32 %v11530_v9, %v11529_v18  ;;  %v18160_v46 = vadd.f32 %v19602_v6, %v9087_v7  ;;  %v18199_v18 = vpop.f32.mrf.mxu0 }
 0x703   : > { %v11532_v26 = vpop.f32.mrf.mxu1 }
 0x704   : > { %v9090_v0 = vadd.f32 %v11531_v39, %v18077_v38  ;;  %v18205_v6 = vpop.f32.mrf.mxu0 }
 0x705   : > { %v11533_v43 = vpop.f32.mrf.mxu1 }
 0x706   : > { %v11534_v2 = vadd.f32 %v11533_v43, %v11532_v26  ;;  %v18166_v1 = vadd.f32 %v17906_v60, %v9090_v0 }
 0x707   : > { %v11535_v36 = vpop.f32.mrf.mxu1 }
 0x708   : > { %v9095_v53 = vadd.f32 %v11534_v2, %v18081_v61  ;;  %v18211_v2 = vpop.f32.mrf.mxu0 }
 0x709   : > { %v11536_v30 = vpop.f32.mrf.mxu1 }
 0x70a   : > { %v11537_v42 = vadd.f32 %v11536_v30, %v11535_v36  ;;  %v18172_v49 = vadd.f32 %v17918_v17, %v9095_v53 }
 0x70b   : > { %v11538_v14 = vpop.f32.mrf.mxu1 }
 0x70c   : > { %v9098_v38 = vadd.f32 %v11537_v42, %v18091_v10  ;;  %v18217_v42 = vpop.f32.mrf.mxu0 }
 0x70d   : > { %v11539_v3 = vpop.f32.mrf.mxu1 }
 0x70e   : > { %v11540_v27 = vadd.f32 %v11539_v3, %v11538_v14  ;;  %v18178_v60 = vadd.f32 %v17924_v16, %v9098_v38 }
 0x70f   : > { %v11541_v21 = vpop.f32.mrf.mxu1 }
 0x710   : > { %v9103_v61 = vadd.f32 %v11540_v27, %v18095_v5  ;;  %v18223_v27 = vpop.f32.mrf.mxu0 }
 0x711   : > { %v11542_v41 = vpop.f32.mrf.mxu1 }
 0x712   : > { %v11543_v40 = vadd.f32 %v11542_v41, %v11541_v21  ;;  %v18184_v17 = vadd.f32 %v17936_v56, %v9103_v61 }
 0x713   : > { %v11544_v45 = vpop.f32.mrf.mxu1 }
 0x714   : > { %v9106_v10 = vadd.f32 %v11543_v40, %v18105_v51  ;;  %v18229_v40 = vpop.f32.mrf.mxu0 }
 0x715   : > { %v11545_v57 = vpop.f32.mrf.mxu1 }
 0x716   : > { %v11546_v15 = vadd.f32 %v11545_v57, %v11544_v45  ;;  %v18190_v16 = vadd.f32 %v17942_v33, %v9106_v10 }
 0x717   : > { %v11547_v19 = vpop.f32.mrf.mxu1 }
 0x718   : > { %v9111_v5 = vadd.f32 %v11546_v15, %v18109_v35  ;;  %v18235_v15 = vpop.f32.mrf.mxu0 }
 0x719   : > { %v11548_v34 = vpop.f32.mrf.mxu1 }
 0x71a   : > { %v11549_v55 = vadd.f32 %v11548_v34, %v11547_v19  ;;  %v18196_v56 = vadd.f32 %v17954_v50, %v9111_v5 }
 0x71b   : > { %v11550_v25 = vpop.f32.mrf.mxu1 }
 0x71c   : > { %v9114_v51 = vadd.f32 %v11549_v55, %v18119_v11 }
 0x71d   : > { %v11551_v7 = vpop.f32.mrf.mxu1 }
 0x71e   : > { %v11552_v9 = vadd.f32 %v11551_v7, %v11550_v25  ;;  %v18202_v33 = vadd.f32 %v17960_v59, %v9114_v51  ;;  %v18243_v25 = vpop.f32.mrf.mxu0 }
 0x71f   : > { %v11553_v39 = vpop.f32.mrf.mxu1 }
 0x720   : > { %v9119_v35 = vadd.f32 %v11552_v9, %v18123_v54 }
 0x721   : > { %v11554_v26 = vpop.f32.mrf.mxu1 }
 0x722   : > { %v11555_v0 = vadd.f32 %v11554_v26, %v11553_v39  ;;  %v18208_v50 = vadd.f32 %v17972_v22, %v9119_v35  ;;  %v18250_v39 = vpop.f32.mrf.mxu0 }
 0x723   : > { %v11636_v43 = vpop.f32.mrf.mxu1 }
 0x724   : > { %v9122_v11 = vadd.f32 %v11555_v0, %v18130_v63 }
 0x725   : > { %v11637_v36 = vpop.f32.mrf.mxu1 }
 0x726   : > { %v11638_v53 = vadd.f32 %v11637_v36, %v11636_v43  ;;  %v18214_v59 = vadd.f32 %v17978_v4, %v9122_v11 }
 0x727   : > { %v11639_v30 = vpop.f32.mrf.mxu1 }
 0x728   : > { %v9257_v54 = vadd.f32 %v11638_v53, %v18134_v13 }
 0x729   : > { %v11640_v14 = vpop.f32.mrf.mxu1 }
 0x72a   : > { %v11641_v38 = vadd.f32 %v11640_v14, %v11639_v30  ;;  %v18220_v22 = vadd.f32 %v17994_v20, %v9257_v54 }
 0x72b   : > { %v11642_v3 = vpop.f32.mrf.mxu1 }
 0x72c   : > { %v9260_v63 = vadd.f32 %v11641_v38, %v18138_v8 }
 0x72d   : > { %v11643_v21 = vpop.f32.mrf.mxu1 }
 0x72e   : > { %v11644_v61 = vadd.f32 %v11643_v21, %v11642_v3  ;;  %v18226_v4 = vadd.f32 %v18003_v32, %v9260_v63 }
 0x72f   : > { %v11645_v41 = vpop.f32.mrf.mxu1 }
 0x730   : > { %v9265_v13 = vadd.f32 %v11644_v61, %v18142_v29  ;;  %v11714_v29 = vadd.f32 %v18163_v37, %v18157_v44  ;;  %v18255_v44 = vpop.f32.mrf.mxu0 }
 0x731   : > { %v11646_v45 = vpop.f32.mrf.mxu1 }
 0x732   : > { %v11647_v10 = vadd.f32 %v11646_v45, %v11645_v41  ;;  %v18232_v20 = vadd.f32 %v18018_v58, %v9265_v13  ;;  %v18260_v36 = vpop.f32.mrf.mxu0 }
 0x733   : > { %v11648_v57 = vpop.f32.mrf.mxu1 }
 0x734   : > { %v9268_v8 = vadd.f32 %v11647_v10, %v18146_v48  ;;  %v18265_v14 = vpop.f32.mrf.mxu0 }
 0x735   : > { %v11649_v19 = vpop.f32.mrf.mxu1 }
 0x736   : > { %v11650_v5 = vadd.f32 %v11649_v19, %v11648_v57  ;;  %v18238_v32 = vadd.f32 %v18027_v12, %v9268_v8  ;;  %v18270_v21 = vpop.f32.mrf.mxu0 }
 0x737   : > { %v11651_v34 = vpop.f32.mrf.mxu1 }
 0x738   : > { %v9273_v55 = vadd.f32 %v11650_v5, %v18150_v31  ;;  %v18275_v45 = vpop.f32.mrf.mxu0 }
 0x739   : > { %v11652_v58 = vpop.f32.mrf.mxu1 }
 0x73a   : > { %v11653_v51 = vadd.f32 %v11652_v58, %v11651_v34  ;;  %v18245_v7 = vadd.f32 %v11714_v29, %v9273_v55  ;;  %v18280_v19 = vpop.f32.mrf.mxu0 }
 0x73b   : > { %v11654_v48 = vpop.f32.mrf.mxu1 }
 0x73c   : > { %v18248_v9 = vadd.f32 %v11653_v51, %v18154_v28  ;;  %v18285_v55 = vpop.f32.mrf.mxu0 }
 0x73d   : > { %v11655_v12 = vpop.f32.mrf.mxu1 }
 0x73e   : > { %v11656_v35 = vadd.f32 %v11655_v12, %v11654_v48  ;;  %v18290_v12 = vpop.f32.mrf.mxu0 }
 0x73f   : > { %v11657_v26 = vpop.f32.mrf.mxu1 }
 0x740   : > { %v18253_v0 = vadd.f32 %v11656_v35, %v18160_v46 }
 0x741   : > { %v11658_v31 = vpop.f32.mrf.mxu1 }
 0x742   : > { %v11659_v37 = vadd.f32 %v11658_v31, %v11657_v26 }
 0x743   : > { %v11660_v43 = vpop.f32.mrf.mxu1 }
 0x744   : > { %v18258_v11 = vadd.f32 %v11659_v37, %v18166_v1  ;;  %v11962_v37 = vpop.f32.mrf.mxu0 }
 0x745   : > { %v11661_v28 = vpop.f32.mrf.mxu1 }
 0x746   : > { %v11662_v53 = vadd.f32 %v11661_v28, %v11660_v43 }
 0x747   : > { %v11663_v30 = vpop.f32.mrf.mxu1 }
 0x748   : > { %v18263_v54 = vadd.f32 %v11662_v53, %v18172_v49 }
 0x749   : > { %v11664_v46 = vpop.f32.mrf.mxu1 }
 0x74a   : > { %v11665_v38 = vadd.f32 %v11664_v46, %v11663_v30  ;;  %v9547_v30 = vpop.f32.mrf.mxu0 }
 0x74b   : > { %v11666_v3 = vpop.f32.mrf.mxu1 }
 0x74c   : > { %v18268_v63 = vadd.f32 %v11665_v38, %v18178_v60 }
 0x74d   : > { %v11667_v1 = vpop.f32.mrf.mxu1 }
 0x74e   : > { %v11668_v61 = vadd.f32 %v11667_v1, %v11666_v3  ;;  %v11963_v1 = vpop.f32.mrf.mxu0 }
 0x74f   : > { %v11669_v41 = vpop.f32.mrf.mxu1 }
 0x750   : > { %v18273_v13 = vadd.f32 %v11668_v61, %v18184_v17 }
 0x751   : > { %v11670_v49 = vpop.f32.mrf.mxu1 }
 0x752   : > { %v11671_v10 = vadd.f32 %v11670_v49, %v11669_v41  ;;  %v9550_v49 = vpop.f32.mrf.mxu0 }
 0x753   : > { %v11672_v57 = vpop.f32.mrf.mxu1 }
 0x754   : > { %v18278_v8 = vadd.f32 %v11671_v10, %v18190_v16 }
 0x755   : > { %v11673_v60 = vpop.f32.mrf.mxu1 }
 0x756   : > { %v11674_v5 = vadd.f32 %v11673_v60, %v11672_v57  ;;  %v11966_v57 = vpop.f32.mrf.mxu0 }
 0x757   : > { %v11675_v34 = vpop.f32.mrf.mxu1 }
 0x758   : > { %v18283_v29 = vadd.f32 %v11674_v5, %v18196_v56 }
 0x759   : > { %v11676_v17 = vpop.f32.mrf.mxu1 }
 0x75a   : > { %v11677_v58 = vadd.f32 %v11676_v17, %v11675_v34  ;;  %v9563_v34 = vpop.f32.mrf.mxu0 }
 0x75b   : > { %v11678_v51 = vpop.f32.mrf.mxu1 }
 0x75c   : > { %v18288_v48 = vadd.f32 %v11677_v58, %v18202_v33 }
 0x75d   : > { %v11679_v16 = vpop.f32.mrf.mxu1 }
 0x75e   : > { %v11680_v35 = vadd.f32 %v11679_v16, %v11678_v51  ;;  %v11717_v51 = vadd.f32 %v18175_v62, %v18169_v52 }
 0x75f   : > { %v11681_v26 = vpop.f32.mrf.mxu1 }
 0x760   : > { %v18293_v31 = vadd.f32 %v11680_v35, %v18208_v50 }
 0x761   : > { %v11682_v43 = vpop.f32.mrf.mxu1 }
 0x762   : > { %v11683_v56 = vadd.f32 %v11682_v43, %v11681_v26  ;;  %v9373_v43 = vadd.f32 %v11717_v51, %v18248_v9 }
 0x763   : > { %v11764_v28 = vpop.f32.mrf.mxu1 }
 0x764   : > { %v18296_v53 = vadd.f32 %v11683_v56, %v18214_v59 }
 0x765   : > { %v11765_v46 = vpop.f32.mrf.mxu1 }
 0x766   : > { %v11766_v38 = vadd.f32 %v11765_v46, %v11764_v28 }
 0x767   : > { %v11767_v33 = vpop.f32.mrf.mxu1 }
 0x768   : > { %v9451_v3 = vadd.f32 %v11766_v38, %v18220_v22  ;;  %v11967_v22 = vpop.f32.mrf.mxu0 }
 0x769   : > { %v11768_v61 = vpop.f32.mrf.mxu1 }
 0x76a   : > { %v11769_v17 = vadd.f32 %v11768_v61, %v11767_v33  ;;  %v18304_v28 = vadd.f32 %v9547_v30, %v9451_v3  ;;  %v11720_v61 = vadd.f32 %v18187_v24, %v18181_v47  ;;  %v11723_v47 = vadd.f32 %v18199_v18, %v18193_v23 }
 0x76b   : > { %v11770_v41 = vpop.f32.mrf.mxu1 }
 0x76c   : > { %v9454_v26 = vadd.f32 %v11769_v17, %v18226_v4  ;;  %v9378_v4 = vadd.f32 %v11720_v61, %v18253_v0 }
 0x76d   : > { %v11771_v10 = vpop.f32.mrf.mxu1 }
 0x76e   : > { %v11772_v46 = vadd.f32 %v11771_v10, %v11770_v41 }
 0x76f   : > { %v11773_v50 = vpop.f32.mrf.mxu1 }
 0x770   : > { %v9459_v30 = vadd.f32 %v11772_v46, %v18232_v20 }
 0x771   : > { %v11774_v60 = vpop.f32.mrf.mxu1 }
 0x772   : > { %v11775_v3 = vadd.f32 %v11774_v60, %v11773_v50  ;;  %v18323_v51 = vadd.f32 %v11962_v37, %v9459_v30 }
 0x773   : > { %v11776_v5 = vpop.f32.mrf.mxu1 }
 0x774   : > { %v9462_v0 = vadd.f32 %v11775_v3, %v18238_v32 }
 0x775   : > { %v11777_v58 = vpop.f32.mrf.mxu1 }
 0x776   : > { %v11778_v59 = vadd.f32 %v11777_v58, %v11776_v5  ;;  %v18312_v58 = vadd.f32 %v9550_v49, %v9454_v26  ;;  %v9381_v49 = vadd.f32 %v11723_v47, %v18258_v11 }
 0x777   : > { %v11779_v16 = vpop.f32.mrf.mxu1 }
 0x778   : > { %v9467_v35 = vadd.f32 %v11778_v59, %v18245_v7  ;;  %v9566_v7 = vpop.f32.mrf.mxu0 }
 0x779   : > { %v11780_v56 = vpop.f32.mrf.mxu1 }
 0x77a   : > { %v18306_v38 = vadd.f32 %v9563_v34, %v9467_v35  ;;  %v11781_v33 = vadd.f32 %v11780_v56, %v11779_v16  ;;  %v18330_v35 = vadd.f32 %v11963_v1, %v9462_v0  ;;  %v11732_v1 = vadd.f32 %v18235_v15, %v18229_v40 }
 0x77b   : > { %v11782_v5 = vpop.f32.mrf.mxu1  ;;  %v11738_v15 = vadd.f32 %v18260_v36, %v18255_v44  ;;  %v11741_v36 = vadd.f32 %v18270_v21, %v18265_v14 }
 0x77c   : > { %v9470_v52 = vadd.f32 %v11781_v33, %v9373_v43  ;;  %v9610_v62 = vmax.f32 %v18304_v28, %v18306_v38  ;;  %v9394_v47 = vadd.f32 %v11732_v1, %v18273_v13  ;;  %v11747_v13 = vadd.f32 %v18290_v12, %v18285_v55 }
 0x77d   : > { %v11783_v9 = vpop.f32.mrf.mxu1  ;;  %v9402_v44 = vadd.f32 %v11738_v15, %v18283_v29 }
 0x77e   : > { %v18316_v41 = vadd.f32 %v9566_v7, %v9470_v52  ;;  %v11784_v10 = vadd.f32 %v11783_v9, %v11782_v5  ;;  %v11970_v9 = vpop.f32.mrf.mxu0 }
 0x77f   : > { %v11785_v24 = vpop.f32.mrf.mxu1 }
 0x780   : > { %v9475_v34 = vadd.f32 %v11784_v10, %v9378_v4  ;;  %v9611_v17 = vmax.f32 %v18312_v58, %v18316_v41  ;;  %v11744_v10 = vadd.f32 %v18280_v19, %v18275_v45  ;;  %v11729_v45 = vadd.f32 %v18223_v27, %v18217_v42  ;;  %v9579_v19 = vpop.f32.mrf.mxu0 }
 0x781   : > { %v11786_v59 = vpop.f32.mrf.mxu1  ;;  %v9413_v27 = vadd.f32 %v11747_v13, %v18296_v53 }
 0x782   : > { %v18326_v20 = vadd.f32 %v11966_v57, %v9475_v34  ;;  %v11787_v50 = vadd.f32 %v11786_v59, %v11785_v24  ;;  %v11735_v34 = vadd.f32 %v18250_v39, %v18243_v25 }
 0x783   : > { %v11788_v60 = vpop.f32.mrf.mxu1 }
 0x784   : > { %v9478_v16 = vadd.f32 %v11787_v50, %v9381_v49  ;;  %v9612_v23 = vmax.f32 %v18323_v51, %v18326_v20  ;;  %v9410_v51 = vadd.f32 %v11744_v10, %v18293_v31  ;;  %v9397_v25 = vadd.f32 %v11735_v34, %v18278_v8  ;;  %v11971_v8 = vpop.f32.mrf.mxu0 }
 0x785   : > { %v11789_v18 = vpop.f32.mrf.mxu1  ;;  %v9389_v31 = vadd.f32 %v11729_v45, %v18268_v63 }
 0x786   : > { %v18332_v26 = vadd.f32 %v11967_v22, %v9478_v16  ;;  %v11726_v22 = vadd.f32 %v18211_v2, %v18205_v6  ;;  %v11790_v30 = vadd.f32 %v11789_v18, %v11788_v60 }
 0x787   : > { %v11791_v43 = vpop.f32.mrf.mxu1 }
 0x788   : > { %v9613_v11 = vmax.f32 %v18330_v35, %v18332_v26  ;;  %v9386_v49 = vadd.f32 %v11726_v22, %v18263_v54 }
 0x789   : > { %v11792_v37 = vpop.f32.mrf.mxu1 }
 0x78a   : > { %v9483_v0 = vadd.f32 %v11790_v30, %v9386_v49  ;;  %v11793_v54 = vadd.f32 %v11792_v37, %v11791_v43  ;;  %v9405_v37 = vadd.f32 %v11741_v36, %v18288_v48 }
 0x78b   : > { %v11794_v56 = vpop.f32.mrf.mxu1 }
 0x78d   : > { %v11795_v32 = vpop.f32.mrf.mxu1 }
 0x78e   : > { %v11796_v4 = vadd.f32 %v11795_v32, %v11794_v56  ;;  %v9580_v56 = vadd.f32 %v9579_v19, %v9483_v0  ;;  %v9486_v32 = vadd.f32 %v11793_v54, %v9389_v31 }
 0x78f   : > { %v11797_v57 = vpop.f32.mrf.mxu1 }
 0x790   : > { %v9491_v6 = vadd.f32 %v11796_v4, %v9394_v47 }
 0x791   : > { %v11798_v46 = vpop.f32.mrf.mxu1 }
 0x792   : > { %v11799_v59 = vadd.f32 %v11798_v46, %v11797_v57  ;;  %v9588_v12 = vadd.f32 %v11970_v9, %v9491_v6 }
 0x793   : > { %v11800_v33 = vpop.f32.mrf.mxu1 }
 0x794   : > { %v9494_v60 = vadd.f32 %v11799_v59, %v9397_v25 }
 0x795   : > { %v11801_v61 = vpop.f32.mrf.mxu1 }
 0x796   : > { %v11802_v2 = vadd.f32 %v11801_v61, %v11800_v33  ;;  %v9591_v14 = vadd.f32 %v11971_v8, %v9494_v60 }
 0x797   : > { %v11803_v5 = vpop.f32.mrf.mxu1 }
 0x798   : > { %v9499_v18 = vadd.f32 %v11802_v2, %v9402_v44 }
 0x799   : > { %v11804_v52 = vpop.f32.mrf.mxu1 }
 0x79a   : > { %v11805_v55 = vadd.f32 %v11804_v52, %v11803_v5  ;;  %v9582_v5 = vpop.f32.mrf.mxu0  ;;  %v10963_v52 = vld [vmem:[%s18384_s5] ss:$0 sm:$0xff] }
 0x79b   : > { %v11806_v7 = vpop.f32.mrf.mxu1  ;;  %v9583_v4 = vadd.f32 %v9582_v5, %v9486_v32 }
 0x79c   : > { %v9502_v53 = vadd.f32 %v11805_v55, %v9405_v37 }
 0x79d   : > { %v11807_v3 = vpop.f32.mrf.mxu1 }
 0x79e   : > { %v11808_v24 = vadd.f32 %v11807_v3, %v11806_v7 }
 0x79f   : > { %v11809_v40 = vpop.f32.mrf.mxu1 }
 0x7a0   : > { %v9507_v50 = vadd.f32 %v11808_v24, %v9410_v51 }
 0x7a1   : > { %v11810_v39 = vpop.f32.mrf.mxu1 }
 0x7a2   : > { %v11811_v20 = vadd.f32 %v11810_v39, %v11809_v40 }
 0x7a3   : > { %v11974_v42 = vpop.f32.mrf.mxu1 }
 0x7a4   : > { %v9604_v16 = vadd.f32 %v11974_v42, %v9507_v50  ;;  %v9510_v46 = vadd.f32 %v11811_v20, %v9413_v27 }
 0x7a5   : > { %v9595_v43 = vpop.f32.mrf.mxu1 }
 0x7a6   : > { %v9616_v29 = vmax.f32 %v9588_v12, %v9604_v16  ;;  %v9596_v57 = vadd.f32 %v9595_v43, %v9499_v18 }
 0x7a7   : > { %v11975_v21 = vpop.f32.mrf.mxu1 }
 0x7a8   : > { %v9620_v63 = vmax.f32 %v9612_v23, %v9616_v29  ;;  %v9614_v33 = vmax.f32 %v9580_v56, %v9596_v57  ;;  %v9607_v61 = vadd.f32 %v11975_v21, %v9510_v46 }
 0x7a9   : > { %v9598_v7 = vpop.f32.mrf.mxu1 }
 0x7aa   : > { %v9618_v48 = vmax.f32 %v9610_v62, %v9614_v33  ;;  %v9617_v1 = vmax.f32 %v9591_v14, %v9607_v61  ;;  %v9599_v22 = vadd.f32 %v9598_v7, %v9502_v53  ;;  %v9631_v9 = vadd.f32 %v10963_v52, %v9620_v63 }
 0x7ac   : > { %v9621_v23 = vmax.f32 %v9613_v11, %v9617_v1  ;;  %v9615_v30 = vmax.f32 %v9583_v4, %v9599_v22  ;;  %v9629_v3 = vadd.f32 %v10963_v52, %v9618_v48  ;;  %v9635_v24 = vmax.f32 %v9631_v9, 0.0 }
 0x7ae   : > { %v9632_v10 = vadd.f32 %v10963_v52, %v9621_v23  ;;  %v9619_v47 = vmax.f32 %v9611_v17, %v9615_v30  ;;  %v9633_v38 = vmax.f32 %v9629_v3, 0.0 }
 0x7b0   : > { %v9636_v34 = vmax.f32 %v9632_v10, 0.0  ;;  %v9630_v28 = vadd.f32 %v10963_v52, %v9619_v47 }
 0x7b2   : > { %v10983_v62 = vpack.c.bf16 %v9636_v34, %v9635_v24  ;;  %v9634_v49 = vmax.f32 %v9630_v28, 0.0 }
 0x7b4   : > { %10985 = vst [vmem:[%s251_s8 + $0x8] sm:$0xff] %v10983_v62   ;;  %v10978_v35 = vpack.c.bf16 %v9634_v49, %v9633_v38 }
 0x7b6   : > { %10979 = vst [vmem:[%s251_s8] sm:$0xff] %v10978_v35  }
 0x7b7 PF: > { %s16_s21 = sadd.s32 1, %s12873_s21  }
 0x7b8   : > { %p13_p4 = scmp.ge.s32.totalorder %s16_s21, 4  }
 0x7ba   :  { %15 = sbr.rel (!%p13_p4) target bundleno = 1 (0x1), region = 98 }

// kernel: simple_cnn_header_forward.3
= control target key start
LH: loop header
LB: loop body
LE: loop exit
PB: predicated region body
PF: predicated region fallthrough
CT: control target
= control target key end

     0   :  { %v553_v28 = vlaneseq  ;;  %v4023_v36 = vmov 1966171168   ;;  %s4916_s0 = inlined_call_operand.vmem [shape: bf16[2,4096], index: 0, kind: input, shape index: {}]   ;;  %s4917_s1 = inlined_call_operand.vmem [shape: bf16[4096,128], index: 1, kind: input, shape index: {}]   ;;  %s4918_s2 = inlined_call_operand.vmem [shape: f32[1,128], index: 2, kind: input, shape index: {}]   ;;  %s4919_s3 = inlined_call_operand.vmem [shape: bf16[128,128], index: 3, kind: input, shape index: {}]   ;;  %s4920_s4 = inlined_call_operand.vmem [shape: f32[1,128], index: 4, kind: input, shape index: {}]   ;;  %s4921_s5 = inlined_call_operand.hbm [shape: f32[2,128], index: 5, kind: output, shape index: {}]  }
   0x1   :  { %v3733_v0 = vld [vmem:[%s4917_s1 + $0x78] sm:$0xff]   ;;  %v3737_v4 = vld [vmem:[%s4917_s1 + $0x70] sm:$0xff]   ;;  %v3741_v8 = vld [vmem:[%s4917_s1 + $0x68] sm:$0xff]   ;;  %v551_v37 = vunpack.c.l.s4 %v4023_v36 }
   0x2   :  { %v3734_v1 = vld [vmem:[%s4917_s1 + $0xf8] sm:$0xff]   ;;  %3348 = vmatprep.subr.bf16.mxu0 %v3733_v0  ;;  %v3738_v5 = vld [vmem:[%s4917_s1 + $0xf0] sm:$0xff]   ;;  %v3742_v9 = vld [vmem:[%s4917_s1 + $0xe8] sm:$0xff]   ;;  %v554_v33 = vshrl.u32 %v553_v28, 7 }
   0x3   :  { %v3735_v2 = vld [vmem:[%s4917_s1 + $0x38] sm:$0xff]   ;;  %3370 = vmatprep.subr.bf16.mxu1 %v3734_v1  ;;  %v3739_v6 = vld [vmem:[%s4917_s1 + $0x30] sm:$0xff]   ;;  %v3743_v10 = vld [vmem:[%s4917_s1 + $0x28] sm:$0xff]   ;;  %v552_v40 = vunpack.c.0.s8 %v551_v37 }
   0x4   :  { %v3736_v3 = vld [vmem:[%s4917_s1 + $0xb8] sm:$0xff]   ;;  %3349 = vmatpush3.bf16.msra.mxu0 %v3735_v2  ;;  %v3740_v7 = vld [vmem:[%s4917_s1 + $0xb0] sm:$0xff]   ;;  %v3744_v11 = vld [vmem:[%s4917_s1 + $0xa8] sm:$0xff]  }
   0x5   :  { %3371 = vmatpush3.bf16.msra.mxu1 %v3736_v3  ;;  %3350 = vmatprep.subr.bf16.mxu0 %v3737_v4  ;;  %v3745_v12 = vld [vmem:[%s4917_s1 + $0x60] sm:$0xff]   ;;  %v3749_v16 = vld [vmem:[%s4917_s1 + $0x58] sm:$0xff]   ;;  %v3753_v20 = vld [vmem:[%s4917_s1 + $0x50] sm:$0xff]   ;;  %v4162_v41 = vsub.s32 %v552_v40, %v554_v33 }
   0x6   :  { %3372 = vmatprep.subr.bf16.mxu1 %v3738_v5  ;;  %v3746_v13 = vld [vmem:[%s4917_s1 + $0xe0] sm:$0xff]   ;;  %v3750_v17 = vld [vmem:[%s4917_s1 + $0xd8] sm:$0xff]   ;;  %v3754_v21 = vld [vmem:[%s4917_s1 + $0xd0] sm:$0xff]  }
   0x7   :  { %v3747_v14 = vld [vmem:[%s4917_s1 + $0x20] sm:$0xff]   ;;  %v3751_v18 = vld [vmem:[%s4917_s1 + $0x18] sm:$0xff]   ;;  %v3755_v22 = vld [vmem:[%s4917_s1 + $0x10] sm:$0xff]  }
   0x8   :  { %3351 = vmatpush3.bf16.msra.mxu0 %v3739_v6  ;;  %v3748_v15 = vld [vmem:[%s4917_s1 + $0xa0] sm:$0xff]   ;;  %v3752_v19 = vld [vmem:[%s4917_s1 + $0x98] sm:$0xff]   ;;  %v3756_v23 = vld [vmem:[%s4917_s1 + $0x90] sm:$0xff]  }
   0x9   :  { %3373 = vmatpush3.bf16.msra.mxu1 %v3740_v7  ;;  %3352 = vmatprep.subr.bf16.mxu0 %v3741_v8  ;;  %v3757_v24 = vld [vmem:[%s4917_s1 + $0x48] sm:$0xff]   ;;  %v3761_v29 = vld [vmem:[%s4917_s1 + $0x40] sm:$0xff]   ;;  %v3766_v35 = vld [vmem:[%s4917_s1 + $0x178] sm:$0xff]  }
   0xa   :  { %3374 = vmatprep.subr.bf16.mxu1 %v3742_v9  ;;  %v3758_v25 = vld [vmem:[%s4917_s1 + $0xc8] sm:$0xff]   ;;  %v3762_v30 = vld [vmem:[%s4917_s1 + $0xc0] sm:$0xff]   ;;  %v3767_v38 = vld [vmem:[%s4917_s1 + $0x1f8] sm:$0xff]  }
   0xb   :  { %v3759_v26 = vld [vmem:[%s4917_s1 + $0x8] sm:$0xff]   ;;  %v3763_v31 = vld [vmem:[%s4917_s1] sm:$0xff]   ;;  %v3768_v47 = vld [vmem:[%s4917_s1 + $0x138] sm:$0xff]  }
   0xc   :  { %3353 = vmatpush3.bf16.msra.mxu0 %v3743_v10  ;;  %v3760_v27 = vld [vmem:[%s4917_s1 + $0x88] sm:$0xff]   ;;  %v3764_v32 = vld [vmem:[%s4917_s1 + $0x80] sm:$0xff]   ;;  %v3769_v49 = vld [vmem:[%s4917_s1 + $0x1b8] sm:$0xff]  }
   0xd   :  { %3375 = vmatpush3.bf16.msra.mxu1 %v3744_v11  ;;  %3354 = vmatprep.subr.bf16.mxu0 %v3745_v12  ;;  %v22_v34 = vld [vmem:[%s4916_s0] sm:$0xff]  ;;  %v3770_v52 = vld [vmem:[%s4917_s1 + $0x170] sm:$0xff]   ;;  %v3774_v58 = vld [vmem:[%s4917_s1 + $0x168] sm:$0xff]  }
   0xe   :  { %3376 = vmatprep.subr.bf16.mxu1 %v3746_v13  ;;  %v549_v39 = vcombine.high %v22_v34, %v22_v34  ;;  %v556_v42 = vrot.slane %v22_v34, %v4162_v41  ;;  %v3771_v54 = vld [vmem:[%s4917_s1 + $0x1f0] sm:$0xff]   ;;  %v3775_v59 = vld [vmem:[%s4917_s1 + $0x1e8] sm:$0xff]   ;;  %v3778_v62 = vld [vmem:[%s4917_s1 + $0x160] sm:$0xff]  }
   0xf   :  { %v3772_v55 = vld [vmem:[%s4917_s1 + $0x130] sm:$0xff]   ;;  %v3776_v60 = vld [vmem:[%s4917_s1 + $0x128] sm:$0xff]   ;;  %v3779_v63 = vld [vmem:[%s4917_s1 + $0x1e0] sm:$0xff]  }
  0x10   :  { %3355 = vmatpush3.bf16.msra.mxu0 %v3747_v14  ;;  %v4166_v43 = vrot.slane %v549_v39, %v4162_v41  ;;  %v564_v44 = vcombine.high %v556_v42, %v556_v42  ;;  %v572_v45 = vrot.slane %v556_v42, %v4162_v41  ;;  %v3773_v57 = vld [vmem:[%s4917_s1 + $0x1b0] sm:$0xff]   ;;  %v3777_v61 = vld [vmem:[%s4917_s1 + $0x1a8] sm:$0xff]   ;;  %v3780_v0 = vld [vmem:[%s4917_s1 + $0x120] sm:$0xff]  }
  0x11   :  { %3377 = vmatpush3.bf16.msra.mxu1 %v3748_v15  ;;  %3356 = vmatprep.subr.bf16.mxu0 %v3749_v16  ;;  %v3781_v1 = vld [vmem:[%s4917_s1 + $0x1a0] sm:$0xff]   ;;  %v3782_v2 = vld [vmem:[%s4917_s1 + $0x158] sm:$0xff]   ;;  %v3786_v6 = vld [vmem:[%s4917_s1 + $0x150] sm:$0xff]  }
  0x12   :  { %3378 = vmatprep.subr.bf16.mxu1 %v3750_v17  ;;  %v565_v46 = vcombine.high %v4166_v43, %v4166_v43  ;;  %v586_v48 = vrot.slane %v564_v44, %v4162_v41  ;;  %v594_v51 = vcombine.high %v572_v45, %v572_v45  ;;  %v3783_v3 = vld [vmem:[%s4917_s1 + $0x1d8] sm:$0xff]   ;;  %v3787_v7 = vld [vmem:[%s4917_s1 + $0x1d0] sm:$0xff]   ;;  %v3790_v10 = vld [vmem:[%s4917_s1 + $0x148] sm:$0xff]  }
  0x13   :  { %v3784_v4 = vld [vmem:[%s4917_s1 + $0x118] sm:$0xff]   ;;  %v3788_v8 = vld [vmem:[%s4917_s1 + $0x110] sm:$0xff]   ;;  %v3791_v11 = vld [vmem:[%s4917_s1 + $0x1c8] sm:$0xff]  }
  0x14   :  { %3357 = vmatpush3.bf16.msra.mxu0 %v3751_v18  ;;  %v593_v50 = vrot.slane %v565_v46, %v4162_v41  ;;  %2345 = vmatprep.mubr.bf16.mxu0 %v586_v48  ;;  %v596_v53 = vcombine.high %v586_v48, %v586_v48  ;;  %v3785_v5 = vld [vmem:[%s4917_s1 + $0x198] sm:$0xff]   ;;  %v3789_v9 = vld [vmem:[%s4917_s1 + $0x190] sm:$0xff]   ;;  %v3792_v12 = vld [vmem:[%s4917_s1 + $0x108] sm:$0xff]   ;;  %v579_v18 = vrot.slane %v4166_v43, %v4162_v41 }
  0x15   :  { %3379 = vmatpush3.bf16.msra.mxu1 %v3752_v19  ;;  %3358 = vmatprep.subr.bf16.mxu0 %v3753_v20  ;;  %v3793_v13 = vld [vmem:[%s4917_s1 + $0x188] sm:$0xff]   ;;  %v3794_v14 = vld [vmem:[%s4917_s1 + $0x140] sm:$0xff]   ;;  %v3798_v19 = vld [vmem:[%s4917_s1 + $0x278] sm:$0xff]  }
  0x16   :  { %3380 = vmatprep.subr.bf16.mxu1 %v3754_v21  ;;  %v597_v56 = vcombine.high %v593_v50, %v593_v50  ;;  %2385 = vmatprep.mubr.bf16.mxu1 %v596_v53  ;;  %v3795_v15 = vld [vmem:[%s4917_s1 + $0x1c0] sm:$0xff]   ;;  %v3799_v20 = vld [vmem:[%s4917_s1 + $0x2f8] sm:$0xff]   ;;  %v3806_v28 = vld [vmem:[%s4917_s1 + $0x268] sm:$0xff]  }
  0x17   :  { %v3796_v16 = vld [vmem:[%s4917_s1 + $0x100] sm:$0xff]   ;;  %v3800_v21 = vld [vmem:[%s4917_s1 + $0x238] sm:$0xff]   ;;  %v3818_v40 = vld [vmem:[%s4917_s1 + $0x250] sm:$0xff]  }
  0x18   :  { %3359 = vmatpush3.bf16.msra.mxu0 %v3755_v22  ;;  %v3797_v17 = vld [vmem:[%s4917_s1 + $0x180] sm:$0xff]   ;;  %v3801_v22 = vld [vmem:[%s4917_s1 + $0x2b8] sm:$0xff]   ;;  %v3819_v42 = vld [vmem:[%s4917_s1 + $0x2d0] sm:$0xff]  }
  0x19   :  { %3381 = vmatpush3.bf16.msra.mxu1 %v3756_v23  ;;  %3360 = vmatprep.subr.bf16.mxu0 %v3757_v24  ;;  %v595_v23 = vcombine.high %v579_v18, %v579_v18  ;;  %v3802_v24 = vld [vmem:[%s4917_s1 + $0x270] sm:$0xff]   ;;  %v3811_v33 = vld [vmem:[%s4917_s1 + $0x2e0] sm:$0xff]   ;;  %v3814_v36 = vld [vmem:[%s4917_s1 + $0x258] sm:$0xff]  }
  0x1a   :  { %3382 = vmatprep.subr.bf16.mxu1 %v3758_v25  ;;  %v3803_v25 = vld [vmem:[%s4917_s1 + $0x2f0] sm:$0xff]   ;;  %v3812_v34 = vld [vmem:[%s4917_s1 + $0x220] sm:$0xff]   ;;  %v3815_v37 = vld [vmem:[%s4917_s1 + $0x2d8] sm:$0xff]  }
  0x1b   :  { %v3817_v39 = vld [vmem:[%s4917_s1 + $0x298] sm:$0xff]   ;;  %v3820_v43 = vld [vmem:[%s4917_s1 + $0x210] sm:$0xff]   ;;  %v23_v46 = vld [vmem:[%s4916_s0 + $0x8] sm:$0xff] }
  0x1c   :  { %3361 = vmatpush3.bf16.msra.mxu0 %v3759_v26  ;;  %v3804_v26 = vld [vmem:[%s4917_s1 + $0x230] sm:$0xff]   ;;  %v605_v48 = vrot.slane %v23_v46, %v4162_v41 }
  0x1d   :  { %3383 = vmatpush3.bf16.msra.mxu1 %v3760_v27  ;;  %3362 = vmatprep.subr.bf16.mxu0 %v3761_v29  ;;  %v3805_v27 = vld [vmem:[%s4917_s1 + $0x2b0] sm:$0xff]   ;;  %v3807_v29 = vld [vmem:[%s4917_s1 + $0x2e8] sm:$0xff]  }
  0x1e   :  { %3384 = vmatprep.subr.bf16.mxu1 %v3762_v30  ;;  %v3808_v30 = vld [vmem:[%s4917_s1 + $0x228] sm:$0xff]   ;;  %v3821_v44 = vld [vmem:[%s4917_s1 + $0x290] sm:$0xff]  }
  0x20   :  { %3363 = vmatpush3.bf16.msra.mxu0 %v3763_v31  ;;  %v3809_v31 = vld [vmem:[%s4917_s1 + $0x2a8] sm:$0xff]  }
  0x21   :  { %3385 = vmatpush3.bf16.msra.mxu1 %v3764_v32  ;;  %3392 = vmatprep.subr.bf16.mxu0 %v3766_v35  ;;  %v3810_v32 = vld [vmem:[%s4917_s1 + $0x260] sm:$0xff]  }
  0x22   :  { %3414 = vmatprep.subr.bf16.mxu1 %v3767_v38  ;;  %v3813_v35 = vld [vmem:[%s4917_s1 + $0x2a0] sm:$0xff]   ;;  %v3816_v38 = vld [vmem:[%s4917_s1 + $0x218] sm:$0xff]  }
  0x23   :  { %2346 = vmatmul.mubr.bf16.vlgmr.msra.gmra.mxu0 %v572_v45  ;;  %v3822_v45 = vld [vmem:[%s4917_s1 + $0x248] sm:$0xff]  }
  0x24   :  { %3393 = vmatpush3.bf16.msra.mxu0 %v3768_v47  ;;  %2386 = vmatmul.mubr.bf16.vlgmr.msra.gmra.mxu1 %v594_v51  ;;  %v3823_v47 = vld [vmem:[%s4917_s1 + $0x2c8] sm:$0xff]  }
  0x25   :  { %3394 = vmatprep.subr.bf16.mxu0 %v3770_v52  ;;  %3415 = vmatpush3.bf16.msra.mxu1 %v3769_v49  ;;  %v598_v49 = vcombine.high %v23_v46, %v23_v46  ;;  %v3825_v51 = vld [vmem:[%s4917_s1 + $0x288] sm:$0xff]   ;;  %v613_v52 = vcombine.high %v605_v48, %v605_v48 }
  0x26   :  { %2425 = vmatprep.mubr.bf16.mxu0 %v593_v50  ;;  %3416 = vmatprep.subr.bf16.mxu1 %v3771_v54  ;;  %v3824_v50 = vld [vmem:[%s4917_s1 + $0x208] sm:$0xff]   ;;  %v3826_v54 = vld [vmem:[%s4917_s1 + $0x240] sm:$0xff]  }
  0x27   :  { %2465 = vmatprep.mubr.bf16.mxu1 %v597_v56  ;;  %v4354_v53 = vrot.slane %v598_v49, %v4162_v41  ;;  %v635_v56 = vrot.slane %v613_v52, %v4162_v41  ;;  %v3873_v46 = vld [vmem:[%s4917_s1 + $0x428] sm:$0xff]   ;;  %v3876_v49 = vld [vmem:[%s4917_s1 + $0x4e0] sm:$0xff]   ;;  %v3879_v52 = vld [vmem:[%s4917_s1 + $0x458] sm:$0xff]  }
  0x28   :  { %3395 = vmatpush3.bf16.msra.mxu0 %v3772_v55  ;;  %v3827_v55 = vld [vmem:[%s4917_s1 + $0x2c0] sm:$0xff]  }
  0x29   :  { %3396 = vmatprep.subr.bf16.mxu0 %v3774_v58  ;;  %3417 = vmatpush3.bf16.msra.mxu1 %v3773_v57  ;;  %v614_v57 = vcombine.high %v4354_v53, %v4354_v53  ;;  %v3828_v58 = vld [vmem:[%s4917_s1 + $0x200] sm:$0xff]  }
  0x2a   :  { %3418 = vmatprep.subr.bf16.mxu1 %v3775_v59  ;;  %v3829_v59 = vld [vmem:[%s4917_s1 + $0x280] sm:$0xff]  }
  0x2c   :  { %3397 = vmatpush3.bf16.msra.mxu0 %v3776_v60  ;;  %v645_v60 = vcombine.high %v635_v56, %v635_v56 }
  0x2d   :  { %3398 = vmatprep.subr.bf16.mxu0 %v3778_v62  ;;  %3419 = vmatpush3.bf16.msra.mxu1 %v3777_v61  ;;  %v621_v61 = vrot.slane %v605_v48, %v4162_v41  ;;  %v3830_v62 = vld [vmem:[%s4917_s1 + $0x378] sm:$0xff]   ;;  %v3875_v48 = vld [vmem:[%s4917_s1 + $0x460] sm:$0xff]  }
  0x2e   :  { %3420 = vmatprep.subr.bf16.mxu1 %v3779_v63  ;;  %v3831_v63 = vld [vmem:[%s4917_s1 + $0x3f8] sm:$0xff]  }
  0x30   :  { %3399 = vmatpush3.bf16.msra.mxu0 %v3780_v0  ;;  %v642_v0 = vrot.slane %v614_v57, %v4162_v41  ;;  %v3884_v57 = vld [vmem:[%s4917_s1 + $0x4d0] sm:$0xff]  }
  0x31   :  { %3400 = vmatprep.subr.bf16.mxu0 %v3782_v2  ;;  %3421 = vmatpush3.bf16.msra.mxu1 %v3781_v1  ;;  %v3832_v1 = vld [vmem:[%s4917_s1 + $0x338] sm:$0xff]  }
  0x32   :  { %3422 = vmatprep.subr.bf16.mxu1 %v3783_v3  ;;  %v3833_v2 = vld [vmem:[%s4917_s1 + $0x3b8] sm:$0xff]   ;;  %v643_v3 = vcombine.high %v621_v61, %v621_v61 }
  0x34   :  { %3401 = vmatpush3.bf16.msra.mxu0 %v3784_v4  ;;  %v3834_v4 = vld [vmem:[%s4917_s1 + $0x370] sm:$0xff]  }
  0x35   :  { %3402 = vmatprep.subr.bf16.mxu0 %v3786_v6  ;;  %3423 = vmatpush3.bf16.msra.mxu1 %v3785_v5  ;;  %v3835_v5 = vld [vmem:[%s4917_s1 + $0x3f0] sm:$0xff]   ;;  %v646_v6 = vcombine.high %v642_v0, %v642_v0 }
  0x36   :  { %3424 = vmatprep.subr.bf16.mxu1 %v3787_v7  ;;  %v3836_v7 = vld [vmem:[%s4917_s1 + $0x330] sm:$0xff]  }
  0x38   :  { %3403 = vmatpush3.bf16.msra.mxu0 %v3788_v8  ;;  %v3837_v8 = vld [vmem:[%s4917_s1 + $0x3b0] sm:$0xff]  }
  0x39   :  { %3404 = vmatprep.subr.bf16.mxu0 %v3790_v10  ;;  %3425 = vmatpush3.bf16.msra.mxu1 %v3789_v9  ;;  %v3838_v9 = vld [vmem:[%s4917_s1 + $0x368] sm:$0xff]  }
  0x3a   :  { %3426 = vmatprep.subr.bf16.mxu1 %v3791_v11  ;;  %v3839_v10 = vld [vmem:[%s4917_s1 + $0x3e8] sm:$0xff]  }
  0x3b   :  { %v3840_v11 = vld [vmem:[%s4917_s1 + $0x328] sm:$0xff]  }
  0x3c   :  { %3405 = vmatpush3.bf16.msra.mxu0 %v3792_v12  ;;  %v3841_v12 = vld [vmem:[%s4917_s1 + $0x3a8] sm:$0xff]  }
  0x3d   :  { %3406 = vmatprep.subr.bf16.mxu0 %v3794_v14  ;;  %3427 = vmatpush3.bf16.msra.mxu1 %v3793_v13  ;;  %v3842_v13 = vld [vmem:[%s4917_s1 + $0x360] sm:$0xff]  }
  0x3e   :  { %3428 = vmatprep.subr.bf16.mxu1 %v3795_v15  ;;  %v3843_v14 = vld [vmem:[%s4917_s1 + $0x3e0] sm:$0xff]  }
  0x3f   :  { %v3844_v15 = vld [vmem:[%s4917_s1 + $0x320] sm:$0xff]  }
  0x40   :  { %3407 = vmatpush3.bf16.msra.mxu0 %v3796_v16  ;;  %v3845_v16 = vld [vmem:[%s4917_s1 + $0x3a0] sm:$0xff]  }
  0x41   :  { %3436 = vmatprep.subr.bf16.mxu0 %v3798_v19  ;;  %3429 = vmatpush3.bf16.msra.mxu1 %v3797_v17  ;;  %v3846_v17 = vld [vmem:[%s4917_s1 + $0x358] sm:$0xff]  }
  0x42   :  { %3458 = vmatprep.subr.bf16.mxu1 %v3799_v20  ;;  %v3848_v19 = vld [vmem:[%s4917_s1 + $0x318] sm:$0xff]  }
  0x43   :  { %2426 = vmatmul.mubr.bf16.vlgmr.msra.gmra.mxu0 %v579_v18  ;;  %v3847_v18 = vld [vmem:[%s4917_s1 + $0x3d8] sm:$0xff]  }
  0x44   :  { %3437 = vmatpush3.bf16.msra.mxu0 %v3800_v21  ;;  %2466 = vmatmul.mubr.bf16.vlgmr.msra.gmra.mxu1 %v595_v23  ;;  %v3849_v20 = vld [vmem:[%s4917_s1 + $0x398] sm:$0xff]   ;;  %v3850_v21 = vld [vmem:[%s4917_s1 + $0x350] sm:$0xff]  }
  0x45   :  { %3438 = vmatprep.subr.bf16.mxu0 %v3802_v24  ;;  %3459 = vmatpush3.bf16.msra.mxu1 %v3801_v22  ;;  %v3851_v22 = vld [vmem:[%s4917_s1 + $0x3d0] sm:$0xff]  }
  0x46   :  { %3460 = vmatprep.subr.bf16.mxu1 %v3803_v25  ;;  %2505 = vmatprep.mubr.bf16.mxu0 %v635_v56  ;;  %v3852_v23 = vld [vmem:[%s4917_s1 + $0x310] sm:$0xff]   ;;  %v3854_v25 = vld [vmem:[%s4917_s1 + $0x348] sm:$0xff]  }
  0x47   :  { %2545 = vmatprep.mubr.bf16.mxu1 %v645_v60  ;;  %v3853_v24 = vld [vmem:[%s4917_s1 + $0x390] sm:$0xff]   ;;  %v3887_v60 = vld [vmem:[%s4917_s1 + $0x448] sm:$0xff]  }
  0x48   :  { %3439 = vmatpush3.bf16.msra.mxu0 %v3804_v26  ;;  %v3855_v26 = vld [vmem:[%s4917_s1 + $0x3c8] sm:$0xff]   ;;  %v3883_v56 = vld [vmem:[%s4917_s1 + $0x450] sm:$0xff]  }
  0x49   :  { %3440 = vmatprep.subr.bf16.mxu0 %v3806_v28  ;;  %3461 = vmatpush3.bf16.msra.mxu1 %v3805_v27  ;;  %v3856_v27 = vld [vmem:[%s4917_s1 + $0x308] sm:$0xff]  }
  0x4a   :  { %3462 = vmatprep.subr.bf16.mxu1 %v3807_v29  ;;  %v3857_v28 = vld [vmem:[%s4917_s1 + $0x388] sm:$0xff]   ;;  %v3858_v29 = vld [vmem:[%s4917_s1 + $0x340] sm:$0xff]  }
  0x4c   :  { %3441 = vmatpush3.bf16.msra.mxu0 %v3808_v30  ;;  %v3859_v30 = vld [vmem:[%s4917_s1 + $0x3c0] sm:$0xff]  }
  0x4d   :  { %3442 = vmatprep.subr.bf16.mxu0 %v3810_v32  ;;  %3463 = vmatpush3.bf16.msra.mxu1 %v3809_v31  ;;  %v3860_v31 = vld [vmem:[%s4917_s1 + $0x300] sm:$0xff]  }
  0x4e   :  { %3464 = vmatprep.subr.bf16.mxu1 %v3811_v33  ;;  %v3861_v32 = vld [vmem:[%s4917_s1 + $0x380] sm:$0xff]   ;;  %v628_v33 = vrot.slane %v4354_v53, %v4162_v41  ;;  %v3880_v53 = vld [vmem:[%s4917_s1 + $0x4d8] sm:$0xff]  }
  0x50   :  { %3443 = vmatpush3.bf16.msra.mxu0 %v3812_v34  ;;  %v3863_v34 = vld [vmem:[%s4917_s1 + $0x478] sm:$0xff]  }
  0x51   :  { %3444 = vmatprep.subr.bf16.mxu0 %v3814_v36  ;;  %3465 = vmatpush3.bf16.msra.mxu1 %v3813_v35  ;;  %v3864_v35 = vld [vmem:[%s4917_s1 + $0x4f8] sm:$0xff]  }
  0x52   :  { %3466 = vmatprep.subr.bf16.mxu1 %v3815_v37  ;;  %v3865_v36 = vld [vmem:[%s4917_s1 + $0x438] sm:$0xff]  }
  0x53   :  { %v3866_v37 = vld [vmem:[%s4917_s1 + $0x4b8] sm:$0xff]  }
  0x54   :  { %3445 = vmatpush3.bf16.msra.mxu0 %v3816_v38  ;;  %v644_v38 = vcombine.high %v628_v33, %v628_v33 }
  0x55   :  { %3446 = vmatprep.subr.bf16.mxu0 %v3818_v40  ;;  %3467 = vmatpush3.bf16.msra.mxu1 %v3817_v39  ;;  %v3867_v39 = vld [vmem:[%s4917_s1 + $0x470] sm:$0xff]  }
  0x56   :  { %3468 = vmatprep.subr.bf16.mxu1 %v3819_v42  ;;  %v3868_v40 = vld [vmem:[%s4917_s1 + $0x4f0] sm:$0xff]  }
  0x57   :  { %v3869_v42 = vld [vmem:[%s4917_s1 + $0x430] sm:$0xff]  }
  0x58   :  { %3447 = vmatpush3.bf16.msra.mxu0 %v3820_v43  ;;  %v3870_v43 = vld [vmem:[%s4917_s1 + $0x4b0] sm:$0xff]  }
  0x59   :  { %3448 = vmatprep.subr.bf16.mxu0 %v3822_v45  ;;  %3469 = vmatpush3.bf16.msra.mxu1 %v3821_v44  ;;  %v3871_v44 = vld [vmem:[%s4917_s1 + $0x468] sm:$0xff]  }
  0x5a   :  { %3470 = vmatprep.subr.bf16.mxu1 %v3823_v47  ;;  %v3872_v45 = vld [vmem:[%s4917_s1 + $0x4e8] sm:$0xff]  }
  0x5b   :  { %v3874_v47 = vld [vmem:[%s4917_s1 + $0x4a8] sm:$0xff]  }
  0x5c   :  { %3449 = vmatpush3.bf16.msra.mxu0 %v3824_v50  ;;  %v3877_v50 = vld [vmem:[%s4917_s1 + $0x420] sm:$0xff]  }
  0x5d   :  { %3450 = vmatprep.subr.bf16.mxu0 %v3826_v54  ;;  %3471 = vmatpush3.bf16.msra.mxu1 %v3825_v51  ;;  %v3878_v51 = vld [vmem:[%s4917_s1 + $0x4a0] sm:$0xff]   ;;  %v3881_v54 = vld [vmem:[%s4917_s1 + $0x418] sm:$0xff]  }
  0x5e   :  { %3472 = vmatprep.subr.bf16.mxu1 %v3827_v55  ;;  %v3882_v55 = vld [vmem:[%s4917_s1 + $0x498] sm:$0xff]  }
  0x60   :  { %3451 = vmatpush3.bf16.msra.mxu0 %v3828_v58  ;;  %v3885_v58 = vld [vmem:[%s4917_s1 + $0x410] sm:$0xff]  }
  0x61   :  { %3480 = vmatprep.subr.bf16.mxu0 %v3830_v62  ;;  %3473 = vmatpush3.bf16.msra.mxu1 %v3829_v59  ;;  %v3886_v59 = vld [vmem:[%s4917_s1 + $0x490] sm:$0xff]   ;;  %v3888_v62 = vld [vmem:[%s4917_s1 + $0x4c8] sm:$0xff]  }
  0x62   :  { %3502 = vmatprep.subr.bf16.mxu1 %v3831_v63 }
  0x63   :  { %2506 = vmatmul.mubr.bf16.vlgmr.msra.gmra.mxu0 %v621_v61  ;;  %v24_v61 = vld [vmem:[%s4916_s0 + $0x10] sm:$0xff] }
  0x64   :  { %3481 = vmatpush3.bf16.msra.mxu0 %v3832_v1  ;;  %2585 = vmatprep.mubr.bf16.mxu0 %v642_v0  ;;  %v654_v63 = vrot.slane %v24_v61, %v4162_v41  ;;  %v647_v0 = vcombine.high %v24_v61, %v24_v61  ;;  %v3889_v1 = vld [vmem:[%s4917_s1 + $0x408] sm:$0xff]  }
  0x65   :  { %2546 = vmatmul.mubr.bf16.vlgmr.msra.gmra.mxu1 %v643_v3  ;;  %3482 = vmatprep.subr.bf16.mxu0 %v3834_v4  ;;  %v3938_v61 = vld [vmem:[%s4917_s1 + $0x628] sm:$0xff]  }
  0x66   :  { %3503 = vmatpush3.bf16.msra.mxu1 %v3833_v2  ;;  %2625 = vmatprep.mubr.bf16.mxu1 %v646_v6  ;;  %v3890_v2 = vld [vmem:[%s4917_s1 + $0x488] sm:$0xff]   ;;  %v662_v3 = vcombine.high %v654_v63, %v654_v63  ;;  %v4560_v4 = vrot.slane %v647_v0, %v4162_v41  ;;  %v3892_v6 = vld [vmem:[%s4917_s1 + $0x4c0] sm:$0xff]  }
  0x67   :  { %3504 = vmatprep.subr.bf16.mxu1 %v3835_v5  ;;  %v3891_v5 = vld [vmem:[%s4917_s1 + $0x440] sm:$0xff]  }
  0x68   :  { %3483 = vmatpush3.bf16.msra.mxu0 %v3836_v7  ;;  %v684_v7 = vrot.slane %v662_v3, %v4162_v41  ;;  %v3941_v0 = vld [vmem:[%s4917_s1 + $0x6e0] sm:$0xff]   ;;  %v3944_v3 = vld [vmem:[%s4917_s1 + $0x658] sm:$0xff]  }
  0x69   :  { %3484 = vmatprep.subr.bf16.mxu0 %v3838_v9  ;;  %v3893_v9 = vld [vmem:[%s4917_s1 + $0x400] sm:$0xff]  }
  0x6a   :  { %3505 = vmatpush3.bf16.msra.mxu1 %v3837_v8  ;;  %v663_v8 = vcombine.high %v4560_v4, %v4560_v4 }
  0x6b   :  { %3506 = vmatprep.subr.bf16.mxu1 %v3839_v10  ;;  %v3894_v10 = vld [vmem:[%s4917_s1 + $0x480] sm:$0xff]  }
  0x6c   :  { %3485 = vmatpush3.bf16.msra.mxu0 %v3840_v11  ;;  %v694_v11 = vcombine.high %v684_v7, %v684_v7 }
  0x6d   :  { %3486 = vmatprep.subr.bf16.mxu0 %v3842_v13  ;;  %v3895_v13 = vld [vmem:[%s4917_s1 + $0x578] sm:$0xff]  }
  0x6e   :  { %3507 = vmatpush3.bf16.msra.mxu1 %v3841_v12  ;;  %v670_v12 = vrot.slane %v654_v63, %v4162_v41  ;;  %v3940_v63 = vld [vmem:[%s4917_s1 + $0x660] sm:$0xff]  }
  0x6f   :  { %3508 = vmatprep.subr.bf16.mxu1 %v3843_v14  ;;  %v3896_v14 = vld [vmem:[%s4917_s1 + $0x5f8] sm:$0xff]  }
  0x70   :  { %3487 = vmatpush3.bf16.msra.mxu0 %v3844_v15  ;;  %v691_v15 = vrot.slane %v663_v8, %v4162_v41  ;;  %v3949_v8 = vld [vmem:[%s4917_s1 + $0x6d0] sm:$0xff]  }
  0x71   :  { %3488 = vmatprep.subr.bf16.mxu0 %v3846_v17  ;;  %v3898_v17 = vld [vmem:[%s4917_s1 + $0x5b8] sm:$0xff]  }
  0x72   :  { %3509 = vmatpush3.bf16.msra.mxu1 %v3845_v16  ;;  %v3897_v16 = vld [vmem:[%s4917_s1 + $0x538] sm:$0xff]  }
  0x73   :  { %3510 = vmatprep.subr.bf16.mxu1 %v3847_v18  ;;  %v692_v18 = vcombine.high %v670_v12, %v670_v12 }
  0x74   :  { %3489 = vmatpush3.bf16.msra.mxu0 %v3848_v19  ;;  %v3899_v19 = vld [vmem:[%s4917_s1 + $0x570] sm:$0xff]  }
  0x75   :  { %3490 = vmatprep.subr.bf16.mxu0 %v3850_v21  ;;  %v695_v21 = vcombine.high %v691_v15, %v691_v15 }
  0x76   :  { %3511 = vmatpush3.bf16.msra.mxu1 %v3849_v20  ;;  %v3900_v20 = vld [vmem:[%s4917_s1 + $0x5f0] sm:$0xff]  }
  0x77   :  { %3512 = vmatprep.subr.bf16.mxu1 %v3851_v22  ;;  %v3901_v22 = vld [vmem:[%s4917_s1 + $0x530] sm:$0xff]  }
  0x78   :  { %3491 = vmatpush3.bf16.msra.mxu0 %v3852_v23  ;;  %v3902_v23 = vld [vmem:[%s4917_s1 + $0x5b0] sm:$0xff]  }
  0x79   :  { %3492 = vmatprep.subr.bf16.mxu0 %v3854_v25  ;;  %v3904_v25 = vld [vmem:[%s4917_s1 + $0x5e8] sm:$0xff]  }
  0x7a   :  { %3513 = vmatpush3.bf16.msra.mxu1 %v3853_v24  ;;  %v3903_v24 = vld [vmem:[%s4917_s1 + $0x568] sm:$0xff]  }
  0x7b   :  { %3514 = vmatprep.subr.bf16.mxu1 %v3855_v26  ;;  %v3905_v26 = vld [vmem:[%s4917_s1 + $0x528] sm:$0xff]  }
  0x7c   :  { %3493 = vmatpush3.bf16.msra.mxu0 %v3856_v27  ;;  %v3906_v27 = vld [vmem:[%s4917_s1 + $0x5a8] sm:$0xff]  }
  0x7d   :  { %3494 = vmatprep.subr.bf16.mxu0 %v3858_v29  ;;  %v3908_v29 = vld [vmem:[%s4917_s1 + $0x5e0] sm:$0xff]  }
  0x7e   :  { %3515 = vmatpush3.bf16.msra.mxu1 %v3857_v28  ;;  %v3907_v28 = vld [vmem:[%s4917_s1 + $0x560] sm:$0xff]  }
  0x7f   :  { %3516 = vmatprep.subr.bf16.mxu1 %v3859_v30  ;;  %v3909_v30 = vld [vmem:[%s4917_s1 + $0x520] sm:$0xff]  }
  0x80   :  { %3495 = vmatpush3.bf16.msra.mxu0 %v3860_v31  ;;  %v3910_v31 = vld [vmem:[%s4917_s1 + $0x5a0] sm:$0xff]  }
  0x81   :  { %3524 = vmatprep.subr.bf16.mxu0 %v3863_v34  ;;  %v3913_v34 = vld [vmem:[%s4917_s1 + $0x518] sm:$0xff]  }
  0x82   :  { %3517 = vmatpush3.bf16.msra.mxu1 %v3861_v32  ;;  %v3911_v32 = vld [vmem:[%s4917_s1 + $0x558] sm:$0xff]  }
  0x83   :  { %2586 = vmatmul.mubr.bf16.vlgmr.msra.gmra.mxu0 %v628_v33  ;;  %3546 = vmatprep.subr.bf16.mxu1 %v3864_v35  ;;  %v3912_v33 = vld [vmem:[%s4917_s1 + $0x5d8] sm:$0xff]  }
  0x84   :  { %3525 = vmatpush3.bf16.msra.mxu0 %v3865_v36  ;;  %2665 = vmatprep.mubr.bf16.mxu0 %v684_v7  ;;  %v3914_v35 = vld [vmem:[%s4917_s1 + $0x598] sm:$0xff]   ;;  %v3915_v36 = vld [vmem:[%s4917_s1 + $0x550] sm:$0xff]  }
  0x85   :  { %2626 = vmatmul.mubr.bf16.vlgmr.msra.gmra.mxu1 %v644_v38  ;;  %3526 = vmatprep.subr.bf16.mxu0 %v3867_v39  ;;  %v3917_v38 = vld [vmem:[%s4917_s1 + $0x510] sm:$0xff]  }
  0x86   :  { %3547 = vmatpush3.bf16.msra.mxu1 %v3866_v37  ;;  %2705 = vmatprep.mubr.bf16.mxu1 %v694_v11  ;;  %v3916_v37 = vld [vmem:[%s4917_s1 + $0x5d0] sm:$0xff]   ;;  %v3952_v11 = vld [vmem:[%s4917_s1 + $0x648] sm:$0xff]  }
  0x87   :  { %3548 = vmatprep.subr.bf16.mxu1 %v3868_v40  ;;  %v3918_v39 = vld [vmem:[%s4917_s1 + $0x590] sm:$0xff]   ;;  %v3919_v40 = vld [vmem:[%s4917_s1 + $0x548] sm:$0xff]  }
  0x88   :  { %3527 = vmatpush3.bf16.msra.mxu0 %v3869_v42  ;;  %v3920_v42 = vld [vmem:[%s4917_s1 + $0x5c8] sm:$0xff]   ;;  %v3948_v7 = vld [vmem:[%s4917_s1 + $0x650] sm:$0xff]  }
  0x89   :  { %3528 = vmatprep.subr.bf16.mxu0 %v3871_v44  ;;  %v3922_v44 = vld [vmem:[%s4917_s1 + $0x588] sm:$0xff]  }
  0x8a   :  { %3549 = vmatpush3.bf16.msra.mxu1 %v3870_v43  ;;  %v3921_v43 = vld [vmem:[%s4917_s1 + $0x508] sm:$0xff]  }
  0x8b   :  { %3550 = vmatprep.subr.bf16.mxu1 %v3872_v45  ;;  %v3923_v45 = vld [vmem:[%s4917_s1 + $0x540] sm:$0xff]  }
  0x8c   :  { %3529 = vmatpush3.bf16.msra.mxu0 %v3873_v46  ;;  %v3924_v46 = vld [vmem:[%s4917_s1 + $0x5c0] sm:$0xff]  }
  0x8d   :  { %3530 = vmatprep.subr.bf16.mxu0 %v3875_v48  ;;  %v3926_v48 = vld [vmem:[%s4917_s1 + $0x580] sm:$0xff]  }
  0x8e   :  { %3551 = vmatpush3.bf16.msra.mxu1 %v3874_v47  ;;  %v3925_v47 = vld [vmem:[%s4917_s1 + $0x500] sm:$0xff]  }
  0x8f   :  { %3552 = vmatprep.subr.bf16.mxu1 %v3876_v49  ;;  %v677_v49 = vrot.slane %v4560_v4, %v4162_v41  ;;  %v3945_v4 = vld [vmem:[%s4917_s1 + $0x6d8] sm:$0xff]  }
  0x90   :  { %3531 = vmatpush3.bf16.msra.mxu0 %v3877_v50  ;;  %v3928_v50 = vld [vmem:[%s4917_s1 + $0x678] sm:$0xff]  }
  0x91   :  { %3532 = vmatprep.subr.bf16.mxu0 %v3879_v52  ;;  %v3930_v52 = vld [vmem:[%s4917_s1 + $0x638] sm:$0xff]  }
  0x92   :  { %3553 = vmatpush3.bf16.msra.mxu1 %v3878_v51  ;;  %v3929_v51 = vld [vmem:[%s4917_s1 + $0x6f8] sm:$0xff]  }
  0x93   :  { %3554 = vmatprep.subr.bf16.mxu1 %v3880_v53  ;;  %v3931_v53 = vld [vmem:[%s4917_s1 + $0x6b8] sm:$0xff]  }
  0x94   :  { %3533 = vmatpush3.bf16.msra.mxu0 %v3881_v54  ;;  %v693_v54 = vcombine.high %v677_v49, %v677_v49 }
  0x95   :  { %3534 = vmatprep.subr.bf16.mxu0 %v3883_v56  ;;  %v3933_v56 = vld [vmem:[%s4917_s1 + $0x6f0] sm:$0xff]  }
  0x96   :  { %3555 = vmatpush3.bf16.msra.mxu1 %v3882_v55  ;;  %v3932_v55 = vld [vmem:[%s4917_s1 + $0x670] sm:$0xff]  }
  0x97   :  { %3556 = vmatprep.subr.bf16.mxu1 %v3884_v57  ;;  %v3934_v57 = vld [vmem:[%s4917_s1 + $0x630] sm:$0xff]  }
  0x98   :  { %3535 = vmatpush3.bf16.msra.mxu0 %v3885_v58  ;;  %v3935_v58 = vld [vmem:[%s4917_s1 + $0x6b0] sm:$0xff]  }
  0x99   :  { %3536 = vmatprep.subr.bf16.mxu0 %v3887_v60  ;;  %v3937_v60 = vld [vmem:[%s4917_s1 + $0x6e8] sm:$0xff]  }
  0x9a   :  { %3557 = vmatpush3.bf16.msra.mxu1 %v3886_v59  ;;  %v3936_v59 = vld [vmem:[%s4917_s1 + $0x668] sm:$0xff]  }
  0x9b   :  { %3558 = vmatprep.subr.bf16.mxu1 %v3888_v62  ;;  %v3939_v62 = vld [vmem:[%s4917_s1 + $0x6a8] sm:$0xff]  }
  0x9c   :  { %3537 = vmatpush3.bf16.msra.mxu0 %v3889_v1  ;;  %v3942_v1 = vld [vmem:[%s4917_s1 + $0x620] sm:$0xff]  }
  0x9d   :  { %3538 = vmatprep.subr.bf16.mxu0 %v3891_v5  ;;  %v3946_v5 = vld [vmem:[%s4917_s1 + $0x618] sm:$0xff]  }
  0x9e   :  { %3559 = vmatpush3.bf16.msra.mxu1 %v3890_v2  ;;  %v3943_v2 = vld [vmem:[%s4917_s1 + $0x6a0] sm:$0xff]  }
  0x9f   :  { %3560 = vmatprep.subr.bf16.mxu1 %v3892_v6  ;;  %v3947_v6 = vld [vmem:[%s4917_s1 + $0x698] sm:$0xff]  }
  0xa0   :  { %3539 = vmatpush3.bf16.msra.mxu0 %v3893_v9  ;;  %v3950_v9 = vld [vmem:[%s4917_s1 + $0x610] sm:$0xff]  }
  0xa1   :  { %3568 = vmatprep.subr.bf16.mxu0 %v3895_v13  ;;  %v3953_v13 = vld [vmem:[%s4917_s1 + $0x6c8] sm:$0xff]  }
  0xa2   :  { %3561 = vmatpush3.bf16.msra.mxu1 %v3894_v10  ;;  %v3951_v10 = vld [vmem:[%s4917_s1 + $0x690] sm:$0xff]  }
  0xa3   :  { %2666 = vmatmul.mubr.bf16.vlgmr.msra.gmra.mxu0 %v670_v12  ;;  %3590 = vmatprep.subr.bf16.mxu1 %v3896_v14  ;;  %v25_v12 = vld [vmem:[%s4916_s0 + $0x18] sm:$0xff] }
  0xa4   :  { %3569 = vmatpush3.bf16.msra.mxu0 %v3897_v16  ;;  %2745 = vmatprep.mubr.bf16.mxu0 %v691_v15  ;;  %v703_v14 = vrot.slane %v25_v12, %v4162_v41  ;;  %v696_v15 = vcombine.high %v25_v12, %v25_v12  ;;  %v3954_v16 = vld [vmem:[%s4917_s1 + $0x608] sm:$0xff]  }
  0xa5   :  { %2706 = vmatmul.mubr.bf16.vlgmr.msra.gmra.mxu1 %v692_v18  ;;  %3570 = vmatprep.subr.bf16.mxu0 %v3899_v19 }
  0xa6   :  { %3591 = vmatpush3.bf16.msra.mxu1 %v3898_v17  ;;  %2785 = vmatprep.mubr.bf16.mxu1 %v695_v21  ;;  %v3956_v17 = vld [vmem:[%s4917_s1 + $0x640] sm:$0xff]   ;;  %v711_v18 = vcombine.high %v703_v14, %v703_v14  ;;  %v4766_v19 = vrot.slane %v696_v15, %v4162_v41 }
  0xa7   :  { %3592 = vmatprep.subr.bf16.mxu1 %v3900_v20  ;;  %v3955_v20 = vld [vmem:[%s4917_s1 + $0x688] sm:$0xff]   ;;  %v3957_v21 = vld [vmem:[%s4917_s1 + $0x6c0] sm:$0xff]  }
  0xa8   :  { %3571 = vmatpush3.bf16.msra.mxu0 %v3901_v22  ;;  %v3958_v22 = vld [vmem:[%s4917_s1 + $0x600] sm:$0xff]  }
  0xa9   :  { %3572 = vmatprep.subr.bf16.mxu0 %v3903_v24  ;;  %v712_v24 = vcombine.high %v4766_v19, %v4766_v19 }
  0xaa   :  { %3593 = vmatpush3.bf16.msra.mxu1 %v3902_v23  ;;  %v733_v23 = vrot.slane %v711_v18, %v4162_v41 }
  0xab   :  { %3594 = vmatprep.subr.bf16.mxu1 %v3904_v25  ;;  %v3959_v25 = vld [vmem:[%s4917_s1 + $0x680] sm:$0xff]  }
  0xac   :  { %3573 = vmatpush3.bf16.msra.mxu0 %v3905_v26  ;;  %v743_v26 = vcombine.high %v733_v23, %v733_v23 }
  0xad   :  { %3574 = vmatprep.subr.bf16.mxu0 %v3907_v28  ;;  %v3960_v28 = vld [vmem:[%s4917_s1 + $0x778] sm:$0xff]  }
  0xae   :  { %3595 = vmatpush3.bf16.msra.mxu1 %v3906_v27  ;;  %v719_v27 = vrot.slane %v703_v14, %v4162_v41 }
  0xaf   :  { %3596 = vmatprep.subr.bf16.mxu1 %v3908_v29  ;;  %v3961_v29 = vld [vmem:[%s4917_s1 + $0x7f8] sm:$0xff]  }
  0xb0   :  { %3575 = vmatpush3.bf16.msra.mxu0 %v3909_v30  ;;  %v740_v30 = vrot.slane %v712_v24, %v4162_v41 }
  0xb1   :  { %3576 = vmatprep.subr.bf16.mxu0 %v3911_v32  ;;  %v3963_v32 = vld [vmem:[%s4917_s1 + $0x7b8] sm:$0xff]  }
  0xb2   :  { %3597 = vmatpush3.bf16.msra.mxu1 %v3910_v31  ;;  %v3962_v31 = vld [vmem:[%s4917_s1 + $0x738] sm:$0xff]  }
  0xb3   :  { %3598 = vmatprep.subr.bf16.mxu1 %v3912_v33  ;;  %v741_v33 = vcombine.high %v719_v27, %v719_v27 }
  0xb4   :  { %3577 = vmatpush3.bf16.msra.mxu0 %v3913_v34  ;;  %v3964_v34 = vld [vmem:[%s4917_s1 + $0x770] sm:$0xff]  }
  0xb5   :  { %3578 = vmatprep.subr.bf16.mxu0 %v3915_v36  ;;  %v744_v36 = vcombine.high %v740_v30, %v740_v30 }
  0xb6   :  { %3599 = vmatpush3.bf16.msra.mxu1 %v3914_v35  ;;  %v3965_v35 = vld [vmem:[%s4917_s1 + $0x7f0] sm:$0xff]  }
  0xb7   :  { %3600 = vmatprep.subr.bf16.mxu1 %v3916_v37 }
  0xb8   :  { %3579 = vmatpush3.bf16.msra.mxu0 %v3917_v38  ;;  %v3082_v38 = vld [vmem:[%s4918_s2] ss:$0 sm:$0xff] }
  0xb9   :  { %3580 = vmatprep.subr.bf16.mxu0 %v3919_v40  ;;  %v3967_v40 = vld [vmem:[%s4917_s1 + $0x7b0] sm:$0xff]  }
  0xba   :  { %3601 = vmatpush3.bf16.msra.mxu1 %v3918_v39  ;;  %v3966_v39 = vld [vmem:[%s4917_s1 + $0x730] sm:$0xff]  }
  0xbb   :  { %3602 = vmatprep.subr.bf16.mxu1 %v3920_v42 }
  0xbc   :  { %3581 = vmatpush3.bf16.msra.mxu0 %v3921_v43 }
  0xbd   :  { %3582 = vmatprep.subr.bf16.mxu0 %v3923_v45 }
  0xbe   :  { %3603 = vmatpush3.bf16.msra.mxu1 %v3922_v44  ;;  %v3968_v44 = vld [vmem:[%s4917_s1 + $0x768] sm:$0xff]  }
  0xbf   :  { %3604 = vmatprep.subr.bf16.mxu1 %v3924_v46  ;;  %v3969_v46 = vld [vmem:[%s4917_s1 + $0x7e8] sm:$0xff]  }
  0xc0   :  { %3583 = vmatpush3.bf16.msra.mxu0 %v3925_v47 }
  0xc1   :  { %3612 = vmatprep.subr.bf16.mxu0 %v3928_v50 }
  0xc2   :  { %3605 = vmatpush3.bf16.msra.mxu1 %v3926_v48 }
  0xc3   :  { %2746 = vmatmul.mubr.bf16.vlgmr.msra.gmra.mxu0 %v677_v49  ;;  %3634 = vmatprep.subr.bf16.mxu1 %v3929_v51  ;;  %v3970_v49 = vld [vmem:[%s4917_s1 + $0x728] sm:$0xff]  }
  0xc4   :  { %3613 = vmatpush3.bf16.msra.mxu0 %v3930_v52  ;;  %2825 = vmatprep.mubr.bf16.mxu0 %v733_v23  ;;  %v3971_v52 = vld [vmem:[%s4917_s1 + $0x7a8] sm:$0xff]  }
  0xc5   :  { %2786 = vmatmul.mubr.bf16.vlgmr.msra.gmra.mxu1 %v693_v54  ;;  %3614 = vmatprep.subr.bf16.mxu0 %v3932_v55  ;;  %v3972_v55 = vld [vmem:[%s4917_s1 + $0x760] sm:$0xff]  }
  0xc6   :  { %3635 = vmatpush3.bf16.msra.mxu1 %v3931_v53  ;;  %2865 = vmatprep.mubr.bf16.mxu1 %v743_v26 }
  0xc7   :  { %3636 = vmatprep.subr.bf16.mxu1 %v3933_v56 }
  0xc8   :  { %3615 = vmatpush3.bf16.msra.mxu0 %v3934_v57  ;;  %v3973_v57 = vld [vmem:[%s4917_s1 + $0x7e0] sm:$0xff]  }
  0xc9   :  { %3616 = vmatprep.subr.bf16.mxu0 %v3936_v59  ;;  %v3974_v59 = vld [vmem:[%s4917_s1 + $0x720] sm:$0xff]  }
  0xca   :  { %3637 = vmatpush3.bf16.msra.mxu1 %v3935_v58 }
  0xcb   :  { %3638 = vmatprep.subr.bf16.mxu1 %v3937_v60  ;;  %v3975_v60 = vld [vmem:[%s4917_s1 + $0x7a0] sm:$0xff]  }
  0xcc   :  { %3617 = vmatpush3.bf16.msra.mxu0 %v3938_v61  ;;  %v3976_v61 = vld [vmem:[%s4917_s1 + $0x758] sm:$0xff]  }
  0xcd   :  { %3618 = vmatprep.subr.bf16.mxu0 %v3940_v63  ;;  %v3978_v63 = vld [vmem:[%s4917_s1 + $0x718] sm:$0xff]  }
  0xce   :  { %3639 = vmatpush3.bf16.msra.mxu1 %v3939_v62  ;;  %v3977_v62 = vld [vmem:[%s4917_s1 + $0x7d8] sm:$0xff]  }
  0xcf   :  { %3640 = vmatprep.subr.bf16.mxu1 %v3941_v0  ;;  %v3979_v0 = vld [vmem:[%s4917_s1 + $0x798] sm:$0xff]  }
  0xd0   :  { %3619 = vmatpush3.bf16.msra.mxu0 %v3942_v1  ;;  %v3980_v1 = vld [vmem:[%s4917_s1 + $0x750] sm:$0xff]  }
  0xd1   :  { %3620 = vmatprep.subr.bf16.mxu0 %v3944_v3  ;;  %v3982_v3 = vld [vmem:[%s4917_s1 + $0x710] sm:$0xff]  }
  0xd2   :  { %3641 = vmatpush3.bf16.msra.mxu1 %v3943_v2  ;;  %v3981_v2 = vld [vmem:[%s4917_s1 + $0x7d0] sm:$0xff]  }
  0xd3   :  { %3642 = vmatprep.subr.bf16.mxu1 %v3945_v4  ;;  %v3983_v4 = vld [vmem:[%s4917_s1 + $0x790] sm:$0xff]  }
  0xd4   :  { %3621 = vmatpush3.bf16.msra.mxu0 %v3946_v5  ;;  %v3984_v5 = vld [vmem:[%s4917_s1 + $0x748] sm:$0xff]  }
  0xd5   :  { %3622 = vmatprep.subr.bf16.mxu0 %v3948_v7  ;;  %v3986_v7 = vld [vmem:[%s4917_s1 + $0x708] sm:$0xff]  }
  0xd6   :  { %3643 = vmatpush3.bf16.msra.mxu1 %v3947_v6  ;;  %v3985_v6 = vld [vmem:[%s4917_s1 + $0x7c8] sm:$0xff]  }
  0xd7   :  { %3644 = vmatprep.subr.bf16.mxu1 %v3949_v8  ;;  %v3988_v8 = vld [vmem:[%s4917_s1 + $0x740] sm:$0xff]  }
  0xd8   :  { %3623 = vmatpush3.bf16.msra.mxu0 %v3950_v9  ;;  %v3987_v9 = vld [vmem:[%s4917_s1 + $0x788] sm:$0xff]  }
  0xd9   :  { %3624 = vmatprep.subr.bf16.mxu0 %v3952_v11  ;;  %v3990_v11 = vld [vmem:[%s4917_s1 + $0x700] sm:$0xff]  }
  0xda   :  { %3645 = vmatpush3.bf16.msra.mxu1 %v3951_v10  ;;  %v3989_v10 = vld [vmem:[%s4917_s1 + $0x7c0] sm:$0xff]  }
  0xdb   :  { %3646 = vmatprep.subr.bf16.mxu1 %v3953_v13 }
  0xdc   :  { %3625 = vmatpush3.bf16.msra.mxu0 %v3954_v16 }
  0xdd   :  { %3626 = vmatprep.subr.bf16.mxu0 %v3956_v17 }
  0xde   :  { %3647 = vmatpush3.bf16.msra.mxu1 %v3955_v20 }
  0xdf   :  { %3648 = vmatprep.subr.bf16.mxu1 %v3957_v21 }
  0xe0   :  { %3627 = vmatpush3.bf16.msra.mxu0 %v3958_v22 }
  0xe1   :  { %3656 = vmatprep.subr.bf16.mxu0 %v3960_v28 }
  0xe2   :  { %3649 = vmatpush3.bf16.msra.mxu1 %v3959_v25 }
  0xe3   :  { %v3364_v37 = vpop.f32.mrf.mxu0  ;;  %2826 = vmatmul.mubr.bf16.vlgmr.msra.gmra.mxu0 %v719_v27  ;;  %3678 = vmatprep.subr.bf16.mxu1 %v3961_v29 }
  0xe4   :  { %3657 = vmatpush3.bf16.msra.mxu0 %v3962_v31  ;;  %2905 = vmatprep.mubr.bf16.mxu0 %v740_v30  ;;  %v3386_v42 = vpop.f32.mrf.mxu1 }
  0xe5   :  { %2866 = vmatmul.mubr.bf16.vlgmr.msra.gmra.mxu1 %v741_v33  ;;  %v3365_v43 = vpop.f32.mrf.mxu0  ;;  %3658 = vmatprep.subr.bf16.mxu0 %v3964_v34 }
  0xe6   :  { %3679 = vmatpush3.bf16.msra.mxu1 %v3963_v32  ;;  %v3366_v45 = vadd.f32 %v3365_v43, %v3364_v37  ;;  %2945 = vmatprep.mubr.bf16.mxu1 %v744_v36  ;;  %v3387_v47 = vpop.f32.mrf.mxu1 }
  0xe7   :  { %v3367_v48 = vpop.f32.mrf.mxu0  ;;  %3680 = vmatprep.subr.bf16.mxu1 %v3965_v35  ;;  %v3388_v51 = vadd.f32 %v3387_v47, %v3386_v42 }
  0xe8   :  { %v2348_v50 = vadd.f32 %v3366_v45, %v3082_v38  ;;  %3659 = vmatpush3.bf16.msra.mxu0 %v3966_v39  ;;  %v3389_v53 = vpop.f32.mrf.mxu1 }
  0xe9   :  { %v3368_v54 = vpop.f32.mrf.mxu0  ;;  %3660 = vmatprep.subr.bf16.mxu0 %v3968_v44 }
  0xea   :  { %v2388_v56 = vadd.f32 %v3388_v51, %v2348_v50  ;;  %3681 = vmatpush3.bf16.msra.mxu1 %v3967_v40  ;;  %v3390_v58 = vpop.f32.mrf.mxu1 }
  0xeb   :  { %3682 = vmatprep.subr.bf16.mxu1 %v3969_v46 }
  0xec   :  { %3661 = vmatpush3.bf16.msra.mxu0 %v3970_v49 }
  0xed   :  { %3662 = vmatprep.subr.bf16.mxu0 %v3972_v55 }
  0xee   :  { %3683 = vmatpush3.bf16.msra.mxu1 %v3971_v52 }
  0xef   :  { %3684 = vmatprep.subr.bf16.mxu1 %v3973_v57 }
  0xf0   :  { %3663 = vmatpush3.bf16.msra.mxu0 %v3974_v59 }
  0xf1   :  { %3664 = vmatprep.subr.bf16.mxu0 %v3976_v61 }
  0xf2   :  { %3685 = vmatpush3.bf16.msra.mxu1 %v3975_v60 }
  0xf3   :  { %3686 = vmatprep.subr.bf16.mxu1 %v3977_v62 }
  0xf4   :  { %3665 = vmatpush3.bf16.msra.mxu0 %v3978_v63 }
  0xf5   :  { %3666 = vmatprep.subr.bf16.mxu0 %v3980_v1 }
  0xf6   :  { %3687 = vmatpush3.bf16.msra.mxu1 %v3979_v0 }
  0xf7   :  { %3688 = vmatprep.subr.bf16.mxu1 %v3981_v2 }
  0xf8   :  { %3667 = vmatpush3.bf16.msra.mxu0 %v3982_v3 }
  0xf9   :  { %3668 = vmatprep.subr.bf16.mxu0 %v3984_v5 }
  0xfa   :  { %3689 = vmatpush3.bf16.msra.mxu1 %v3983_v4 }
  0xfb   :  { %3690 = vmatprep.subr.bf16.mxu1 %v3985_v6 }
  0xfc   :  { %3669 = vmatpush3.bf16.msra.mxu0 %v3986_v7 }
  0xfd   :  { %10 = vsyncpa [#allocation3], 0  ;;  %3670 = vmatprep.subr.bf16.mxu0 %v3988_v8  ;;  %v726_v12 = vrot.slane %v4766_v19, %v4162_v41  ;;  %v3991_v13 = vld [vmem:[%s4917_s1 + $0x780] sm:$0xff]   ;;  %v3993_v38 = vld [vmem:[%s4919_s3 + $0x38] sm:$0xff]   ;;  %v4024_v39 = vmov 0.0   ;;  %vm4025_vm0 = vmmov 0  }
  0xfe   :  { %3691 = vmatpush3.bf16.msra.mxu1 %v3987_v9  ;;  %v3994_v40 = vld [vmem:[%s4919_s3 + $0x30] sm:$0xff]   ;;  %v3995_v42 = vld [vmem:[%s4919_s3 + $0x28] sm:$0xff]   ;;  %v3996_v43 = vld [vmem:[%s4919_s3 + $0x20] sm:$0xff]   ;;  %s4026_s24 = smov [#allocation2]  }
  0xff   :  { %3692 = vmatprep.subr.bf16.mxu1 %v3989_v10  ;;  %v742_v14 = vcombine.high %v726_v12, %v726_v12  ;;  %v3997_v44 = vld [vmem:[%s4919_s3 + $0x18] sm:$0xff]   ;;  %v3998_v48 = vld [vmem:[%s4919_s3 + $0x10] sm:$0xff]   ;;  %v4000_v59 = vld [vmem:[%s4919_s3] sm:$0xff]   ;;  %s3074_s25 = sshll.u32 %s4026_s24, 4  ;;  %s3075_s25 = int_to_ptr.vmem [resolvable:$true] %s3074_s25 }
 0x100   :  { %3671 = vmatpush3.bf16.msra.mxu0 %v3990_v11  ;;  %s4001_s26 = scalar_lea.vmem %s3075_s25, 32  ;;  %p4006_p1 = scmp.lt.s32.totalorder %s3075_s25, %s3075_s25 }
 0x101   :  { %3709 = vmatprep.subr.bf16.mxu0 %v4024_v39  ;;  %p4002_p0 = scmp.ne.s32.totalorder %s3075_s25, %s4001_s26  ;;  %p4007_p2 = scmp.lt.s32.totalorder %s4001_s26, %s4001_s26 }
 0x102   :  { %3693 = vmatpush3.bf16.msra.mxu1 %v3991_v13 }
 0x103   :  { %v3408_v15 = vpop.f32.mrf.mxu0  ;;  %2906 = vmatmul.mubr.bf16.vlgmr.msra.gmra.mxu0 %v726_v12  ;;  %p4008_p3 = por %p4007_p2, %p4006_p1 }
 0x104   :  { %v3430_v16 = vpop.f32.mrf.mxu1  ;;  %3710 = vmatpush3.bf16.msra.mxu0 %v3993_v38  ;;  %3725 = vmatprep.mubr.msk.bf16.mxu0 %vm4025_vm0, %v4024_v39 }
 0x105   :  { %2946 = vmatmul.mubr.bf16.vlgmr.msra.gmra.mxu1 %v742_v14  ;;  %v3409_v17 = vpop.f32.mrf.mxu0  ;;  %3711 = vmatprep.subr.bf16.mxu0 %v4024_v39  ;;  %p4009_p4 = pnand %p4008_p3, %p4002_p0 }
 0x106   :  { %v3410_v18 = vadd.f32 %v3409_v17, %v3408_v15  ;;  %v3431_v20 = vpop.f32.mrf.mxu1 }
 0x107   :  { %v3411_v21 = vpop.f32.mrf.mxu0  ;;  %v3432_v23 = vadd.f32 %v3431_v20, %v3430_v16 }
 0x108   :  { %v2428_v22 = vadd.f32 %v3410_v18, %v2388_v56  ;;  %v3433_v41 = vpop.f32.mrf.mxu1  ;;  %3712 = vmatpush3.bf16.msra.mxu0 %v3994_v40  ;;  %v3999_v56 = vld [vmem:[%s4919_s3 + $0x8] sm:$0xff]  }
 0x109   :  { %v3412_v19 = vpop.f32.mrf.mxu0  ;;  %3713 = vmatprep.subr.bf16.mxu0 %v4024_v39 }
 0x10a   :  { %v2468_v24 = vadd.f32 %v3432_v23, %v2428_v22  ;;  %v3434_v25 = vpop.f32.mrf.mxu1 }
 0x10c   :  { %3714 = vmatpush3.bf16.msra.mxu0 %v3995_v42 }
 0x10d   :  { %3715 = vmatprep.subr.bf16.mxu0 %v4024_v39 }
 0x110   :  { %3716 = vmatpush3.bf16.msra.mxu0 %v3996_v43 }
 0x111   :  { %3717 = vmatprep.subr.bf16.mxu0 %v4024_v39 }
 0x114   :  { %3718 = vmatpush3.bf16.msra.mxu0 %v3997_v44 }
 0x115   :  { %3719 = vmatprep.subr.bf16.mxu0 %v4024_v39 }
 0x118   :  { %3720 = vmatpush3.bf16.msra.mxu0 %v3998_v48 }
 0x119   :  { %3721 = vmatprep.subr.bf16.mxu0 %v4024_v39 }
 0x11c   :  { %3722 = vmatpush3.bf16.msra.mxu0 %v3999_v56 }
 0x11d   :  { %3723 = vmatprep.subr.bf16.mxu0 %v4024_v39 }
 0x120   :  { %3724 = vmatpush3.bf16.msra.mxu0 %v4000_v59 }
 0x123   :  { %v3452_v26 = vpop.f32.mrf.mxu0 }
 0x125   :  { %v3474_v27 = vpop.f32.mrf.mxu1  ;;  %v3453_v28 = vpop.f32.mrf.mxu0 }
 0x126   :  { %v3454_v29 = vadd.f32 %v3453_v28, %v3452_v26 }
 0x127   :  { %v3475_v30 = vpop.f32.mrf.mxu1  ;;  %v3455_v31 = vpop.f32.mrf.mxu0 }
 0x128   :  { %v2508_v32 = vadd.f32 %v3454_v29, %v2468_v24  ;;  %v3476_v33 = vadd.f32 %v3475_v30, %v3474_v27 }
 0x129   :  { %v3477_v34 = vpop.f32.mrf.mxu1  ;;  %v3456_v35 = vpop.f32.mrf.mxu0 }
 0x12a   :  { %v2548_v36 = vadd.f32 %v3476_v33, %v2508_v32 }
 0x12b   :  { %v3478_v37 = vpop.f32.mrf.mxu1 }
 0x143   :  { %v3496_v45 = vpop.f32.mrf.mxu0 }
 0x145   :  { %v3518_v46 = vpop.f32.mrf.mxu1  ;;  %v3497_v47 = vpop.f32.mrf.mxu0 }
 0x146   :  { %v3498_v49 = vadd.f32 %v3497_v47, %v3496_v45 }
 0x147   :  { %v3519_v50 = vpop.f32.mrf.mxu1  ;;  %v3499_v51 = vpop.f32.mrf.mxu0 }
 0x148   :  { %v2588_v52 = vadd.f32 %v3498_v49, %v2548_v36  ;;  %v3520_v53 = vadd.f32 %v3519_v50, %v3518_v46  ;;  %v3339_v46 = vld [vmem:[%s4920_s4] ss:$0 sm:$0xff] }
 0x149   :  { %v3521_v54 = vpop.f32.mrf.mxu1  ;;  %v3500_v55 = vpop.f32.mrf.mxu0 }
 0x14a   :  { %v2628_v57 = vadd.f32 %v3520_v53, %v2588_v52 }
 0x14b   :  { %v3522_v58 = vpop.f32.mrf.mxu1 }
 0x163   :  { %v3540_v60 = vpop.f32.mrf.mxu0 }
 0x165   :  { %v3562_v61 = vpop.f32.mrf.mxu1  ;;  %v3541_v62 = vpop.f32.mrf.mxu0 }
 0x166   :  { %v3542_v63 = vadd.f32 %v3541_v62, %v3540_v60 }
 0x167   :  { %v3563_v0 = vpop.f32.mrf.mxu1  ;;  %v3543_v1 = vpop.f32.mrf.mxu0 }
 0x168   :  { %v2668_v2 = vadd.f32 %v3542_v63, %v2628_v57  ;;  %v3564_v3 = vadd.f32 %v3563_v0, %v3562_v61 }
 0x169   :  { %v3565_v4 = vpop.f32.mrf.mxu1  ;;  %v3544_v5 = vpop.f32.mrf.mxu0 }
 0x16a   :  { %v2708_v6 = vadd.f32 %v3564_v3, %v2668_v2 }
 0x16b   :  { %v3566_v7 = vpop.f32.mrf.mxu1 }
 0x183   :  { %v3584_v8 = vpop.f32.mrf.mxu0 }
 0x185   :  { %v3606_v9 = vpop.f32.mrf.mxu1  ;;  %v3585_v10 = vpop.f32.mrf.mxu0 }
 0x186   :  { %v3586_v19 = vadd.f32 %v3585_v10, %v3584_v8 }
 0x187   :  { %v3607_v11 = vpop.f32.mrf.mxu1  ;;  %v3587_v12 = vpop.f32.mrf.mxu0 }
 0x188   :  { %v2748_v24 = vadd.f32 %v3586_v19, %v2708_v6  ;;  %v3608_v25 = vadd.f32 %v3607_v11, %v3606_v9 }
 0x189   :  { %v3609_v13 = vpop.f32.mrf.mxu1  ;;  %v3588_v14 = vpop.f32.mrf.mxu0 }
 0x18a   :  { %v2788_v27 = vadd.f32 %v3608_v25, %v2748_v24 }
 0x18b   :  { %v3610_v15 = vpop.f32.mrf.mxu1 }
 0x1a3   :  { %v3628_v16 = vpop.f32.mrf.mxu0 }
 0x1a5   :  { %v3650_v17 = vpop.f32.mrf.mxu1  ;;  %v3629_v18 = vpop.f32.mrf.mxu0 }
 0x1a6   :  { %v3630_v26 = vadd.f32 %v3629_v18, %v3628_v16 }
 0x1a7   :  { %v3651_v20 = vpop.f32.mrf.mxu1  ;;  %v3631_v21 = vpop.f32.mrf.mxu0 }
 0x1a8   :  { %v2828_v28 = vadd.f32 %v3630_v26, %v2788_v27  ;;  %v3652_v29 = vadd.f32 %v3651_v20, %v3650_v17 }
 0x1a9   :  { %v3653_v22 = vpop.f32.mrf.mxu1  ;;  %v3632_v23 = vpop.f32.mrf.mxu0 }
 0x1aa   :  { %v2868_v33 = vadd.f32 %v3652_v29, %v2828_v28 }
 0x1ab   :  { %v3654_v41 = vpop.f32.mrf.mxu1 }
 0x1c3   :  { %v3672_v30 = vpop.f32.mrf.mxu0 }
 0x1c5   :  { %v3694_v31 = vpop.f32.mrf.mxu1  ;;  %v3673_v32 = vpop.f32.mrf.mxu0 }
 0x1c6   :  { %v3674_v34 = vadd.f32 %v3673_v32, %v3672_v30 }
 0x1c7   :  { %v3695_v35 = vpop.f32.mrf.mxu1  ;;  %v3675_v36 = vpop.f32.mrf.mxu0 }
 0x1c8   :  { %v2908_v37 = vadd.f32 %v3674_v34, %v2868_v33  ;;  %v3696_v38 = vadd.f32 %v3695_v35, %v3694_v31 }
 0x1c9   :  { %v3697_v39 = vpop.f32.mrf.mxu1  ;;  %v3676_v40 = vpop.f32.mrf.mxu0 }
 0x1ca   :  { %v2948_v42 = vadd.f32 %v3696_v38, %v2908_v37 }
 0x1cb   :  { %v3698_v43 = vpop.f32.mrf.mxu1 }
 0x1cc   :  { %v2953_v44 = vmax.f32 %v2948_v42, 0.0 }
 0x1ce   :  { %v2954_v45 = vpack.c.bf16 %v2953_v44, %v2953_v44 }
 0x1d0   :  { %3726 = vmatmul.mubr.bf16.vlgmr.msra.gmra.mxu0 %v2954_v45 }
 0x290   :  { %v3060_v47 = vpop.f32.mrf.mxu0 }
 0x291   :  { %v3061_v48 = vadd.f32 %v3339_v46, %v3060_v47 }
 0x292   :  { %v3727_v49 = vpop.f32.mrf.mxu0 }
 0x293   :  { %v3066_v50 = vmax.f32 %v3061_v48, 0.0 }
 0x294   :  { %v3063_v51 = vpop.f32.mrf.mxu0 }
 0x295   :  { %3067 = vst [vmem:[#allocation2] sm:$0x3] %v3066_v50 }
 0x296   :  { %v3728_v52 = vpop.f32.mrf.mxu0 }
 0x297   :  { %4012 = shalt.err (!%p4009_p4)
}
 0x298   :  { %3077 = dma.vmem_to_hbm [thread:$0]  %s3075_s25, 32, %s4921_s5, [#allocation3]  }
 0x299   :  { %4021 = dma.done.wait [#allocation3], 32  }
 0x29a   :  { %4022 = vsyncadd [#allocation3], 4294967264 }
 0x29b   :  { %3081 = vsyncpa [#allocation3], 1 }

</bundles_post_ra>
